<compile_context>
chip_gen: v7x
topology: tpu7x:2x2x1
jax: 0.10.0
libtpu: 0.0.40
codegen_flags: <defaults>
</compile_context>

<pallas_src>
import jax
import jax.numpy as jnp
from jax.experimental import pallas as pl
from jax.experimental.pallas import tpu as pltpu


# ----------------------------------------------------------------------------
# Kernel A: ConvTranspose2d(C_in, C_in//2, kernel_size=2, stride=2)
#   One MXU matmul per sample: (H1*W1, C_in) @ (C_in, 4*C_half).
#   The 2x2 spatial interleave is done by the store layout, so the wrapper
#   reshape to (N, 2H1, 2W1, C_half) is free (contiguous).
# ----------------------------------------------------------------------------
def _make_upconv_kernel(H1, W1, C_half):
    two_c = 2 * C_half

    def kernel(x_ref, w_ref, b_ref, o_ref):
        # x_ref: (1, H1*W1, C_in)   w_ref: (C_in, 4*C_half)  b_ref: (1, 4*C_half)
        # o_ref: (1, H1, 2, W1, 2*C_half)   columns ordered (di, dj, co)
        planes = jnp.dot(x_ref[0], w_ref[...],
                         preferred_element_type=jnp.float32) + b_ref[...]
        for h in range(H1):
            rows = planes[h * W1:(h + 1) * W1, :]      # (W1, 4*C_half)
            o_ref[0, h, 0] = rows[:, :two_c]           # di = 0 -> (W1, (dj, co))
            o_ref[0, h, 1] = rows[:, two_c:]           # di = 1

    return kernel


def upconv2x2(x1_nhwc, wt, bt):
    """ConvTranspose2d(C_in, C_in//2, 2, stride=2); NHWC in -> NHWC out."""
    N, H1, W1, C_in = x1_nhwc.shape
    C_half = wt.shape[1]

    # w_up[ci, (di*2+dj)*C_half + co] = wt[ci, co, di, dj]
    w_up = jnp.transpose(wt, (0, 2, 3, 1)).reshape(C_in, 4 * C_half)
    w_up = w_up.astype(jnp.float32)
    b_up = jnp.tile(bt.astype(jnp.float32), 4).reshape(1, 4 * C_half)
    x_flat = x1_nhwc.reshape(N, H1 * W1, C_in).astype(jnp.float32)

    out = pl.pallas_call(
        _make_upconv_kernel(H1, W1, C_half),
        out_shape=jax.ShapeDtypeStruct((N, H1, 2, W1, 2 * C_half), jnp.float32),
        grid_spec=pltpu.PrefetchScalarGridSpec(
            num_scalar_prefetch=0,
            grid=(N,),
            in_specs=[
                pl.BlockSpec((1, H1 * W1, C_in), lambda n: (n, 0, 0)),
                pl.BlockSpec((C_in, 4 * C_half), lambda n: (0, 0)),
                pl.BlockSpec((1, 4 * C_half), lambda n: (0, 0)),
            ],
            out_specs=pl.BlockSpec((1, H1, 2, W1, 2 * C_half),
                                   lambda n: (n, 0, 0, 0, 0)),
        ),
        compiler_params=pltpu.CompilerParams(
            dimension_semantics=("parallel",),
            vmem_limit_bytes=32 * 1024 * 1024),
    )(x_flat, w_up, b_up)

    # (N, H1, 2, W1, 2*C_half) -> (N, 2H1, 2W1, C_half): contiguous, free.
    return out.reshape(N, 2 * H1, 2 * W1, C_half)


# ----------------------------------------------------------------------------
# Kernel B: fused  F.pad + concat + conv3x3+BN+ReLU + conv3x3+BN+ReLU.
#   Per sample, the padded concat lives as two flat (Sx, C_half) VMEM slabs
#   (x2 part / up part).  Each conv is 9 taps; each tap is a sublane-offset
#   slice of the flat slab and one MXU matmul contracting over channels.
# ----------------------------------------------------------------------------
def _make_doubleconv_kernel(H, W, H_up, W_up, oY, oX, C_half, C_mid, C_out):
    Wx = W + 4                 # padded width (2-px halo each side)
    Sx = (H + 4) * Wx          # flat padded extent
    band = H * Wx              # computed band: padded-grid rows 2 .. H+1
    base = 2 * Wx

    def kernel(x2_ref, up_ref, mask_ref, w1a_ref, w1b_ref, b1_ref,
               w2_ref, b2_ref, o_ref, a_ref, b_ref, h_ref):
        # ---- build padded inputs in VMEM (F.pad + concat fused, no HBM pads)
        a_ref[...] = jnp.zeros((Sx, C_half), jnp.float32)
        b_ref[...] = jnp.zeros((Sx, C_half), jnp.float32)
        for i in range(H):
            a_ref[pl.ds((i + 2) * Wx + 2, W), :] = x2_ref[0, i]
        for i in range(H_up):
            b_ref[pl.ds((i + 2 + oY) * Wx + (2 + oX), W_up), :] = up_ref[0, i]

        # ---- conv1 (+ folded BN1) + ReLU : 9 taps x 2 slabs, MXU matmuls
        acc = jnp.zeros((band, C_mid), jnp.float32) + b1_ref[...]
        for dh in range(3):
            for dw in range(3):
                k = dh * 3 + dw
                off = base + (dh - 1) * Wx + (dw - 1)
                acc = acc + jnp.dot(a_ref[pl.ds(off, band), :], w1a_ref[k],
                                    preferred_element_type=jnp.float32)
                acc = acc + jnp.dot(b_ref[pl.ds(off, band), :], w1b_ref[k],
                                    preferred_element_type=jnp.float32)
        # hidden activation with built-in zero ring (acts as conv2's padding)
        h_ref[pl.ds(0, base), :] = jnp.zeros((base, C_mid), jnp.float32)
        h_ref[pl.ds(base + band, 2 * Wx), :] = jnp.zeros((2 * Wx, C_mid),
                                                         jnp.float32)
        h_ref[pl.ds(base, band), :] = jnp.maximum(acc, 0.0) * mask_ref[...]

        # ---- conv2 (+ folded BN2) + ReLU
        acc2 = jnp.zeros((band, C_out), jnp.float32) + b2_ref[...]
        for dh in range(3):
            for dw in range(3):
                k = dh * 3 + dw
                off = base + (dh - 1) * Wx + (dw - 1)
                acc2 = acc2 + jnp.dot(h_ref[pl.ds(off, band), :], w2_ref[k],
                                      preferred_element_type=jnp.float32)
        o_ref[0] = jnp.maximum(acc2, 0.0)

    return kernel


# ----------------------------------------------------------------------------
# Full Up.forward (bilinear=False): up -> pad -> concat -> DoubleConv
# ----------------------------------------------------------------------------
def up_forward(x1, x2, params):
    N, C_in, H1, W1 = x1.shape
    _, C_skip, H2, W2 = x2.shape
    C_half = C_in // 2
    assert C_skip == C_half
    H_up, W_up = 2 * H1, 2 * W1
    dY, dX = H2 - H_up, W2 - W_up
    assert dY >= 0 and dX >= 0   # negative diffs (crop) not modeled
    oY, oX = dY // 2, dX // 2

    # NCHW -> NHWC (channels on lanes for the MXU contraction layout).
    x1_nhwc = jnp.transpose(x1, (0, 2, 3, 1)).astype(jnp.float32)
    x2_nhwc = jnp.transpose(x2, (0, 2, 3, 1)).astype(jnp.float32)

    up_nhwc = upconv2x2(x1_nhwc, params["wt"], params["bt"])   # (N, 2H1, 2W1, C_half)

    # Fold BatchNorm (inference mode) into conv weights / biases.
    eps = 1e-5
    s1 = params["g1"] / jnp.sqrt(params["v1"] + eps)
    w1e = (params["w1"] * s1[:, None, None, None]).astype(jnp.float32)
    b1e = ((params["b1"] - params["m1"]) * s1 + params["be1"]).astype(jnp.float32)
    s2 = params["g2"] / jnp.sqrt(params["v2"] + eps)
    w2e = (params["w2"] * s2[:, None, None, None]).astype(jnp.float32)
    b2e = ((params["b2"] - params["m2"]) * s2 + params["be2"]).astype(jnp.float32)

    C_mid, C_cat = w1e.shape[0], w1e.shape[1]
    C_out = w2e.shape[0]
    assert C_cat == C_in

    # Per-tap weight matrices for the channel contraction on the MXU.
    # Concat order is [x2, up]: w1a = first C_half input channels, w1b = rest.
    w1a = jnp.transpose(w1e[:, :C_half], (2, 3, 1, 0)).reshape(9, C_half, C_mid)
    w1b = jnp.transpose(w1e[:, C_half:], (2, 3, 1, 0)).reshape(9, C_half, C_mid)
    w2r = jnp.transpose(w2e, (2, 3, 1, 0)).reshape(9, C_mid, C_out)
    b1r = b1e.reshape(1, C_mid)
    b2r = b2e.reshape(1, C_out)

    Wx = W2 + 4
    band = H2 * Wx
    Sx = (H2 + 4) * Wx
    col = jnp.arange(band, dtype=jnp.int32) % Wx
    mask = ((col >= 2) & (col <= W2 + 1)).astype(jnp.float32).reshape(band, 1)

    out_flat = pl.pallas_call(
        _make_doubleconv_kernel(H2, W2, H_up, W_up, oY, oX,
                                C_half, C_mid, C_out),
        out_shape=jax.ShapeDtypeStruct((N, band, C_out), jnp.float32),
        grid_spec=pltpu.PrefetchScalarGridSpec(
            num_scalar_prefetch=0,
            grid=(N,),
            in_specs=[
                pl.BlockSpec((1, H2, W2, C_half), lambda n: (n, 0, 0, 0)),
                pl.BlockSpec((1, H_up, W_up, C_half), lambda n: (n, 0, 0, 0)),
                pl.BlockSpec((band, 1), lambda n: (0, 0)),
                pl.BlockSpec((9, C_half, C_mid), lambda n: (0, 0, 0)),
                pl.BlockSpec((9, C_half, C_mid), lambda n: (0, 0, 0)),
                pl.BlockSpec((1, C_mid), lambda n: (0, 0)),
                pl.BlockSpec((9, C_mid, C_out), lambda n: (0, 0, 0)),
                pl.BlockSpec((1, C_out), lambda n: (0, 0)),
            ],
            out_specs=pl.BlockSpec((1, band, C_out), lambda n: (n, 0, 0)),
            scratch_shapes=[
                pltpu.VMEM((Sx, C_half), jnp.float32),   # padded x2 slab
                pltpu.VMEM((Sx, C_half), jnp.float32),   # padded up slab
                pltpu.VMEM((Sx, C_mid), jnp.float32),    # hidden act. + zero ring
            ],
        ),
        compiler_params=pltpu.CompilerParams(
            dimension_semantics=("parallel",),
            vmem_limit_bytes=32 * 1024 * 1024),
    )(x2_nhwc, up_nhwc, mask, w1a, w1b, b1r, w2r, b2r)

    # (N, H2*Wx, C_out) -> valid columns -> NCHW
    out = out_flat.reshape(N, H2, Wx, C_out)[:, :, 2:2 + W2, :]
    return jnp.transpose(out, (0, 3, 1, 2))


# ----------------------------------------------------------------------------
# Pure-JAX reference (unfused, BN applied explicitly in eval mode)
# ----------------------------------------------------------------------------
def reference_up(x1, x2, p, eps=1e-5):
    N, C_in, H1, W1 = x1.shape
    C_half = C_in // 2
    up = jnp.einsum("ncij,codk->noidjk", x1, p["wt"]).reshape(
        N, C_half, 2 * H1, 2 * W1) + p["bt"][None, :, None, None]
    H2, W2 = x2.shape[2], x2.shape[3]
    dY, dX = H2 - 2 * H1, W2 - 2 * W1
    up = jnp.pad(up, ((0, 0), (0, 0), (dY // 2, dY - dY // 2),
                      (dX // 2, dX - dX // 2)))
    x = jnp.concatenate([x2, up], axis=1)

    def conv3(x, w, b):
        y = jax.lax.conv_general_dilated(
            x, w, window_strides=(1, 1), padding=((1, 1), (1, 1)),
            dimension_numbers=("NCHW", "OIHW", "NCHW"))
        return y + b[None, :, None, None]

    def bn(x, g, be, m, v):
        return (g[None, :, None, None] * (x - m[None, :, None, None])
                / jnp.sqrt(v[None, :, None, None] + eps)
                + be[None, :, None, None])

    h = jax.nn.relu(bn(conv3(x, p["w1"], p["b1"]),
                       p["g1"], p["be1"], p["m1"], p["v1"]))
    y = jax.nn.relu(bn(conv3(h, p["w2"], p["b2"]),
                       p["g2"], p["be2"], p["m2"], p["v2"]))
    return y


if __name__ == "__main__":
    key = jax.random.PRNGKey(0)
    ks = jax.random.split(key, 16)

    # Up(in_channels=4, out_channels=2, bilinear=False)
    N, C_in, H1, W1 = 2, 4, 8, 8
    C_half = C_in // 2
    C_out = 2
    H2, W2 = 2 * H1, 2 * W1           # skip connection size (diff = 0)

    x1 = jax.random.normal(ks[0], (N, C_in, H1, W1), jnp.float32)
    x2 = jax.random.normal(ks[1], (N, C_half, H2, W2), jnp.float32)

    def uni(k, shape, bound):
        return jax.random.uniform(k, shape, jnp.float32, -bound, bound)

    bt_b = 1.0 / (C_in * 2 * 2) ** 0.5
    b1_b = 1.0 / (C_in * 3 * 3) ** 0.5
    b2_b = 1.0 / (C_out * 3 * 3) ** 0.5
    params = {
        # ConvTranspose2d(C_in, C_in//2, kernel_size=2, stride=2)
        "wt": uni(ks[2], (C_in, C_half, 2, 2), bt_b),
        "bt": uni(ks[3], (C_half,), bt_b),
        # Conv2d(C_in, C_out, 3, padding=1) + BatchNorm2d(C_out)
        "w1": uni(ks[4], (C_out, C_in, 3, 3), b1_b),
        "b1": uni(ks[5], (C_out,), b1_b),
        "g1": jax.random.uniform(ks[6], (C_out,), jnp.float32, 0.5, 1.5),
        "be1": 0.1 * jax.random.normal(ks[7], (C_out,), jnp.float32),
        "m1": 0.1 * jax.random.normal(ks[8], (C_out,), jnp.float32),
        "v1": jax.random.uniform(ks[9], (C_out,), jnp.float32, 0.5, 1.5),
        # Conv2d(C_out, C_out, 3, padding=1) + BatchNorm2d(C_out)
        "w2": uni(ks[10], (C_out, C_out, 3, 3), b2_b),
        "b2": uni(ks[11], (C_out,), b2_b),
        "g2": jax.random.uniform(ks[12], (C_out,), jnp.float32, 0.5, 1.5),
        "be2": 0.1 * jax.random.normal(ks[13], (C_out,), jnp.float32),
        "m2": 0.1 * jax.random.normal(ks[14], (C_out,), jnp.float32),
        "v2": jax.random.uniform(ks[15], (C_out,), jnp.float32, 0.5, 1.5),
    }

    out = jax.jit(up_forward)(x1, x2, params)
    out = jax.block_until_ready(out)

    ref = reference_up(x1, x2, params)
    assert out.shape == (N, C_out, H2, W2), out.shape
    max_err = float(jnp.max(jnp.abs(out - ref)))
    assert jnp.allclose(out, ref, atol=1e-4, rtol=1e-4), max_err

    print("KERNEL_OK")
</pallas_src>

<mosaic_0001>
module attributes {stable_mosaic.version = 11 : i64} {
  func.func @kernel(%arg0: i32, %arg1: memref<1x64x4xf32, #tpu.memory_space<vmem>>, %arg2: memref<4x8xf32, #tpu.memory_space<vmem>>, %arg3: memref<1x8xf32, #tpu.memory_space<vmem>>, %arg4: memref<1x8x2x8x4xf32, #tpu.memory_space<vmem>>) attributes {dimension_semantics = [#tpu.dimension_semantics<parallel>], iteration_bounds = array<i64: 2>, scalar_prefetch = 0 : i64, scratch_operands = 0 : i64, tpu.core_type = #tpu.core_type<tc>, window_params = [{transform_indices = @transform_0, window_bounds = array<i64: 1, 64, 4>}, {pipeline_mode = #tpu.pipeline_mode<synchronous>, transform_indices = @transform_1, window_bounds = array<i64: 4, 8>}, {pipeline_mode = #tpu.pipeline_mode<synchronous>, transform_indices = @transform_2, window_bounds = array<i64: 1, 8>}, {transform_indices = @transform_3, window_bounds = array<i64: 1, 8, 2, 8, 4>}]} {
    %c0 = arith.constant 0 : index
    %c0_0 = arith.constant 0 : index
    %c0_1 = arith.constant 0 : index
    %0 = vector.load %arg1[%c0, %c0_0, %c0_1] : memref<1x64x4xf32, #tpu.memory_space<vmem>>, vector<1x64x4xf32>
    %1 = vector.shape_cast %0 : vector<1x64x4xf32> to vector<64x4xf32>
    %c0_2 = arith.constant 0 : index
    %c0_3 = arith.constant 0 : index
    %2 = vector.load %arg2[%c0_2, %c0_3] : memref<4x8xf32, #tpu.memory_space<vmem>>, vector<4x8xf32>
    %cst = arith.constant dense<0.000000e+00> : vector<64x8xf32>
    %3 = tpu.matmul %1, %2, %cst {dimension_numbers = #tpu.dot_dimension_numbers<[1], [0], [0], [1], [0, 0, 1, 1], [], []>} : vector<64x4xf32>, vector<4x8xf32>, vector<64x8xf32> -> vector<64x8xf32>
    %c0_4 = arith.constant 0 : index
    %c0_5 = arith.constant 0 : index
    %4 = vector.load %arg3[%c0_4, %c0_5] : memref<1x8xf32, #tpu.memory_space<vmem>>, vector<1x8xf32>
    %5 = vector.broadcast %4 : vector<1x8xf32> to vector<64x8xf32>
    %6 = arith.addf %3, %5 : vector<64x8xf32>
    %7 = vector.extract_strided_slice %6 {offsets = [0, 0], sizes = [8, 8], strides = [1, 1]} : vector<64x8xf32> to vector<8x8xf32>
    %8 = vector.extract_strided_slice %7 {offsets = [0, 0], sizes = [8, 4], strides = [1, 1]} : vector<8x8xf32> to vector<8x4xf32>
    %c0_6 = arith.constant 0 : index
    %c0_7 = arith.constant 0 : index
    %c0_8 = arith.constant 0 : index
    %c0_9 = arith.constant 0 : index
    %c0_10 = arith.constant 0 : index
    %9 = vector.load %arg4[%c0_6, %c0_7, %c0_8, %c0_9, %c0_10] : memref<1x8x2x8x4xf32, #tpu.memory_space<vmem>>, vector<1x1x1x8x4xf32>
    %10 = vector.shape_cast %9 : vector<1x1x1x8x4xf32> to vector<8x4xf32>
    %11 = vector.shape_cast %8 : vector<8x4xf32> to vector<1x1x1x8x4xf32>
    tpu.vector_store %arg4[%c0_6, %c0_7, %c0_8, %c0_9, %c0_10], %11 {strides = array<i32>} : memref<1x8x2x8x4xf32, #tpu.memory_space<vmem>>, vector<1x1x1x8x4xf32>,
    %12 = vector.extract_strided_slice %7 {offsets = [0, 4], sizes = [8, 4], strides = [1, 1]} : vector<8x8xf32> to vector<8x4xf32>
    %c0_11 = arith.constant 0 : index
    %c0_12 = arith.constant 0 : index
    %c1 = arith.constant 1 : index
    %c0_13 = arith.constant 0 : index
    %c0_14 = arith.constant 0 : index
    %13 = vector.load %arg4[%c0_11, %c0_12, %c1, %c0_13, %c0_14] : memref<1x8x2x8x4xf32, #tpu.memory_space<vmem>>, vector<1x1x1x8x4xf32>
    %14 = vector.shape_cast %13 : vector<1x1x1x8x4xf32> to vector<8x4xf32>
    %15 = vector.shape_cast %12 : vector<8x4xf32> to vector<1x1x1x8x4xf32>
    tpu.vector_store %arg4[%c0_11, %c0_12, %c1, %c0_13, %c0_14], %15 {strides = array<i32>} : memref<1x8x2x8x4xf32, #tpu.memory_space<vmem>>, vector<1x1x1x8x4xf32>,
    %16 = vector.extract_strided_slice %6 {offsets = [8, 0], sizes = [8, 8], strides = [1, 1]} : vector<64x8xf32> to vector<8x8xf32>
    %17 = vector.extract_strided_slice %16 {offsets = [0, 0], sizes = [8, 4], strides = [1, 1]} : vector<8x8xf32> to vector<8x4xf32>
    %c0_15 = arith.constant 0 : index
    %c1_16 = arith.constant 1 : index
    %c0_17 = arith.constant 0 : index
    %c0_18 = arith.constant 0 : index
    %c0_19 = arith.constant 0 : index
    %18 = vector.load %arg4[%c0_15, %c1_16, %c0_17, %c0_18, %c0_19] : memref<1x8x2x8x4xf32, #tpu.memory_space<vmem>>, vector<1x1x1x8x4xf32>
    %19 = vector.shape_cast %18 : vector<1x1x1x8x4xf32> to vector<8x4xf32>
    %20 = vector.shape_cast %17 : vector<8x4xf32> to vector<1x1x1x8x4xf32>
    tpu.vector_store %arg4[%c0_15, %c1_16, %c0_17, %c0_18, %c0_19], %20 {strides = array<i32>} : memref<1x8x2x8x4xf32, #tpu.memory_space<vmem>>, vector<1x1x1x8x4xf32>,
    %21 = vector.extract_strided_slice %16 {offsets = [0, 4], sizes = [8, 4], strides = [1, 1]} : vector<8x8xf32> to vector<8x4xf32>
    %c0_20 = arith.constant 0 : index
    %c1_21 = arith.constant 1 : index
    %c1_22 = arith.constant 1 : index
    %c0_23 = arith.constant 0 : index
    %c0_24 = arith.constant 0 : index
    %22 = vector.load %arg4[%c0_20, %c1_21, %c1_22, %c0_23, %c0_24] : memref<1x8x2x8x4xf32, #tpu.memory_space<vmem>>, vector<1x1x1x8x4xf32>
    %23 = vector.shape_cast %22 : vector<1x1x1x8x4xf32> to vector<8x4xf32>
    %24 = vector.shape_cast %21 : vector<8x4xf32> to vector<1x1x1x8x4xf32>
    tpu.vector_store %arg4[%c0_20, %c1_21, %c1_22, %c0_23, %c0_24], %24 {strides = array<i32>} : memref<1x8x2x8x4xf32, #tpu.memory_space<vmem>>, vector<1x1x1x8x4xf32>,
    %25 = vector.extract_strided_slice %6 {offsets = [16, 0], sizes = [8, 8], strides = [1, 1]} : vector<64x8xf32> to vector<8x8xf32>
    %26 = vector.extract_strided_slice %25 {offsets = [0, 0], sizes = [8, 4], strides = [1, 1]} : vector<8x8xf32> to vector<8x4xf32>
    %c0_25 = arith.constant 0 : index
    %c2 = arith.constant 2 : index
    %c0_26 = arith.constant 0 : index
    %c0_27 = arith.constant 0 : index
    %c0_28 = arith.constant 0 : index
    %27 = vector.load %arg4[%c0_25, %c2, %c0_26, %c0_27, %c0_28] : memref<1x8x2x8x4xf32, #tpu.memory_space<vmem>>, vector<1x1x1x8x4xf32>
    %28 = vector.shape_cast %27 : vector<1x1x1x8x4xf32> to vector<8x4xf32>
    %29 = vector.shape_cast %26 : vector<8x4xf32> to vector<1x1x1x8x4xf32>
    tpu.vector_store %arg4[%c0_25, %c2, %c0_26, %c0_27, %c0_28], %29 {strides = array<i32>} : memref<1x8x2x8x4xf32, #tpu.memory_space<vmem>>, vector<1x1x1x8x4xf32>,
    %30 = vector.extract_strided_slice %25 {offsets = [0, 4], sizes = [8, 4], strides = [1, 1]} : vector<8x8xf32> to vector<8x4xf32>
    %c0_29 = arith.constant 0 : index
    %c2_30 = arith.constant 2 : index
    %c1_31 = arith.constant 1 : index
    %c0_32 = arith.constant 0 : index
    %c0_33 = arith.constant 0 : index
    %31 = vector.load %arg4[%c0_29, %c2_30, %c1_31, %c0_32, %c0_33] : memref<1x8x2x8x4xf32, #tpu.memory_space<vmem>>, vector<1x1x1x8x4xf32>
    %32 = vector.shape_cast %31 : vector<1x1x1x8x4xf32> to vector<8x4xf32>
    %33 = vector.shape_cast %30 : vector<8x4xf32> to vector<1x1x1x8x4xf32>
    tpu.vector_store %arg4[%c0_29, %c2_30, %c1_31, %c0_32, %c0_33], %33 {strides = array<i32>} : memref<1x8x2x8x4xf32, #tpu.memory_space<vmem>>, vector<1x1x1x8x4xf32>,
    %34 = vector.extract_strided_slice %6 {offsets = [24, 0], sizes = [8, 8], strides = [1, 1]} : vector<64x8xf32> to vector<8x8xf32>
    %35 = vector.extract_strided_slice %34 {offsets = [0, 0], sizes = [8, 4], strides = [1, 1]} : vector<8x8xf32> to vector<8x4xf32>
    %c0_34 = arith.constant 0 : index
    %c3 = arith.constant 3 : index
    %c0_35 = arith.constant 0 : index
    %c0_36 = arith.constant 0 : index
    %c0_37 = arith.constant 0 : index
    %36 = vector.load %arg4[%c0_34, %c3, %c0_35, %c0_36, %c0_37] : memref<1x8x2x8x4xf32, #tpu.memory_space<vmem>>, vector<1x1x1x8x4xf32>
    %37 = vector.shape_cast %36 : vector<1x1x1x8x4xf32> to vector<8x4xf32>
    %38 = vector.shape_cast %35 : vector<8x4xf32> to vector<1x1x1x8x4xf32>
    tpu.vector_store %arg4[%c0_34, %c3, %c0_35, %c0_36, %c0_37], %38 {strides = array<i32>} : memref<1x8x2x8x4xf32, #tpu.memory_space<vmem>>, vector<1x1x1x8x4xf32>,
    %39 = vector.extract_strided_slice %34 {offsets = [0, 4], sizes = [8, 4], strides = [1, 1]} : vector<8x8xf32> to vector<8x4xf32>
    %c0_38 = arith.constant 0 : index
    %c3_39 = arith.constant 3 : index
    %c1_40 = arith.constant 1 : index
    %c0_41 = arith.constant 0 : index
    %c0_42 = arith.constant 0 : index
    %40 = vector.load %arg4[%c0_38, %c3_39, %c1_40, %c0_41, %c0_42] : memref<1x8x2x8x4xf32, #tpu.memory_space<vmem>>, vector<1x1x1x8x4xf32>
    %41 = vector.shape_cast %40 : vector<1x1x1x8x4xf32> to vector<8x4xf32>
    %42 = vector.shape_cast %39 : vector<8x4xf32> to vector<1x1x1x8x4xf32>
    tpu.vector_store %arg4[%c0_38, %c3_39, %c1_40, %c0_41, %c0_42], %42 {strides = array<i32>} : memref<1x8x2x8x4xf32, #tpu.memory_space<vmem>>, vector<1x1x1x8x4xf32>,
    %43 = vector.extract_strided_slice %6 {offsets = [32, 0], sizes = [8, 8], strides = [1, 1]} : vector<64x8xf32> to vector<8x8xf32>
    %44 = vector.extract_strided_slice %43 {offsets = [0, 0], sizes = [8, 4], strides = [1, 1]} : vector<8x8xf32> to vector<8x4xf32>
    %c0_43 = arith.constant 0 : index
    %c4 = arith.constant 4 : index
    %c0_44 = arith.constant 0 : index
    %c0_45 = arith.constant 0 : index
    %c0_46 = arith.constant 0 : index
    %45 = vector.load %arg4[%c0_43, %c4, %c0_44, %c0_45, %c0_46] : memref<1x8x2x8x4xf32, #tpu.memory_space<vmem>>, vector<1x1x1x8x4xf32>
    %46 = vector.shape_cast %45 : vector<1x1x1x8x4xf32> to vector<8x4xf32>
    %47 = vector.shape_cast %44 : vector<8x4xf32> to vector<1x1x1x8x4xf32>
    tpu.vector_store %arg4[%c0_43, %c4, %c0_44, %c0_45, %c0_46], %47 {strides = array<i32>} : memref<1x8x2x8x4xf32, #tpu.memory_space<vmem>>, vector<1x1x1x8x4xf32>,
    %48 = vector.extract_strided_slice %43 {offsets = [0, 4], sizes = [8, 4], strides = [1, 1]} : vector<8x8xf32> to vector<8x4xf32>
    %c0_47 = arith.constant 0 : index
    %c4_48 = arith.constant 4 : index
    %c1_49 = arith.constant 1 : index
    %c0_50 = arith.constant 0 : index
    %c0_51 = arith.constant 0 : index
    %49 = vector.load %arg4[%c0_47, %c4_48, %c1_49, %c0_50, %c0_51] : memref<1x8x2x8x4xf32, #tpu.memory_space<vmem>>, vector<1x1x1x8x4xf32>
    %50 = vector.shape_cast %49 : vector<1x1x1x8x4xf32> to vector<8x4xf32>
    %51 = vector.shape_cast %48 : vector<8x4xf32> to vector<1x1x1x8x4xf32>
    tpu.vector_store %arg4[%c0_47, %c4_48, %c1_49, %c0_50, %c0_51], %51 {strides = array<i32>} : memref<1x8x2x8x4xf32, #tpu.memory_space<vmem>>, vector<1x1x1x8x4xf32>,
    %52 = vector.extract_strided_slice %6 {offsets = [40, 0], sizes = [8, 8], strides = [1, 1]} : vector<64x8xf32> to vector<8x8xf32>
    %53 = vector.extract_strided_slice %52 {offsets = [0, 0], sizes = [8, 4], strides = [1, 1]} : vector<8x8xf32> to vector<8x4xf32>
    %c0_52 = arith.constant 0 : index
    %c5 = arith.constant 5 : index
    %c0_53 = arith.constant 0 : index
    %c0_54 = arith.constant 0 : index
    %c0_55 = arith.constant 0 : index
    %54 = vector.load %arg4[%c0_52, %c5, %c0_53, %c0_54, %c0_55] : memref<1x8x2x8x4xf32, #tpu.memory_space<vmem>>, vector<1x1x1x8x4xf32>
    %55 = vector.shape_cast %54 : vector<1x1x1x8x4xf32> to vector<8x4xf32>
    %56 = vector.shape_cast %53 : vector<8x4xf32> to vector<1x1x1x8x4xf32>
    tpu.vector_store %arg4[%c0_52, %c5, %c0_53, %c0_54, %c0_55], %56 {strides = array<i32>} : memref<1x8x2x8x4xf32, #tpu.memory_space<vmem>>, vector<1x1x1x8x4xf32>,
    %57 = vector.extract_strided_slice %52 {offsets = [0, 4], sizes = [8, 4], strides = [1, 1]} : vector<8x8xf32> to vector<8x4xf32>
    %c0_56 = arith.constant 0 : index
    %c5_57 = arith.constant 5 : index
    %c1_58 = arith.constant 1 : index
    %c0_59 = arith.constant 0 : index
    %c0_60 = arith.constant 0 : index
    %58 = vector.load %arg4[%c0_56, %c5_57, %c1_58, %c0_59, %c0_60] : memref<1x8x2x8x4xf32, #tpu.memory_space<vmem>>, vector<1x1x1x8x4xf32>
    %59 = vector.shape_cast %58 : vector<1x1x1x8x4xf32> to vector<8x4xf32>
    %60 = vector.shape_cast %57 : vector<8x4xf32> to vector<1x1x1x8x4xf32>
    tpu.vector_store %arg4[%c0_56, %c5_57, %c1_58, %c0_59, %c0_60], %60 {strides = array<i32>} : memref<1x8x2x8x4xf32, #tpu.memory_space<vmem>>, vector<1x1x1x8x4xf32>,
    %61 = vector.extract_strided_slice %6 {offsets = [48, 0], sizes = [8, 8], strides = [1, 1]} : vector<64x8xf32> to vector<8x8xf32>
    %62 = vector.extract_strided_slice %61 {offsets = [0, 0], sizes = [8, 4], strides = [1, 1]} : vector<8x8xf32> to vector<8x4xf32>
    %c0_61 = arith.constant 0 : index
    %c6 = arith.constant 6 : index
    %c0_62 = arith.constant 0 : index
    %c0_63 = arith.constant 0 : index
    %c0_64 = arith.constant 0 : index
    %63 = vector.load %arg4[%c0_61, %c6, %c0_62, %c0_63, %c0_64] : memref<1x8x2x8x4xf32, #tpu.memory_space<vmem>>, vector<1x1x1x8x4xf32>
    %64 = vector.shape_cast %63 : vector<1x1x1x8x4xf32> to vector<8x4xf32>
    %65 = vector.shape_cast %62 : vector<8x4xf32> to vector<1x1x1x8x4xf32>
    tpu.vector_store %arg4[%c0_61, %c6, %c0_62, %c0_63, %c0_64], %65 {strides = array<i32>} : memref<1x8x2x8x4xf32, #tpu.memory_space<vmem>>, vector<1x1x1x8x4xf32>,
    %66 = vector.extract_strided_slice %61 {offsets = [0, 4], sizes = [8, 4], strides = [1, 1]} : vector<8x8xf32> to vector<8x4xf32>
    %c0_65 = arith.constant 0 : index
    %c6_66 = arith.constant 6 : index
    %c1_67 = arith.constant 1 : index
    %c0_68 = arith.constant 0 : index
    %c0_69 = arith.constant 0 : index
    %67 = vector.load %arg4[%c0_65, %c6_66, %c1_67, %c0_68, %c0_69] : memref<1x8x2x8x4xf32, #tpu.memory_space<vmem>>, vector<1x1x1x8x4xf32>
    %68 = vector.shape_cast %67 : vector<1x1x1x8x4xf32> to vector<8x4xf32>
    %69 = vector.shape_cast %66 : vector<8x4xf32> to vector<1x1x1x8x4xf32>
    tpu.vector_store %arg4[%c0_65, %c6_66, %c1_67, %c0_68, %c0_69], %69 {strides = array<i32>} : memref<1x8x2x8x4xf32, #tpu.memory_space<vmem>>, vector<1x1x1x8x4xf32>,
    %70 = vector.extract_strided_slice %6 {offsets = [56, 0], sizes = [8, 8], strides = [1, 1]} : vector<64x8xf32> to vector<8x8xf32>
    %71 = vector.extract_strided_slice %70 {offsets = [0, 0], sizes = [8, 4], strides = [1, 1]} : vector<8x8xf32> to vector<8x4xf32>
    %c0_70 = arith.constant 0 : index
    %c7 = arith.constant 7 : index
    %c0_71 = arith.constant 0 : index
    %c0_72 = arith.constant 0 : index
    %c0_73 = arith.constant 0 : index
    %72 = vector.load %arg4[%c0_70, %c7, %c0_71, %c0_72, %c0_73] : memref<1x8x2x8x4xf32, #tpu.memory_space<vmem>>, vector<1x1x1x8x4xf32>
    %73 = vector.shape_cast %72 : vector<1x1x1x8x4xf32> to vector<8x4xf32>
    %74 = vector.shape_cast %71 : vector<8x4xf32> to vector<1x1x1x8x4xf32>
    tpu.vector_store %arg4[%c0_70, %c7, %c0_71, %c0_72, %c0_73], %74 {strides = array<i32>} : memref<1x8x2x8x4xf32, #tpu.memory_space<vmem>>, vector<1x1x1x8x4xf32>,
    %75 = vector.extract_strided_slice %70 {offsets = [0, 4], sizes = [8, 4], strides = [1, 1]} : vector<8x8xf32> to vector<8x4xf32>
    %c0_74 = arith.constant 0 : index
    %c7_75 = arith.constant 7 : index
    %c1_76 = arith.constant 1 : index
    %c0_77 = arith.constant 0 : index
    %c0_78 = arith.constant 0 : index
    %76 = vector.load %arg4[%c0_74, %c7_75, %c1_76, %c0_77, %c0_78] : memref<1x8x2x8x4xf32, #tpu.memory_space<vmem>>, vector<1x1x1x8x4xf32>
    %77 = vector.shape_cast %76 : vector<1x1x1x8x4xf32> to vector<8x4xf32>
    %78 = vector.shape_cast %75 : vector<8x4xf32> to vector<1x1x1x8x4xf32>
    tpu.vector_store %arg4[%c0_74, %c7_75, %c1_76, %c0_77, %c0_78], %78 {strides = array<i32>} : memref<1x8x2x8x4xf32, #tpu.memory_space<vmem>>, vector<1x1x1x8x4xf32>,
    return
  }
  func.func @transform_0(%arg0: i32) -> (i32, i32, i32) {
    %c0_i32 = arith.constant 0 : i32
    %c0_i32_0 = arith.constant 0 : i32
    %c0_i32_1 = arith.constant 0 : i32
    return %arg0, %c0_i32, %c0_i32_0 : i32, i32, i32
  }
  func.func @transform_1(%arg0: i32) -> (i32, i32) {
    %c0_i32 = arith.constant 0 : i32
    %c0_i32_0 = arith.constant 0 : i32
    %c0_i32_1 = arith.constant 0 : i32
    return %c0_i32, %c0_i32_0 : i32, i32
  }
  func.func @transform_2(%arg0: i32) -> (i32, i32) {
    %c0_i32 = arith.constant 0 : i32
    %c0_i32_0 = arith.constant 0 : i32
    %c0_i32_1 = arith.constant 0 : i32
    return %c0_i32, %c0_i32_0 : i32, i32
  }
  func.func @transform_3(%arg0: i32) -> (i32, i32, i32, i32, i32) {
    %c0_i32 = arith.constant 0 : i32
    %c0_i32_0 = arith.constant 0 : i32
    %c0_i32_1 = arith.constant 0 : i32
    %c0_i32_2 = arith.constant 0 : i32
    %c0_i32_3 = arith.constant 0 : i32
    return %arg0, %c0_i32, %c0_i32_0, %c0_i32_1, %c0_i32_2 : i32, i32, i32, i32, i32
  }
}

module attributes {stable_mosaic.version = 11 : i64} {
  func.func @kernel(%arg0: i32, %arg1: memref<1x16x16x2xf32, #tpu.memory_space<vmem>>, %arg2: memref<1x16x16x2xf32, #tpu.memory_space<vmem>>, %arg3: memref<320x1xf32, #tpu.memory_space<vmem>>, %arg4: memref<9x2x2xf32, #tpu.memory_space<vmem>>, %arg5: memref<9x2x2xf32, #tpu.memory_space<vmem>>, %arg6: memref<1x2xf32, #tpu.memory_space<vmem>>, %arg7: memref<9x2x2xf32, #tpu.memory_space<vmem>>, %arg8: memref<1x2xf32, #tpu.memory_space<vmem>>, %arg9: memref<1x320x2xf32, #tpu.memory_space<vmem>>, %arg10: memref<400x2xf32, #tpu.memory_space<vmem>>, %arg11: memref<400x2xf32, #tpu.memory_space<vmem>>, %arg12: memref<400x2xf32, #tpu.memory_space<vmem>>) attributes {dimension_semantics = [#tpu.dimension_semantics<parallel>], iteration_bounds = array<i64: 2>, scalar_prefetch = 0 : i64, scratch_operands = 3 : i64, tpu.core_type = #tpu.core_type<tc>, window_params = [{transform_indices = @transform_0, window_bounds = array<i64: 1, 16, 16, 2>}, {transform_indices = @transform_1, window_bounds = array<i64: 1, 16, 16, 2>}, {pipeline_mode = #tpu.pipeline_mode<synchronous>, transform_indices = @transform_2, window_bounds = array<i64: 320, 1>}, {pipeline_mode = #tpu.pipeline_mode<synchronous>, transform_indices = @transform_3, window_bounds = array<i64: 9, 2, 2>}, {pipeline_mode = #tpu.pipeline_mode<synchronous>, transform_indices = @transform_4, window_bounds = array<i64: 9, 2, 2>}, {pipeline_mode = #tpu.pipeline_mode<synchronous>, transform_indices = @transform_5, window_bounds = array<i64: 1, 2>}, {pipeline_mode = #tpu.pipeline_mode<synchronous>, transform_indices = @transform_6, window_bounds = array<i64: 9, 2, 2>}, {pipeline_mode = #tpu.pipeline_mode<synchronous>, transform_indices = @transform_7, window_bounds = array<i64: 1, 2>}, {transform_indices = @transform_8, window_bounds = array<i64: 1, 320, 2>}]} {
    %cst = arith.constant 0.000000e+00 : f32
    %0 = vector.broadcast %cst : f32 to vector<400x2xf32>
    %c0 = arith.constant 0 : index
    %c0_0 = arith.constant 0 : index
    %1 = vector.load %arg10[%c0, %c0_0] : memref<400x2xf32, #tpu.memory_space<vmem>>, vector<400x2xf32>
    tpu.vector_store %arg10[%c0, %c0_0], %0 {strides = array<i32>} : memref<400x2xf32, #tpu.memory_space<vmem>>, vector<400x2xf32>,
    %cst_1 = arith.constant 0.000000e+00 : f32
    %2 = vector.broadcast %cst_1 : f32 to vector<400x2xf32>
    %c0_2 = arith.constant 0 : index
    %c0_3 = arith.constant 0 : index
    %3 = vector.load %arg11[%c0_2, %c0_3] : memref<400x2xf32, #tpu.memory_space<vmem>>, vector<400x2xf32>
    tpu.vector_store %arg11[%c0_2, %c0_3], %2 {strides = array<i32>} : memref<400x2xf32, #tpu.memory_space<vmem>>, vector<400x2xf32>,
    %c0_4 = arith.constant 0 : index
    %c0_5 = arith.constant 0 : index
    %c0_6 = arith.constant 0 : index
    %c0_7 = arith.constant 0 : index
    %4 = vector.load %arg1[%c0_4, %c0_5, %c0_6, %c0_7] : memref<1x16x16x2xf32, #tpu.memory_space<vmem>>, vector<1x1x16x2xf32>
    %5 = vector.shape_cast %4 : vector<1x1x16x2xf32> to vector<16x2xf32>
    %c42 = arith.constant 42 : index
    %c0_8 = arith.constant 0 : index
    %6 = vector.load %arg10[%c42, %c0_8] : memref<400x2xf32, #tpu.memory_space<vmem>>, vector<16x2xf32>
    tpu.vector_store %arg10[%c42, %c0_8], %5 {strides = array<i32>} : memref<400x2xf32, #tpu.memory_space<vmem>>, vector<16x2xf32>,
    %c0_9 = arith.constant 0 : index
    %c1 = arith.constant 1 : index
    %c0_10 = arith.constant 0 : index
    %c0_11 = arith.constant 0 : index
    %7 = vector.load %arg1[%c0_9, %c1, %c0_10, %c0_11] : memref<1x16x16x2xf32, #tpu.memory_space<vmem>>, vector<1x1x16x2xf32>
    %8 = vector.shape_cast %7 : vector<1x1x16x2xf32> to vector<16x2xf32>
    %c62 = arith.constant 62 : index
    %c0_12 = arith.constant 0 : index
    %9 = vector.load %arg10[%c62, %c0_12] : memref<400x2xf32, #tpu.memory_space<vmem>>, vector<16x2xf32>
    tpu.vector_store %arg10[%c62, %c0_12], %8 {strides = array<i32>} : memref<400x2xf32, #tpu.memory_space<vmem>>, vector<16x2xf32>,
    %c0_13 = arith.constant 0 : index
    %c2 = arith.constant 2 : index
    %c0_14 = arith.constant 0 : index
    %c0_15 = arith.constant 0 : index
    %10 = vector.load %arg1[%c0_13, %c2, %c0_14, %c0_15] : memref<1x16x16x2xf32, #tpu.memory_space<vmem>>, vector<1x1x16x2xf32>
    %11 = vector.shape_cast %10 : vector<1x1x16x2xf32> to vector<16x2xf32>
    %c82 = arith.constant 82 : index
    %c0_16 = arith.constant 0 : index
    %12 = vector.load %arg10[%c82, %c0_16] : memref<400x2xf32, #tpu.memory_space<vmem>>, vector<16x2xf32>
    tpu.vector_store %arg10[%c82, %c0_16], %11 {strides = array<i32>} : memref<400x2xf32, #tpu.memory_space<vmem>>, vector<16x2xf32>,
    %c0_17 = arith.constant 0 : index
    %c3 = arith.constant 3 : index
    %c0_18 = arith.constant 0 : index
    %c0_19 = arith.constant 0 : index
    %13 = vector.load %arg1[%c0_17, %c3, %c0_18, %c0_19] : memref<1x16x16x2xf32, #tpu.memory_space<vmem>>, vector<1x1x16x2xf32>
    %14 = vector.shape_cast %13 : vector<1x1x16x2xf32> to vector<16x2xf32>
    %c102 = arith.constant 102 : index
    %c0_20 = arith.constant 0 : index
    %15 = vector.load %arg10[%c102, %c0_20] : memref<400x2xf32, #tpu.memory_space<vmem>>, vector<16x2xf32>
    tpu.vector_store %arg10[%c102, %c0_20], %14 {strides = array<i32>} : memref<400x2xf32, #tpu.memory_space<vmem>>, vector<16x2xf32>,
    %c0_21 = arith.constant 0 : index
    %c4 = arith.constant 4 : index
    %c0_22 = arith.constant 0 : index
    %c0_23 = arith.constant 0 : index
    %16 = vector.load %arg1[%c0_21, %c4, %c0_22, %c0_23] : memref<1x16x16x2xf32, #tpu.memory_space<vmem>>, vector<1x1x16x2xf32>
    %17 = vector.shape_cast %16 : vector<1x1x16x2xf32> to vector<16x2xf32>
    %c122 = arith.constant 122 : index
    %c0_24 = arith.constant 0 : index
    %18 = vector.load %arg10[%c122, %c0_24] : memref<400x2xf32, #tpu.memory_space<vmem>>, vector<16x2xf32>
    tpu.vector_store %arg10[%c122, %c0_24], %17 {strides = array<i32>} : memref<400x2xf32, #tpu.memory_space<vmem>>, vector<16x2xf32>,
    %c0_25 = arith.constant 0 : index
    %c5 = arith.constant 5 : index
    %c0_26 = arith.constant 0 : index
    %c0_27 = arith.constant 0 : index
    %19 = vector.load %arg1[%c0_25, %c5, %c0_26, %c0_27] : memref<1x16x16x2xf32, #tpu.memory_space<vmem>>, vector<1x1x16x2xf32>
    %20 = vector.shape_cast %19 : vector<1x1x16x2xf32> to vector<16x2xf32>
    %c142 = arith.constant 142 : index
    %c0_28 = arith.constant 0 : index
    %21 = vector.load %arg10[%c142, %c0_28] : memref<400x2xf32, #tpu.memory_space<vmem>>, vector<16x2xf32>
    tpu.vector_store %arg10[%c142, %c0_28], %20 {strides = array<i32>} : memref<400x2xf32, #tpu.memory_space<vmem>>, vector<16x2xf32>,
    %c0_29 = arith.constant 0 : index
    %c6 = arith.constant 6 : index
    %c0_30 = arith.constant 0 : index
    %c0_31 = arith.constant 0 : index
    %22 = vector.load %arg1[%c0_29, %c6, %c0_30, %c0_31] : memref<1x16x16x2xf32, #tpu.memory_space<vmem>>, vector<1x1x16x2xf32>
    %23 = vector.shape_cast %22 : vector<1x1x16x2xf32> to vector<16x2xf32>
    %c162 = arith.constant 162 : index
    %c0_32 = arith.constant 0 : index
    %24 = vector.load %arg10[%c162, %c0_32] : memref<400x2xf32, #tpu.memory_space<vmem>>, vector<16x2xf32>
    tpu.vector_store %arg10[%c162, %c0_32], %23 {strides = array<i32>} : memref<400x2xf32, #tpu.memory_space<vmem>>, vector<16x2xf32>,
    %c0_33 = arith.constant 0 : index
    %c7 = arith.constant 7 : index
    %c0_34 = arith.constant 0 : index
    %c0_35 = arith.constant 0 : index
    %25 = vector.load %arg1[%c0_33, %c7, %c0_34, %c0_35] : memref<1x16x16x2xf32, #tpu.memory_space<vmem>>, vector<1x1x16x2xf32>
    %26 = vector.shape_cast %25 : vector<1x1x16x2xf32> to vector<16x2xf32>
    %c182 = arith.constant 182 : index
    %c0_36 = arith.constant 0 : index
    %27 = vector.load %arg10[%c182, %c0_36] : memref<400x2xf32, #tpu.memory_space<vmem>>, vector<16x2xf32>
    tpu.vector_store %arg10[%c182, %c0_36], %26 {strides = array<i32>} : memref<400x2xf32, #tpu.memory_space<vmem>>, vector<16x2xf32>,
    %c0_37 = arith.constant 0 : index
    %c8 = arith.constant 8 : index
    %c0_38 = arith.constant 0 : index
    %c0_39 = arith.constant 0 : index
    %28 = vector.load %arg1[%c0_37, %c8, %c0_38, %c0_39] : memref<1x16x16x2xf32, #tpu.memory_space<vmem>>, vector<1x1x16x2xf32>
    %29 = vector.shape_cast %28 : vector<1x1x16x2xf32> to vector<16x2xf32>
    %c202 = arith.constant 202 : index
    %c0_40 = arith.constant 0 : index
    %30 = vector.load %arg10[%c202, %c0_40] : memref<400x2xf32, #tpu.memory_space<vmem>>, vector<16x2xf32>
    tpu.vector_store %arg10[%c202, %c0_40], %29 {strides = array<i32>} : memref<400x2xf32, #tpu.memory_space<vmem>>, vector<16x2xf32>,
    %c0_41 = arith.constant 0 : index
    %c9 = arith.constant 9 : index
    %c0_42 = arith.constant 0 : index
    %c0_43 = arith.constant 0 : index
    %31 = vector.load %arg1[%c0_41, %c9, %c0_42, %c0_43] : memref<1x16x16x2xf32, #tpu.memory_space<vmem>>, vector<1x1x16x2xf32>
    %32 = vector.shape_cast %31 : vector<1x1x16x2xf32> to vector<16x2xf32>
    %c222 = arith.constant 222 : index
    %c0_44 = arith.constant 0 : index
    %33 = vector.load %arg10[%c222, %c0_44] : memref<400x2xf32, #tpu.memory_space<vmem>>, vector<16x2xf32>
    tpu.vector_store %arg10[%c222, %c0_44], %32 {strides = array<i32>} : memref<400x2xf32, #tpu.memory_space<vmem>>, vector<16x2xf32>,
    %c0_45 = arith.constant 0 : index
    %c10 = arith.constant 10 : index
    %c0_46 = arith.constant 0 : index
    %c0_47 = arith.constant 0 : index
    %34 = vector.load %arg1[%c0_45, %c10, %c0_46, %c0_47] : memref<1x16x16x2xf32, #tpu.memory_space<vmem>>, vector<1x1x16x2xf32>
    %35 = vector.shape_cast %34 : vector<1x1x16x2xf32> to vector<16x2xf32>
    %c242 = arith.constant 242 : index
    %c0_48 = arith.constant 0 : index
    %36 = vector.load %arg10[%c242, %c0_48] : memref<400x2xf32, #tpu.memory_space<vmem>>, vector<16x2xf32>
    tpu.vector_store %arg10[%c242, %c0_48], %35 {strides = array<i32>} : memref<400x2xf32, #tpu.memory_space<vmem>>, vector<16x2xf32>,
    %c0_49 = arith.constant 0 : index
    %c11 = arith.constant 11 : index
    %c0_50 = arith.constant 0 : index
    %c0_51 = arith.constant 0 : index
    %37 = vector.load %arg1[%c0_49, %c11, %c0_50, %c0_51] : memref<1x16x16x2xf32, #tpu.memory_space<vmem>>, vector<1x1x16x2xf32>
    %38 = vector.shape_cast %37 : vector<1x1x16x2xf32> to vector<16x2xf32>
    %c262 = arith.constant 262 : index
    %c0_52 = arith.constant 0 : index
    %39 = vector.load %arg10[%c262, %c0_52] : memref<400x2xf32, #tpu.memory_space<vmem>>, vector<16x2xf32>
    tpu.vector_store %arg10[%c262, %c0_52], %38 {strides = array<i32>} : memref<400x2xf32, #tpu.memory_space<vmem>>, vector<16x2xf32>,
    %c0_53 = arith.constant 0 : index
    %c12 = arith.constant 12 : index
    %c0_54 = arith.constant 0 : index
    %c0_55 = arith.constant 0 : index
    %40 = vector.load %arg1[%c0_53, %c12, %c0_54, %c0_55] : memref<1x16x16x2xf32, #tpu.memory_space<vmem>>, vector<1x1x16x2xf32>
    %41 = vector.shape_cast %40 : vector<1x1x16x2xf32> to vector<16x2xf32>
    %c282 = arith.constant 282 : index
    %c0_56 = arith.constant 0 : index
    %42 = vector.load %arg10[%c282, %c0_56] : memref<400x2xf32, #tpu.memory_space<vmem>>, vector<16x2xf32>
    tpu.vector_store %arg10[%c282, %c0_56], %41 {strides = array<i32>} : memref<400x2xf32, #tpu.memory_space<vmem>>, vector<16x2xf32>,
    %c0_57 = arith.constant 0 : index
    %c13 = arith.constant 13 : index
    %c0_58 = arith.constant 0 : index
    %c0_59 = arith.constant 0 : index
    %43 = vector.load %arg1[%c0_57, %c13, %c0_58, %c0_59] : memref<1x16x16x2xf32, #tpu.memory_space<vmem>>, vector<1x1x16x2xf32>
    %44 = vector.shape_cast %43 : vector<1x1x16x2xf32> to vector<16x2xf32>
    %c302 = arith.constant 302 : index
    %c0_60 = arith.constant 0 : index
    %45 = vector.load %arg10[%c302, %c0_60] : memref<400x2xf32, #tpu.memory_space<vmem>>, vector<16x2xf32>
    tpu.vector_store %arg10[%c302, %c0_60], %44 {strides = array<i32>} : memref<400x2xf32, #tpu.memory_space<vmem>>, vector<16x2xf32>,
    %c0_61 = arith.constant 0 : index
    %c14 = arith.constant 14 : index
    %c0_62 = arith.constant 0 : index
    %c0_63 = arith.constant 0 : index
    %46 = vector.load %arg1[%c0_61, %c14, %c0_62, %c0_63] : memref<1x16x16x2xf32, #tpu.memory_space<vmem>>, vector<1x1x16x2xf32>
    %47 = vector.shape_cast %46 : vector<1x1x16x2xf32> to vector<16x2xf32>
    %c322 = arith.constant 322 : index
    %c0_64 = arith.constant 0 : index
    %48 = vector.load %arg10[%c322, %c0_64] : memref<400x2xf32, #tpu.memory_space<vmem>>, vector<16x2xf32>
    tpu.vector_store %arg10[%c322, %c0_64], %47 {strides = array<i32>} : memref<400x2xf32, #tpu.memory_space<vmem>>, vector<16x2xf32>,
    %c0_65 = arith.constant 0 : index
    %c15 = arith.constant 15 : index
    %c0_66 = arith.constant 0 : index
    %c0_67 = arith.constant 0 : index
    %49 = vector.load %arg1[%c0_65, %c15, %c0_66, %c0_67] : memref<1x16x16x2xf32, #tpu.memory_space<vmem>>, vector<1x1x16x2xf32>
    %50 = vector.shape_cast %49 : vector<1x1x16x2xf32> to vector<16x2xf32>
    %c342 = arith.constant 342 : index
    %c0_68 = arith.constant 0 : index
    %51 = vector.load %arg10[%c342, %c0_68] : memref<400x2xf32, #tpu.memory_space<vmem>>, vector<16x2xf32>
    tpu.vector_store %arg10[%c342, %c0_68], %50 {strides = array<i32>} : memref<400x2xf32, #tpu.memory_space<vmem>>, vector<16x2xf32>,
    %c0_69 = arith.constant 0 : index
    %c0_70 = arith.constant 0 : index
    %c0_71 = arith.constant 0 : index
    %c0_72 = arith.constant 0 : index
    %52 = vector.load %arg2[%c0_69, %c0_70, %c0_71, %c0_72] : memref<1x16x16x2xf32, #tpu.memory_space<vmem>>, vector<1x1x16x2xf32>
    %53 = vector.shape_cast %52 : vector<1x1x16x2xf32> to vector<16x2xf32>
    %c42_73 = arith.constant 42 : index
    %c0_74 = arith.constant 0 : index
    %54 = vector.load %arg11[%c42_73, %c0_74] : memref<400x2xf32, #tpu.memory_space<vmem>>, vector<16x2xf32>
    tpu.vector_store %arg11[%c42_73, %c0_74], %53 {strides = array<i32>} : memref<400x2xf32, #tpu.memory_space<vmem>>, vector<16x2xf32>,
    %c0_75 = arith.constant 0 : index
    %c1_76 = arith.constant 1 : index
    %c0_77 = arith.constant 0 : index
    %c0_78 = arith.constant 0 : index
    %55 = vector.load %arg2[%c0_75, %c1_76, %c0_77, %c0_78] : memref<1x16x16x2xf32, #tpu.memory_space<vmem>>, vector<1x1x16x2xf32>
    %56 = vector.shape_cast %55 : vector<1x1x16x2xf32> to vector<16x2xf32>
    %c62_79 = arith.constant 62 : index
    %c0_80 = arith.constant 0 : index
    %57 = vector.load %arg11[%c62_79, %c0_80] : memref<400x2xf32, #tpu.memory_space<vmem>>, vector<16x2xf32>
    tpu.vector_store %arg11[%c62_79, %c0_80], %56 {strides = array<i32>} : memref<400x2xf32, #tpu.memory_space<vmem>>, vector<16x2xf32>,
    %c0_81 = arith.constant 0 : index
    %c2_82 = arith.constant 2 : index
    %c0_83 = arith.constant 0 : index
    %c0_84 = arith.constant 0 : index
    %58 = vector.load %arg2[%c0_81, %c2_82, %c0_83, %c0_84] : memref<1x16x16x2xf32, #tpu.memory_space<vmem>>, vector<1x1x16x2xf32>
    %59 = vector.shape_cast %58 : vector<1x1x16x2xf32> to vector<16x2xf32>
    %c82_85 = arith.constant 82 : index
    %c0_86 = arith.constant 0 : index
    %60 = vector.load %arg11[%c82_85, %c0_86] : memref<400x2xf32, #tpu.memory_space<vmem>>, vector<16x2xf32>
    tpu.vector_store %arg11[%c82_85, %c0_86], %59 {strides = array<i32>} : memref<400x2xf32, #tpu.memory_space<vmem>>, vector<16x2xf32>,
    %c0_87 = arith.constant 0 : index
    %c3_88 = arith.constant 3 : index
    %c0_89 = arith.constant 0 : index
    %c0_90 = arith.constant 0 : index
    %61 = vector.load %arg2[%c0_87, %c3_88, %c0_89, %c0_90] : memref<1x16x16x2xf32, #tpu.memory_space<vmem>>, vector<1x1x16x2xf32>
    %62 = vector.shape_cast %61 : vector<1x1x16x2xf32> to vector<16x2xf32>
    %c102_91 = arith.constant 102 : index
    %c0_92 = arith.constant 0 : index
    %63 = vector.load %arg11[%c102_91, %c0_92] : memref<400x2xf32, #tpu.memory_space<vmem>>, vector<16x2xf32>
    tpu.vector_store %arg11[%c102_91, %c0_92], %62 {strides = array<i32>} : memref<400x2xf32, #tpu.memory_space<vmem>>, vector<16x2xf32>,
    %c0_93 = arith.constant 0 : index
    %c4_94 = arith.constant 4 : index
    %c0_95 = arith.constant 0 : index
    %c0_96 = arith.constant 0 : index
    %64 = vector.load %arg2[%c0_93, %c4_94, %c0_95, %c0_96] : memref<1x16x16x2xf32, #tpu.memory_space<vmem>>, vector<1x1x16x2xf32>
    %65 = vector.shape_cast %64 : vector<1x1x16x2xf32> to vector<16x2xf32>
    %c122_97 = arith.constant 122 : index
    %c0_98 = arith.constant 0 : index
    %66 = vector.load %arg11[%c122_97, %c0_98] : memref<400x2xf32, #tpu.memory_space<vmem>>, vector<16x2xf32>
    tpu.vector_store %arg11[%c122_97, %c0_98], %65 {strides = array<i32>} : memref<400x2xf32, #tpu.memory_space<vmem>>, vector<16x2xf32>,
    %c0_99 = arith.constant 0 : index
    %c5_100 = arith.constant 5 : index
    %c0_101 = arith.constant 0 : index
    %c0_102 = arith.constant 0 : index
    %67 = vector.load %arg2[%c0_99, %c5_100, %c0_101, %c0_102] : memref<1x16x16x2xf32, #tpu.memory_space<vmem>>, vector<1x1x16x2xf32>
    %68 = vector.shape_cast %67 : vector<1x1x16x2xf32> to vector<16x2xf32>
    %c142_103 = arith.constant 142 : index
    %c0_104 = arith.constant 0 : index
    %69 = vector.load %arg11[%c142_103, %c0_104] : memref<400x2xf32, #tpu.memory_space<vmem>>, vector<16x2xf32>
    tpu.vector_store %arg11[%c142_103, %c0_104], %68 {strides = array<i32>} : memref<400x2xf32, #tpu.memory_space<vmem>>, vector<16x2xf32>,
    %c0_105 = arith.constant 0 : index
    %c6_106 = arith.constant 6 : index
    %c0_107 = arith.constant 0 : index
    %c0_108 = arith.constant 0 : index
    %70 = vector.load %arg2[%c0_105, %c6_106, %c0_107, %c0_108] : memref<1x16x16x2xf32, #tpu.memory_space<vmem>>, vector<1x1x16x2xf32>
    %71 = vector.shape_cast %70 : vector<1x1x16x2xf32> to vector<16x2xf32>
    %c162_109 = arith.constant 162 : index
    %c0_110 = arith.constant 0 : index
    %72 = vector.load %arg11[%c162_109, %c0_110] : memref<400x2xf32, #tpu.memory_space<vmem>>, vector<16x2xf32>
    tpu.vector_store %arg11[%c162_109, %c0_110], %71 {strides = array<i32>} : memref<400x2xf32, #tpu.memory_space<vmem>>, vector<16x2xf32>,
    %c0_111 = arith.constant 0 : index
    %c7_112 = arith.constant 7 : index
    %c0_113 = arith.constant 0 : index
    %c0_114 = arith.constant 0 : index
    %73 = vector.load %arg2[%c0_111, %c7_112, %c0_113, %c0_114] : memref<1x16x16x2xf32, #tpu.memory_space<vmem>>, vector<1x1x16x2xf32>
    %74 = vector.shape_cast %73 : vector<1x1x16x2xf32> to vector<16x2xf32>
    %c182_115 = arith.constant 182 : index
    %c0_116 = arith.constant 0 : index
    %75 = vector.load %arg11[%c182_115, %c0_116] : memref<400x2xf32, #tpu.memory_space<vmem>>, vector<16x2xf32>
    tpu.vector_store %arg11[%c182_115, %c0_116], %74 {strides = array<i32>} : memref<400x2xf32, #tpu.memory_space<vmem>>, vector<16x2xf32>,
    %c0_117 = arith.constant 0 : index
    %c8_118 = arith.constant 8 : index
    %c0_119 = arith.constant 0 : index
    %c0_120 = arith.constant 0 : index
    %76 = vector.load %arg2[%c0_117, %c8_118, %c0_119, %c0_120] : memref<1x16x16x2xf32, #tpu.memory_space<vmem>>, vector<1x1x16x2xf32>
    %77 = vector.shape_cast %76 : vector<1x1x16x2xf32> to vector<16x2xf32>
    %c202_121 = arith.constant 202 : index
    %c0_122 = arith.constant 0 : index
    %78 = vector.load %arg11[%c202_121, %c0_122] : memref<400x2xf32, #tpu.memory_space<vmem>>, vector<16x2xf32>
    tpu.vector_store %arg11[%c202_121, %c0_122], %77 {strides = array<i32>} : memref<400x2xf32, #tpu.memory_space<vmem>>, vector<16x2xf32>,
    %c0_123 = arith.constant 0 : index
    %c9_124 = arith.constant 9 : index
    %c0_125 = arith.constant 0 : index
    %c0_126 = arith.constant 0 : index
    %79 = vector.load %arg2[%c0_123, %c9_124, %c0_125, %c0_126] : memref<1x16x16x2xf32, #tpu.memory_space<vmem>>, vector<1x1x16x2xf32>
    %80 = vector.shape_cast %79 : vector<1x1x16x2xf32> to vector<16x2xf32>
    %c222_127 = arith.constant 222 : index
    %c0_128 = arith.constant 0 : index
    %81 = vector.load %arg11[%c222_127, %c0_128] : memref<400x2xf32, #tpu.memory_space<vmem>>, vector<16x2xf32>
    tpu.vector_store %arg11[%c222_127, %c0_128], %80 {strides = array<i32>} : memref<400x2xf32, #tpu.memory_space<vmem>>, vector<16x2xf32>,
    %c0_129 = arith.constant 0 : index
    %c10_130 = arith.constant 10 : index
    %c0_131 = arith.constant 0 : index
    %c0_132 = arith.constant 0 : index
    %82 = vector.load %arg2[%c0_129, %c10_130, %c0_131, %c0_132] : memref<1x16x16x2xf32, #tpu.memory_space<vmem>>, vector<1x1x16x2xf32>
    %83 = vector.shape_cast %82 : vector<1x1x16x2xf32> to vector<16x2xf32>
    %c242_133 = arith.constant 242 : index
    %c0_134 = arith.constant 0 : index
    %84 = vector.load %arg11[%c242_133, %c0_134] : memref<400x2xf32, #tpu.memory_space<vmem>>, vector<16x2xf32>
    tpu.vector_store %arg11[%c242_133, %c0_134], %83 {strides = array<i32>} : memref<400x2xf32, #tpu.memory_space<vmem>>, vector<16x2xf32>,
    %c0_135 = arith.constant 0 : index
    %c11_136 = arith.constant 11 : index
    %c0_137 = arith.constant 0 : index
    %c0_138 = arith.constant 0 : index
    %85 = vector.load %arg2[%c0_135, %c11_136, %c0_137, %c0_138] : memref<1x16x16x2xf32, #tpu.memory_space<vmem>>, vector<1x1x16x2xf32>
    %86 = vector.shape_cast %85 : vector<1x1x16x2xf32> to vector<16x2xf32>
    %c262_139 = arith.constant 262 : index
    %c0_140 = arith.constant 0 : index
    %87 = vector.load %arg11[%c262_139, %c0_140] : memref<400x2xf32, #tpu.memory_space<vmem>>, vector<16x2xf32>
    tpu.vector_store %arg11[%c262_139, %c0_140], %86 {strides = array<i32>} : memref<400x2xf32, #tpu.memory_space<vmem>>, vector<16x2xf32>,
    %c0_141 = arith.constant 0 : index
    %c12_142 = arith.constant 12 : index
    %c0_143 = arith.constant 0 : index
    %c0_144 = arith.constant 0 : index
    %88 = vector.load %arg2[%c0_141, %c12_142, %c0_143, %c0_144] : memref<1x16x16x2xf32, #tpu.memory_space<vmem>>, vector<1x1x16x2xf32>
    %89 = vector.shape_cast %88 : vector<1x1x16x2xf32> to vector<16x2xf32>
    %c282_145 = arith.constant 282 : index
    %c0_146 = arith.constant 0 : index
    %90 = vector.load %arg11[%c282_145, %c0_146] : memref<400x2xf32, #tpu.memory_space<vmem>>, vector<16x2xf32>
    tpu.vector_store %arg11[%c282_145, %c0_146], %89 {strides = array<i32>} : memref<400x2xf32, #tpu.memory_space<vmem>>, vector<16x2xf32>,
    %c0_147 = arith.constant 0 : index
    %c13_148 = arith.constant 13 : index
    %c0_149 = arith.constant 0 : index
    %c0_150 = arith.constant 0 : index
    %91 = vector.load %arg2[%c0_147, %c13_148, %c0_149, %c0_150] : memref<1x16x16x2xf32, #tpu.memory_space<vmem>>, vector<1x1x16x2xf32>
    %92 = vector.shape_cast %91 : vector<1x1x16x2xf32> to vector<16x2xf32>
    %c302_151 = arith.constant 302 : index
    %c0_152 = arith.constant 0 : index
    %93 = vector.load %arg11[%c302_151, %c0_152] : memref<400x2xf32, #tpu.memory_space<vmem>>, vector<16x2xf32>
    tpu.vector_store %arg11[%c302_151, %c0_152], %92 {strides = array<i32>} : memref<400x2xf32, #tpu.memory_space<vmem>>, vector<16x2xf32>,
    %c0_153 = arith.constant 0 : index
    %c14_154 = arith.constant 14 : index
    %c0_155 = arith.constant 0 : index
    %c0_156 = arith.constant 0 : index
    %94 = vector.load %arg2[%c0_153, %c14_154, %c0_155, %c0_156] : memref<1x16x16x2xf32, #tpu.memory_space<vmem>>, vector<1x1x16x2xf32>
    %95 = vector.shape_cast %94 : vector<1x1x16x2xf32> to vector<16x2xf32>
    %c322_157 = arith.constant 322 : index
    %c0_158 = arith.constant 0 : index
    %96 = vector.load %arg11[%c322_157, %c0_158] : memref<400x2xf32, #tpu.memory_space<vmem>>, vector<16x2xf32>
    tpu.vector_store %arg11[%c322_157, %c0_158], %95 {strides = array<i32>} : memref<400x2xf32, #tpu.memory_space<vmem>>, vector<16x2xf32>,
    %c0_159 = arith.constant 0 : index
    %c15_160 = arith.constant 15 : index
    %c0_161 = arith.constant 0 : index
    %c0_162 = arith.constant 0 : index
    %97 = vector.load %arg2[%c0_159, %c15_160, %c0_161, %c0_162] : memref<1x16x16x2xf32, #tpu.memory_space<vmem>>, vector<1x1x16x2xf32>
    %98 = vector.shape_cast %97 : vector<1x1x16x2xf32> to vector<16x2xf32>
    %c342_163 = arith.constant 342 : index
    %c0_164 = arith.constant 0 : index
    %99 = vector.load %arg11[%c342_163, %c0_164] : memref<400x2xf32, #tpu.memory_space<vmem>>, vector<16x2xf32>
    tpu.vector_store %arg11[%c342_163, %c0_164], %98 {strides = array<i32>} : memref<400x2xf32, #tpu.memory_space<vmem>>, vector<16x2xf32>,
    %cst_165 = arith.constant 0.000000e+00 : f32
    %100 = vector.broadcast %cst_165 : f32 to vector<320x2xf32>
    %c0_166 = arith.constant 0 : index
    %c0_167 = arith.constant 0 : index
    %101 = vector.load %arg6[%c0_166, %c0_167] : memref<1x2xf32, #tpu.memory_space<vmem>>, vector<1x2xf32>
    %102 = vector.broadcast %101 : vector<1x2xf32> to vector<320x2xf32>
    %103 = arith.addf %100, %102 : vector<320x2xf32>
    %c19 = arith.constant 19 : index
    %c0_168 = arith.constant 0 : index
    %104 = vector.load %arg10[%c19, %c0_168] : memref<400x2xf32, #tpu.memory_space<vmem>>, vector<320x2xf32>
    %c0_169 = arith.constant 0 : index
    %c0_170 = arith.constant 0 : index
    %c0_171 = arith.constant 0 : index
    %105 = vector.load %arg4[%c0_169, %c0_170, %c0_171] : memref<9x2x2xf32, #tpu.memory_space<vmem>>, vector<1x2x2xf32>
    %106 = vector.shape_cast %105 : vector<1x2x2xf32> to vector<2x2xf32>
    %cst_172 = arith.constant dense<0.000000e+00> : vector<320x2xf32>
    %107 = tpu.matmul %104, %106, %cst_172 {dimension_numbers = #tpu.dot_dimension_numbers<[1], [0], [0], [1], [0, 0, 1, 1], [], []>} : vector<320x2xf32>, vector<2x2xf32>, vector<320x2xf32> -> vector<320x2xf32>
    %108 = arith.addf %103, %107 : vector<320x2xf32>
    %c19_173 = arith.constant 19 : index
    %c0_174 = arith.constant 0 : index
    %109 = vector.load %arg11[%c19_173, %c0_174] : memref<400x2xf32, #tpu.memory_space<vmem>>, vector<320x2xf32>
    %c0_175 = arith.constant 0 : index
    %c0_176 = arith.constant 0 : index
    %c0_177 = arith.constant 0 : index
    %110 = vector.load %arg5[%c0_175, %c0_176, %c0_177] : memref<9x2x2xf32, #tpu.memory_space<vmem>>, vector<1x2x2xf32>
    %111 = vector.shape_cast %110 : vector<1x2x2xf32> to vector<2x2xf32>
    %cst_178 = arith.constant dense<0.000000e+00> : vector<320x2xf32>
    %112 = tpu.matmul %109, %111, %cst_178 {dimension_numbers = #tpu.dot_dimension_numbers<[1], [0], [0], [1], [0, 0, 1, 1], [], []>} : vector<320x2xf32>, vector<2x2xf32>, vector<320x2xf32> -> vector<320x2xf32>
    %113 = arith.addf %108, %112 : vector<320x2xf32>
    %c20 = arith.constant 20 : index
    %c0_179 = arith.constant 0 : index
    %114 = vector.load %arg10[%c20, %c0_179] : memref<400x2xf32, #tpu.memory_space<vmem>>, vector<320x2xf32>
    %c1_180 = arith.constant 1 : index
    %c0_181 = arith.constant 0 : index
    %c0_182 = arith.constant 0 : index
    %115 = vector.load %arg4[%c1_180, %c0_181, %c0_182] : memref<9x2x2xf32, #tpu.memory_space<vmem>>, vector<1x2x2xf32>
    %116 = vector.shape_cast %115 : vector<1x2x2xf32> to vector<2x2xf32>
    %cst_183 = arith.constant dense<0.000000e+00> : vector<320x2xf32>
    %117 = tpu.matmul %114, %116, %cst_183 {dimension_numbers = #tpu.dot_dimension_numbers<[1], [0], [0], [1], [0, 0, 1, 1], [], []>} : vector<320x2xf32>, vector<2x2xf32>, vector<320x2xf32> -> vector<320x2xf32>
    %118 = arith.addf %113, %117 : vector<320x2xf32>
    %c20_184 = arith.constant 20 : index
    %c0_185 = arith.constant 0 : index
    %119 = vector.load %arg11[%c20_184, %c0_185] : memref<400x2xf32, #tpu.memory_space<vmem>>, vector<320x2xf32>
    %c1_186 = arith.constant 1 : index
    %c0_187 = arith.constant 0 : index
    %c0_188 = arith.constant 0 : index
    %120 = vector.load %arg5[%c1_186, %c0_187, %c0_188] : memref<9x2x2xf32, #tpu.memory_space<vmem>>, vector<1x2x2xf32>
    %121 = vector.shape_cast %120 : vector<1x2x2xf32> to vector<2x2xf32>
    %cst_189 = arith.constant dense<0.000000e+00> : vector<320x2xf32>
    %122 = tpu.matmul %119, %121, %cst_189 {dimension_numbers = #tpu.dot_dimension_numbers<[1], [0], [0], [1], [0, 0, 1, 1], [], []>} : vector<320x2xf32>, vector<2x2xf32>, vector<320x2xf32> -> vector<320x2xf32>
    %123 = arith.addf %118, %122 : vector<320x2xf32>
    %c21 = arith.constant 21 : index
    %c0_190 = arith.constant 0 : index
    %124 = vector.load %arg10[%c21, %c0_190] : memref<400x2xf32, #tpu.memory_space<vmem>>, vector<320x2xf32>
    %c2_191 = arith.constant 2 : index
    %c0_192 = arith.constant 0 : index
    %c0_193 = arith.constant 0 : index
    %125 = vector.load %arg4[%c2_191, %c0_192, %c0_193] : memref<9x2x2xf32, #tpu.memory_space<vmem>>, vector<1x2x2xf32>
    %126 = vector.shape_cast %125 : vector<1x2x2xf32> to vector<2x2xf32>
    %cst_194 = arith.constant dense<0.000000e+00> : vector<320x2xf32>
    %127 = tpu.matmul %124, %126, %cst_194 {dimension_numbers = #tpu.dot_dimension_numbers<[1], [0], [0], [1], [0, 0, 1, 1], [], []>} : vector<320x2xf32>, vector<2x2xf32>, vector<320x2xf32> -> vector<320x2xf32>
    %128 = arith.addf %123, %127 : vector<320x2xf32>
    %c21_195 = arith.constant 21 : index
    %c0_196 = arith.constant 0 : index
    %129 = vector.load %arg11[%c21_195, %c0_196] : memref<400x2xf32, #tpu.memory_space<vmem>>, vector<320x2xf32>
    %c2_197 = arith.constant 2 : index
    %c0_198 = arith.constant 0 : index
    %c0_199 = arith.constant 0 : index
    %130 = vector.load %arg5[%c2_197, %c0_198, %c0_199] : memref<9x2x2xf32, #tpu.memory_space<vmem>>, vector<1x2x2xf32>
    %131 = vector.shape_cast %130 : vector<1x2x2xf32> to vector<2x2xf32>
    %cst_200 = arith.constant dense<0.000000e+00> : vector<320x2xf32>
    %132 = tpu.matmul %129, %131, %cst_200 {dimension_numbers = #tpu.dot_dimension_numbers<[1], [0], [0], [1], [0, 0, 1, 1], [], []>} : vector<320x2xf32>, vector<2x2xf32>, vector<320x2xf32> -> vector<320x2xf32>
    %133 = arith.addf %128, %132 : vector<320x2xf32>
    %c39 = arith.constant 39 : index
    %c0_201 = arith.constant 0 : index
    %134 = vector.load %arg10[%c39, %c0_201] : memref<400x2xf32, #tpu.memory_space<vmem>>, vector<320x2xf32>
    %c3_202 = arith.constant 3 : index
    %c0_203 = arith.constant 0 : index
    %c0_204 = arith.constant 0 : index
    %135 = vector.load %arg4[%c3_202, %c0_203, %c0_204] : memref<9x2x2xf32, #tpu.memory_space<vmem>>, vector<1x2x2xf32>
    %136 = vector.shape_cast %135 : vector<1x2x2xf32> to vector<2x2xf32>
    %cst_205 = arith.constant dense<0.000000e+00> : vector<320x2xf32>
    %137 = tpu.matmul %134, %136, %cst_205 {dimension_numbers = #tpu.dot_dimension_numbers<[1], [0], [0], [1], [0, 0, 1, 1], [], []>} : vector<320x2xf32>, vector<2x2xf32>, vector<320x2xf32> -> vector<320x2xf32>
    %138 = arith.addf %133, %137 : vector<320x2xf32>
    %c39_206 = arith.constant 39 : index
    %c0_207 = arith.constant 0 : index
    %139 = vector.load %arg11[%c39_206, %c0_207] : memref<400x2xf32, #tpu.memory_space<vmem>>, vector<320x2xf32>
    %c3_208 = arith.constant 3 : index
    %c0_209 = arith.constant 0 : index
    %c0_210 = arith.constant 0 : index
    %140 = vector.load %arg5[%c3_208, %c0_209, %c0_210] : memref<9x2x2xf32, #tpu.memory_space<vmem>>, vector<1x2x2xf32>
    %141 = vector.shape_cast %140 : vector<1x2x2xf32> to vector<2x2xf32>
    %cst_211 = arith.constant dense<0.000000e+00> : vector<320x2xf32>
    %142 = tpu.matmul %139, %141, %cst_211 {dimension_numbers = #tpu.dot_dimension_numbers<[1], [0], [0], [1], [0, 0, 1, 1], [], []>} : vector<320x2xf32>, vector<2x2xf32>, vector<320x2xf32> -> vector<320x2xf32>
    %143 = arith.addf %138, %142 : vector<320x2xf32>
    %c40 = arith.constant 40 : index
    %c0_212 = arith.constant 0 : index
    %144 = vector.load %arg10[%c40, %c0_212] : memref<400x2xf32, #tpu.memory_space<vmem>>, vector<320x2xf32>
    %c4_213 = arith.constant 4 : index
    %c0_214 = arith.constant 0 : index
    %c0_215 = arith.constant 0 : index
    %145 = vector.load %arg4[%c4_213, %c0_214, %c0_215] : memref<9x2x2xf32, #tpu.memory_space<vmem>>, vector<1x2x2xf32>
    %146 = vector.shape_cast %145 : vector<1x2x2xf32> to vector<2x2xf32>
    %cst_216 = arith.constant dense<0.000000e+00> : vector<320x2xf32>
    %147 = tpu.matmul %144, %146, %cst_216 {dimension_numbers = #tpu.dot_dimension_numbers<[1], [0], [0], [1], [0, 0, 1, 1], [], []>} : vector<320x2xf32>, vector<2x2xf32>, vector<320x2xf32> -> vector<320x2xf32>
    %148 = arith.addf %143, %147 : vector<320x2xf32>
    %c40_217 = arith.constant 40 : index
    %c0_218 = arith.constant 0 : index
    %149 = vector.load %arg11[%c40_217, %c0_218] : memref<400x2xf32, #tpu.memory_space<vmem>>, vector<320x2xf32>
    %c4_219 = arith.constant 4 : index
    %c0_220 = arith.constant 0 : index
    %c0_221 = arith.constant 0 : index
    %150 = vector.load %arg5[%c4_219, %c0_220, %c0_221] : memref<9x2x2xf32, #tpu.memory_space<vmem>>, vector<1x2x2xf32>
    %151 = vector.shape_cast %150 : vector<1x2x2xf32> to vector<2x2xf32>
    %cst_222 = arith.constant dense<0.000000e+00> : vector<320x2xf32>
    %152 = tpu.matmul %149, %151, %cst_222 {dimension_numbers = #tpu.dot_dimension_numbers<[1], [0], [0], [1], [0, 0, 1, 1], [], []>} : vector<320x2xf32>, vector<2x2xf32>, vector<320x2xf32> -> vector<320x2xf32>
    %153 = arith.addf %148, %152 : vector<320x2xf32>
    %c41 = arith.constant 41 : index
    %c0_223 = arith.constant 0 : index
    %154 = vector.load %arg10[%c41, %c0_223] : memref<400x2xf32, #tpu.memory_space<vmem>>, vector<320x2xf32>
    %c5_224 = arith.constant 5 : index
    %c0_225 = arith.constant 0 : index
    %c0_226 = arith.constant 0 : index
    %155 = vector.load %arg4[%c5_224, %c0_225, %c0_226] : memref<9x2x2xf32, #tpu.memory_space<vmem>>, vector<1x2x2xf32>
    %156 = vector.shape_cast %155 : vector<1x2x2xf32> to vector<2x2xf32>
    %cst_227 = arith.constant dense<0.000000e+00> : vector<320x2xf32>
    %157 = tpu.matmul %154, %156, %cst_227 {dimension_numbers = #tpu.dot_dimension_numbers<[1], [0], [0], [1], [0, 0, 1, 1], [], []>} : vector<320x2xf32>, vector<2x2xf32>, vector<320x2xf32> -> vector<320x2xf32>
    %158 = arith.addf %153, %157 : vector<320x2xf32>
    %c41_228 = arith.constant 41 : index
    %c0_229 = arith.constant 0 : index
    %159 = vector.load %arg11[%c41_228, %c0_229] : memref<400x2xf32, #tpu.memory_space<vmem>>, vector<320x2xf32>
    %c5_230 = arith.constant 5 : index
    %c0_231 = arith.constant 0 : index
    %c0_232 = arith.constant 0 : index
    %160 = vector.load %arg5[%c5_230, %c0_231, %c0_232] : memref<9x2x2xf32, #tpu.memory_space<vmem>>, vector<1x2x2xf32>
    %161 = vector.shape_cast %160 : vector<1x2x2xf32> to vector<2x2xf32>
    %cst_233 = arith.constant dense<0.000000e+00> : vector<320x2xf32>
    %162 = tpu.matmul %159, %161, %cst_233 {dimension_numbers = #tpu.dot_dimension_numbers<[1], [0], [0], [1], [0, 0, 1, 1], [], []>} : vector<320x2xf32>, vector<2x2xf32>, vector<320x2xf32> -> vector<320x2xf32>
    %163 = arith.addf %158, %162 : vector<320x2xf32>
    %c59 = arith.constant 59 : index
    %c0_234 = arith.constant 0 : index
    %164 = vector.load %arg10[%c59, %c0_234] : memref<400x2xf32, #tpu.memory_space<vmem>>, vector<320x2xf32>
    %c6_235 = arith.constant 6 : index
    %c0_236 = arith.constant 0 : index
    %c0_237 = arith.constant 0 : index
    %165 = vector.load %arg4[%c6_235, %c0_236, %c0_237] : memref<9x2x2xf32, #tpu.memory_space<vmem>>, vector<1x2x2xf32>
    %166 = vector.shape_cast %165 : vector<1x2x2xf32> to vector<2x2xf32>
    %cst_238 = arith.constant dense<0.000000e+00> : vector<320x2xf32>
    %167 = tpu.matmul %164, %166, %cst_238 {dimension_numbers = #tpu.dot_dimension_numbers<[1], [0], [0], [1], [0, 0, 1, 1], [], []>} : vector<320x2xf32>, vector<2x2xf32>, vector<320x2xf32> -> vector<320x2xf32>
    %168 = arith.addf %163, %167 : vector<320x2xf32>
    %c59_239 = arith.constant 59 : index
    %c0_240 = arith.constant 0 : index
    %169 = vector.load %arg11[%c59_239, %c0_240] : memref<400x2xf32, #tpu.memory_space<vmem>>, vector<320x2xf32>
    %c6_241 = arith.constant 6 : index
    %c0_242 = arith.constant 0 : index
    %c0_243 = arith.constant 0 : index
    %170 = vector.load %arg5[%c6_241, %c0_242, %c0_243] : memref<9x2x2xf32, #tpu.memory_space<vmem>>, vector<1x2x2xf32>
    %171 = vector.shape_cast %170 : vector<1x2x2xf32> to vector<2x2xf32>
    %cst_244 = arith.constant dense<0.000000e+00> : vector<320x2xf32>
    %172 = tpu.matmul %169, %171, %cst_244 {dimension_numbers = #tpu.dot_dimension_numbers<[1], [0], [0], [1], [0, 0, 1, 1], [], []>} : vector<320x2xf32>, vector<2x2xf32>, vector<320x2xf32> -> vector<320x2xf32>
    %173 = arith.addf %168, %172 : vector<320x2xf32>
    %c60 = arith.constant 60 : index
    %c0_245 = arith.constant 0 : index
    %174 = vector.load %arg10[%c60, %c0_245] : memref<400x2xf32, #tpu.memory_space<vmem>>, vector<320x2xf32>
    %c7_246 = arith.constant 7 : index
    %c0_247 = arith.constant 0 : index
    %c0_248 = arith.constant 0 : index
    %175 = vector.load %arg4[%c7_246, %c0_247, %c0_248] : memref<9x2x2xf32, #tpu.memory_space<vmem>>, vector<1x2x2xf32>
    %176 = vector.shape_cast %175 : vector<1x2x2xf32> to vector<2x2xf32>
    %cst_249 = arith.constant dense<0.000000e+00> : vector<320x2xf32>
    %177 = tpu.matmul %174, %176, %cst_249 {dimension_numbers = #tpu.dot_dimension_numbers<[1], [0], [0], [1], [0, 0, 1, 1], [], []>} : vector<320x2xf32>, vector<2x2xf32>, vector<320x2xf32> -> vector<320x2xf32>
    %178 = arith.addf %173, %177 : vector<320x2xf32>
    %c60_250 = arith.constant 60 : index
    %c0_251 = arith.constant 0 : index
    %179 = vector.load %arg11[%c60_250, %c0_251] : memref<400x2xf32, #tpu.memory_space<vmem>>, vector<320x2xf32>
    %c7_252 = arith.constant 7 : index
    %c0_253 = arith.constant 0 : index
    %c0_254 = arith.constant 0 : index
    %180 = vector.load %arg5[%c7_252, %c0_253, %c0_254] : memref<9x2x2xf32, #tpu.memory_space<vmem>>, vector<1x2x2xf32>
    %181 = vector.shape_cast %180 : vector<1x2x2xf32> to vector<2x2xf32>
    %cst_255 = arith.constant dense<0.000000e+00> : vector<320x2xf32>
    %182 = tpu.matmul %179, %181, %cst_255 {dimension_numbers = #tpu.dot_dimension_numbers<[1], [0], [0], [1], [0, 0, 1, 1], [], []>} : vector<320x2xf32>, vector<2x2xf32>, vector<320x2xf32> -> vector<320x2xf32>
    %183 = arith.addf %178, %182 : vector<320x2xf32>
    %c61 = arith.constant 61 : index
    %c0_256 = arith.constant 0 : index
    %184 = vector.load %arg10[%c61, %c0_256] : memref<400x2xf32, #tpu.memory_space<vmem>>, vector<320x2xf32>
    %c8_257 = arith.constant 8 : index
    %c0_258 = arith.constant 0 : index
    %c0_259 = arith.constant 0 : index
    %185 = vector.load %arg4[%c8_257, %c0_258, %c0_259] : memref<9x2x2xf32, #tpu.memory_space<vmem>>, vector<1x2x2xf32>
    %186 = vector.shape_cast %185 : vector<1x2x2xf32> to vector<2x2xf32>
    %cst_260 = arith.constant dense<0.000000e+00> : vector<320x2xf32>
    %187 = tpu.matmul %184, %186, %cst_260 {dimension_numbers = #tpu.dot_dimension_numbers<[1], [0], [0], [1], [0, 0, 1, 1], [], []>} : vector<320x2xf32>, vector<2x2xf32>, vector<320x2xf32> -> vector<320x2xf32>
    %188 = arith.addf %183, %187 : vector<320x2xf32>
    %c61_261 = arith.constant 61 : index
    %c0_262 = arith.constant 0 : index
    %189 = vector.load %arg11[%c61_261, %c0_262] : memref<400x2xf32, #tpu.memory_space<vmem>>, vector<320x2xf32>
    %c8_263 = arith.constant 8 : index
    %c0_264 = arith.constant 0 : index
    %c0_265 = arith.constant 0 : index
    %190 = vector.load %arg5[%c8_263, %c0_264, %c0_265] : memref<9x2x2xf32, #tpu.memory_space<vmem>>, vector<1x2x2xf32>
    %191 = vector.shape_cast %190 : vector<1x2x2xf32> to vector<2x2xf32>
    %cst_266 = arith.constant dense<0.000000e+00> : vector<320x2xf32>
    %192 = tpu.matmul %189, %191, %cst_266 {dimension_numbers = #tpu.dot_dimension_numbers<[1], [0], [0], [1], [0, 0, 1, 1], [], []>} : vector<320x2xf32>, vector<2x2xf32>, vector<320x2xf32> -> vector<320x2xf32>
    %193 = arith.addf %188, %192 : vector<320x2xf32>
    %cst_267 = arith.constant 0.000000e+00 : f32
    %194 = vector.broadcast %cst_267 : f32 to vector<40x2xf32>
    %c0_268 = arith.constant 0 : index
    %c0_269 = arith.constant 0 : index
    %195 = vector.load %arg12[%c0_268, %c0_269] : memref<400x2xf32, #tpu.memory_space<vmem>>, vector<40x2xf32>
    tpu.vector_store %arg12[%c0_268, %c0_269], %194 {strides = array<i32>} : memref<400x2xf32, #tpu.memory_space<vmem>>, vector<40x2xf32>,
    %cst_270 = arith.constant 0.000000e+00 : f32
    %196 = vector.broadcast %cst_270 : f32 to vector<40x2xf32>
    %c360 = arith.constant 360 : index
    %c0_271 = arith.constant 0 : index
    %197 = vector.load %arg12[%c360, %c0_271] : memref<400x2xf32, #tpu.memory_space<vmem>>, vector<40x2xf32>
    tpu.vector_store %arg12[%c360, %c0_271], %196 {strides = array<i32>} : memref<400x2xf32, #tpu.memory_space<vmem>>, vector<40x2xf32>,
    %cst_272 = arith.constant 0.000000e+00 : f32
    %198 = vector.broadcast %cst_272 : f32 to vector<320x2xf32>
    %199 = arith.maximumf %193, %198 : vector<320x2xf32>
    %c0_273 = arith.constant 0 : index
    %c0_274 = arith.constant 0 : index
    %200 = vector.load %arg3[%c0_273, %c0_274] : memref<320x1xf32, #tpu.memory_space<vmem>>, vector<320x1xf32>
    %201 = vector.broadcast %200 : vector<320x1xf32> to vector<320x2xf32>
    %202 = arith.mulf %199, %201 : vector<320x2xf32>
    %c40_275 = arith.constant 40 : index
    %c0_276 = arith.constant 0 : index
    %203 = vector.load %arg12[%c40_275, %c0_276] : memref<400x2xf32, #tpu.memory_space<vmem>>, vector<320x2xf32>
    tpu.vector_store %arg12[%c40_275, %c0_276], %202 {strides = array<i32>} : memref<400x2xf32, #tpu.memory_space<vmem>>, vector<320x2xf32>,
    %cst_277 = arith.constant 0.000000e+00 : f32
    %204 = vector.broadcast %cst_277 : f32 to vector<320x2xf32>
    %c0_278 = arith.constant 0 : index
    %c0_279 = arith.constant 0 : index
    %205 = vector.load %arg8[%c0_278, %c0_279] : memref<1x2xf32, #tpu.memory_space<vmem>>, vector<1x2xf32>
    %206 = vector.broadcast %205 : vector<1x2xf32> to vector<320x2xf32>
    %207 = arith.addf %204, %206 : vector<320x2xf32>
    %c19_280 = arith.constant 19 : index
    %c0_281 = arith.constant 0 : index
    %208 = vector.load %arg12[%c19_280, %c0_281] : memref<400x2xf32, #tpu.memory_space<vmem>>, vector<320x2xf32>
    %c0_282 = arith.constant 0 : index
    %c0_283 = arith.constant 0 : index
    %c0_284 = arith.constant 0 : index
    %209 = vector.load %arg7[%c0_282, %c0_283, %c0_284] : memref<9x2x2xf32, #tpu.memory_space<vmem>>, vector<1x2x2xf32>
    %210 = vector.shape_cast %209 : vector<1x2x2xf32> to vector<2x2xf32>
    %cst_285 = arith.constant dense<0.000000e+00> : vector<320x2xf32>
    %211 = tpu.matmul %208, %210, %cst_285 {dimension_numbers = #tpu.dot_dimension_numbers<[1], [0], [0], [1], [0, 0, 1, 1], [], []>} : vector<320x2xf32>, vector<2x2xf32>, vector<320x2xf32> -> vector<320x2xf32>
    %212 = arith.addf %207, %211 : vector<320x2xf32>
    %c20_286 = arith.constant 20 : index
    %c0_287 = arith.constant 0 : index
    %213 = vector.load %arg12[%c20_286, %c0_287] : memref<400x2xf32, #tpu.memory_space<vmem>>, vector<320x2xf32>
    %c1_288 = arith.constant 1 : index
    %c0_289 = arith.constant 0 : index
    %c0_290 = arith.constant 0 : index
    %214 = vector.load %arg7[%c1_288, %c0_289, %c0_290] : memref<9x2x2xf32, #tpu.memory_space<vmem>>, vector<1x2x2xf32>
    %215 = vector.shape_cast %214 : vector<1x2x2xf32> to vector<2x2xf32>
    %cst_291 = arith.constant dense<0.000000e+00> : vector<320x2xf32>
    %216 = tpu.matmul %213, %215, %cst_291 {dimension_numbers = #tpu.dot_dimension_numbers<[1], [0], [0], [1], [0, 0, 1, 1], [], []>} : vector<320x2xf32>, vector<2x2xf32>, vector<320x2xf32> -> vector<320x2xf32>
    %217 = arith.addf %212, %216 : vector<320x2xf32>
    %c21_292 = arith.constant 21 : index
    %c0_293 = arith.constant 0 : index
    %218 = vector.load %arg12[%c21_292, %c0_293] : memref<400x2xf32, #tpu.memory_space<vmem>>, vector<320x2xf32>
    %c2_294 = arith.constant 2 : index
    %c0_295 = arith.constant 0 : index
    %c0_296 = arith.constant 0 : index
    %219 = vector.load %arg7[%c2_294, %c0_295, %c0_296] : memref<9x2x2xf32, #tpu.memory_space<vmem>>, vector<1x2x2xf32>
    %220 = vector.shape_cast %219 : vector<1x2x2xf32> to vector<2x2xf32>
    %cst_297 = arith.constant dense<0.000000e+00> : vector<320x2xf32>
    %221 = tpu.matmul %218, %220, %cst_297 {dimension_numbers = #tpu.dot_dimension_numbers<[1], [0], [0], [1], [0, 0, 1, 1], [], []>} : vector<320x2xf32>, vector<2x2xf32>, vector<320x2xf32> -> vector<320x2xf32>
    %222 = arith.addf %217, %221 : vector<320x2xf32>
    %c39_298 = arith.constant 39 : index
    %c0_299 = arith.constant 0 : index
    %223 = vector.load %arg12[%c39_298, %c0_299] : memref<400x2xf32, #tpu.memory_space<vmem>>, vector<320x2xf32>
    %c3_300 = arith.constant 3 : index
    %c0_301 = arith.constant 0 : index
    %c0_302 = arith.constant 0 : index
    %224 = vector.load %arg7[%c3_300, %c0_301, %c0_302] : memref<9x2x2xf32, #tpu.memory_space<vmem>>, vector<1x2x2xf32>
    %225 = vector.shape_cast %224 : vector<1x2x2xf32> to vector<2x2xf32>
    %cst_303 = arith.constant dense<0.000000e+00> : vector<320x2xf32>
    %226 = tpu.matmul %223, %225, %cst_303 {dimension_numbers = #tpu.dot_dimension_numbers<[1], [0], [0], [1], [0, 0, 1, 1], [], []>} : vector<320x2xf32>, vector<2x2xf32>, vector<320x2xf32> -> vector<320x2xf32>
    %227 = arith.addf %222, %226 : vector<320x2xf32>
    %c40_304 = arith.constant 40 : index
    %c0_305 = arith.constant 0 : index
    %228 = vector.load %arg12[%c40_304, %c0_305] : memref<400x2xf32, #tpu.memory_space<vmem>>, vector<320x2xf32>
    %c4_306 = arith.constant 4 : index
    %c0_307 = arith.constant 0 : index
    %c0_308 = arith.constant 0 : index
    %229 = vector.load %arg7[%c4_306, %c0_307, %c0_308] : memref<9x2x2xf32, #tpu.memory_space<vmem>>, vector<1x2x2xf32>
    %230 = vector.shape_cast %229 : vector<1x2x2xf32> to vector<2x2xf32>
    %cst_309 = arith.constant dense<0.000000e+00> : vector<320x2xf32>
    %231 = tpu.matmul %228, %230, %cst_309 {dimension_numbers = #tpu.dot_dimension_numbers<[1], [0], [0], [1], [0, 0, 1, 1], [], []>} : vector<320x2xf32>, vector<2x2xf32>, vector<320x2xf32> -> vector<320x2xf32>
    %232 = arith.addf %227, %231 : vector<320x2xf32>
    %c41_310 = arith.constant 41 : index
    %c0_311 = arith.constant 0 : index
    %233 = vector.load %arg12[%c41_310, %c0_311] : memref<400x2xf32, #tpu.memory_space<vmem>>, vector<320x2xf32>
    %c5_312 = arith.constant 5 : index
    %c0_313 = arith.constant 0 : index
    %c0_314 = arith.constant 0 : index
    %234 = vector.load %arg7[%c5_312, %c0_313, %c0_314] : memref<9x2x2xf32, #tpu.memory_space<vmem>>, vector<1x2x2xf32>
    %235 = vector.shape_cast %234 : vector<1x2x2xf32> to vector<2x2xf32>
    %cst_315 = arith.constant dense<0.000000e+00> : vector<320x2xf32>
    %236 = tpu.matmul %233, %235, %cst_315 {dimension_numbers = #tpu.dot_dimension_numbers<[1], [0], [0], [1], [0, 0, 1, 1], [], []>} : vector<320x2xf32>, vector<2x2xf32>, vector<320x2xf32> -> vector<320x2xf32>
    %237 = arith.addf %232, %236 : vector<320x2xf32>
    %c59_316 = arith.constant 59 : index
    %c0_317 = arith.constant 0 : index
    %238 = vector.load %arg12[%c59_316, %c0_317] : memref<400x2xf32, #tpu.memory_space<vmem>>, vector<320x2xf32>
    %c6_318 = arith.constant 6 : index
    %c0_319 = arith.constant 0 : index
    %c0_320 = arith.constant 0 : index
    %239 = vector.load %arg7[%c6_318, %c0_319, %c0_320] : memref<9x2x2xf32, #tpu.memory_space<vmem>>, vector<1x2x2xf32>
    %240 = vector.shape_cast %239 : vector<1x2x2xf32> to vector<2x2xf32>
    %cst_321 = arith.constant dense<0.000000e+00> : vector<320x2xf32>
    %241 = tpu.matmul %238, %240, %cst_321 {dimension_numbers = #tpu.dot_dimension_numbers<[1], [0], [0], [1], [0, 0, 1, 1], [], []>} : vector<320x2xf32>, vector<2x2xf32>, vector<320x2xf32> -> vector<320x2xf32>
    %242 = arith.addf %237, %241 : vector<320x2xf32>
    %c60_322 = arith.constant 60 : index
    %c0_323 = arith.constant 0 : index
    %243 = vector.load %arg12[%c60_322, %c0_323] : memref<400x2xf32, #tpu.memory_space<vmem>>, vector<320x2xf32>
    %c7_324 = arith.constant 7 : index
    %c0_325 = arith.constant 0 : index
    %c0_326 = arith.constant 0 : index
    %244 = vector.load %arg7[%c7_324, %c0_325, %c0_326] : memref<9x2x2xf32, #tpu.memory_space<vmem>>, vector<1x2x2xf32>
    %245 = vector.shape_cast %244 : vector<1x2x2xf32> to vector<2x2xf32>
    %cst_327 = arith.constant dense<0.000000e+00> : vector<320x2xf32>
    %246 = tpu.matmul %243, %245, %cst_327 {dimension_numbers = #tpu.dot_dimension_numbers<[1], [0], [0], [1], [0, 0, 1, 1], [], []>} : vector<320x2xf32>, vector<2x2xf32>, vector<320x2xf32> -> vector<320x2xf32>
    %247 = arith.addf %242, %246 : vector<320x2xf32>
    %c61_328 = arith.constant 61 : index
    %c0_329 = arith.constant 0 : index
    %248 = vector.load %arg12[%c61_328, %c0_329] : memref<400x2xf32, #tpu.memory_space<vmem>>, vector<320x2xf32>
    %c8_330 = arith.constant 8 : index
    %c0_331 = arith.constant 0 : index
    %c0_332 = arith.constant 0 : index
    %249 = vector.load %arg7[%c8_330, %c0_331, %c0_332] : memref<9x2x2xf32, #tpu.memory_space<vmem>>, vector<1x2x2xf32>
    %250 = vector.shape_cast %249 : vector<1x2x2xf32> to vector<2x2xf32>
    %cst_333 = arith.constant dense<0.000000e+00> : vector<320x2xf32>
    %251 = tpu.matmul %248, %250, %cst_333 {dimension_numbers = #tpu.dot_dimension_numbers<[1], [0], [0], [1], [0, 0, 1, 1], [], []>} : vector<320x2xf32>, vector<2x2xf32>, vector<320x2xf32> -> vector<320x2xf32>
    %252 = arith.addf %247, %251 : vector<320x2xf32>
    %cst_334 = arith.constant 0.000000e+00 : f32
    %253 = vector.broadcast %cst_334 : f32 to vector<320x2xf32>
    %254 = arith.maximumf %252, %253 : vector<320x2xf32>
    %c0_335 = arith.constant 0 : index
    %c0_336 = arith.constant 0 : index
    %c0_337 = arith.constant 0 : index
    %255 = vector.load %arg9[%c0_335, %c0_336, %c0_337] : memref<1x320x2xf32, #tpu.memory_space<vmem>>, vector<1x320x2xf32>
    %256 = vector.shape_cast %255 : vector<1x320x2xf32> to vector<320x2xf32>
    %257 = vector.shape_cast %254 : vector<320x2xf32> to vector<1x320x2xf32>
    tpu.vector_store %arg9[%c0_335, %c0_336, %c0_337], %257 {strides = array<i32>} : memref<1x320x2xf32, #tpu.memory_space<vmem>>, vector<1x320x2xf32>,
    return
  }
  func.func @transform_0(%arg0: i32) -> (i32, i32, i32, i32) {
    %c0_i32 = arith.constant 0 : i32
    %c0_i32_0 = arith.constant 0 : i32
    %c0_i32_1 = arith.constant 0 : i32
    %c0_i32_2 = arith.constant 0 : i32
    return %arg0, %c0_i32, %c0_i32_0, %c0_i32_1 : i32, i32, i32, i32
  }
  func.func @transform_1(%arg0: i32) -> (i32, i32, i32, i32) {
    %c0_i32 = arith.constant 0 : i32
    %c0_i32_0 = arith.constant 0 : i32
    %c0_i32_1 = arith.constant 0 : i32
    %c0_i32_2 = arith.constant 0 : i32
    return %arg0, %c0_i32, %c0_i32_0, %c0_i32_1 : i32, i32, i32, i32
  }
  func.func @transform_2(%arg0: i32) -> (i32, i32) {
    %c0_i32 = arith.constant 0 : i32
    %c0_i32_0 = arith.constant 0 : i32
    %c0_i32_1 = arith.constant 0 : i32
    return %c0_i32, %c0_i32_0 : i32, i32
  }
  func.func @transform_3(%arg0: i32) -> (i32, i32, i32) {
    %c0_i32 = arith.constant 0 : i32
    %c0_i32_0 = arith.constant 0 : i32
    %c0_i32_1 = arith.constant 0 : i32
    %c0_i32_2 = arith.constant 0 : i32
    return %c0_i32, %c0_i32_0, %c0_i32_1 : i32, i32, i32
  }
  func.func @transform_4(%arg0: i32) -> (i32, i32, i32) {
    %c0_i32 = arith.constant 0 : i32
    %c0_i32_0 = arith.constant 0 : i32
    %c0_i32_1 = arith.constant 0 : i32
    %c0_i32_2 = arith.constant 0 : i32
    return %c0_i32, %c0_i32_0, %c0_i32_1 : i32, i32, i32
  }
  func.func @transform_5(%arg0: i32) -> (i32, i32) {
    %c0_i32 = arith.constant 0 : i32
    %c0_i32_0 = arith.constant 0 : i32
    %c0_i32_1 = arith.constant 0 : i32
    return %c0_i32, %c0_i32_0 : i32, i32
  }
  func.func @transform_6(%arg0: i32) -> (i32, i32, i32) {
    %c0_i32 = arith.constant 0 : i32
    %c0_i32_0 = arith.constant 0 : i32
    %c0_i32_1 = arith.constant 0 : i32
    %c0_i32_2 = arith.constant 0 : i32
    return %c0_i32, %c0_i32_0, %c0_i32_1 : i32, i32, i32
  }
  func.func @transform_7(%arg0: i32) -> (i32, i32) {
    %c0_i32 = arith.constant 0 : i32
    %c0_i32_0 = arith.constant 0 : i32
    %c0_i32_1 = arith.constant 0 : i32
    return %c0_i32, %c0_i32_0 : i32, i32
  }
  func.func @transform_8(%arg0: i32) -> (i32, i32, i32) {
    %c0_i32 = arith.constant 0 : i32
    %c0_i32_0 = arith.constant 0 : i32
    %c0_i32_1 = arith.constant 0 : i32
    return %arg0, %c0_i32, %c0_i32_0 : i32, i32, i32
  }
}

</mosaic_0001>

<bundles_post_ra>
// kernel: tile.8
= control target key start
LH: loop header
LB: loop body
LE: loop exit
PB: predicated region body
PF: predicated region fallthrough
CT: control target
= control target key end

     0   :  { %s22_s0 = inlined_call_operand.vmem [shape: f32[2], index: 0, kind: input, shape index: {}]   ;;  %s23_s1 = inlined_call_operand.vmem [shape: f32[4,2], index: 1, kind: output, shape index: {}]  }
   0x1   :  { %v4_v0 = vld [vmem:[%s22_s0] ss:$0 sm:$0xff] }
   0x2   :  { %5 = vst [vmem:[%s23_s1] sm:$0xf] %v4_v0 }

// kernel: tile.9
= control target key start
LH: loop header
LB: loop body
LE: loop exit
PB: predicated region body
PF: predicated region fallthrough
CT: control target
= control target key end

     0   :  { %vm7_vm0 = vcmask 15360   ;;  %s37_s8 = smov 2   ;;  %s38_s9 = smov 4   ;;  %vm13_vm1 = vcmask 64560   ;;  %vm19_vm2 = vcmask 48160   ;;  %vm25_vm3 = vcmask 31760   ;;  %s55_s0 = inlined_call_operand.vmem [shape: f32[4,2], index: 0, kind: input, shape index: {}]   ;;  %s56_s1 = inlined_call_operand.vmem [shape: f32[1,8], index: 1, kind: output, shape index: {}]  }
   0x1   :  { %v4_v0 = vld [vmem:[%s55_s0] sm:$0xf]  ;;  %s36_s0 = smov 6  }
   0x2   :  { %5 = vst [vmem:[#allocation1] sm:$0xf] %v4_v0 }
   0x9   :  { %v10_v1 = vld [vmem:[#allocation1 + $0x3] sm:$0x1]   ;;  %v22_v2 = vld [vmem:[#allocation1 + $0x1] sm:$0x1]   ;;  %v6_v3 = vld [vmem:[#allocation1] sm:$0x1]  }
   0xa   :  { %11 = vrot.lane.b32.xlu0 %v10_v1, %s36_s0  ;;  %23 = vrot.lane.b32.xlu1 %v22_v2, %s37_s8  ;;  %v16_v4 = vld [vmem:[#allocation1 + $0x2] sm:$0x1]   ;;  %8 = vst.msk [vmem:[#allocation0] sm:$0x1] %vm7_vm0, %v6_v3  }
   0xe   :  { %17 = vrot.lane.b32.xlu0 %v16_v4, %s38_s9 }
  0x7c   :  { %v12_v5 = vpop.permute.xlu0 %11   ;;  %v24_v6 = vpop.permute.xlu1 %23  }
  0x7d   :  { %14 = vst.msk [vmem:[#allocation0] sm:$0x1] %vm13_vm1, %v12_v5  }
  0x80   :  { %v18_v7 = vpop.permute.xlu0 %17  }
  0x81   :  { %20 = vst.msk [vmem:[#allocation0] sm:$0x1] %vm19_vm2, %v18_v7  }
  0x82   :  { %26 = vst.msk [vmem:[#allocation0] sm:$0x1] %vm25_vm3, %v24_v6  }
  0x89   :  { %v30_v8 = vld [vmem:[#allocation0] sm:$0x1] }
  0x8a   :  { %32 = vst [vmem:[%s56_s1] sm:$0x1] %v30_v8 }

// kernel: up_forward.2
= control target key start
LH: loop header
LB: loop body
LE: loop exit
PB: predicated region body
PF: predicated region fallthrough
CT: control target
= control target key end

     0   :  { %s540_s12 = smov 0   ;;  %s605_s0 = inlined_call_operand.vmem [shape: f32[2,64,4], index: 0, kind: input, shape index: {}]   ;;  %s606_s1 = inlined_call_operand.vmem [shape: f32[4,8], index: 1, kind: input, shape index: {}]   ;;  %s607_s2 = inlined_call_operand.vmem [shape: f32[1,8], index: 2, kind: input, shape index: {}]   ;;  %s608_s3 = inlined_call_operand.vmem [shape: f32[2,8,2,8,4], index: 3, kind: output, shape index: {}]  }
   0x1 LB: > { %s439_s13 = sadd.s32 4294967295, %s517_s12   ;;  %p443_p0 = scmp.ge.s32.totalorder %s517_s12, 1  ;;  %s517_s12 = sphi %s540_s12, %s13_s12  }
   0x2   : > { %p137_p1 = scmp.lt.s32.totalorder %s517_s12, 3 }
   0x4   : > { %p138_p2 = pnand %p443_p0, %p137_p1 }
   0x5   : > { %v179_v0 = vld [vmem:[%s606_s1] sm:$0xf] (!%p138_p2)  ;;  %vm212_vm0 = vcmask (!%p138_p2), 1043456   ;;  %p161_p3 = scmp.lt.s32.totalorder (!%p138_p2), %s439_s13, 1  ;;  %vm187_vm1 = vcmask (!%p138_p2), 31744   ;;  %s519_s26 = smov (!%p138_p2), 124  }
   0x6   : > { %141 = sbr.rel (%p138_p2) target bundleno = 361 (0x169), region = 32  ;;  %486 = vmatprep.subr.msk.mxu0 (!%p138_p2), %vm212_vm0, %v179_v0  ;;  %500 = vmatprep.subr.msk.mxu1 (!%p138_p2), %vm212_vm0, %v179_v0  ;;  %v448_v9 = vld [vmem:[%s607_s2] ss:$0 sm:$0xff] (!%p138_p2) }
   0x7   : > { %487 = vmatpush3.msk.msra.mxu0 (!%p138_p2), %vm212_vm0, %v179_v0  ;;  %501 = vmatpush3.msk.msra.mxu1 (!%p138_p2), %vm212_vm0, %v179_v0 }
   0xd   : > { %s610_s13 = smov (!%p161_p3, %s439_s13), 1 }
   0xe   : > { %s475_s16 = sshll.u32 %s610_s13, 6  ;;  %s476_s20 = sshll.u32 %s610_s13, 7 }
   0xf   : > { %s165_s19 = scalar_lea.vmem %s605_s0, %s475_s16  ;;  %s568_s25 = scalar_lea.vmem %s608_s3, %s476_s20 }
  0x10   : > { %v171_v1 = vld [vmem:[%s165_s19] sm:$0xff]  ;;  %v172_v3 = vld [vmem:[%s165_s19 + $0x8] sm:$0xff]  ;;  %v173_v5 = vld [vmem:[%s165_s19 + $0x10] sm:$0xff] }
  0x11   : > { %v175_v2 = vld [vmem:[%s165_s19 + $0x20] sm:$0xff]  ;;  %488 = vmatprep.mubr.msk.f32.mxu0 %vm187_vm1, %v171_v1  ;;  %v176_v4 = vld [vmem:[%s165_s19 + $0x28] sm:$0xff]  ;;  %v177_v6 = vld [vmem:[%s165_s19 + $0x30] sm:$0xff] }
  0x12   : > { %494 = vmatprep.mubr.msk.f32.mxu1 %vm187_vm1, %v175_v2  ;;  %489 = vmatmul.mubr.msk.f32.vlgmr.msra.gmra.mrb[0].mxu0 %vm187_vm1, %v172_v3  ;;  %v174_v7 = vld [vmem:[%s165_s19 + $0x18] sm:$0xff] }
  0x13   : > { %495 = vmatmul.mubr.msk.f32.vlgmr.msra.gmra.mrb[0].mxu1 %vm187_vm1, %v176_v4  ;;  %491 = vmatprep.mubr.msk.f32.mxu0 %vm187_vm1, %v173_v5  ;;  %v178_v8 = vld [vmem:[%s165_s19 + $0x38] sm:$0xff] }
  0x14   : > { %497 = vmatprep.mubr.msk.f32.mxu1 %vm187_vm1, %v177_v6 }
  0x16   : > { %492 = vmatmul.mubr.msk.f32.gmra.mrb[2].mxu0 %vm187_vm1, %v174_v7 }
  0x17   : > { %498 = vmatmul.mubr.msk.f32.gmra.mrb[2].mxu1 %vm187_vm1, %v178_v8 }
  0xe5   : > { %v490_v10 = vpop.f32.mrb[0].mxu0 }
  0xe6   : > { %v496_v11 = vpop.f32.mrb[0].mxu1  ;;  %v288_v12 = vadd.f32 %v490_v10, %v448_v9  ;;  %v282_v14 = vpop.f32.mrb[1].mxu0 }
  0xe7   : > { %v308_v13 = vadd.f32 %v496_v11, %v448_v9  ;;  %v302_v15 = vpop.f32.mrb[1].mxu1  ;;  %v283_v16 = vadd.f32 %v448_v9, %v282_v14 }
  0xe8   : > { %v303_v17 = vadd.f32 %v448_v9, %v302_v15  ;;  %459 = vst.msk [vmem:[%s568_s25 + $0x10] sm:$0xff] %vm187_vm1, %v288_v12  ;;  %331 = vrot.lane.b32.xlu0 %v288_v12, %s519_s26 }
  0xe9   : > { %467 = vst.msk [vmem:[%s568_s25 + $0x50] sm:$0xff] %vm187_vm1, %v308_v13  ;;  %363 = vrot.lane.b32.xlu1 %v308_v13, %s519_s26  ;;  %321 = vst.msk [vmem:[%s568_s25] sm:$0xff] %vm187_vm1, %v283_v16  ;;  %v493_v18 = vpop.f32.mrb[2].mxu0 }
  0xea   : > { %465 = vst.msk [vmem:[%s568_s25 + $0x40] sm:$0xff] %vm187_vm1, %v303_v17  ;;  %v499_v19 = vpop.f32.mrb[2].mxu1  ;;  %v298_v20 = vadd.f32 %v493_v18, %v448_v9  ;;  %v292_v21 = vpop.f32.mrb[3].mxu0 }
  0xeb   : > { %v318_v22 = vadd.f32 %v499_v19, %v448_v9  ;;  %v312_v23 = vpop.f32.mrb[3].mxu1  ;;  %v293_v24 = vadd.f32 %v448_v9, %v292_v21 }
  0xec   : > { %v313_v25 = vadd.f32 %v448_v9, %v312_v23  ;;  %463 = vst.msk [vmem:[%s568_s25 + $0x30] sm:$0xff] %vm187_vm1, %v298_v20  ;;  %323 = vrot.lane.b32.xlu0 %v283_v16, %s519_s26 }
  0xed   : > { %347 = vrot.lane.b32.xlu1 %v298_v20, %s519_s26  ;;  %471 = vst.msk [vmem:[%s568_s25 + $0x70] sm:$0xff] %vm187_vm1, %v318_v22  ;;  %461 = vst.msk [vmem:[%s568_s25 + $0x20] sm:$0xff] %vm187_vm1, %v293_v24 }
  0xee   : > { %469 = vst.msk [vmem:[%s568_s25 + $0x60] sm:$0xff] %vm187_vm1, %v313_v25 }
  0xf0   : > { %355 = vrot.lane.b32.xlu0 %v303_v17, %s519_s26 }
  0xf1   : > { %339 = vrot.lane.b32.xlu1 %v293_v24, %s519_s26 }
  0xf4   : > { %371 = vrot.lane.b32.xlu0 %v313_v25, %s519_s26 }
  0xf5   : > { %379 = vrot.lane.b32.xlu1 %v318_v22, %s519_s26 }
 0x15a   : > { %v332_v27 = vpop.permute.xlu0 %331 }
 0x15b   : > { %v364_v26 = vpop.permute.xlu1 %363  ;;  %460 = vst.msk [vmem:[%s568_s25 + $0x18] sm:$0xff] %vm187_vm1, %v332_v27 }
 0x15c   : > { %468 = vst.msk [vmem:[%s568_s25 + $0x58] sm:$0xff] %vm187_vm1, %v364_v26 }
 0x15e   : > { %v324_v29 = vpop.permute.xlu0 %323 }
 0x15f   : > { %v348_v28 = vpop.permute.xlu1 %347  ;;  %458 = vst.msk [vmem:[%s568_s25 + $0x8] sm:$0xff] %vm187_vm1, %v324_v29 }
 0x160   : > { %464 = vst.msk [vmem:[%s568_s25 + $0x38] sm:$0xff] %vm187_vm1, %v348_v28 }
 0x162   : > { %v356_v31 = vpop.permute.xlu0 %355 }
 0x163   : > { %v340_v30 = vpop.permute.xlu1 %339  ;;  %466 = vst.msk [vmem:[%s568_s25 + $0x48] sm:$0xff] %vm187_vm1, %v356_v31 }
 0x164   : > { %462 = vst.msk [vmem:[%s568_s25 + $0x28] sm:$0xff] %vm187_vm1, %v340_v30 }
 0x166   : > { %v372_v33 = vpop.permute.xlu0 %371 }
 0x167   : > { %v380_v32 = vpop.permute.xlu1 %379  ;;  %470 = vst.msk [vmem:[%s568_s25 + $0x68] sm:$0xff] %vm187_vm1, %v372_v33 }
 0x168   : > { %472 = vst.msk [vmem:[%s568_s25 + $0x78] sm:$0xff] %vm187_vm1, %v380_v32 }
 0x169 PF: > { %s13_s12 = sadd.s32 1, %s517_s12  }
 0x16a   : > { %p10_p4 = scmp.ge.s32.totalorder %s13_s12, 4  }
 0x16c   :  { %12 = sbr.rel (!%p10_p4) target bundleno = 1 (0x1), region = 77 }

// kernel: up_forward.3
= control target key start
LH: loop header
LB: loop body
LE: loop exit
PB: predicated region body
PF: predicated region fallthrough
CT: control target
= control target key end

     0   :  { %s18991_s27 = smov 0   ;;  %s21941_s0 = inlined_call_operand.vmem [shape: f32[2,16,16,2], index: 0, kind: input, shape index: {}]   ;;  %s21942_s1 = inlined_call_operand.vmem [shape: f32[2,16,16,2], index: 1, kind: input, shape index: {}]   ;;  %s21943_s2 = inlined_call_operand.vmem [shape: f32[320,1], index: 2, kind: input, shape index: {}]   ;;  %s21944_s3 = inlined_call_operand.vmem [shape: f32[9,2,2], index: 3, kind: input, shape index: {}]   ;;  %s21945_s4 = inlined_call_operand.vmem [shape: f32[9,2,2], index: 4, kind: input, shape index: {}]   ;;  %s21946_s5 = inlined_call_operand.vmem [shape: f32[1,2], index: 5, kind: input, shape index: {}]   ;;  %s21947_s6 = inlined_call_operand.vmem [shape: f32[9,2,2], index: 6, kind: input, shape index: {}]   ;;  %s21948_s7 = inlined_call_operand.vmem [shape: f32[1,2], index: 7, kind: input, shape index: {}]   ;;  %s21949_s8 = inlined_call_operand.vmem [shape: f32[2,320,2], index: 8, kind: output, shape index: {}]  }
   0x1 LB: > { %s13806_s28 = sadd.s32 4294967295, %s18942_s27   ;;  %p13810_p0 = scmp.ge.s32.totalorder %s18942_s27, 1  ;;  %s18942_s27 = sphi %s18991_s27, %s18_s27  }
   0x2   : > { %p272_p1 = scmp.lt.s32.totalorder %s18942_s27, 3 }
   0x4   : > { %p273_p2 = pnand %p13810_p0, %p272_p1 }
   0x6   : > { %276 = sbr.rel (%p273_p2) target bundleno = 2226 (0x8b2), region = 52 }
   0xd   : > { %vm754_vm0 = vcmask 1041408   ;;  %v19002_v0 = vld [vmem:[%s21944_s3 + $0x4] sm:$0x3]  ;;  %vm326_vm1 = vcmask 15360   ;;  %p19006_p3 = scmp.lt.s32.totalorder %s13806_s28, 1  ;;  %v18944_v1 = vmov 0.0  }
   0xe   : > { %16368 = vmatprep.subr.msk.mxu0 %vm754_vm0, %v19002_v0  ;;  %329 = vst.msk [vmem:[#allocation2 + $0x10] sm:$0xff] %vm326_vm1, %v18944_v1  ;;  %330 = vst.msk [vmem:[#allocation2 + $0x18] sm:$0xff] %vm326_vm1, %v18944_v1  ;;  %v14085_v2 = vld [vmem:[%s21945_s4 + $0x4] sm:$0x3]  ;;  %v19238_v9 = vld [vmem:[%s21944_s3 + $0x6] sm:$0x3] }
   0xf   : > { %331 = vst.msk [vmem:[#allocation2 + $0x20] sm:$0xff] %vm326_vm1, %v18944_v1  ;;  %332 = vst.msk [vmem:[#allocation2 + $0x28] sm:$0xff] %vm326_vm1, %v18944_v1  ;;  %16369 = vmatpush3.msk.msra.mxu0 %vm754_vm0, %v19002_v0  ;;  %s22218_s28 = smov (!%p19006_p3, %s13806_s28), 1 }
  0x10   : > { %333 = vst.msk [vmem:[#allocation2 + $0x30] sm:$0xff] %vm326_vm1, %v18944_v1  ;;  %334 = vst.msk [vmem:[#allocation2 + $0x38] sm:$0xff] %vm326_vm1, %v18944_v1  ;;  %16430 = vmatprep.subr.msk.mxu0 %vm754_vm0, %v14085_v2  ;;  %s15011_s12 = sshll.u32 %s22218_s28, 8  ;;  %s18876_s13 = smul.u32 320, %s22218_s28 }
  0x11   : > { %335 = vst.msk [vmem:[#allocation2 + $0x40] sm:$0xff] %vm326_vm1, %v18944_v1  ;;  %336 = vst.msk [vmem:[#allocation2 + $0x48] sm:$0xff] %vm326_vm1, %v18944_v1  ;;  %s19224_s15 = scalar_lea.vmem %s21941_s0, %s15011_s12  ;;  %s19252_s20 = scalar_lea.vmem %s21942_s1, %s15011_s12 }
  0x12   : > { %337 = vst.msk [vmem:[#allocation2 + $0x50] sm:$0xff] %vm326_vm1, %v18944_v1  ;;  %338 = vst.msk [vmem:[#allocation2 + $0x58] sm:$0xff] %vm326_vm1, %v18944_v1  ;;  %v427_v3 = vld [vmem:[%s19224_s15] sm:$0xff]  ;;  %v428_v4 = vld [vmem:[%s19224_s15 + $0x8] sm:$0xff]  ;;  %s21817_s18 = scalar_lea.vmem %s21949_s8, %s18876_s13 }
  0x13   : > { %339 = vst.msk [vmem:[#allocation2 + $0x60] sm:$0xff] %vm326_vm1, %v18944_v1  ;;  %340 = vst.msk [vmem:[#allocation2 + $0x68] sm:$0xff] %vm326_vm1, %v18944_v1  ;;  %v13816_v5 = vld [vmem:[%s19224_s15 + $0x10] sm:$0xff]  ;;  %v13817_v6 = vld [vmem:[%s19224_s15 + $0x18] sm:$0xff] }
  0x14   : > { %341 = vst.msk [vmem:[#allocation2 + $0x70] sm:$0xff] %vm326_vm1, %v18944_v1  ;;  %342 = vst.msk [vmem:[#allocation2 + $0x78] sm:$0xff] %vm326_vm1, %v18944_v1  ;;  %v13818_v7 = vld [vmem:[%s19224_s15 + $0x20] sm:$0xff]  ;;  %v13819_v8 = vld [vmem:[%s19224_s15 + $0x28] sm:$0xff] }
  0x15   : > { %343 = vst.msk [vmem:[#allocation2 + $0x80] sm:$0xff] %vm326_vm1, %v18944_v1  ;;  %344 = vst.msk [vmem:[#allocation2 + $0x88] sm:$0xff] %vm326_vm1, %v18944_v1  ;;  %v2472_v10 = vld [vmem:[#allocation2 + $0x15] sm:$0xff]  ;;  %v13822_v14 = vld [vmem:[%s19224_s15 + $0x40] sm:$0xff] }
  0x16   : > { %345 = vst.msk [vmem:[#allocation2 + $0x90] sm:$0xff] %vm326_vm1, %v18944_v1  ;;  %346 = vst.msk [vmem:[#allocation2 + $0x98] sm:$0xff] %vm326_vm1, %v18944_v1  ;;  %v2473_v11 = vld [vmem:[#allocation2 + $0x1d] sm:$0xff]  ;;  %v13820_v12 = vld [vmem:[%s19224_s15 + $0x30] sm:$0xff]  ;;  %16370 = vmatprep.mubr.msk.f32.mxu0 %vm326_vm1, %v2472_v10 }
  0x17   : > { %347 = vst.msk [vmem:[#allocation2 + $0xa0] sm:$0xff] %vm326_vm1, %v18944_v1  ;;  %348 = vst.msk [vmem:[#allocation2 + $0xa8] sm:$0xff] %vm326_vm1, %v18944_v1  ;;  %v13821_v13 = vld [vmem:[%s19224_s15 + $0x38] sm:$0xff]  ;;  %v13823_v15 = vld [vmem:[%s19224_s15 + $0x48] sm:$0xff]  ;;  %16371 = vmatmul.mubr.msk.f32.vlgmr.msra.gmra.mrb[0].mxu0 %vm326_vm1, %v2473_v11 }
  0x18   : > { %349 = vst.msk [vmem:[#allocation2 + $0xb0] sm:$0xff] %vm326_vm1, %v18944_v1  ;;  %350 = vst.msk [vmem:[#allocation2 + $0xb8] sm:$0xff] %vm326_vm1, %v18944_v1  ;;  %v13824_v16 = vld [vmem:[%s19224_s15 + $0x50] sm:$0xff]  ;;  %v13825_v17 = vld [vmem:[%s19224_s15 + $0x58] sm:$0xff]  ;;  %16431 = vmatpush3.msk.msra.mxu0 %vm754_vm0, %v14085_v2 }
  0x19   : > { %351 = vst.msk [vmem:[#allocation2 + $0xc0] sm:$0xff] %vm326_vm1, %v18944_v1  ;;  %352 = vst.msk [vmem:[#allocation2 + $0xc8] sm:$0xff] %vm326_vm1, %v18944_v1  ;;  %v13826_v18 = vld [vmem:[%s19224_s15 + $0x60] sm:$0xff]  ;;  %v13827_v19 = vld [vmem:[%s19224_s15 + $0x68] sm:$0xff]  ;;  %16492 = vmatprep.subr.msk.mxu0 %vm754_vm0, %v19238_v9 }
  0x1a   : > { %353 = vst.msk [vmem:[#allocation2 + $0xd0] sm:$0xff] %vm326_vm1, %v18944_v1  ;;  %354 = vst.msk [vmem:[#allocation2 + $0xd8] sm:$0xff] %vm326_vm1, %v18944_v1  ;;  %v506_v20 = vld [vmem:[%s19252_s20] sm:$0xff]  ;;  %v507_v21 = vld [vmem:[%s19252_s20 + $0x8] sm:$0xff] }
  0x1b   : > { %355 = vst.msk [vmem:[#allocation2 + $0xe0] sm:$0xff] %vm326_vm1, %v18944_v1  ;;  %356 = vst.msk [vmem:[#allocation2 + $0xe8] sm:$0xff] %vm326_vm1, %v18944_v1  ;;  %v13846_v22 = vld [vmem:[%s19252_s20 + $0x10] sm:$0xff]  ;;  %v13847_v23 = vld [vmem:[%s19252_s20 + $0x18] sm:$0xff] }
  0x1c   : > { %357 = vst.msk [vmem:[#allocation2 + $0xf0] sm:$0xff] %vm326_vm1, %v18944_v1  ;;  %358 = vst.msk [vmem:[#allocation2 + $0xf8] sm:$0xff] %vm326_vm1, %v18944_v1  ;;  %v13848_v24 = vld [vmem:[%s19252_s20 + $0x20] sm:$0xff]  ;;  %v13849_v25 = vld [vmem:[%s19252_s20 + $0x28] sm:$0xff] }
  0x1d   : > { %359 = vst.msk [vmem:[#allocation2 + $0x100] sm:$0xff] %vm326_vm1, %v18944_v1  ;;  %360 = vst.msk [vmem:[#allocation2 + $0x108] sm:$0xff] %vm326_vm1, %v18944_v1  ;;  %v13850_v33 = vld [vmem:[%s19252_s20 + $0x30] sm:$0xff]  ;;  %v13851_v35 = vld [vmem:[%s19252_s20 + $0x38] sm:$0xff] }
  0x1e   : > { %361 = vst.msk [vmem:[#allocation2 + $0x110] sm:$0xff] %vm326_vm1, %v18944_v1  ;;  %362 = vst.msk [vmem:[#allocation2 + $0x118] sm:$0xff] %vm326_vm1, %v18944_v1  ;;  %v13852_v36 = vld [vmem:[%s19252_s20 + $0x40] sm:$0xff]  ;;  %v13853_v37 = vld [vmem:[%s19252_s20 + $0x48] sm:$0xff] }
  0x1f   : > { %363 = vst.msk [vmem:[#allocation2 + $0x120] sm:$0xff] %vm326_vm1, %v18944_v1  ;;  %364 = vst.msk [vmem:[#allocation2 + $0x128] sm:$0xff] %vm326_vm1, %v18944_v1  ;;  %v13854_v39 = vld [vmem:[%s19252_s20 + $0x50] sm:$0xff]  ;;  %v13855_v40 = vld [vmem:[%s19252_s20 + $0x58] sm:$0xff] }
  0x20   : > { %365 = vst.msk [vmem:[#allocation2 + $0x130] sm:$0xff] %vm326_vm1, %v18944_v1  ;;  %366 = vst.msk [vmem:[#allocation2 + $0x138] sm:$0xff] %vm326_vm1, %v18944_v1  ;;  %v13856_v41 = vld [vmem:[%s19252_s20 + $0x60] sm:$0xff]  ;;  %v13857_v42 = vld [vmem:[%s19252_s20 + $0x68] sm:$0xff] }
  0x21   : > { %367 = vst.msk [vmem:[#allocation2 + $0x140] sm:$0xff] %vm326_vm1, %v18944_v1  ;;  %368 = vst.msk [vmem:[#allocation2 + $0x148] sm:$0xff] %vm326_vm1, %v18944_v1  ;;  %v13858_v43 = vld [vmem:[%s19252_s20 + $0x70] sm:$0xff]  ;;  %v13859_v44 = vld [vmem:[%s19252_s20 + $0x78] sm:$0xff] }
  0x22   : > { %369 = vst.msk [vmem:[#allocation2 + $0x150] sm:$0xff] %vm326_vm1, %v18944_v1  ;;  %370 = vst.msk [vmem:[#allocation2 + $0x158] sm:$0xff] %vm326_vm1, %v18944_v1  ;;  %v13860_v45 = vld [vmem:[%s19252_s20 + $0x80] sm:$0xff]  ;;  %v13861_v46 = vld [vmem:[%s19252_s20 + $0x88] sm:$0xff] }
  0x23   : > { %371 = vst.msk [vmem:[#allocation2 + $0x160] sm:$0xff] %vm326_vm1, %v18944_v1  ;;  %372 = vst.msk [vmem:[#allocation2 + $0x168] sm:$0xff] %vm326_vm1, %v18944_v1  ;;  %v13862_v47 = vld [vmem:[%s19252_s20 + $0x90] sm:$0xff]  ;;  %v13863_v49 = vld [vmem:[%s19252_s20 + $0x98] sm:$0xff] }
  0x24   : > { %373 = vst.msk [vmem:[#allocation2 + $0x170] sm:$0xff] %vm326_vm1, %v18944_v1  ;;  %374 = vst.msk [vmem:[#allocation2 + $0x178] sm:$0xff] %vm326_vm1, %v18944_v1  ;;  %v13864_v50 = vld [vmem:[%s19252_s20 + $0xa0] sm:$0xff]  ;;  %v13865_v51 = vld [vmem:[%s19252_s20 + $0xa8] sm:$0xff] }
  0x25   : > { %379 = vst.msk [vmem:[#allocation3 + $0x10] sm:$0xff] %vm326_vm1, %v18944_v1  ;;  %380 = vst.msk [vmem:[#allocation3 + $0x18] sm:$0xff] %vm326_vm1, %v18944_v1  ;;  %v13866_v52 = vld [vmem:[%s19252_s20 + $0xb0] sm:$0xff]  ;;  %v13867_v53 = vld [vmem:[%s19252_s20 + $0xb8] sm:$0xff] }
  0x26   : > { %381 = vst.msk [vmem:[#allocation3 + $0x20] sm:$0xff] %vm326_vm1, %v18944_v1  ;;  %382 = vst.msk [vmem:[#allocation3 + $0x28] sm:$0xff] %vm326_vm1, %v18944_v1  ;;  %v13868_v54 = vld [vmem:[%s19252_s20 + $0xc0] sm:$0xff]  ;;  %v13869_v55 = vld [vmem:[%s19252_s20 + $0xc8] sm:$0xff] }
  0x27   : > { %383 = vst.msk [vmem:[#allocation3 + $0x30] sm:$0xff] %vm326_vm1, %v18944_v1  ;;  %384 = vst.msk [vmem:[#allocation3 + $0x38] sm:$0xff] %vm326_vm1, %v18944_v1  ;;  %v13870_v56 = vld [vmem:[%s19252_s20 + $0xd0] sm:$0xff]  ;;  %v13871_v57 = vld [vmem:[%s19252_s20 + $0xd8] sm:$0xff] }
  0x28   : > { %385 = vst.msk [vmem:[#allocation3 + $0x40] sm:$0xff] %vm326_vm1, %v18944_v1  ;;  %386 = vst.msk [vmem:[#allocation3 + $0x48] sm:$0xff] %vm326_vm1, %v18944_v1  ;;  %v13872_v59 = vld [vmem:[%s19252_s20 + $0xe0] sm:$0xff]  ;;  %v13873_v60 = vld [vmem:[%s19252_s20 + $0xe8] sm:$0xff] }
  0x29   : > { %387 = vst.msk [vmem:[#allocation3 + $0x50] sm:$0xff] %vm326_vm1, %v18944_v1  ;;  %388 = vst.msk [vmem:[#allocation3 + $0x58] sm:$0xff] %vm326_vm1, %v18944_v1  ;;  %v13832_v10 = vld [vmem:[%s19224_s15 + $0x90] sm:$0xff]  ;;  %v13833_v11 = vld [vmem:[%s19224_s15 + $0x98] sm:$0xff] }
  0x2a   : > { %389 = vst.msk [vmem:[#allocation3 + $0x60] sm:$0xff] %vm326_vm1, %v18944_v1  ;;  %390 = vst.msk [vmem:[#allocation3 + $0x68] sm:$0xff] %vm326_vm1, %v18944_v1 }
  0x2b   : > { %391 = vst.msk [vmem:[#allocation3 + $0x70] sm:$0xff] %vm326_vm1, %v18944_v1  ;;  %392 = vst.msk [vmem:[#allocation3 + $0x78] sm:$0xff] %vm326_vm1, %v18944_v1 }
  0x2c   : > { %393 = vst.msk [vmem:[#allocation3 + $0x80] sm:$0xff] %vm326_vm1, %v18944_v1  ;;  %394 = vst.msk [vmem:[#allocation3 + $0x88] sm:$0xff] %vm326_vm1, %v18944_v1 }
  0x2d   : > { %395 = vst.msk [vmem:[#allocation3 + $0x90] sm:$0xff] %vm326_vm1, %v18944_v1  ;;  %396 = vst.msk [vmem:[#allocation3 + $0x98] sm:$0xff] %vm326_vm1, %v18944_v1 }
  0x2e   : > { %397 = vst.msk [vmem:[#allocation3 + $0xa0] sm:$0xff] %vm326_vm1, %v18944_v1  ;;  %398 = vst.msk [vmem:[#allocation3 + $0xa8] sm:$0xff] %vm326_vm1, %v18944_v1 }
  0x2f   : > { %399 = vst.msk [vmem:[#allocation3 + $0xb0] sm:$0xff] %vm326_vm1, %v18944_v1  ;;  %400 = vst.msk [vmem:[#allocation3 + $0xb8] sm:$0xff] %vm326_vm1, %v18944_v1 }
  0x30   : > { %401 = vst.msk [vmem:[#allocation3 + $0xc0] sm:$0xff] %vm326_vm1, %v18944_v1  ;;  %402 = vst.msk [vmem:[#allocation3 + $0xc8] sm:$0xff] %vm326_vm1, %v18944_v1 }
  0x31   : > { %403 = vst.msk [vmem:[#allocation3 + $0xd0] sm:$0xff] %vm326_vm1, %v18944_v1  ;;  %404 = vst.msk [vmem:[#allocation3 + $0xd8] sm:$0xff] %vm326_vm1, %v18944_v1 }
  0x32   : > { %405 = vst.msk [vmem:[#allocation3 + $0xe0] sm:$0xff] %vm326_vm1, %v18944_v1  ;;  %406 = vst.msk [vmem:[#allocation3 + $0xe8] sm:$0xff] %vm326_vm1, %v18944_v1 }
  0x33   : > { %407 = vst.msk [vmem:[#allocation3 + $0xf0] sm:$0xff] %vm326_vm1, %v18944_v1  ;;  %408 = vst.msk [vmem:[#allocation3 + $0xf8] sm:$0xff] %vm326_vm1, %v18944_v1 }
  0x34   : > { %409 = vst.msk [vmem:[#allocation3 + $0x100] sm:$0xff] %vm326_vm1, %v18944_v1  ;;  %410 = vst.msk [vmem:[#allocation3 + $0x108] sm:$0xff] %vm326_vm1, %v18944_v1 }
  0x35   : > { %411 = vst.msk [vmem:[#allocation3 + $0x110] sm:$0xff] %vm326_vm1, %v18944_v1  ;;  %412 = vst.msk [vmem:[#allocation3 + $0x118] sm:$0xff] %vm326_vm1, %v18944_v1 }
  0x36   : > { %413 = vst.msk [vmem:[#allocation3 + $0x120] sm:$0xff] %vm326_vm1, %v18944_v1  ;;  %414 = vst.msk [vmem:[#allocation3 + $0x128] sm:$0xff] %vm326_vm1, %v18944_v1 }
  0x37   : > { %415 = vst.msk [vmem:[#allocation3 + $0x130] sm:$0xff] %vm326_vm1, %v18944_v1  ;;  %416 = vst.msk [vmem:[#allocation3 + $0x138] sm:$0xff] %vm326_vm1, %v18944_v1 }
  0x38   : > { %417 = vst.msk [vmem:[#allocation3 + $0x140] sm:$0xff] %vm326_vm1, %v18944_v1  ;;  %418 = vst.msk [vmem:[#allocation3 + $0x148] sm:$0xff] %vm326_vm1, %v18944_v1 }
  0x39   : > { %419 = vst.msk [vmem:[#allocation3 + $0x150] sm:$0xff] %vm326_vm1, %v18944_v1  ;;  %420 = vst.msk [vmem:[#allocation3 + $0x158] sm:$0xff] %vm326_vm1, %v18944_v1 }
  0x3a   : > { %421 = vst.msk [vmem:[#allocation3 + $0x160] sm:$0xff] %vm326_vm1, %v18944_v1  ;;  %422 = vst.msk [vmem:[#allocation3 + $0x168] sm:$0xff] %vm326_vm1, %v18944_v1 }
  0x3b   : > { %423 = vst.msk [vmem:[#allocation3 + $0x170] sm:$0xff] %vm326_vm1, %v18944_v1  ;;  %424 = vst.msk [vmem:[#allocation3 + $0x178] sm:$0xff] %vm326_vm1, %v18944_v1 }
  0x3c   : > { %9054 = vst.msk [vmem:[#allocation4 + $0x10] sm:$0xff] %vm326_vm1, %v18944_v1  ;;  %9055 = vst.msk [vmem:[#allocation4 + $0x18] sm:$0xff] %vm326_vm1, %v18944_v1 }
  0x3d   : > { %9056 = vst.msk [vmem:[#allocation4 + $0x20] sm:$0xff] %vm326_vm1, %v18944_v1  ;;  %9057 = vst.msk [vmem:[#allocation4 + $0x168] sm:$0xff] %vm326_vm1, %v18944_v1 }
  0x3e   : > { %9058 = vst.msk [vmem:[#allocation4 + $0x170] sm:$0xff] %vm326_vm1, %v18944_v1  ;;  %9059 = vst.msk [vmem:[#allocation4 + $0x178] sm:$0xff] %vm326_vm1, %v18944_v1 }
  0x3f   : > { %429 = vst.msk [vmem:[#allocation2 + $0x2a] sm:$0xff] %vm326_vm1, %v427_v3  ;;  %430 = vst.msk [vmem:[#allocation2 + $0x32] sm:$0xff] %vm326_vm1, %v428_v4  ;;  %v2942_v4 = vld [vmem:[#allocation3 + $0x15] sm:$0xff] }
  0x40   : > { %434 = vst.msk [vmem:[#allocation2 + $0x3e] sm:$0xff] %vm326_vm1, %v13816_v5  ;;  %435 = vst.msk [vmem:[#allocation2 + $0x46] sm:$0xff] %vm326_vm1, %v13817_v6  ;;  %v13828_v5 = vld [vmem:[%s19224_s15 + $0x70] sm:$0xff]  ;;  %v13829_v6 = vld [vmem:[%s19224_s15 + $0x78] sm:$0xff] }
  0x41   : > { %439 = vst.msk [vmem:[#allocation2 + $0x52] sm:$0xff] %vm326_vm1, %v13818_v7  ;;  %440 = vst.msk [vmem:[#allocation2 + $0x5a] sm:$0xff] %vm326_vm1, %v13819_v8  ;;  %v13830_v7 = vld [vmem:[%s19224_s15 + $0x80] sm:$0xff]  ;;  %v13831_v8 = vld [vmem:[%s19224_s15 + $0x88] sm:$0xff] }
  0x42   : > { %444 = vst.msk [vmem:[#allocation2 + $0x66] sm:$0xff] %vm326_vm1, %v13820_v12  ;;  %445 = vst.msk [vmem:[#allocation2 + $0x6e] sm:$0xff] %vm326_vm1, %v13821_v13  ;;  %v13834_v12 = vld [vmem:[%s19224_s15 + $0xa0] sm:$0xff]  ;;  %v13835_v13 = vld [vmem:[%s19224_s15 + $0xa8] sm:$0xff] }
  0x43   : > { %449 = vst.msk [vmem:[#allocation2 + $0x7a] sm:$0xff] %vm326_vm1, %v13822_v14  ;;  %450 = vst.msk [vmem:[#allocation2 + $0x82] sm:$0xff] %vm326_vm1, %v13823_v15  ;;  %v2943_v14 = vld [vmem:[#allocation3 + $0x1d] sm:$0xff] }
  0x44   : > { %454 = vst.msk [vmem:[#allocation2 + $0x8e] sm:$0xff] %vm326_vm1, %v13824_v16  ;;  %455 = vst.msk [vmem:[#allocation2 + $0x96] sm:$0xff] %vm326_vm1, %v13825_v17  ;;  %v13836_v15 = vld [vmem:[%s19224_s15 + $0xb0] sm:$0xff]  ;;  %v13837_v17 = vld [vmem:[%s19224_s15 + $0xb8] sm:$0xff] }
  0x45   : > { %459 = vst.msk [vmem:[#allocation2 + $0xa2] sm:$0xff] %vm326_vm1, %v13826_v18  ;;  %460 = vst.msk [vmem:[#allocation2 + $0xaa] sm:$0xff] %vm326_vm1, %v13827_v19  ;;  %v19370_v18 = vld [vmem:[%s21945_s4 + $0x6] sm:$0x3] }
  0x46   : > { %508 = vst.msk [vmem:[#allocation3 + $0x2a] sm:$0xff] %vm326_vm1, %v506_v20  ;;  %509 = vst.msk [vmem:[#allocation3 + $0x32] sm:$0xff] %vm326_vm1, %v507_v21  ;;  %v2474_v26 = vld [vmem:[#allocation2 + $0x25] sm:$0xff]  ;;  %v2475_v27 = vld [vmem:[#allocation2 + $0x2d] sm:$0xff] }
  0x47   : > { %513 = vst.msk [vmem:[#allocation3 + $0x3e] sm:$0xff] %vm326_vm1, %v13846_v22  ;;  %v2476_v28 = vld [vmem:[#allocation2 + $0x35] sm:$0xff]  ;;  %514 = vst.msk [vmem:[#allocation3 + $0x46] sm:$0xff] %vm326_vm1, %v13847_v23  ;;  %16373 = vmatprep.mubr.msk.f32.mxu0 %vm326_vm1, %v2474_v26  ;;  %v2477_v29 = vld [vmem:[#allocation2 + $0x3d] sm:$0xff] }
  0x48   : > { %518 = vst.msk [vmem:[#allocation3 + $0x52] sm:$0xff] %vm326_vm1, %v13848_v24  ;;  %519 = vst.msk [vmem:[#allocation3 + $0x5a] sm:$0xff] %vm326_vm1, %v13849_v25  ;;  %16374 = vmatmul.mubr.msk.f32.gmra.mrb[2].mxu0 %vm326_vm1, %v2475_v27  ;;  %v2478_v30 = vld [vmem:[#allocation2 + $0x45] sm:$0xff]  ;;  %v2479_v31 = vld [vmem:[#allocation2 + $0x4d] sm:$0xff] }
  0x49   : > { %16376 = vmatprep.mubr.msk.f32.mxu0 %vm326_vm1, %v2476_v28  ;;  %v2480_v32 = vld [vmem:[#allocation2 + $0x55] sm:$0xff]  ;;  %v2481_v34 = vld [vmem:[#allocation2 + $0x5d] sm:$0xff]  ;;  %523 = vst.msk [vmem:[#allocation3 + $0x66] sm:$0xff] %vm326_vm1, %v13850_v33  ;;  %v2482_v38 = vld [vmem:[#allocation2 + $0x65] sm:$0xff] }
  0x4a   : > { %524 = vst.msk [vmem:[#allocation3 + $0x6e] sm:$0xff] %vm326_vm1, %v13851_v35  ;;  %528 = vst.msk [vmem:[#allocation3 + $0x7a] sm:$0xff] %vm326_vm1, %v13852_v36  ;;  %v2483_v48 = vld [vmem:[#allocation2 + $0x6d] sm:$0xff]  ;;  %v2484_v58 = vld [vmem:[#allocation2 + $0x75] sm:$0xff] }
  0x4b   : > { %529 = vst.msk [vmem:[#allocation3 + $0x82] sm:$0xff] %vm326_vm1, %v13853_v37  ;;  %533 = vst.msk [vmem:[#allocation3 + $0x8e] sm:$0xff] %vm326_vm1, %v13854_v39  ;;  %v2485_v61 = vld [vmem:[#allocation2 + $0x7d] sm:$0xff]  ;;  %v2486_v62 = vld [vmem:[#allocation2 + $0x85] sm:$0xff] }
  0x4c   : > { %16377 = vmatmul.mubr.msk.f32.gmra.mrb[4].mxu0 %vm326_vm1, %v2477_v29  ;;  %534 = vst.msk [vmem:[#allocation3 + $0x96] sm:$0xff] %vm326_vm1, %v13855_v40  ;;  %538 = vst.msk [vmem:[#allocation3 + $0xa2] sm:$0xff] %vm326_vm1, %v13856_v41  ;;  %v2487_v63 = vld [vmem:[#allocation2 + $0x8d] sm:$0xff]  ;;  %v2488_v0 = vld [vmem:[#allocation2 + $0x95] sm:$0xff] }
  0x4d   : > { %16379 = vmatprep.mubr.msk.f32.mxu0 %vm326_vm1, %v2478_v30  ;;  %539 = vst.msk [vmem:[#allocation3 + $0xaa] sm:$0xff] %vm326_vm1, %v13857_v42  ;;  %543 = vst.msk [vmem:[#allocation3 + $0xb6] sm:$0xff] %vm326_vm1, %v13858_v43  ;;  %v2489_v1 = vld [vmem:[#allocation2 + $0x9d] sm:$0xff]  ;;  %v2490_v2 = vld [vmem:[#allocation2 + $0xa5] sm:$0xff] }
  0x4e   : > { %544 = vst.msk [vmem:[#allocation3 + $0xbe] sm:$0xff] %vm326_vm1, %v13859_v44  ;;  %548 = vst.msk [vmem:[#allocation3 + $0xca] sm:$0xff] %vm326_vm1, %v13860_v45  ;;  %v2491_v3 = vld [vmem:[#allocation2 + $0xad] sm:$0xff]  ;;  %v2944_v16 = vld [vmem:[#allocation3 + $0x25] sm:$0xff] }
  0x4f   : > { %549 = vst.msk [vmem:[#allocation3 + $0xd2] sm:$0xff] %vm326_vm1, %v13861_v46  ;;  %553 = vst.msk [vmem:[#allocation3 + $0xde] sm:$0xff] %vm326_vm1, %v13862_v47  ;;  %v2945_v19 = vld [vmem:[#allocation3 + $0x2d] sm:$0xff]  ;;  %v2946_v20 = vld [vmem:[#allocation3 + $0x35] sm:$0xff] }
  0x50   : > { %16380 = vmatmul.mubr.msk.f32.gmra.mrb[6].mxu0 %vm326_vm1, %v2479_v31  ;;  %554 = vst.msk [vmem:[#allocation3 + $0xe6] sm:$0xff] %vm326_vm1, %v13863_v49  ;;  %558 = vst.msk [vmem:[#allocation3 + $0xf2] sm:$0xff] %vm326_vm1, %v13864_v50  ;;  %v2947_v21 = vld [vmem:[#allocation3 + $0x3d] sm:$0xff]  ;;  %v13838_v22 = vld [vmem:[%s19224_s15 + $0xc0] sm:$0xff] }
  0x51   : > { %16382 = vmatprep.mubr.msk.f32.mxu0 %vm326_vm1, %v2480_v32  ;;  %559 = vst.msk [vmem:[#allocation3 + $0xfa] sm:$0xff] %vm326_vm1, %v13865_v51  ;;  %563 = vst.msk [vmem:[#allocation3 + $0x106] sm:$0xff] %vm326_vm1, %v13866_v52  ;;  %v2948_v23 = vld [vmem:[#allocation3 + $0x45] sm:$0xff]  ;;  %v13839_v24 = vld [vmem:[%s19224_s15 + $0xc8] sm:$0xff] }
  0x52   : > { %564 = vst.msk [vmem:[#allocation3 + $0x10e] sm:$0xff] %vm326_vm1, %v13867_v53  ;;  %568 = vst.msk [vmem:[#allocation3 + $0x11a] sm:$0xff] %vm326_vm1, %v13868_v54  ;;  %v13841_v25 = vld [vmem:[%s19224_s15 + $0xd8] sm:$0xff]  ;;  %v2950_v27 = vld [vmem:[#allocation3 + $0x55] sm:$0xff] }
  0x53   : > { %569 = vst.msk [vmem:[#allocation3 + $0x122] sm:$0xff] %vm326_vm1, %v13869_v55  ;;  %573 = vst.msk [vmem:[#allocation3 + $0x12e] sm:$0xff] %vm326_vm1, %v13870_v56  ;;  %v2949_v26 = vld [vmem:[#allocation3 + $0x4d] sm:$0xff]  ;;  %v2951_v29 = vld [vmem:[#allocation3 + $0x5d] sm:$0xff] }
  0x54   : > { %16383 = vmatmul.mubr.msk.f32.gmra.mrb[8].mxu0 %vm326_vm1, %v2481_v34  ;;  %574 = vst.msk [vmem:[#allocation3 + $0x136] sm:$0xff] %vm326_vm1, %v13871_v57  ;;  %578 = vst.msk [vmem:[#allocation3 + $0x142] sm:$0xff] %vm326_vm1, %v13872_v59  ;;  %v13842_v28 = vld [vmem:[%s19224_s15 + $0xe0] sm:$0xff]  ;;  %v2952_v30 = vld [vmem:[#allocation3 + $0x65] sm:$0xff] }
  0x55   : > { %16385 = vmatprep.mubr.msk.f32.mxu0 %vm326_vm1, %v2482_v38  ;;  %579 = vst.msk [vmem:[#allocation3 + $0x14a] sm:$0xff] %vm326_vm1, %v13873_v60  ;;  %464 = vst.msk [vmem:[#allocation2 + $0xb6] sm:$0xff] %vm326_vm1, %v13828_v5  ;;  %v13843_v31 = vld [vmem:[%s19224_s15 + $0xe8] sm:$0xff]  ;;  %v13844_v32 = vld [vmem:[%s19224_s15 + $0xf0] sm:$0xff] }
  0x56   : > { %465 = vst.msk [vmem:[#allocation2 + $0xbe] sm:$0xff] %vm326_vm1, %v13829_v6  ;;  %469 = vst.msk [vmem:[#allocation2 + $0xca] sm:$0xff] %vm326_vm1, %v13830_v7  ;;  %v2953_v33 = vld [vmem:[#allocation3 + $0x6d] sm:$0xff]  ;;  %v2954_v34 = vld [vmem:[#allocation3 + $0x75] sm:$0xff] }
  0x57   : > { %470 = vst.msk [vmem:[#allocation2 + $0xd2] sm:$0xff] %vm326_vm1, %v13831_v8  ;;  %474 = vst.msk [vmem:[#allocation2 + $0xde] sm:$0xff] %vm326_vm1, %v13832_v10  ;;  %v13845_v35 = vld [vmem:[%s19224_s15 + $0xf8] sm:$0xff]  ;;  %v2955_v36 = vld [vmem:[#allocation3 + $0x7d] sm:$0xff] }
  0x58   : > { %16386 = vmatmul.mubr.msk.f32.gmra.mrb[10].mxu0 %vm326_vm1, %v2483_v48  ;;  %475 = vst.msk [vmem:[#allocation2 + $0xe6] sm:$0xff] %vm326_vm1, %v13833_v11  ;;  %479 = vst.msk [vmem:[#allocation2 + $0xf2] sm:$0xff] %vm326_vm1, %v13834_v12  ;;  %v2956_v37 = vld [vmem:[#allocation3 + $0x85] sm:$0xff]  ;;  %v2957_v38 = vld [vmem:[#allocation3 + $0x8d] sm:$0xff] }
  0x59   : > { %16388 = vmatprep.mubr.msk.f32.mxu0 %vm326_vm1, %v2484_v58  ;;  %480 = vst.msk [vmem:[#allocation2 + $0xfa] sm:$0xff] %vm326_vm1, %v13835_v13  ;;  %484 = vst.msk [vmem:[#allocation2 + $0x106] sm:$0xff] %vm326_vm1, %v13836_v15  ;;  %v2958_v39 = vld [vmem:[#allocation3 + $0x95] sm:$0xff]  ;;  %v2959_v40 = vld [vmem:[#allocation3 + $0x9d] sm:$0xff] }
  0x5a   : > { %485 = vst.msk [vmem:[#allocation2 + $0x10e] sm:$0xff] %vm326_vm1, %v13837_v17  ;;  %489 = vst.msk [vmem:[#allocation2 + $0x11a] sm:$0xff] %vm326_vm1, %v13838_v22  ;;  %v2960_v41 = vld [vmem:[#allocation3 + $0xa5] sm:$0xff]  ;;  %v2961_v42 = vld [vmem:[#allocation3 + $0xad] sm:$0xff] }
  0x5b   : > { %490 = vst.msk [vmem:[#allocation2 + $0x122] sm:$0xff] %vm326_vm1, %v13839_v24  ;;  %495 = vst.msk [vmem:[#allocation2 + $0x136] sm:$0xff] %vm326_vm1, %v13841_v25  ;;  %v2962_v43 = vld [vmem:[#allocation3 + $0xb5] sm:$0xff]  ;;  %v2963_v44 = vld [vmem:[#allocation3 + $0xbd] sm:$0xff] }
  0x5c   : > { %16389 = vmatmul.mubr.msk.f32.gmra.mrb[12].mxu0 %vm326_vm1, %v2485_v61  ;;  %499 = vst.msk [vmem:[#allocation2 + $0x142] sm:$0xff] %vm326_vm1, %v13842_v28  ;;  %500 = vst.msk [vmem:[#allocation2 + $0x14a] sm:$0xff] %vm326_vm1, %v13843_v31  ;;  %v2964_v45 = vld [vmem:[#allocation3 + $0xc5] sm:$0xff]  ;;  %v2965_v46 = vld [vmem:[#allocation3 + $0xcd] sm:$0xff] }
  0x5d   : > { %16391 = vmatprep.mubr.msk.f32.mxu0 %vm326_vm1, %v2486_v62  ;;  %504 = vst.msk [vmem:[#allocation2 + $0x156] sm:$0xff] %vm326_vm1, %v13844_v32  ;;  %505 = vst.msk [vmem:[#allocation2 + $0x15e] sm:$0xff] %vm326_vm1, %v13845_v35  ;;  %v2966_v47 = vld [vmem:[#allocation3 + $0xd5] sm:$0xff]  ;;  %v2967_v48 = vld [vmem:[#allocation3 + $0xdd] sm:$0xff] }
  0x5e   : > { %v2968_v49 = vld [vmem:[#allocation3 + $0xe5] sm:$0xff]  ;;  %v2969_v50 = vld [vmem:[#allocation3 + $0xed] sm:$0xff]  ;;  %v2970_v51 = vld [vmem:[#allocation3 + $0xf5] sm:$0xff] }
  0x5f   : > { %v2971_v52 = vld [vmem:[#allocation3 + $0xfd] sm:$0xff]  ;;  %v2972_v53 = vld [vmem:[#allocation3 + $0x105] sm:$0xff]  ;;  %v2973_v54 = vld [vmem:[#allocation3 + $0x10d] sm:$0xff] }
  0x60   : > { %16392 = vmatmul.mubr.msk.f32.gmra.mrb[14].mxu0 %vm326_vm1, %v2487_v63  ;;  %v2974_v55 = vld [vmem:[#allocation3 + $0x115] sm:$0xff]  ;;  %v2975_v56 = vld [vmem:[#allocation3 + $0x11d] sm:$0xff]  ;;  %v2976_v57 = vld [vmem:[#allocation3 + $0x125] sm:$0xff] }
  0x61   : > { %16394 = vmatprep.mubr.msk.f32.mxu0 %vm326_vm1, %v2488_v0  ;;  %v2977_v58 = vld [vmem:[#allocation3 + $0x12d] sm:$0xff]  ;;  %v2978_v59 = vld [vmem:[#allocation3 + $0x135] sm:$0xff]  ;;  %v2979_v60 = vld [vmem:[#allocation3 + $0x13d] sm:$0xff] }
  0x62   : > { %v2980_v61 = vld [vmem:[#allocation3 + $0x145] sm:$0xff]  ;;  %v2981_v62 = vld [vmem:[#allocation3 + $0x14d] sm:$0xff]  ;;  %v3412_v63 = vld [vmem:[#allocation2 + $0x27] sm:$0xff] }
  0x63   : > { %v3413_v0 = vld [vmem:[#allocation2 + $0x2f] sm:$0xff]  ;;  %v3418_v6 = vld [vmem:[#allocation2 + $0x57] sm:$0xff]  ;;  %v3419_v7 = vld [vmem:[#allocation2 + $0x5f] sm:$0xff] }
  0x64   : > { %16395 = vmatmul.mubr.msk.f32.gmra.mrb[16].mxu0 %vm326_vm1, %v2489_v1  ;;  %v3414_v1 = vld [vmem:[#allocation2 + $0x37] sm:$0xff]  ;;  %v3417_v5 = vld [vmem:[#allocation2 + $0x4f] sm:$0xff]  ;;  %v3420_v8 = vld [vmem:[#allocation2 + $0x67] sm:$0xff] }
  0x65   : > { %16397 = vmatprep.mubr.msk.f32.mxu0 %vm326_vm1, %v2490_v2  ;;  %v19436_v2 = vld [vmem:[%s21944_s3 + $0x8] sm:$0x3]  ;;  %v3421_v10 = vld [vmem:[#allocation2 + $0x6f] sm:$0xff]  ;;  %v3422_v11 = vld [vmem:[#allocation2 + $0x77] sm:$0xff] }
  0x66   : > { %v13874_v12 = vld [vmem:[%s19252_s20 + $0xf0] sm:$0xff]  ;;  %v3423_v13 = vld [vmem:[#allocation2 + $0x7f] sm:$0xff] }
  0x67   : > { %583 = vst.msk [vmem:[#allocation3 + $0x156] sm:$0xff] %vm326_vm1, %v13874_v12  ;;  %v13875_v15 = vld [vmem:[%s19252_s20 + $0xf8] sm:$0xff]  ;;  %v3433_v24 = vld [vmem:[#allocation2 + $0xcf] sm:$0xff] }
  0x68   : > { %16398 = vmatmul.mubr.msk.f32.gmra.mrb[18].mxu0 %vm326_vm1, %v2491_v3  ;;  %v3415_v3 = vld [vmem:[#allocation2 + $0x3f] sm:$0xff]  ;;  %584 = vst.msk [vmem:[#allocation3 + $0x15e] sm:$0xff] %vm326_vm1, %v13875_v15  ;;  %v3426_v17 = vld [vmem:[#allocation2 + $0x97] sm:$0xff]  ;;  %v3441_v31 = vld [vmem:[#allocation2 + $0x10f] sm:$0xff] }
  0x69   : > { %16432 = vmatprep.mubr.msk.f32.mxu0 %vm326_vm1, %v2942_v4  ;;  %v3416_v4 = vld [vmem:[#allocation2 + $0x47] sm:$0xff]  ;;  %v3431_v22 = vld [vmem:[#allocation2 + $0xbf] sm:$0xff]  ;;  %v3438_v28 = vld [vmem:[#allocation2 + $0xf7] sm:$0xff] }
  0x6a   : > { %v3435_v25 = vld [vmem:[#allocation2 + $0xdf] sm:$0xff]  ;;  %v3442_v32 = vld [vmem:[#allocation2 + $0x117] sm:$0xff]  ;;  %v3917_v15 = vld [vmem:[#allocation3 + $0x13f] sm:$0xff] }
  0x6b   : > { %v3914_v12 = vld [vmem:[#allocation3 + $0x127] sm:$0xff] }
  0x6c   : > { %16433 = vmatmul.mubr.msk.f32.vlgmr.msra.gmra.mrb[0].mxu0 %vm326_vm1, %v2943_v14  ;;  %v3424_v14 = vld [vmem:[#allocation2 + $0x87] sm:$0xff] }
  0x6d   : > { %16493 = vmatpush3.msk.msra.mxu0 %vm754_vm0, %v19238_v9  ;;  %16435 = vmatprep.mubr.msk.f32.mxu0 %vm326_vm1, %v2944_v16  ;;  %v13840_v9 = vld [vmem:[%s19224_s15 + $0xd0] sm:$0xff] }
  0x6e   : > { %16554 = vmatprep.subr.msk.mxu0 %vm754_vm0, %v19370_v18  ;;  %494 = vst.msk [vmem:[#allocation2 + $0x12e] sm:$0xff] %vm326_vm1, %v13840_v9  ;;  %v3425_v16 = vld [vmem:[#allocation2 + $0x8f] sm:$0xff]  ;;  %v3434_v9 = vld [vmem:[#allocation2 + $0xd7] sm:$0xff] }
  0x70   : > { %16436 = vmatmul.mubr.msk.f32.gmra.mrb[2].mxu0 %vm326_vm1, %v2945_v19  ;;  %v3428_v19 = vld [vmem:[#allocation2 + $0xa7] sm:$0xff] }
  0x71   : > { %16438 = vmatprep.mubr.msk.f32.mxu0 %vm326_vm1, %v2946_v20  ;;  %v3429_v20 = vld [vmem:[#allocation2 + $0xaf] sm:$0xff] }
  0x74   : > { %16439 = vmatmul.mubr.msk.f32.gmra.mrb[4].mxu0 %vm326_vm1, %v2947_v21  ;;  %v3430_v21 = vld [vmem:[#allocation2 + $0xb7] sm:$0xff] }
  0x75   : > { %16441 = vmatprep.mubr.msk.f32.mxu0 %vm326_vm1, %v2948_v23  ;;  %v3432_v23 = vld [vmem:[#allocation2 + $0xc7] sm:$0xff]  ;;  %v3445_v35 = vld [vmem:[#allocation2 + $0x12f] sm:$0xff] }
  0x78   : > { %16442 = vmatmul.mubr.msk.f32.gmra.mrb[6].mxu0 %vm326_vm1, %v2949_v26  ;;  %v3436_v26 = vld [vmem:[#allocation2 + $0xe7] sm:$0xff] }
  0x79   : > { %16444 = vmatprep.mubr.msk.f32.mxu0 %vm326_vm1, %v2950_v27  ;;  %v3437_v27 = vld [vmem:[#allocation2 + $0xef] sm:$0xff] }
  0x7c   : > { %16445 = vmatmul.mubr.msk.f32.gmra.mrb[8].mxu0 %vm326_vm1, %v2951_v29  ;;  %v3439_v29 = vld [vmem:[#allocation2 + $0xff] sm:$0xff] }
  0x7d   : > { %16447 = vmatprep.mubr.msk.f32.mxu0 %vm326_vm1, %v2952_v30  ;;  %v3440_v30 = vld [vmem:[#allocation2 + $0x107] sm:$0xff] }
  0x80   : > { %16448 = vmatmul.mubr.msk.f32.gmra.mrb[10].mxu0 %vm326_vm1, %v2953_v33  ;;  %v3443_v33 = vld [vmem:[#allocation2 + $0x11f] sm:$0xff] }
  0x81   : > { %16450 = vmatprep.mubr.msk.f32.mxu0 %vm326_vm1, %v2954_v34  ;;  %v3444_v34 = vld [vmem:[#allocation2 + $0x127] sm:$0xff] }
  0x84   : > { %16451 = vmatmul.mubr.msk.f32.gmra.mrb[12].mxu0 %vm326_vm1, %v2955_v36  ;;  %v3446_v36 = vld [vmem:[#allocation2 + $0x137] sm:$0xff] }
  0x85   : > { %16453 = vmatprep.mubr.msk.f32.mxu0 %vm326_vm1, %v2956_v37  ;;  %v3447_v37 = vld [vmem:[#allocation2 + $0x13f] sm:$0xff] }
  0x88   : > { %16454 = vmatmul.mubr.msk.f32.gmra.mrb[14].mxu0 %vm326_vm1, %v2957_v38  ;;  %v3448_v38 = vld [vmem:[#allocation2 + $0x147] sm:$0xff] }
  0x89   : > { %16456 = vmatprep.mubr.msk.f32.mxu0 %vm326_vm1, %v2958_v39  ;;  %v3449_v39 = vld [vmem:[#allocation2 + $0x14f] sm:$0xff] }
  0x8c   : > { %16457 = vmatmul.mubr.msk.f32.gmra.mrb[16].mxu0 %vm326_vm1, %v2959_v40  ;;  %v3450_v40 = vld [vmem:[#allocation2 + $0x157] sm:$0xff] }
  0x8d   : > { %16459 = vmatprep.mubr.msk.f32.mxu0 %vm326_vm1, %v2960_v41  ;;  %v3451_v41 = vld [vmem:[#allocation2 + $0x15f] sm:$0xff] }
  0x90   : > { %16460 = vmatmul.mubr.msk.f32.gmra.mrb[18].mxu0 %vm326_vm1, %v2961_v42  ;;  %v3882_v42 = vld [vmem:[#allocation3 + $0x27] sm:$0xff] }
  0x91   : > { %16462 = vmatprep.mubr.msk.f32.mxu0 %vm326_vm1, %v2962_v43  ;;  %v3883_v43 = vld [vmem:[#allocation3 + $0x2f] sm:$0xff] }
  0x94   : > { %16463 = vmatmul.mubr.msk.f32.gmra.mrb[20].mxu0 %vm326_vm1, %v2963_v44  ;;  %v3884_v44 = vld [vmem:[#allocation3 + $0x37] sm:$0xff] }
  0x95   : > { %16465 = vmatprep.mubr.msk.f32.mxu0 %vm326_vm1, %v2964_v45  ;;  %v19489_v45 = vld [vmem:[%s21945_s4 + $0x8] sm:$0x3] }
  0x98   : > { %16466 = vmatmul.mubr.msk.f32.gmra.mrb[22].mxu0 %vm326_vm1, %v2965_v46  ;;  %v3885_v46 = vld [vmem:[#allocation3 + $0x3f] sm:$0xff] }
  0x99   : > { %16468 = vmatprep.mubr.msk.f32.mxu0 %vm326_vm1, %v2966_v47  ;;  %v3886_v47 = vld [vmem:[#allocation3 + $0x47] sm:$0xff] }
  0x9c   : > { %16469 = vmatmul.mubr.msk.f32.gmra.mrb[24].mxu0 %vm326_vm1, %v2967_v48  ;;  %v3887_v48 = vld [vmem:[#allocation3 + $0x4f] sm:$0xff] }
  0x9d   : > { %16471 = vmatprep.mubr.msk.f32.mxu0 %vm326_vm1, %v2968_v49  ;;  %v3888_v49 = vld [vmem:[#allocation3 + $0x57] sm:$0xff] }
  0xa0   : > { %16472 = vmatmul.mubr.msk.f32.gmra.mrb[26].mxu0 %vm326_vm1, %v2969_v50  ;;  %v3889_v50 = vld [vmem:[#allocation3 + $0x5f] sm:$0xff] }
  0xa1   : > { %16474 = vmatprep.mubr.msk.f32.mxu0 %vm326_vm1, %v2970_v51  ;;  %v3890_v51 = vld [vmem:[#allocation3 + $0x67] sm:$0xff] }
  0xa4   : > { %16475 = vmatmul.mubr.msk.f32.gmra.mrb[28].mxu0 %vm326_vm1, %v2971_v52  ;;  %v3891_v52 = vld [vmem:[#allocation3 + $0x6f] sm:$0xff] }
  0xa5   : > { %16477 = vmatprep.mubr.msk.f32.mxu0 %vm326_vm1, %v2972_v53  ;;  %v3892_v53 = vld [vmem:[#allocation3 + $0x77] sm:$0xff] }
  0xa8   : > { %16478 = vmatmul.mubr.msk.f32.gmra.mrb[30].mxu0 %vm326_vm1, %v2973_v54  ;;  %v3893_v54 = vld [vmem:[#allocation3 + $0x7f] sm:$0xff] }
  0xa9   : > { %16480 = vmatprep.mubr.msk.f32.mxu0 %vm326_vm1, %v2974_v55  ;;  %v3894_v55 = vld [vmem:[#allocation3 + $0x87] sm:$0xff] }
  0xac   : > { %16481 = vmatmul.mubr.msk.f32.gmra.mrb[32].mxu0 %vm326_vm1, %v2975_v56  ;;  %v3895_v56 = vld [vmem:[#allocation3 + $0x8f] sm:$0xff] }
  0xad   : > { %16483 = vmatprep.mubr.msk.f32.mxu0 %vm326_vm1, %v2976_v57  ;;  %v3896_v57 = vld [vmem:[#allocation3 + $0x97] sm:$0xff] }
  0xb0   : > { %16484 = vmatmul.mubr.msk.f32.gmra.mrb[34].mxu0 %vm326_vm1, %v2977_v58  ;;  %v3897_v58 = vld [vmem:[#allocation3 + $0x9f] sm:$0xff] }
  0xb1   : > { %16486 = vmatprep.mubr.msk.f32.mxu0 %vm326_vm1, %v2978_v59  ;;  %v3898_v59 = vld [vmem:[#allocation3 + $0xa7] sm:$0xff] }
  0xb4   : > { %16487 = vmatmul.mubr.msk.f32.gmra.mrb[36].mxu0 %vm326_vm1, %v2979_v60  ;;  %v3899_v60 = vld [vmem:[#allocation3 + $0xaf] sm:$0xff] }
  0xb5   : > { %16489 = vmatprep.mubr.msk.f32.mxu0 %vm326_vm1, %v2980_v61  ;;  %v3900_v61 = vld [vmem:[#allocation3 + $0xb7] sm:$0xff] }
  0xb8   : > { %16490 = vmatmul.mubr.msk.f32.gmra.mrb[38].mxu0 %vm326_vm1, %v2981_v62  ;;  %v3901_v62 = vld [vmem:[#allocation3 + $0xbf] sm:$0xff] }
  0xb9   : > { %16494 = vmatprep.mubr.msk.f32.mxu0 %vm326_vm1, %v3412_v63  ;;  %v3902_v63 = vld [vmem:[#allocation3 + $0xc7] sm:$0xff] }
  0xbc   : > { %16495 = vmatmul.mubr.msk.f32.vlgmr.msra.gmra.mrb[0].mxu0 %vm326_vm1, %v3413_v0  ;;  %v3903_v0 = vld [vmem:[#allocation3 + $0xcf] sm:$0xff] }
  0xbd   : > { %16555 = vmatpush3.msk.msra.mxu0 %vm754_vm0, %v19370_v18  ;;  %16497 = vmatprep.mubr.msk.f32.mxu0 %vm326_vm1, %v3414_v1  ;;  %v3427_v18 = vld [vmem:[#allocation2 + $0x9f] sm:$0xff]  ;;  %v3904_v1 = vld [vmem:[#allocation3 + $0xd7] sm:$0xff] }
  0xbe   : > { %16616 = vmatprep.subr.msk.mxu0 %vm754_vm0, %v19436_v2 }
  0xc0   : > { %16498 = vmatmul.mubr.msk.f32.gmra.mrb[2].mxu0 %vm326_vm1, %v3415_v3  ;;  %v3906_v3 = vld [vmem:[#allocation3 + $0xe7] sm:$0xff] }
  0xc1   : > { %16500 = vmatprep.mubr.msk.f32.mxu0 %vm326_vm1, %v3416_v4  ;;  %v3907_v4 = vld [vmem:[#allocation3 + $0xef] sm:$0xff] }
  0xc4   : > { %16501 = vmatmul.mubr.msk.f32.gmra.mrb[4].mxu0 %vm326_vm1, %v3417_v5  ;;  %v3908_v5 = vld [vmem:[#allocation3 + $0xf7] sm:$0xff] }
  0xc5   : > { %16503 = vmatprep.mubr.msk.f32.mxu0 %vm326_vm1, %v3418_v6  ;;  %v3909_v6 = vld [vmem:[#allocation3 + $0xff] sm:$0xff] }
  0xc8   : > { %16504 = vmatmul.mubr.msk.f32.gmra.mrb[6].mxu0 %vm326_vm1, %v3419_v7  ;;  %v3910_v7 = vld [vmem:[#allocation3 + $0x107] sm:$0xff] }
  0xc9   : > { %16506 = vmatprep.mubr.msk.f32.mxu0 %vm326_vm1, %v3420_v8  ;;  %v3911_v8 = vld [vmem:[#allocation3 + $0x10f] sm:$0xff] }
  0xcc   : > { %16507 = vmatmul.mubr.msk.f32.gmra.mrb[8].mxu0 %vm326_vm1, %v3421_v10  ;;  %v3912_v10 = vld [vmem:[#allocation3 + $0x117] sm:$0xff] }
  0xcd   : > { %16509 = vmatprep.mubr.msk.f32.mxu0 %vm326_vm1, %v3422_v11  ;;  %v3913_v11 = vld [vmem:[#allocation3 + $0x11f] sm:$0xff] }
  0xd0   : > { %16510 = vmatmul.mubr.msk.f32.gmra.mrb[10].mxu0 %vm326_vm1, %v3423_v13  ;;  %v3915_v13 = vld [vmem:[#allocation3 + $0x12f] sm:$0xff] }
  0xd1   : > { %16512 = vmatprep.mubr.msk.f32.mxu0 %vm326_vm1, %v3424_v14  ;;  %v3916_v14 = vld [vmem:[#allocation3 + $0x137] sm:$0xff] }
  0xd4   : > { %16513 = vmatmul.mubr.msk.f32.gmra.mrb[12].mxu0 %vm326_vm1, %v3425_v16  ;;  %v3918_v16 = vld [vmem:[#allocation3 + $0x147] sm:$0xff] }
  0xd5   : > { %16515 = vmatprep.mubr.msk.f32.mxu0 %vm326_vm1, %v3426_v17  ;;  %v3919_v17 = vld [vmem:[#allocation3 + $0x14f] sm:$0xff] }
  0xd8   : > { %16516 = vmatmul.mubr.msk.f32.gmra.mrb[14].mxu0 %vm326_vm1, %v3427_v18  ;;  %v3920_v18 = vld [vmem:[#allocation3 + $0x157] sm:$0xff] }
  0xd9   : > { %16518 = vmatprep.mubr.msk.f32.mxu0 %vm326_vm1, %v3428_v19  ;;  %v3921_v19 = vld [vmem:[#allocation3 + $0x15f] sm:$0xff] }
  0xdc   : > { %16519 = vmatmul.mubr.msk.f32.gmra.mrb[16].mxu0 %vm326_vm1, %v3429_v20  ;;  %v4352_v20 = vld [vmem:[#allocation2 + $0x28] sm:$0xff] }
  0xdd   : > { %16521 = vmatprep.mubr.msk.f32.mxu0 %vm326_vm1, %v3430_v21  ;;  %v4353_v21 = vld [vmem:[#allocation2 + $0x30] sm:$0xff] }
  0xe0   : > { %16522 = vmatmul.mubr.msk.f32.gmra.mrb[18].mxu0 %vm326_vm1, %v3431_v22  ;;  %v4354_v22 = vld [vmem:[#allocation2 + $0x38] sm:$0xff] }
  0xe1   : > { %16524 = vmatprep.mubr.msk.f32.mxu0 %vm326_vm1, %v3432_v23  ;;  %v19538_v23 = vld [vmem:[%s21944_s3 + $0xa] sm:$0x3] }
  0xe4   : > { %16525 = vmatmul.mubr.msk.f32.gmra.mrb[20].mxu0 %vm326_vm1, %v3433_v24  ;;  %v4355_v24 = vld [vmem:[#allocation2 + $0x40] sm:$0xff] }
  0xe5   : > { %16527 = vmatprep.mubr.msk.f32.mxu0 %vm326_vm1, %v3434_v9  ;;  %v4356_v9 = vld [vmem:[#allocation2 + $0x48] sm:$0xff] }
  0xe8   : > { %16528 = vmatmul.mubr.msk.f32.gmra.mrb[22].mxu0 %vm326_vm1, %v3435_v25  ;;  %v4357_v25 = vld [vmem:[#allocation2 + $0x50] sm:$0xff] }
  0xe9   : > { %16530 = vmatprep.mubr.msk.f32.mxu0 %vm326_vm1, %v3436_v26  ;;  %v4358_v26 = vld [vmem:[#allocation2 + $0x58] sm:$0xff] }
  0xec   : > { %16531 = vmatmul.mubr.msk.f32.gmra.mrb[24].mxu0 %vm326_vm1, %v3437_v27  ;;  %v4359_v27 = vld [vmem:[#allocation2 + $0x60] sm:$0xff] }
  0xed   : > { %16533 = vmatprep.mubr.msk.f32.mxu0 %vm326_vm1, %v3438_v28  ;;  %v4360_v28 = vld [vmem:[#allocation2 + $0x68] sm:$0xff] }
  0xf0   : > { %16534 = vmatmul.mubr.msk.f32.gmra.mrb[26].mxu0 %vm326_vm1, %v3439_v29  ;;  %v4361_v29 = vld [vmem:[#allocation2 + $0x70] sm:$0xff] }
  0xf1   : > { %16536 = vmatprep.mubr.msk.f32.mxu0 %vm326_vm1, %v3440_v30  ;;  %v4362_v30 = vld [vmem:[#allocation2 + $0x78] sm:$0xff] }
  0xf4   : > { %16537 = vmatmul.mubr.msk.f32.gmra.mrb[28].mxu0 %vm326_vm1, %v3441_v31  ;;  %v4363_v31 = vld [vmem:[#allocation2 + $0x80] sm:$0xff] }
  0xf5   : > { %16539 = vmatprep.mubr.msk.f32.mxu0 %vm326_vm1, %v3442_v32  ;;  %v4364_v32 = vld [vmem:[#allocation2 + $0x88] sm:$0xff] }
  0xf8   : > { %16540 = vmatmul.mubr.msk.f32.gmra.mrb[30].mxu0 %vm326_vm1, %v3443_v33  ;;  %v4365_v33 = vld [vmem:[#allocation2 + $0x90] sm:$0xff] }
  0xf9   : > { %16542 = vmatprep.mubr.msk.f32.mxu0 %vm326_vm1, %v3444_v34  ;;  %v4366_v34 = vld [vmem:[#allocation2 + $0x98] sm:$0xff] }
  0xfc   : > { %16543 = vmatmul.mubr.msk.f32.gmra.mrb[32].mxu0 %vm326_vm1, %v3445_v35  ;;  %v633_v35 = vld [vmem:[%s21944_s3] sm:$0x3] }
  0xfd   : > { %16545 = vmatprep.mubr.msk.f32.mxu0 %vm326_vm1, %v3446_v36  ;;  %v4367_v36 = vld [vmem:[#allocation2 + $0xa0] sm:$0xff]  ;;  %16120 = vmatprep.subr.msk.mxu1 %vm754_vm0, %v633_v35 }
  0xfe   : > { %16121 = vmatpush3.msk.msra.mxu1 %vm754_vm0, %v633_v35  ;;  %v623_v35 = vld [vmem:[#allocation2 + $0x103] sm:$0xff] }
 0x100   : > { %16546 = vmatmul.mubr.msk.f32.gmra.mrb[34].mxu0 %vm326_vm1, %v3447_v37  ;;  %v593_v37 = vld [vmem:[#allocation2 + $0x13] sm:$0xff] }
 0x101   : > { %16548 = vmatprep.mubr.msk.f32.mxu0 %vm326_vm1, %v3448_v38  ;;  %v4368_v38 = vld [vmem:[#allocation2 + $0xa8] sm:$0xff]  ;;  %16122 = vmatprep.mubr.msk.f32.mxu1 %vm326_vm1, %v593_v37  ;;  %v4829_v37 = vld [vmem:[#allocation3 + $0x60] sm:$0xff] }
 0x104   : > { %16549 = vmatmul.mubr.msk.f32.gmra.mrb[36].mxu0 %vm326_vm1, %v3449_v39  ;;  %v594_v39 = vld [vmem:[#allocation2 + $0x1b] sm:$0xff] }
 0x105   : > { %16551 = vmatprep.mubr.msk.f32.mxu0 %vm326_vm1, %v3450_v40  ;;  %v4369_v40 = vld [vmem:[#allocation2 + $0xb0] sm:$0xff]  ;;  %16123 = vmatmul.mubr.msk.f32.vlgmr.msra.gmra.mrb[0].mxu1 %vm326_vm1, %v594_v39  ;;  %v4830_v39 = vld [vmem:[#allocation3 + $0x68] sm:$0xff] }
 0x108   : > { %16552 = vmatmul.mubr.msk.f32.gmra.mrb[38].mxu0 %vm326_vm1, %v3451_v41  ;;  %v595_v41 = vld [vmem:[#allocation2 + $0x23] sm:$0xff] }
 0x109   : > { %16556 = vmatprep.mubr.msk.f32.mxu0 %vm326_vm1, %v3882_v42  ;;  %v4370_v42 = vld [vmem:[#allocation2 + $0xb8] sm:$0xff]  ;;  %16125 = vmatprep.mubr.msk.f32.mxu1 %vm326_vm1, %v595_v41  ;;  %v4831_v41 = vld [vmem:[#allocation3 + $0x70] sm:$0xff] }
 0x10c   : > { %16557 = vmatmul.mubr.msk.f32.vlgmr.msra.gmra.mrb[0].mxu0 %vm326_vm1, %v3883_v43  ;;  %v596_v43 = vld [vmem:[#allocation2 + $0x2b] sm:$0xff] }
 0x10d   : > { %16617 = vmatpush3.msk.msra.mxu0 %vm754_vm0, %v19436_v2  ;;  %16559 = vmatprep.mubr.msk.f32.mxu0 %vm326_vm1, %v3884_v44  ;;  %v3905_v2 = vld [vmem:[#allocation3 + $0xdf] sm:$0xff]  ;;  %v4371_v44 = vld [vmem:[#allocation2 + $0xc0] sm:$0xff] }
 0x10e   : > { %16678 = vmatprep.subr.msk.mxu0 %vm754_vm0, %v19489_v45  ;;  %16126 = vmatmul.mubr.msk.f32.gmra.mrb[2].mxu1 %vm326_vm1, %v596_v43  ;;  %v4832_v43 = vld [vmem:[#allocation3 + $0x78] sm:$0xff] }
 0x110   : > { %16560 = vmatmul.mubr.msk.f32.gmra.mrb[2].mxu0 %vm326_vm1, %v3885_v46  ;;  %v4372_v46 = vld [vmem:[#allocation2 + $0xc8] sm:$0xff] }
 0x111   : > { %16562 = vmatprep.mubr.msk.f32.mxu0 %vm326_vm1, %v3886_v47  ;;  %v598_v47 = vld [vmem:[#allocation2 + $0x3b] sm:$0xff] }
 0x114   : > { %16563 = vmatmul.mubr.msk.f32.gmra.mrb[4].mxu0 %vm326_vm1, %v3887_v48  ;;  %v4373_v48 = vld [vmem:[#allocation2 + $0xd0] sm:$0xff] }
 0x115   : > { %16565 = vmatprep.mubr.msk.f32.mxu0 %vm326_vm1, %v3888_v49  ;;  %v599_v49 = vld [vmem:[#allocation2 + $0x43] sm:$0xff] }
 0x118   : > { %16566 = vmatmul.mubr.msk.f32.gmra.mrb[6].mxu0 %vm326_vm1, %v3889_v50  ;;  %v4374_v50 = vld [vmem:[#allocation2 + $0xd8] sm:$0xff] }
 0x119   : > { %16568 = vmatprep.mubr.msk.f32.mxu0 %vm326_vm1, %v3890_v51  ;;  %v600_v51 = vld [vmem:[#allocation2 + $0x4b] sm:$0xff] }
 0x11c   : > { %16569 = vmatmul.mubr.msk.f32.gmra.mrb[8].mxu0 %vm326_vm1, %v3891_v52  ;;  %v4375_v52 = vld [vmem:[#allocation2 + $0xe0] sm:$0xff] }
 0x11d   : > { %16571 = vmatprep.mubr.msk.f32.mxu0 %vm326_vm1, %v3892_v53  ;;  %v601_v53 = vld [vmem:[#allocation2 + $0x53] sm:$0xff] }
 0x120   : > { %16572 = vmatmul.mubr.msk.f32.gmra.mrb[10].mxu0 %vm326_vm1, %v3893_v54  ;;  %v4376_v54 = vld [vmem:[#allocation2 + $0xe8] sm:$0xff] }
 0x121   : > { %16574 = vmatprep.mubr.msk.f32.mxu0 %vm326_vm1, %v3894_v55  ;;  %v602_v55 = vld [vmem:[#allocation2 + $0x5b] sm:$0xff] }
 0x124   : > { %16575 = vmatmul.mubr.msk.f32.gmra.mrb[12].mxu0 %vm326_vm1, %v3895_v56  ;;  %v4377_v56 = vld [vmem:[#allocation2 + $0xf0] sm:$0xff] }
 0x125   : > { %16577 = vmatprep.mubr.msk.f32.mxu0 %vm326_vm1, %v3896_v57  ;;  %v603_v57 = vld [vmem:[#allocation2 + $0x63] sm:$0xff] }
 0x128   : > { %16578 = vmatmul.mubr.msk.f32.gmra.mrb[14].mxu0 %vm326_vm1, %v3897_v58  ;;  %v4378_v58 = vld [vmem:[#allocation2 + $0xf8] sm:$0xff] }
 0x129   : > { %16580 = vmatprep.mubr.msk.f32.mxu0 %vm326_vm1, %v3898_v59  ;;  %v604_v59 = vld [vmem:[#allocation2 + $0x6b] sm:$0xff] }
 0x12c   : > { %16581 = vmatmul.mubr.msk.f32.gmra.mrb[16].mxu0 %vm326_vm1, %v3899_v60  ;;  %v4379_v60 = vld [vmem:[#allocation2 + $0x100] sm:$0xff] }
 0x12d   : > { %16583 = vmatprep.mubr.msk.f32.mxu0 %vm326_vm1, %v3900_v61  ;;  %v605_v61 = vld [vmem:[#allocation2 + $0x73] sm:$0xff] }
 0x130   : > { %16584 = vmatmul.mubr.msk.f32.gmra.mrb[18].mxu0 %vm326_vm1, %v3901_v62  ;;  %v4380_v62 = vld [vmem:[#allocation2 + $0x108] sm:$0xff] }
 0x131   : > { %16586 = vmatprep.mubr.msk.f32.mxu0 %vm326_vm1, %v3902_v63  ;;  %v606_v63 = vld [vmem:[#allocation2 + $0x7b] sm:$0xff] }
 0x134   : > { %16587 = vmatmul.mubr.msk.f32.gmra.mrb[20].mxu0 %vm326_vm1, %v3903_v0  ;;  %v4381_v0 = vld [vmem:[#allocation2 + $0x110] sm:$0xff] }
 0x135   : > { %16589 = vmatprep.mubr.msk.f32.mxu0 %vm326_vm1, %v3904_v1  ;;  %v607_v1 = vld [vmem:[#allocation2 + $0x83] sm:$0xff] }
 0x138   : > { %16590 = vmatmul.mubr.msk.f32.gmra.mrb[22].mxu0 %vm326_vm1, %v3905_v2  ;;  %v4382_v2 = vld [vmem:[#allocation2 + $0x118] sm:$0xff] }
 0x139   : > { %16592 = vmatprep.mubr.msk.f32.mxu0 %vm326_vm1, %v3906_v3  ;;  %v608_v3 = vld [vmem:[#allocation2 + $0x8b] sm:$0xff] }
 0x13c   : > { %16593 = vmatmul.mubr.msk.f32.gmra.mrb[24].mxu0 %vm326_vm1, %v3907_v4  ;;  %v4383_v4 = vld [vmem:[#allocation2 + $0x120] sm:$0xff] }
 0x13d   : > { %16595 = vmatprep.mubr.msk.f32.mxu0 %vm326_vm1, %v3908_v5  ;;  %v609_v5 = vld [vmem:[#allocation2 + $0x93] sm:$0xff] }
 0x140   : > { %16596 = vmatmul.mubr.msk.f32.gmra.mrb[26].mxu0 %vm326_vm1, %v3909_v6  ;;  %v4384_v6 = vld [vmem:[#allocation2 + $0x128] sm:$0xff] }
 0x141   : > { %16598 = vmatprep.mubr.msk.f32.mxu0 %vm326_vm1, %v3910_v7  ;;  %v610_v7 = vld [vmem:[#allocation2 + $0x9b] sm:$0xff] }
 0x144   : > { %16599 = vmatmul.mubr.msk.f32.gmra.mrb[28].mxu0 %vm326_vm1, %v3911_v8  ;;  %v4385_v8 = vld [vmem:[#allocation2 + $0x130] sm:$0xff] }
 0x145   : > { %16601 = vmatprep.mubr.msk.f32.mxu0 %vm326_vm1, %v3912_v10  ;;  %v611_v10 = vld [vmem:[#allocation2 + $0xa3] sm:$0xff] }
 0x148   : > { %16602 = vmatmul.mubr.msk.f32.gmra.mrb[30].mxu0 %vm326_vm1, %v3913_v11  ;;  %v4386_v11 = vld [vmem:[#allocation2 + $0x138] sm:$0xff] }
 0x149   : > { %16604 = vmatprep.mubr.msk.f32.mxu0 %vm326_vm1, %v3914_v12  ;;  %v612_v12 = vld [vmem:[#allocation2 + $0xab] sm:$0xff] }
 0x14c   : > { %16605 = vmatmul.mubr.msk.f32.gmra.mrb[32].mxu0 %vm326_vm1, %v3915_v13  ;;  %v4387_v13 = vld [vmem:[#allocation2 + $0x140] sm:$0xff] }
 0x14d   : > { %16607 = vmatprep.mubr.msk.f32.mxu0 %vm326_vm1, %v3916_v14  ;;  %v613_v14 = vld [vmem:[#allocation2 + $0xb3] sm:$0xff] }
 0x150   : > { %16608 = vmatmul.mubr.msk.f32.gmra.mrb[34].mxu0 %vm326_vm1, %v3917_v15  ;;  %v4388_v15 = vld [vmem:[#allocation2 + $0x148] sm:$0xff] }
 0x151   : > { %16610 = vmatprep.mubr.msk.f32.mxu0 %vm326_vm1, %v3918_v16  ;;  %v614_v16 = vld [vmem:[#allocation2 + $0xbb] sm:$0xff] }
 0x154   : > { %16611 = vmatmul.mubr.msk.f32.gmra.mrb[36].mxu0 %vm326_vm1, %v3919_v17  ;;  %v4389_v17 = vld [vmem:[#allocation2 + $0x150] sm:$0xff] }
 0x155   : > { %16613 = vmatprep.mubr.msk.f32.mxu0 %vm326_vm1, %v3920_v18  ;;  %v615_v18 = vld [vmem:[#allocation2 + $0xc3] sm:$0xff] }
 0x158   : > { %16614 = vmatmul.mubr.msk.f32.gmra.mrb[38].mxu0 %vm326_vm1, %v3921_v19  ;;  %v4390_v19 = vld [vmem:[#allocation2 + $0x158] sm:$0xff] }
 0x159   : > { %16618 = vmatprep.mubr.msk.f32.mxu0 %vm326_vm1, %v4352_v20  ;;  %v616_v20 = vld [vmem:[#allocation2 + $0xcb] sm:$0xff] }
 0x15c   : > { %16619 = vmatmul.mubr.msk.f32.vlgmr.msra.gmra.mrb[0].mxu0 %vm326_vm1, %v4353_v21  ;;  %v4391_v21 = vld [vmem:[#allocation2 + $0x160] sm:$0xff] }
 0x15d   : > { %16679 = vmatpush3.msk.msra.mxu0 %vm754_vm0, %v19489_v45  ;;  %16621 = vmatprep.mubr.msk.f32.mxu0 %vm326_vm1, %v4354_v22  ;;  %v597_v45 = vld [vmem:[#allocation2 + $0x33] sm:$0xff] }
 0x15e   : > { %16740 = vmatprep.subr.msk.mxu0 %vm754_vm0, %v19538_v23  ;;  %16128 = vmatprep.mubr.msk.f32.mxu1 %vm326_vm1, %v597_v45  ;;  %v617_v22 = vld [vmem:[#allocation2 + $0xd3] sm:$0xff] }
 0x15f   : > { %16129 = vmatmul.mubr.msk.f32.gmra.mrb[4].mxu1 %vm326_vm1, %v598_v47  ;;  %v4833_v45 = vld [vmem:[#allocation3 + $0x80] sm:$0xff]  ;;  %v4834_v47 = vld [vmem:[#allocation3 + $0x88] sm:$0xff] }
 0x160   : > { %16622 = vmatmul.mubr.msk.f32.gmra.mrb[2].mxu0 %vm326_vm1, %v4355_v24  ;;  %16131 = vmatprep.mubr.msk.f32.mxu1 %vm326_vm1, %v599_v49  ;;  %v4822_v24 = vld [vmem:[#allocation3 + $0x28] sm:$0xff]  ;;  %v4835_v49 = vld [vmem:[#allocation3 + $0x90] sm:$0xff] }
 0x161   : > { %16624 = vmatprep.mubr.msk.f32.mxu0 %vm326_vm1, %v4356_v9  ;;  %v618_v9 = vld [vmem:[#allocation2 + $0xdb] sm:$0xff] }
 0x163   : > { %16132 = vmatmul.mubr.msk.f32.gmra.mrb[6].mxu1 %vm326_vm1, %v600_v51  ;;  %v4836_v51 = vld [vmem:[#allocation3 + $0x98] sm:$0xff] }
 0x164   : > { %16625 = vmatmul.mubr.msk.f32.gmra.mrb[4].mxu0 %vm326_vm1, %v4357_v25  ;;  %16134 = vmatprep.mubr.msk.f32.mxu1 %vm326_vm1, %v601_v53  ;;  %v4823_v25 = vld [vmem:[#allocation3 + $0x30] sm:$0xff] }
 0x165   : > { %16627 = vmatprep.mubr.msk.f32.mxu0 %vm326_vm1, %v4358_v26  ;;  %v619_v26 = vld [vmem:[#allocation2 + $0xe3] sm:$0xff]  ;;  %v1103_v53 = vld [vmem:[%s21945_s4] sm:$0x3] }
 0x166   : > { %16182 = vmatprep.subr.msk.mxu1 %vm754_vm0, %v1103_v53 }
 0x167   : > { %16135 = vmatmul.mubr.msk.f32.gmra.mrb[8].mxu1 %vm326_vm1, %v602_v55  ;;  %v1063_v55 = vld [vmem:[#allocation3 + $0x13] sm:$0xff] }
 0x168   : > { %16628 = vmatmul.mubr.msk.f32.gmra.mrb[6].mxu0 %vm326_vm1, %v4359_v27  ;;  %16137 = vmatprep.mubr.msk.f32.mxu1 %vm326_vm1, %v603_v57  ;;  %v4824_v27 = vld [vmem:[#allocation3 + $0x38] sm:$0xff] }
 0x169   : > { %16630 = vmatprep.mubr.msk.f32.mxu0 %vm326_vm1, %v4360_v28  ;;  %v19619_v28 = vld [vmem:[%s21945_s4 + $0xa] sm:$0x3]  ;;  %16183 = vmatpush3.msk.msra.mxu1 %vm754_vm0, %v1103_v53  ;;  %v5298_v53 = vld [vmem:[#allocation2 + $0x59] sm:$0xff] }
 0x16a   : > { %v1064_v57 = vld [vmem:[#allocation3 + $0x1b] sm:$0xff] }
 0x16b   : > { %16138 = vmatmul.mubr.msk.f32.gmra.mrb[10].mxu1 %vm326_vm1, %v604_v59  ;;  %v1065_v59 = vld [vmem:[#allocation3 + $0x23] sm:$0xff] }
 0x16c   : > { %16631 = vmatmul.mubr.msk.f32.gmra.mrb[8].mxu0 %vm326_vm1, %v4361_v29  ;;  %16140 = vmatprep.mubr.msk.f32.mxu1 %vm326_vm1, %v605_v61  ;;  %v620_v29 = vld [vmem:[#allocation2 + $0xeb] sm:$0xff]  ;;  %v1066_v61 = vld [vmem:[#allocation3 + $0x2b] sm:$0xff] }
 0x16d   : > { %16633 = vmatprep.mubr.msk.f32.mxu0 %vm326_vm1, %v4362_v30  ;;  %v4825_v30 = vld [vmem:[#allocation3 + $0x40] sm:$0xff] }
 0x16f   : > { %16141 = vmatmul.mubr.msk.f32.gmra.mrb[12].mxu1 %vm326_vm1, %v606_v63  ;;  %v1067_v63 = vld [vmem:[#allocation3 + $0x33] sm:$0xff] }
 0x170   : > { %16634 = vmatmul.mubr.msk.f32.gmra.mrb[10].mxu0 %vm326_vm1, %v4363_v31  ;;  %16143 = vmatprep.mubr.msk.f32.mxu1 %vm326_vm1, %v607_v1  ;;  %v621_v31 = vld [vmem:[#allocation2 + $0xf3] sm:$0xff]  ;;  %v1068_v1 = vld [vmem:[#allocation3 + $0x3b] sm:$0xff] }
 0x171   : > { %16636 = vmatprep.mubr.msk.f32.mxu0 %vm326_vm1, %v4364_v32  ;;  %v4826_v32 = vld [vmem:[#allocation3 + $0x48] sm:$0xff] }
 0x173   : > { %16144 = vmatmul.mubr.msk.f32.gmra.mrb[14].mxu1 %vm326_vm1, %v608_v3  ;;  %v1069_v3 = vld [vmem:[#allocation3 + $0x43] sm:$0xff] }
 0x174   : > { %16637 = vmatmul.mubr.msk.f32.gmra.mrb[12].mxu0 %vm326_vm1, %v4365_v33  ;;  %16146 = vmatprep.mubr.msk.f32.mxu1 %vm326_vm1, %v609_v5  ;;  %v622_v33 = vld [vmem:[#allocation2 + $0xfb] sm:$0xff] }
 0x175   : > { %16639 = vmatprep.mubr.msk.f32.mxu0 %vm326_vm1, %v4366_v34  ;;  %v4827_v34 = vld [vmem:[#allocation3 + $0x50] sm:$0xff] }
 0x176   : > { %v1070_v5 = vld [vmem:[#allocation3 + $0x4b] sm:$0xff] }
 0x177   : > { %16147 = vmatmul.mubr.msk.f32.gmra.mrb[16].mxu1 %vm326_vm1, %v610_v7  ;;  %v1071_v7 = vld [vmem:[#allocation3 + $0x53] sm:$0xff] }
 0x178   : > { %16640 = vmatmul.mubr.msk.f32.gmra.mrb[14].mxu0 %vm326_vm1, %v4367_v36  ;;  %16149 = vmatprep.mubr.msk.f32.mxu1 %vm326_vm1, %v611_v10  ;;  %v624_v36 = vld [vmem:[#allocation2 + $0x10b] sm:$0xff] }
 0x179   : > { %16642 = vmatprep.mubr.msk.f32.mxu0 %vm326_vm1, %v4368_v38  ;;  %v625_v38 = vld [vmem:[#allocation2 + $0x113] sm:$0xff]  ;;  %v1072_v10 = vld [vmem:[#allocation3 + $0x5b] sm:$0xff] }
 0x17b   : > { %16150 = vmatmul.mubr.msk.f32.gmra.mrb[18].mxu1 %vm326_vm1, %v612_v12  ;;  %v1073_v12 = vld [vmem:[#allocation3 + $0x63] sm:$0xff] }
 0x17c   : > { %16643 = vmatmul.mubr.msk.f32.gmra.mrb[16].mxu0 %vm326_vm1, %v4369_v40  ;;  %16152 = vmatprep.mubr.msk.f32.mxu1 %vm326_vm1, %v613_v14  ;;  %v626_v40 = vld [vmem:[#allocation2 + $0x11b] sm:$0xff] }
 0x17d   : > { %16645 = vmatprep.mubr.msk.f32.mxu0 %vm326_vm1, %v4370_v42  ;;  %v627_v42 = vld [vmem:[#allocation2 + $0x123] sm:$0xff]  ;;  %v1074_v14 = vld [vmem:[#allocation3 + $0x6b] sm:$0xff] }
 0x17f   : > { %16153 = vmatmul.mubr.msk.f32.gmra.mrb[20].mxu1 %vm326_vm1, %v614_v16  ;;  %v1075_v16 = vld [vmem:[#allocation3 + $0x73] sm:$0xff] }
 0x180   : > { %16646 = vmatmul.mubr.msk.f32.gmra.mrb[18].mxu0 %vm326_vm1, %v4371_v44  ;;  %16155 = vmatprep.mubr.msk.f32.mxu1 %vm326_vm1, %v615_v18  ;;  %v628_v44 = vld [vmem:[#allocation2 + $0x12b] sm:$0xff] }
 0x181   : > { %16648 = vmatprep.mubr.msk.f32.mxu0 %vm326_vm1, %v4372_v46  ;;  %v629_v46 = vld [vmem:[#allocation2 + $0x133] sm:$0xff]  ;;  %v19683_v18 = vld [vmem:[#allocation3 + $0x7b] sm:$0xff] }
 0x183   : > { %16156 = vmatmul.mubr.msk.f32.gmra.mrb[22].mxu1 %vm326_vm1, %v616_v20  ;;  %v19686_v20 = vld [vmem:[#allocation3 + $0x83] sm:$0xff] }
 0x184   : > { %16649 = vmatmul.mubr.msk.f32.gmra.mrb[20].mxu0 %vm326_vm1, %v4373_v48  ;;  %16158 = vmatprep.mubr.msk.f32.mxu1 %vm326_vm1, %v617_v22  ;;  %v630_v48 = vld [vmem:[#allocation2 + $0x13b] sm:$0xff] }
 0x185   : > { %16651 = vmatprep.mubr.msk.f32.mxu0 %vm326_vm1, %v4374_v50  ;;  %v631_v50 = vld [vmem:[#allocation2 + $0x143] sm:$0xff]  ;;  %v19693_v22 = vld [vmem:[#allocation3 + $0x8b] sm:$0xff] }
 0x187   : > { %16159 = vmatmul.mubr.msk.f32.gmra.mrb[24].mxu1 %vm326_vm1, %v618_v9  ;;  %v19696_v9 = vld [vmem:[#allocation3 + $0x93] sm:$0xff] }
 0x188   : > { %16652 = vmatmul.mubr.msk.f32.gmra.mrb[22].mxu0 %vm326_vm1, %v4375_v52  ;;  %16161 = vmatprep.mubr.msk.f32.mxu1 %vm326_vm1, %v619_v26  ;;  %v632_v52 = vld [vmem:[#allocation2 + $0x14b] sm:$0xff] }
 0x189   : > { %16654 = vmatprep.mubr.msk.f32.mxu0 %vm326_vm1, %v4376_v54  ;;  %v4837_v54 = vld [vmem:[#allocation3 + $0xa0] sm:$0xff] }
 0x18a   : > { %v19703_v26 = vld [vmem:[#allocation3 + $0x9b] sm:$0xff] }
 0x18b   : > { %16162 = vmatmul.mubr.msk.f32.gmra.mrb[26].mxu1 %vm326_vm1, %v620_v29  ;;  %v19706_v29 = vld [vmem:[#allocation3 + $0xa3] sm:$0xff] }
 0x18c   : > { %16655 = vmatmul.mubr.msk.f32.gmra.mrb[24].mxu0 %vm326_vm1, %v4377_v56  ;;  %16164 = vmatprep.mubr.msk.f32.mxu1 %vm326_vm1, %v621_v31  ;;  %v4838_v56 = vld [vmem:[#allocation3 + $0xa8] sm:$0xff] }
 0x18d   : > { %16657 = vmatprep.mubr.msk.f32.mxu0 %vm326_vm1, %v4378_v58  ;;  %v4839_v58 = vld [vmem:[#allocation3 + $0xb0] sm:$0xff] }
 0x18e   : > { %v19713_v31 = vld [vmem:[#allocation3 + $0xab] sm:$0xff] }
 0x18f   : > { %16165 = vmatmul.mubr.msk.f32.gmra.mrb[28].mxu1 %vm326_vm1, %v622_v33  ;;  %v19716_v33 = vld [vmem:[#allocation3 + $0xb3] sm:$0xff] }
 0x190   : > { %16658 = vmatmul.mubr.msk.f32.gmra.mrb[26].mxu0 %vm326_vm1, %v4379_v60  ;;  %16167 = vmatprep.mubr.msk.f32.mxu1 %vm326_vm1, %v623_v35  ;;  %v4840_v60 = vld [vmem:[#allocation3 + $0xb8] sm:$0xff] }
 0x191   : > { %16660 = vmatprep.mubr.msk.f32.mxu0 %vm326_vm1, %v4380_v62  ;;  %v4841_v62 = vld [vmem:[#allocation3 + $0xc0] sm:$0xff] }
 0x192   : > { %v19723_v35 = vld [vmem:[#allocation3 + $0xbb] sm:$0xff] }
 0x193   : > { %16168 = vmatmul.mubr.msk.f32.gmra.mrb[30].mxu1 %vm326_vm1, %v624_v36  ;;  %v19726_v36 = vld [vmem:[#allocation3 + $0xc3] sm:$0xff] }
 0x194   : > { %16661 = vmatmul.mubr.msk.f32.gmra.mrb[28].mxu0 %vm326_vm1, %v4381_v0  ;;  %16170 = vmatprep.mubr.msk.f32.mxu1 %vm326_vm1, %v625_v38  ;;  %v4842_v0 = vld [vmem:[#allocation3 + $0xc8] sm:$0xff] }
 0x195   : > { %16663 = vmatprep.mubr.msk.f32.mxu0 %vm326_vm1, %v4382_v2  ;;  %v4843_v2 = vld [vmem:[#allocation3 + $0xd0] sm:$0xff] }
 0x196   : > { %v19733_v38 = vld [vmem:[#allocation3 + $0xcb] sm:$0xff] }
 0x197   : > { %16171 = vmatmul.mubr.msk.f32.gmra.mrb[32].mxu1 %vm326_vm1, %v626_v40  ;;  %v19736_v40 = vld [vmem:[#allocation3 + $0xd3] sm:$0xff] }
 0x198   : > { %16664 = vmatmul.mubr.msk.f32.gmra.mrb[30].mxu0 %vm326_vm1, %v4383_v4  ;;  %16173 = vmatprep.mubr.msk.f32.mxu1 %vm326_vm1, %v627_v42  ;;  %v4844_v4 = vld [vmem:[#allocation3 + $0xd8] sm:$0xff] }
 0x199   : > { %16666 = vmatprep.mubr.msk.f32.mxu0 %vm326_vm1, %v4384_v6  ;;  %v4845_v6 = vld [vmem:[#allocation3 + $0xe0] sm:$0xff] }
 0x19a   : > { %v19743_v42 = vld [vmem:[#allocation3 + $0xdb] sm:$0xff] }
 0x19b   : > { %16174 = vmatmul.mubr.msk.f32.gmra.mrb[34].mxu1 %vm326_vm1, %v628_v44  ;;  %v19746_v44 = vld [vmem:[#allocation3 + $0xe3] sm:$0xff] }
 0x19c   : > { %16667 = vmatmul.mubr.msk.f32.gmra.mrb[32].mxu0 %vm326_vm1, %v4385_v8  ;;  %16176 = vmatprep.mubr.msk.f32.mxu1 %vm326_vm1, %v629_v46  ;;  %v4846_v8 = vld [vmem:[#allocation3 + $0xe8] sm:$0xff]  ;;  %v19753_v46 = vld [vmem:[%s21944_s3 + $0xc] sm:$0x3] }
 0x19d   : > { %16669 = vmatprep.mubr.msk.f32.mxu0 %vm326_vm1, %v4386_v11  ;;  %v4847_v11 = vld [vmem:[#allocation3 + $0xf0] sm:$0xff] }
 0x19f   : > { %16177 = vmatmul.mubr.msk.f32.gmra.mrb[36].mxu1 %vm326_vm1, %v630_v48  ;;  %v5295_v48 = vld [vmem:[#allocation2 + $0x41] sm:$0xff] }
 0x1a0   : > { %16670 = vmatmul.mubr.msk.f32.gmra.mrb[34].mxu0 %vm326_vm1, %v4387_v13  ;;  %16179 = vmatprep.mubr.msk.f32.mxu1 %vm326_vm1, %v631_v50  ;;  %v4848_v13 = vld [vmem:[#allocation3 + $0xf8] sm:$0xff] }
 0x1a1   : > { %16672 = vmatprep.mubr.msk.f32.mxu0 %vm326_vm1, %v4388_v15  ;;  %v4849_v15 = vld [vmem:[#allocation3 + $0x100] sm:$0xff] }
 0x1a2   : > { %v5296_v50 = vld [vmem:[#allocation2 + $0x49] sm:$0xff] }
 0x1a3   : > { %16180 = vmatmul.mubr.msk.f32.gmra.mrb[38].mxu1 %vm326_vm1, %v632_v52  ;;  %v19775_v52 = vld [vmem:[#allocation3 + $0x103] sm:$0xff] }
 0x1a4   : > { %16673 = vmatmul.mubr.msk.f32.gmra.mrb[36].mxu0 %vm326_vm1, %v4389_v17  ;;  %16184 = vmatprep.mubr.msk.f32.mxu1 %vm326_vm1, %v1063_v55  ;;  %v4850_v17 = vld [vmem:[#allocation3 + $0x108] sm:$0xff]  ;;  %v5299_v55 = vld [vmem:[#allocation2 + $0x61] sm:$0xff] }
 0x1a5   : > { %16675 = vmatprep.mubr.msk.f32.mxu0 %vm326_vm1, %v4390_v19  ;;  %v4851_v19 = vld [vmem:[#allocation3 + $0x110] sm:$0xff] }
 0x1a7   : > { %16185 = vmatmul.mubr.msk.f32.vlgmr.msra.gmra.mrb[0].mxu1 %vm326_vm1, %v1064_v57  ;;  %v5300_v57 = vld [vmem:[#allocation2 + $0x69] sm:$0xff] }
 0x1a8   : > { %16676 = vmatmul.mubr.msk.f32.gmra.mrb[38].mxu0 %vm326_vm1, %v4391_v21  ;;  %16187 = vmatprep.mubr.msk.f32.mxu1 %vm326_vm1, %v1065_v59  ;;  %v4852_v21 = vld [vmem:[#allocation3 + $0x118] sm:$0xff]  ;;  %v5301_v59 = vld [vmem:[#allocation2 + $0x71] sm:$0xff] }
 0x1a9   : > { %16680 = vmatprep.mubr.msk.f32.mxu0 %vm326_vm1, %v4822_v24  ;;  %v4853_v24 = vld [vmem:[#allocation3 + $0x120] sm:$0xff] }
 0x1ab   : > { %16188 = vmatmul.mubr.msk.f32.gmra.mrb[2].mxu1 %vm326_vm1, %v1066_v61  ;;  %v5302_v61 = vld [vmem:[#allocation2 + $0x79] sm:$0xff] }
 0x1ac   : > { %16681 = vmatmul.mubr.msk.f32.vlgmr.msra.gmra.mrb[0].mxu0 %vm326_vm1, %v4823_v25  ;;  %16190 = vmatprep.mubr.msk.f32.mxu1 %vm326_vm1, %v1067_v63  ;;  %v4854_v25 = vld [vmem:[#allocation3 + $0x128] sm:$0xff]  ;;  %v5303_v63 = vld [vmem:[#allocation2 + $0x81] sm:$0xff] }
 0x1ad   : > { %16741 = vmatpush3.msk.msra.mxu0 %vm754_vm0, %v19538_v23  ;;  %16683 = vmatprep.mubr.msk.f32.mxu0 %vm326_vm1, %v4824_v27  ;;  %v4828_v23 = vld [vmem:[#allocation3 + $0x58] sm:$0xff]  ;;  %v4855_v27 = vld [vmem:[#allocation3 + $0x130] sm:$0xff] }
 0x1ae   : > { %16802 = vmatprep.subr.msk.mxu0 %vm754_vm0, %v19619_v28 }
 0x1af   : > { %16191 = vmatmul.mubr.msk.f32.gmra.mrb[4].mxu1 %vm326_vm1, %v1068_v1  ;;  %v5304_v1 = vld [vmem:[#allocation2 + $0x89] sm:$0xff] }
 0x1b0   : > { %16684 = vmatmul.mubr.msk.f32.gmra.mrb[2].mxu0 %vm326_vm1, %v4825_v30  ;;  %16193 = vmatprep.mubr.msk.f32.mxu1 %vm326_vm1, %v1069_v3  ;;  %v4856_v30 = vld [vmem:[#allocation3 + $0x138] sm:$0xff]  ;;  %v5305_v3 = vld [vmem:[#allocation2 + $0x91] sm:$0xff] }
 0x1b1   : > { %16686 = vmatprep.mubr.msk.f32.mxu0 %vm326_vm1, %v4826_v32  ;;  %v4857_v32 = vld [vmem:[#allocation3 + $0x140] sm:$0xff] }
 0x1b3   : > { %16194 = vmatmul.mubr.msk.f32.gmra.mrb[6].mxu1 %vm326_vm1, %v1070_v5  ;;  %v5306_v5 = vld [vmem:[#allocation2 + $0x99] sm:$0xff] }
 0x1b4   : > { %16687 = vmatmul.mubr.msk.f32.gmra.mrb[4].mxu0 %vm326_vm1, %v4827_v34  ;;  %16196 = vmatprep.mubr.msk.f32.mxu1 %vm326_vm1, %v1071_v7  ;;  %v4858_v34 = vld [vmem:[#allocation3 + $0x148] sm:$0xff]  ;;  %v13959_v7 = vld [vmem:[%s21944_s3 + $0x2] sm:$0x3] }
 0x1b5   : > { %16689 = vmatprep.mubr.msk.f32.mxu0 %vm326_vm1, %v4828_v23  ;;  %v4859_v23 = vld [vmem:[#allocation3 + $0x150] sm:$0xff]  ;;  %16244 = vmatprep.subr.msk.mxu1 %vm754_vm0, %v13959_v7 }
 0x1b6   : > { %16245 = vmatpush3.msk.msra.mxu1 %vm754_vm0, %v13959_v7  ;;  %v19902_v7 = vld [vmem:[#allocation2 + $0x9c] sm:$0xff] }
 0x1b7   : > { %16197 = vmatmul.mubr.msk.f32.gmra.mrb[8].mxu1 %vm326_vm1, %v1072_v10  ;;  %v1532_v10 = vld [vmem:[#allocation2 + $0x14] sm:$0xff] }
 0x1b8   : > { %16690 = vmatmul.mubr.msk.f32.gmra.mrb[6].mxu0 %vm326_vm1, %v4829_v37  ;;  %16199 = vmatprep.mubr.msk.f32.mxu1 %vm326_vm1, %v1073_v12  ;;  %v4860_v37 = vld [vmem:[#allocation3 + $0x158] sm:$0xff]  ;;  %v1533_v12 = vld [vmem:[#allocation2 + $0x1c] sm:$0xff] }
 0x1b9   : > { %16692 = vmatprep.mubr.msk.f32.mxu0 %vm326_vm1, %v4830_v39  ;;  %v4861_v39 = vld [vmem:[#allocation3 + $0x160] sm:$0xff] }
 0x1bb   : > { %16200 = vmatmul.mubr.msk.f32.gmra.mrb[10].mxu1 %vm326_vm1, %v1074_v14  ;;  %v1534_v14 = vld [vmem:[#allocation2 + $0x24] sm:$0xff] }
 0x1bc   : > { %16693 = vmatmul.mubr.msk.f32.gmra.mrb[8].mxu0 %vm326_vm1, %v4831_v41  ;;  %16202 = vmatprep.mubr.msk.f32.mxu1 %vm326_vm1, %v1075_v16  ;;  %v5292_v41 = vld [vmem:[#allocation2 + $0x29] sm:$0xff] }
 0x1bd   : > { %16695 = vmatprep.mubr.msk.f32.mxu0 %vm326_vm1, %v4832_v43  ;;  %v5293_v43 = vld [vmem:[#allocation2 + $0x31] sm:$0xff] }
 0x1be   : > { %v1535_v16 = vld [vmem:[#allocation2 + $0x2c] sm:$0xff] }
 0x1bf   : > { %16203 = vmatmul.mubr.msk.f32.gmra.mrb[12].mxu1 %vm326_vm1, %v19683_v18 }
 0x1c0   : > { %16696 = vmatmul.mubr.msk.f32.gmra.mrb[10].mxu0 %vm326_vm1, %v4833_v45  ;;  %16205 = vmatprep.mubr.msk.f32.mxu1 %vm326_vm1, %v19686_v20  ;;  %v5294_v45 = vld [vmem:[#allocation2 + $0x39] sm:$0xff] }
 0x1c1   : > { %16698 = vmatprep.mubr.msk.f32.mxu0 %vm326_vm1, %v4834_v47  ;;  %v19758_v47 = vld [vmem:[#allocation3 + $0xeb] sm:$0xff] }
 0x1c3   : > { %16206 = vmatmul.mubr.msk.f32.gmra.mrb[14].mxu1 %vm326_vm1, %v19693_v22 }
 0x1c4   : > { %16699 = vmatmul.mubr.msk.f32.gmra.mrb[12].mxu0 %vm326_vm1, %v4835_v49  ;;  %16208 = vmatprep.mubr.msk.f32.mxu1 %vm326_vm1, %v19696_v9  ;;  %v19763_v49 = vld [vmem:[#allocation3 + $0xf3] sm:$0xff] }
 0x1c5   : > { %16701 = vmatprep.mubr.msk.f32.mxu0 %vm326_vm1, %v4836_v51  ;;  %v19772_v51 = vld [vmem:[#allocation3 + $0xfb] sm:$0xff] }
 0x1c7   : > { %16209 = vmatmul.mubr.msk.f32.gmra.mrb[16].mxu1 %vm326_vm1, %v19703_v26 }
 0x1c8   : > { %16702 = vmatmul.mubr.msk.f32.gmra.mrb[14].mxu0 %vm326_vm1, %v4837_v54  ;;  %16211 = vmatprep.mubr.msk.f32.mxu1 %vm326_vm1, %v19706_v29  ;;  %v19782_v54 = vld [vmem:[#allocation3 + $0x10b] sm:$0xff] }
 0x1c9   : > { %16704 = vmatprep.mubr.msk.f32.mxu0 %vm326_vm1, %v4838_v56  ;;  %v19785_v56 = vld [vmem:[#allocation3 + $0x113] sm:$0xff] }
 0x1cb   : > { %16212 = vmatmul.mubr.msk.f32.gmra.mrb[18].mxu1 %vm326_vm1, %v19713_v31 }
 0x1cc   : > { %16705 = vmatmul.mubr.msk.f32.gmra.mrb[16].mxu0 %vm326_vm1, %v4839_v58  ;;  %16214 = vmatprep.mubr.msk.f32.mxu1 %vm326_vm1, %v19716_v33  ;;  %v19792_v58 = vld [vmem:[#allocation3 + $0x11b] sm:$0xff] }
 0x1cd   : > { %16707 = vmatprep.mubr.msk.f32.mxu0 %vm326_vm1, %v4840_v60  ;;  %v19795_v60 = vld [vmem:[#allocation3 + $0x123] sm:$0xff] }
 0x1cf   : > { %16215 = vmatmul.mubr.msk.f32.gmra.mrb[20].mxu1 %vm326_vm1, %v19723_v35 }
 0x1d0   : > { %16708 = vmatmul.mubr.msk.f32.gmra.mrb[18].mxu0 %vm326_vm1, %v4841_v62  ;;  %16217 = vmatprep.mubr.msk.f32.mxu1 %vm326_vm1, %v19726_v36  ;;  %v19802_v62 = vld [vmem:[#allocation3 + $0x12b] sm:$0xff] }
 0x1d1   : > { %16710 = vmatprep.mubr.msk.f32.mxu0 %vm326_vm1, %v4842_v0  ;;  %v19805_v0 = vld [vmem:[#allocation3 + $0x133] sm:$0xff] }
 0x1d3   : > { %16218 = vmatmul.mubr.msk.f32.gmra.mrb[22].mxu1 %vm326_vm1, %v19733_v38 }
 0x1d4   : > { %16711 = vmatmul.mubr.msk.f32.gmra.mrb[20].mxu0 %vm326_vm1, %v4843_v2  ;;  %16220 = vmatprep.mubr.msk.f32.mxu1 %vm326_vm1, %v19736_v40  ;;  %v19812_v2 = vld [vmem:[#allocation3 + $0x13b] sm:$0xff] }
 0x1d5   : > { %16713 = vmatprep.mubr.msk.f32.mxu0 %vm326_vm1, %v4844_v4  ;;  %v19815_v4 = vld [vmem:[#allocation3 + $0x143] sm:$0xff] }
 0x1d7   : > { %16221 = vmatmul.mubr.msk.f32.gmra.mrb[24].mxu1 %vm326_vm1, %v19743_v42 }
 0x1d8   : > { %16714 = vmatmul.mubr.msk.f32.gmra.mrb[22].mxu0 %vm326_vm1, %v4845_v6  ;;  %16223 = vmatprep.mubr.msk.f32.mxu1 %vm326_vm1, %v19746_v44  ;;  %v19822_v6 = vld [vmem:[#allocation3 + $0x14b] sm:$0xff] }
 0x1d9   : > { %16716 = vmatprep.mubr.msk.f32.mxu0 %vm326_vm1, %v4846_v8  ;;  %v5307_v8 = vld [vmem:[#allocation2 + $0xa1] sm:$0xff] }
 0x1db   : > { %16224 = vmatmul.mubr.msk.f32.gmra.mrb[26].mxu1 %vm326_vm1, %v19758_v47 }
 0x1dc   : > { %16717 = vmatmul.mubr.msk.f32.gmra.mrb[24].mxu0 %vm326_vm1, %v4847_v11  ;;  %16226 = vmatprep.mubr.msk.f32.mxu1 %vm326_vm1, %v19763_v49  ;;  %v5308_v11 = vld [vmem:[#allocation2 + $0xa9] sm:$0xff] }
 0x1dd   : > { %16719 = vmatprep.mubr.msk.f32.mxu0 %vm326_vm1, %v4848_v13  ;;  %v5309_v13 = vld [vmem:[#allocation2 + $0xb1] sm:$0xff] }
 0x1df   : > { %16227 = vmatmul.mubr.msk.f32.gmra.mrb[28].mxu1 %vm326_vm1, %v19772_v51 }
 0x1e0   : > { %16720 = vmatmul.mubr.msk.f32.gmra.mrb[26].mxu0 %vm326_vm1, %v4849_v15  ;;  %16229 = vmatprep.mubr.msk.f32.mxu1 %vm326_vm1, %v19775_v52  ;;  %v5310_v15 = vld [vmem:[#allocation2 + $0xb9] sm:$0xff] }
 0x1e1   : > { %16722 = vmatprep.mubr.msk.f32.mxu0 %vm326_vm1, %v4850_v17  ;;  %v5311_v17 = vld [vmem:[#allocation2 + $0xc1] sm:$0xff] }
 0x1e3   : > { %16230 = vmatmul.mubr.msk.f32.gmra.mrb[30].mxu1 %vm326_vm1, %v19782_v54 }
 0x1e4   : > { %16723 = vmatmul.mubr.msk.f32.gmra.mrb[28].mxu0 %vm326_vm1, %v4851_v19  ;;  %16232 = vmatprep.mubr.msk.f32.mxu1 %vm326_vm1, %v19785_v56  ;;  %v1536_v19 = vld [vmem:[#allocation2 + $0x34] sm:$0xff] }
 0x1e5   : > { %16725 = vmatprep.mubr.msk.f32.mxu0 %vm326_vm1, %v4852_v21  ;;  %v5312_v21 = vld [vmem:[#allocation2 + $0xc9] sm:$0xff] }
 0x1e7   : > { %16233 = vmatmul.mubr.msk.f32.gmra.mrb[32].mxu1 %vm326_vm1, %v19792_v58 }
 0x1e8   : > { %16726 = vmatmul.mubr.msk.f32.gmra.mrb[30].mxu0 %vm326_vm1, %v4853_v24  ;;  %16235 = vmatprep.mubr.msk.f32.mxu1 %vm326_vm1, %v19795_v60  ;;  %v19842_v24 = vld [vmem:[#allocation2 + $0x3c] sm:$0xff] }
 0x1e9   : > { %16728 = vmatprep.mubr.msk.f32.mxu0 %vm326_vm1, %v4854_v25  ;;  %v5313_v25 = vld [vmem:[#allocation2 + $0xd1] sm:$0xff] }
 0x1eb   : > { %16236 = vmatmul.mubr.msk.f32.gmra.mrb[34].mxu1 %vm326_vm1, %v19802_v62 }
 0x1ec   : > { %16729 = vmatmul.mubr.msk.f32.gmra.mrb[32].mxu0 %vm326_vm1, %v4855_v27  ;;  %16238 = vmatprep.mubr.msk.f32.mxu1 %vm326_vm1, %v19805_v0  ;;  %v19845_v27 = vld [vmem:[#allocation2 + $0x44] sm:$0xff] }
 0x1ed   : > { %16731 = vmatprep.mubr.msk.f32.mxu0 %vm326_vm1, %v4856_v30  ;;  %v5314_v30 = vld [vmem:[#allocation2 + $0xd9] sm:$0xff] }
 0x1ef   : > { %16239 = vmatmul.mubr.msk.f32.gmra.mrb[36].mxu1 %vm326_vm1, %v19812_v2 }
 0x1f0   : > { %16732 = vmatmul.mubr.msk.f32.gmra.mrb[34].mxu0 %vm326_vm1, %v4857_v32  ;;  %16241 = vmatprep.mubr.msk.f32.mxu1 %vm326_vm1, %v19815_v4  ;;  %v19852_v32 = vld [vmem:[#allocation2 + $0x4c] sm:$0xff] }
 0x1f1   : > { %16734 = vmatprep.mubr.msk.f32.mxu0 %vm326_vm1, %v4858_v34  ;;  %v5315_v34 = vld [vmem:[#allocation2 + $0xe1] sm:$0xff] }
 0x1f3   : > { %16242 = vmatmul.mubr.msk.f32.gmra.mrb[38].mxu1 %vm326_vm1, %v19822_v6 }
 0x1f4   : > { %16735 = vmatmul.mubr.msk.f32.gmra.mrb[36].mxu0 %vm326_vm1, %v4859_v23  ;;  %16246 = vmatprep.mubr.msk.f32.mxu1 %vm326_vm1, %v1532_v10  ;;  %v19855_v23 = vld [vmem:[#allocation2 + $0x54] sm:$0xff]  ;;  %v19905_v10 = vld [vmem:[#allocation2 + $0xa4] sm:$0xff] }
 0x1f5   : > { %16737 = vmatprep.mubr.msk.f32.mxu0 %vm326_vm1, %v4860_v37  ;;  %v5316_v37 = vld [vmem:[#allocation2 + $0xe9] sm:$0xff] }
 0x1f7   : > { %16247 = vmatmul.mubr.msk.f32.vlgmr.msra.gmra.mrb[0].mxu1 %vm326_vm1, %v1533_v12  ;;  %v19912_v12 = vld [vmem:[#allocation2 + $0xac] sm:$0xff] }
 0x1f8   : > { %16738 = vmatmul.mubr.msk.f32.gmra.mrb[38].mxu0 %vm326_vm1, %v4861_v39  ;;  %16249 = vmatprep.mubr.msk.f32.mxu1 %vm326_vm1, %v1534_v14  ;;  %v19862_v39 = vld [vmem:[#allocation2 + $0x5c] sm:$0xff]  ;;  %v19915_v14 = vld [vmem:[#allocation2 + $0xb4] sm:$0xff] }
 0x1f9   : > { %16742 = vmatprep.mubr.msk.f32.mxu0 %vm326_vm1, %v5292_v41  ;;  %v5317_v41 = vld [vmem:[#allocation2 + $0xf1] sm:$0xff] }
 0x1fb   : > { %16250 = vmatmul.mubr.msk.f32.gmra.mrb[2].mxu1 %vm326_vm1, %v1535_v16  ;;  %v19922_v16 = vld [vmem:[#allocation2 + $0xbc] sm:$0xff] }
 0x1fc   : > { %16743 = vmatmul.mubr.msk.f32.vlgmr.msra.gmra.mrb[0].mxu0 %vm326_vm1, %v5293_v43  ;;  %16252 = vmatprep.mubr.msk.f32.mxu1 %vm326_vm1, %v1536_v19  ;;  %v19865_v43 = vld [vmem:[#allocation2 + $0x64] sm:$0xff] }
 0x1fd   : > { %16803 = vmatpush3.msk.msra.mxu0 %vm754_vm0, %v19619_v28  ;;  %16745 = vmatprep.mubr.msk.f32.mxu0 %vm326_vm1, %v5294_v45  ;;  %v5297_v28 = vld [vmem:[#allocation2 + $0x51] sm:$0xff]  ;;  %v5318_v45 = vld [vmem:[#allocation2 + $0xf9] sm:$0xff]  ;;  %v19925_v19 = vld [vmem:[#allocation2 + $0xc4] sm:$0xff] }
 0x1fe   : > { %16864 = vmatprep.subr.msk.mxu0 %vm754_vm0, %v19753_v46 }
 0x1ff   : > { %16253 = vmatmul.mubr.msk.f32.gmra.mrb[4].mxu1 %vm326_vm1, %v19842_v24 }
 0x200   : > { %16746 = vmatmul.mubr.msk.f32.gmra.mrb[2].mxu0 %vm326_vm1, %v5295_v48  ;;  %16255 = vmatprep.mubr.msk.f32.mxu1 %vm326_vm1, %v19845_v27  ;;  %v19872_v48 = vld [vmem:[#allocation2 + $0x6c] sm:$0xff] }
 0x201   : > { %16748 = vmatprep.mubr.msk.f32.mxu0 %vm326_vm1, %v5296_v50  ;;  %v5319_v50 = vld [vmem:[#allocation2 + $0x101] sm:$0xff] }
 0x203   : > { %16256 = vmatmul.mubr.msk.f32.gmra.mrb[6].mxu1 %vm326_vm1, %v19852_v32 }
 0x204   : > { %16749 = vmatmul.mubr.msk.f32.gmra.mrb[4].mxu0 %vm326_vm1, %v5297_v28  ;;  %16258 = vmatprep.mubr.msk.f32.mxu1 %vm326_vm1, %v19855_v23  ;;  %v19875_v28 = vld [vmem:[#allocation2 + $0x74] sm:$0xff] }
 0x205   : > { %16751 = vmatprep.mubr.msk.f32.mxu0 %vm326_vm1, %v5298_v53  ;;  %v5320_v53 = vld [vmem:[#allocation2 + $0x109] sm:$0xff] }
 0x207   : > { %16259 = vmatmul.mubr.msk.f32.gmra.mrb[8].mxu1 %vm326_vm1, %v19862_v39 }
 0x208   : > { %16752 = vmatmul.mubr.msk.f32.gmra.mrb[6].mxu0 %vm326_vm1, %v5299_v55  ;;  %16261 = vmatprep.mubr.msk.f32.mxu1 %vm326_vm1, %v19865_v43  ;;  %v19882_v55 = vld [vmem:[#allocation2 + $0x7c] sm:$0xff] }
 0x209   : > { %16754 = vmatprep.mubr.msk.f32.mxu0 %vm326_vm1, %v5300_v57  ;;  %v5321_v57 = vld [vmem:[#allocation2 + $0x111] sm:$0xff] }
 0x20b   : > { %16262 = vmatmul.mubr.msk.f32.gmra.mrb[10].mxu1 %vm326_vm1, %v19872_v48 }
 0x20c   : > { %16755 = vmatmul.mubr.msk.f32.gmra.mrb[8].mxu0 %vm326_vm1, %v5301_v59  ;;  %16264 = vmatprep.mubr.msk.f32.mxu1 %vm326_vm1, %v19875_v28  ;;  %v19885_v59 = vld [vmem:[#allocation2 + $0x84] sm:$0xff] }
 0x20d   : > { %16757 = vmatprep.mubr.msk.f32.mxu0 %vm326_vm1, %v5302_v61  ;;  %v5322_v61 = vld [vmem:[#allocation2 + $0x119] sm:$0xff] }
 0x20f   : > { %16265 = vmatmul.mubr.msk.f32.gmra.mrb[12].mxu1 %vm326_vm1, %v19882_v55 }
 0x210   : > { %16758 = vmatmul.mubr.msk.f32.gmra.mrb[10].mxu0 %vm326_vm1, %v5303_v63  ;;  %16267 = vmatprep.mubr.msk.f32.mxu1 %vm326_vm1, %v19885_v59  ;;  %v19892_v63 = vld [vmem:[#allocation2 + $0x8c] sm:$0xff] }
 0x211   : > { %16760 = vmatprep.mubr.msk.f32.mxu0 %vm326_vm1, %v5304_v1  ;;  %v5323_v1 = vld [vmem:[#allocation2 + $0x121] sm:$0xff] }
 0x213   : > { %16268 = vmatmul.mubr.msk.f32.gmra.mrb[14].mxu1 %vm326_vm1, %v19892_v63 }
 0x214   : > { %16761 = vmatmul.mubr.msk.f32.gmra.mrb[12].mxu0 %vm326_vm1, %v5305_v3  ;;  %v19895_v3 = vld [vmem:[#allocation2 + $0x94] sm:$0xff] }
 0x215   : > { %16763 = vmatprep.mubr.msk.f32.mxu0 %vm326_vm1, %v5306_v5  ;;  %v5324_v5 = vld [vmem:[#allocation2 + $0x129] sm:$0xff]  ;;  %16270 = vmatprep.mubr.msk.f32.mxu1 %vm326_vm1, %v19895_v3 }
 0x217   : > { %16271 = vmatmul.mubr.msk.f32.gmra.mrb[16].mxu1 %vm326_vm1, %v19902_v7 }
 0x218   : > { %16764 = vmatmul.mubr.msk.f32.gmra.mrb[14].mxu0 %vm326_vm1, %v5307_v8  ;;  %v5325_v8 = vld [vmem:[#allocation2 + $0x131] sm:$0xff]  ;;  %16273 = vmatprep.mubr.msk.f32.mxu1 %vm326_vm1, %v19905_v10 }
 0x219   : > { %16766 = vmatprep.mubr.msk.f32.mxu0 %vm326_vm1, %v5308_v11  ;;  %v5326_v11 = vld [vmem:[#allocation2 + $0x139] sm:$0xff] }
 0x21b   : > { %16274 = vmatmul.mubr.msk.f32.gmra.mrb[18].mxu1 %vm326_vm1, %v19912_v12 }
 0x21c   : > { %16767 = vmatmul.mubr.msk.f32.gmra.mrb[16].mxu0 %vm326_vm1, %v5309_v13  ;;  %v5327_v13 = vld [vmem:[#allocation2 + $0x141] sm:$0xff]  ;;  %16276 = vmatprep.mubr.msk.f32.mxu1 %vm326_vm1, %v19915_v14 }
 0x21d   : > { %16769 = vmatprep.mubr.msk.f32.mxu0 %vm326_vm1, %v5310_v15  ;;  %v5328_v15 = vld [vmem:[#allocation2 + $0x149] sm:$0xff] }
 0x21f   : > { %16277 = vmatmul.mubr.msk.f32.gmra.mrb[20].mxu1 %vm326_vm1, %v19922_v16 }
 0x220   : > { %16770 = vmatmul.mubr.msk.f32.gmra.mrb[18].mxu0 %vm326_vm1, %v5311_v17  ;;  %v5329_v17 = vld [vmem:[#allocation2 + $0x151] sm:$0xff]  ;;  %16279 = vmatprep.mubr.msk.f32.mxu1 %vm326_vm1, %v19925_v19 }
 0x221   : > { %16772 = vmatprep.mubr.msk.f32.mxu0 %vm326_vm1, %v5312_v21  ;;  %v5330_v21 = vld [vmem:[#allocation2 + $0x159] sm:$0xff] }
 0x224   : > { %16773 = vmatmul.mubr.msk.f32.gmra.mrb[20].mxu0 %vm326_vm1, %v5313_v25  ;;  %v19932_v25 = vld [vmem:[#allocation2 + $0xcc] sm:$0xff] }
 0x225   : > { %16775 = vmatprep.mubr.msk.f32.mxu0 %vm326_vm1, %v5314_v30  ;;  %v5331_v30 = vld [vmem:[#allocation2 + $0x161] sm:$0xff]  ;;  %16280 = vmatmul.mubr.msk.f32.gmra.mrb[22].mxu1 %vm326_vm1, %v19932_v25 }
 0x228   : > { %16776 = vmatmul.mubr.msk.f32.gmra.mrb[22].mxu0 %vm326_vm1, %v5315_v34  ;;  %v19935_v34 = vld [vmem:[#allocation2 + $0xd4] sm:$0xff] }
 0x229   : > { %16778 = vmatprep.mubr.msk.f32.mxu0 %vm326_vm1, %v5316_v37  ;;  %v5762_v37 = vld [vmem:[#allocation3 + $0x29] sm:$0xff]  ;;  %16282 = vmatprep.mubr.msk.f32.mxu1 %vm326_vm1, %v19935_v34 }
 0x22c   : > { %16779 = vmatmul.mubr.msk.f32.gmra.mrb[24].mxu0 %vm326_vm1, %v5317_v41  ;;  %v19942_v41 = vld [vmem:[#allocation2 + $0xdc] sm:$0xff] }
 0x22d   : > { %16781 = vmatprep.mubr.msk.f32.mxu0 %vm326_vm1, %v5318_v45  ;;  %v5763_v45 = vld [vmem:[#allocation3 + $0x31] sm:$0xff]  ;;  %16283 = vmatmul.mubr.msk.f32.gmra.mrb[24].mxu1 %vm326_vm1, %v19942_v41 }
 0x230   : > { %16782 = vmatmul.mubr.msk.f32.gmra.mrb[26].mxu0 %vm326_vm1, %v5319_v50  ;;  %v19945_v50 = vld [vmem:[#allocation2 + $0xe4] sm:$0xff] }
 0x231   : > { %16784 = vmatprep.mubr.msk.f32.mxu0 %vm326_vm1, %v5320_v53  ;;  %v5764_v53 = vld [vmem:[#allocation3 + $0x39] sm:$0xff]  ;;  %16285 = vmatprep.mubr.msk.f32.mxu1 %vm326_vm1, %v19945_v50 }
 0x234   : > { %16785 = vmatmul.mubr.msk.f32.gmra.mrb[28].mxu0 %vm326_vm1, %v5321_v57  ;;  %v19952_v57 = vld [vmem:[%s21945_s4 + $0xc] sm:$0x3] }
 0x235   : > { %16787 = vmatprep.mubr.msk.f32.mxu0 %vm326_vm1, %v5322_v61  ;;  %v19957_v61 = vld [vmem:[#allocation2 + $0xec] sm:$0xff] }
 0x236   : > { %16286 = vmatmul.mubr.msk.f32.gmra.mrb[26].mxu1 %vm326_vm1, %v19957_v61 }
 0x238   : > { %16788 = vmatmul.mubr.msk.f32.gmra.mrb[30].mxu0 %vm326_vm1, %v5323_v1  ;;  %v5765_v1 = vld [vmem:[#allocation3 + $0x41] sm:$0xff] }
 0x239   : > { %16790 = vmatprep.mubr.msk.f32.mxu0 %vm326_vm1, %v5324_v5  ;;  %v19962_v5 = vld [vmem:[#allocation2 + $0xf4] sm:$0xff] }
 0x23a   : > { %16288 = vmatprep.mubr.msk.f32.mxu1 %vm326_vm1, %v19962_v5 }
 0x23c   : > { %16791 = vmatmul.mubr.msk.f32.gmra.mrb[32].mxu0 %vm326_vm1, %v5325_v8  ;;  %v5766_v8 = vld [vmem:[#allocation3 + $0x49] sm:$0xff] }
 0x23d   : > { %16793 = vmatprep.mubr.msk.f32.mxu0 %vm326_vm1, %v5326_v11  ;;  %v19971_v11 = vld [vmem:[#allocation2 + $0xfc] sm:$0xff] }
 0x23e   : > { %16289 = vmatmul.mubr.msk.f32.gmra.mrb[28].mxu1 %vm326_vm1, %v19971_v11 }
 0x240   : > { %16794 = vmatmul.mubr.msk.f32.gmra.mrb[34].mxu0 %vm326_vm1, %v5327_v13  ;;  %v19974_v13 = vld [vmem:[#allocation2 + $0x104] sm:$0xff] }
 0x241   : > { %16796 = vmatprep.mubr.msk.f32.mxu0 %vm326_vm1, %v5328_v15  ;;  %v5768_v15 = vld [vmem:[#allocation3 + $0x59] sm:$0xff]  ;;  %16291 = vmatprep.mubr.msk.f32.mxu1 %vm326_vm1, %v19974_v13 }
 0x244   : > { %16797 = vmatmul.mubr.msk.f32.gmra.mrb[36].mxu0 %vm326_vm1, %v5329_v17  ;;  %v19981_v17 = vld [vmem:[#allocation2 + $0x10c] sm:$0xff] }
 0x245   : > { %16799 = vmatprep.mubr.msk.f32.mxu0 %vm326_vm1, %v5330_v21  ;;  %22037 = vst [vmem:[#allocation5_spill] sm:$0xff] %v19981_v17  ;;  %v5769_v21 = vld [vmem:[#allocation3 + $0x61] sm:$0xff]  ;;  %16292 = vmatmul.mubr.msk.f32.gmra.mrb[30].mxu1 %vm326_vm1, %v19981_v17  ;;  %v5780_v17 = vld [vmem:[#allocation3 + $0xb9] sm:$0xff] }
 0x248   : > { %16800 = vmatmul.mubr.msk.f32.gmra.mrb[38].mxu0 %vm326_vm1, %v5331_v30  ;;  %v19984_v30 = vld [vmem:[#allocation2 + $0x114] sm:$0xff] }
 0x249   : > { %16804 = vmatprep.mubr.msk.f32.mxu0 %vm326_vm1, %v5762_v37  ;;  %22038 = vst [vmem:[#allocation6_spill] sm:$0xff] %v19984_v30  ;;  %v5770_v37 = vld [vmem:[#allocation3 + $0x69] sm:$0xff]  ;;  %16294 = vmatprep.mubr.msk.f32.mxu1 %vm326_vm1, %v19984_v30 }
 0x24a   : > { %v5778_v30 = vld [vmem:[#allocation3 + $0xa9] sm:$0xff] }
 0x24c   : > { %16805 = vmatmul.mubr.msk.f32.vlgmr.msra.gmra.mrb[0].mxu0 %vm326_vm1, %v5763_v45  ;;  %v19991_v45 = vld [vmem:[#allocation2 + $0x11c] sm:$0xff] }
 0x24d   : > { %16865 = vmatpush3.msk.msra.mxu0 %vm754_vm0, %v19753_v46  ;;  %16807 = vmatprep.mubr.msk.f32.mxu0 %vm326_vm1, %v5764_v53  ;;  %v5767_v46 = vld [vmem:[#allocation3 + $0x51] sm:$0xff]  ;;  %22039 = vst [vmem:[#allocation7_spill] sm:$0xff] %v19991_v45 }
 0x24e   : > { %16926 = vmatprep.subr.msk.mxu0 %vm754_vm0, %v19952_v57  ;;  %v5771_v53 = vld [vmem:[#allocation3 + $0x71] sm:$0xff]  ;;  %16295 = vmatmul.mubr.msk.f32.gmra.mrb[32].mxu1 %vm326_vm1, %v19991_v45 }
 0x24f   : > { %v20011_v45 = vld [vmem:[#allocation2 + $0x13c] sm:$0xff] }
 0x250   : > { %16808 = vmatmul.mubr.msk.f32.gmra.mrb[2].mxu0 %vm326_vm1, %v5765_v1  ;;  %v19994_v1 = vld [vmem:[#allocation2 + $0x124] sm:$0xff]  ;;  %22043 = vst [vmem:[#allocation11_spill] sm:$0xff] %v20011_v45 }
 0x251   : > { %16810 = vmatprep.mubr.msk.f32.mxu0 %vm326_vm1, %v5766_v8  ;;  %22040 = vst [vmem:[#allocation8_spill] sm:$0xff] %v19994_v1  ;;  %v5772_v8 = vld [vmem:[#allocation3 + $0x79] sm:$0xff]  ;;  %16297 = vmatprep.mubr.msk.f32.mxu1 %vm326_vm1, %v19994_v1 }
 0x252   : > { %v20014_v1 = vld [vmem:[#allocation2 + $0x144] sm:$0xff] }
 0x253   : > { %22044 = vst [vmem:[#allocation12_spill] sm:$0xff] %v20014_v1 }
 0x254   : > { %16811 = vmatmul.mubr.msk.f32.gmra.mrb[4].mxu0 %vm326_vm1, %v5767_v46  ;;  %v20001_v46 = vld [vmem:[#allocation2 + $0x12c] sm:$0xff] }
 0x255   : > { %16813 = vmatprep.mubr.msk.f32.mxu0 %vm326_vm1, %v5768_v15  ;;  %22041 = vst [vmem:[#allocation9_spill] sm:$0xff] %v20001_v46  ;;  %v5773_v15 = vld [vmem:[#allocation3 + $0x81] sm:$0xff]  ;;  %16298 = vmatmul.mubr.msk.f32.gmra.mrb[34].mxu1 %vm326_vm1, %v20001_v46 }
 0x256   : > { %v20021_v46 = vld [vmem:[#allocation2 + $0x14c] sm:$0xff] }
 0x257   : > { %22045 = vst [vmem:[#allocation13_spill] sm:$0xff] %v20021_v46 }
 0x258   : > { %16814 = vmatmul.mubr.msk.f32.gmra.mrb[6].mxu0 %vm326_vm1, %v5769_v21  ;;  %v20004_v21 = vld [vmem:[#allocation2 + $0x134] sm:$0xff] }
 0x259   : > { %16816 = vmatprep.mubr.msk.f32.mxu0 %vm326_vm1, %v5770_v37  ;;  %22042 = vst [vmem:[#allocation10_spill] sm:$0xff] %v20004_v21  ;;  %v5774_v37 = vld [vmem:[#allocation3 + $0x89] sm:$0xff]  ;;  %16300 = vmatprep.mubr.msk.f32.mxu1 %vm326_vm1, %v20004_v21  ;;  %v2002_v21 = vld [vmem:[#allocation3 + $0x14] sm:$0xff] }
 0x25a   : > { %16301 = vmatmul.mubr.msk.f32.gmra.mrb[36].mxu1 %vm326_vm1, %v20011_v45  ;;  %v2004_v45 = vld [vmem:[#allocation3 + $0x24] sm:$0xff] }
 0x25b   : > { %16303 = vmatprep.mubr.msk.f32.mxu1 %vm326_vm1, %v20014_v1  ;;  %v18889_v1 = vld [vmem:[%s21944_s3 + $0x4] sm:$0x3] }
 0x25c   : > { %16817 = vmatmul.mubr.msk.f32.gmra.mrb[8].mxu0 %vm326_vm1, %v5771_v53  ;;  %v5775_v53 = vld [vmem:[#allocation3 + $0x91] sm:$0xff] }
 0x25d   : > { %16819 = vmatprep.mubr.msk.f32.mxu0 %vm326_vm1, %v5772_v8  ;;  %v5776_v8 = vld [vmem:[#allocation3 + $0x99] sm:$0xff] }
 0x25e   : > { %16304 = vmatmul.mubr.msk.f32.gmra.mrb[38].mxu1 %vm326_vm1, %v20021_v46  ;;  %v5782_v46 = vld [vmem:[#allocation3 + $0xc9] sm:$0xff] }
 0x25f   : > { %16308 = vmatprep.mubr.msk.f32.mxu1 %vm326_vm1, %v2002_v21  ;;  %v2005_v21 = vld [vmem:[#allocation3 + $0x2c] sm:$0xff] }
 0x260   : > { %16820 = vmatmul.mubr.msk.f32.gmra.mrb[10].mxu0 %vm326_vm1, %v5773_v15  ;;  %v14001_v15 = vld [vmem:[%s21945_s4 + $0x2] sm:$0x3] }
 0x261   : > { %16822 = vmatprep.mubr.msk.f32.mxu0 %vm326_vm1, %v5774_v37  ;;  %v5777_v37 = vld [vmem:[#allocation3 + $0xa1] sm:$0xff]  ;;  %16306 = vmatprep.subr.msk.mxu1 %vm754_vm0, %v14001_v15 }
 0x262   : > { %16307 = vmatpush3.msk.msra.mxu1 %vm754_vm0, %v14001_v15  ;;  %v5781_v15 = vld [vmem:[#allocation3 + $0xc1] sm:$0xff] }
 0x263   : > { %17794 = vmatprep.subr.msk.mxu1 %vm754_vm0, %v18889_v1 }
 0x264   : > { %16823 = vmatmul.mubr.msk.f32.gmra.mrb[12].mxu0 %vm326_vm1, %v5775_v53  ;;  %v2003_v53 = vld [vmem:[#allocation3 + $0x1c] sm:$0xff] }
 0x265   : > { %16825 = vmatprep.mubr.msk.f32.mxu0 %vm326_vm1, %v5776_v8  ;;  %v5779_v8 = vld [vmem:[#allocation3 + $0xb1] sm:$0xff]  ;;  %16309 = vmatmul.mubr.msk.f32.vlgmr.msra.gmra.mrb[0].mxu1 %vm326_vm1, %v2003_v53  ;;  %v5784_v53 = vld [vmem:[#allocation3 + $0xd9] sm:$0xff] }
 0x266   : > { %16311 = vmatprep.mubr.msk.f32.mxu1 %vm326_vm1, %v2004_v45  ;;  %17795 = vmatpush3.msk.msra.mxu1 %vm754_vm0, %v18889_v1  ;;  %v5783_v45 = vld [vmem:[#allocation3 + $0xd1] sm:$0xff]  ;;  %v20049_v1 = vld [vmem:[#allocation3 + $0x44] sm:$0xff] }
 0x268   : > { %16826 = vmatmul.mubr.msk.f32.gmra.mrb[14].mxu0 %vm326_vm1, %v5777_v37  ;;  %v2006_v37 = vld [vmem:[#allocation3 + $0x34] sm:$0xff] }
 0x269   : > { %16828 = vmatprep.mubr.msk.f32.mxu0 %vm326_vm1, %v5778_v30  ;;  %16312 = vmatmul.mubr.msk.f32.gmra.mrb[2].mxu1 %vm326_vm1, %v2005_v21  ;;  %v20046_v30 = vld [vmem:[#allocation3 + $0x3c] sm:$0xff]  ;;  %v20059_v21 = vld [vmem:[#allocation3 + $0x54] sm:$0xff] }
 0x26a   : > { %16314 = vmatprep.mubr.msk.f32.mxu1 %vm326_vm1, %v2006_v37  ;;  %22047 = vst [vmem:[#allocation15_spill] sm:$0xff] %v20059_v21  ;;  %v5787_v37 = vld [vmem:[#allocation3 + $0xf1] sm:$0xff] }
 0x26c   : > { %16829 = vmatmul.mubr.msk.f32.gmra.mrb[16].mxu0 %vm326_vm1, %v5779_v8  ;;  %v5785_v8 = vld [vmem:[#allocation3 + $0xe1] sm:$0xff] }
 0x26d   : > { %16831 = vmatprep.mubr.msk.f32.mxu0 %vm326_vm1, %v5780_v17  ;;  %16315 = vmatmul.mubr.msk.f32.gmra.mrb[4].mxu1 %vm326_vm1, %v20046_v30  ;;  %v20056_v17 = vld [vmem:[#allocation3 + $0x4c] sm:$0xff] }
 0x26e   : > { %16317 = vmatprep.mubr.msk.f32.mxu1 %vm326_vm1, %v20049_v1  ;;  %22046 = vst [vmem:[#allocation14_spill] sm:$0xff] %v20056_v17 }
 0x270   : > { %16832 = vmatmul.mubr.msk.f32.gmra.mrb[18].mxu0 %vm326_vm1, %v5781_v15  ;;  %v20066_v15 = vld [vmem:[#allocation3 + $0x5c] sm:$0xff] }
 0x271   : > { %16834 = vmatprep.mubr.msk.f32.mxu0 %vm326_vm1, %v5782_v46  ;;  %v5786_v46 = vld [vmem:[#allocation3 + $0xe9] sm:$0xff]  ;;  %16318 = vmatmul.mubr.msk.f32.gmra.mrb[6].mxu1 %vm326_vm1, %v20056_v17  ;;  %22048 = vst [vmem:[#allocation16_spill] sm:$0xff] %v20066_v15 }
 0x272   : > { %16320 = vmatprep.mubr.msk.f32.mxu1 %vm326_vm1, %v20059_v21  ;;  %v20076_v17 = vld [vmem:[#allocation3 + $0x6c] sm:$0xff]  ;;  %v20079_v21 = vld [vmem:[#allocation3 + $0x74] sm:$0xff] }
 0x273   : > { %22050 = vst [vmem:[#allocation18_spill] sm:$0xff] %v20076_v17  ;;  %22051 = vst [vmem:[#allocation19_spill] sm:$0xff] %v20079_v21 }
 0x274   : > { %16835 = vmatmul.mubr.msk.f32.gmra.mrb[20].mxu0 %vm326_vm1, %v5783_v45  ;;  %v20069_v45 = vld [vmem:[#allocation3 + $0x64] sm:$0xff] }
 0x275   : > { %16837 = vmatprep.mubr.msk.f32.mxu0 %vm326_vm1, %v5784_v53  ;;  %22049 = vst [vmem:[#allocation17_spill] sm:$0xff] %v20069_v45  ;;  %v5788_v53 = vld [vmem:[#allocation3 + $0xf9] sm:$0xff]  ;;  %16321 = vmatmul.mubr.msk.f32.gmra.mrb[8].mxu1 %vm326_vm1, %v20066_v15 }
 0x276   : > { %16323 = vmatprep.mubr.msk.f32.mxu1 %vm326_vm1, %v20069_v45  ;;  %v20086_v15 = vld [vmem:[#allocation3 + $0x7c] sm:$0xff]  ;;  %v20089_v45 = vld [vmem:[#allocation3 + $0x84] sm:$0xff] }
 0x277   : > { %22052 = vst [vmem:[#allocation20_spill] sm:$0xff] %v20086_v15  ;;  %22053 = vst [vmem:[#allocation21_spill] sm:$0xff] %v20089_v45 }
 0x278   : > { %16838 = vmatmul.mubr.msk.f32.gmra.mrb[22].mxu0 %vm326_vm1, %v5785_v8  ;;  %v5789_v8 = vld [vmem:[#allocation3 + $0x101] sm:$0xff] }
 0x279   : > { %16840 = vmatprep.mubr.msk.f32.mxu0 %vm326_vm1, %v5786_v46  ;;  %v5790_v46 = vld [vmem:[#allocation3 + $0x109] sm:$0xff]  ;;  %16324 = vmatmul.mubr.msk.f32.gmra.mrb[10].mxu1 %vm326_vm1, %v20076_v17 }
 0x27a   : > { %16326 = vmatprep.mubr.msk.f32.mxu1 %vm326_vm1, %v20079_v21  ;;  %v20096_v17 = vld [vmem:[#allocation3 + $0x8c] sm:$0xff]  ;;  %v20099_v21 = vld [vmem:[#allocation3 + $0x94] sm:$0xff] }
 0x27b   : > { %22054 = vst [vmem:[#allocation22_spill] sm:$0xff] %v20096_v17  ;;  %22055 = vst [vmem:[#allocation23_spill] sm:$0xff] %v20099_v21 }
 0x27c   : > { %16841 = vmatmul.mubr.msk.f32.gmra.mrb[24].mxu0 %vm326_vm1, %v5787_v37  ;;  %v5791_v37 = vld [vmem:[#allocation3 + $0x111] sm:$0xff] }
 0x27d   : > { %16843 = vmatprep.mubr.msk.f32.mxu0 %vm326_vm1, %v5788_v53  ;;  %v5792_v53 = vld [vmem:[#allocation3 + $0x119] sm:$0xff]  ;;  %16327 = vmatmul.mubr.msk.f32.gmra.mrb[12].mxu1 %vm326_vm1, %v20086_v15 }
 0x27e   : > { %16329 = vmatprep.mubr.msk.f32.mxu1 %vm326_vm1, %v20089_v45  ;;  %v20106_v15 = vld [vmem:[#allocation3 + $0x9c] sm:$0xff]  ;;  %v20109_v45 = vld [vmem:[#allocation3 + $0xa4] sm:$0xff] }
 0x27f   : > { %22056 = vst [vmem:[#allocation24_spill] sm:$0xff] %v20106_v15  ;;  %22057 = vst [vmem:[#allocation25_spill] sm:$0xff] %v20109_v45 }
 0x280   : > { %16844 = vmatmul.mubr.msk.f32.gmra.mrb[26].mxu0 %vm326_vm1, %v5789_v8  ;;  %v5793_v8 = vld [vmem:[#allocation3 + $0x121] sm:$0xff] }
 0x281   : > { %16846 = vmatprep.mubr.msk.f32.mxu0 %vm326_vm1, %v5790_v46  ;;  %v5794_v46 = vld [vmem:[#allocation3 + $0x129] sm:$0xff]  ;;  %16330 = vmatmul.mubr.msk.f32.gmra.mrb[14].mxu1 %vm326_vm1, %v20096_v17 }
 0x282   : > { %16332 = vmatprep.mubr.msk.f32.mxu1 %vm326_vm1, %v20099_v21  ;;  %v20116_v17 = vld [vmem:[#allocation3 + $0xac] sm:$0xff]  ;;  %v20119_v21 = vld [vmem:[#allocation3 + $0xb4] sm:$0xff] }
 0x283   : > { %22058 = vst [vmem:[#allocation26_spill] sm:$0xff] %v20116_v17  ;;  %22059 = vst [vmem:[#allocation27_spill] sm:$0xff] %v20119_v21 }
 0x284   : > { %16847 = vmatmul.mubr.msk.f32.gmra.mrb[28].mxu0 %vm326_vm1, %v5791_v37  ;;  %v5795_v37 = vld [vmem:[#allocation3 + $0x131] sm:$0xff] }
 0x285   : > { %16849 = vmatprep.mubr.msk.f32.mxu0 %vm326_vm1, %v5792_v53  ;;  %v5796_v53 = vld [vmem:[#allocation3 + $0x139] sm:$0xff]  ;;  %16333 = vmatmul.mubr.msk.f32.gmra.mrb[16].mxu1 %vm326_vm1, %v20106_v15 }
 0x286   : > { %16335 = vmatprep.mubr.msk.f32.mxu1 %vm326_vm1, %v20109_v45  ;;  %v20126_v15 = vld [vmem:[#allocation3 + $0xbc] sm:$0xff]  ;;  %v20129_v45 = vld [vmem:[#allocation3 + $0xc4] sm:$0xff] }
 0x287   : > { %22060 = vst [vmem:[#allocation28_spill] sm:$0xff] %v20126_v15  ;;  %22061 = vst [vmem:[#allocation29_spill] sm:$0xff] %v20129_v45 }
 0x288   : > { %16850 = vmatmul.mubr.msk.f32.gmra.mrb[30].mxu0 %vm326_vm1, %v5793_v8  ;;  %v5797_v8 = vld [vmem:[#allocation3 + $0x141] sm:$0xff] }
 0x289   : > { %16852 = vmatprep.mubr.msk.f32.mxu0 %vm326_vm1, %v5794_v46  ;;  %v5798_v46 = vld [vmem:[#allocation3 + $0x149] sm:$0xff]  ;;  %16336 = vmatmul.mubr.msk.f32.gmra.mrb[18].mxu1 %vm326_vm1, %v20116_v17 }
 0x28a   : > { %16338 = vmatprep.mubr.msk.f32.mxu1 %vm326_vm1, %v20119_v21  ;;  %v20136_v17 = vld [vmem:[#allocation3 + $0xcc] sm:$0xff]  ;;  %v20139_v21 = vld [vmem:[#allocation3 + $0xd4] sm:$0xff] }
 0x28b   : > { %22062 = vst [vmem:[#allocation30_spill] sm:$0xff] %v20136_v17  ;;  %22063 = vst [vmem:[#allocation31_spill] sm:$0xff] %v20139_v21 }
 0x28c   : > { %16853 = vmatmul.mubr.msk.f32.gmra.mrb[32].mxu0 %vm326_vm1, %v5795_v37  ;;  %v5799_v37 = vld [vmem:[#allocation3 + $0x151] sm:$0xff] }
 0x28d   : > { %16855 = vmatprep.mubr.msk.f32.mxu0 %vm326_vm1, %v5796_v53  ;;  %v5800_v53 = vld [vmem:[#allocation3 + $0x159] sm:$0xff]  ;;  %16339 = vmatmul.mubr.msk.f32.gmra.mrb[20].mxu1 %vm326_vm1, %v20126_v15  ;;  %v6268_v15 = vld [vmem:[#allocation2 + $0x15b] sm:$0xff] }
 0x28e   : > { %16341 = vmatprep.mubr.msk.f32.mxu1 %vm326_vm1, %v20129_v45  ;;  %v18890_v45 = vld [vmem:[#allocation2 + $0x3b] sm:$0xff] }
 0x290   : > { %16856 = vmatmul.mubr.msk.f32.gmra.mrb[34].mxu0 %vm326_vm1, %v5797_v8  ;;  %v5801_v8 = vld [vmem:[#allocation3 + $0x161] sm:$0xff] }
 0x291   : > { %16858 = vmatprep.mubr.msk.f32.mxu0 %vm326_vm1, %v5798_v46  ;;  %16342 = vmatmul.mubr.msk.f32.gmra.mrb[22].mxu1 %vm326_vm1, %v20136_v17  ;;  %v20146_v46 = vld [vmem:[#allocation3 + $0xdc] sm:$0xff] }
 0x292   : > { %16344 = vmatprep.mubr.msk.f32.mxu1 %vm326_vm1, %v20139_v21  ;;  %22064 = vst [vmem:[#allocation32_spill] sm:$0xff] %v20146_v46  ;;  %v18891_v21 = vld [vmem:[#allocation2 + $0x43] sm:$0xff]  ;;  %v18896_v17 = vld [vmem:[#allocation2 + $0x6b] sm:$0xff] }
 0x294   : > { %16859 = vmatmul.mubr.msk.f32.gmra.mrb[36].mxu0 %vm326_vm1, %v5799_v37  ;;  %v20149_v37 = vld [vmem:[#allocation3 + $0xe4] sm:$0xff] }
 0x295   : > { %16861 = vmatprep.mubr.msk.f32.mxu0 %vm326_vm1, %v5800_v53  ;;  %22065 = vst [vmem:[#allocation33_spill] sm:$0xff] %v20149_v37  ;;  %16345 = vmatmul.mubr.msk.f32.gmra.mrb[24].mxu1 %vm326_vm1, %v20146_v46  ;;  %v20156_v53 = vld [vmem:[%s21944_s3 + $0xe] sm:$0x3]  ;;  %v20166_v46 = vld [vmem:[#allocation3 + $0xf4] sm:$0xff] }
 0x296   : > { %16347 = vmatprep.mubr.msk.f32.mxu1 %vm326_vm1, %v20149_v37  ;;  %22067 = vst [vmem:[#allocation35_spill] sm:$0xff] %v20166_v46  ;;  %v20175_v37 = vld [vmem:[#allocation3 + $0xfc] sm:$0xff] }
 0x297   : > { %22068 = vst [vmem:[#allocation36_spill] sm:$0xff] %v20175_v37 }
 0x298   : > { %16862 = vmatmul.mubr.msk.f32.gmra.mrb[38].mxu0 %vm326_vm1, %v5801_v8  ;;  %v20161_v8 = vld [vmem:[#allocation3 + $0xec] sm:$0xff] }
 0x299   : > { %16866 = vmatprep.mubr.msk.f32.mxu0 %vm326_vm1, %v18890_v45  ;;  %22066 = vst [vmem:[#allocation34_spill] sm:$0xff] %v20161_v8  ;;  %v18892_v45 = vld [vmem:[#allocation2 + $0x4b] sm:$0xff]  ;;  %16348 = vmatmul.mubr.msk.f32.gmra.mrb[26].mxu1 %vm326_vm1, %v20161_v8  ;;  %v18895_v8 = vld [vmem:[#allocation2 + $0x63] sm:$0xff] }
 0x29a   : > { %16350 = vmatprep.mubr.msk.f32.mxu1 %vm326_vm1, %v20166_v46  ;;  %v20185_v46 = vld [vmem:[#allocation3 + $0x10c] sm:$0xff] }
 0x29b   : > { %22070 = vst [vmem:[#allocation38_spill] sm:$0xff] %v20185_v46 }
 0x29c   : > { %16867 = vmatmul.mubr.msk.f32.vlgmr.msra.gmra.mrb[0].mxu0 %vm326_vm1, %v18891_v21  ;;  %v18893_v21 = vld [vmem:[#allocation2 + $0x53] sm:$0xff] }
 0x29d   : > { %16927 = vmatpush3.msk.msra.mxu0 %vm754_vm0, %v19952_v57  ;;  %16869 = vmatprep.mubr.msk.f32.mxu0 %vm326_vm1, %v18892_v45  ;;  %v18894_v57 = vld [vmem:[#allocation2 + $0x5b] sm:$0xff] }
 0x29e   : > { %16988 = vmatprep.subr.msk.mxu0 %vm754_vm0, %v20156_v53  ;;  %v20178_v45 = vld [vmem:[#allocation3 + $0x104] sm:$0xff]  ;;  %16351 = vmatmul.mubr.msk.f32.gmra.mrb[28].mxu1 %vm326_vm1, %v20175_v37 }
 0x29f   : > { %22069 = vst [vmem:[#allocation37_spill] sm:$0xff] %v20178_v45  ;;  %16353 = vmatprep.mubr.msk.f32.mxu1 %vm326_vm1, %v20178_v45  ;;  %v20195_v45 = vld [vmem:[#allocation3 + $0x11c] sm:$0xff]  ;;  %v18898_v37 = vld [vmem:[#allocation2 + $0x7b] sm:$0xff] }
 0x2a0   : > { %16870 = vmatmul.mubr.msk.f32.gmra.mrb[2].mxu0 %vm326_vm1, %v18893_v21  ;;  %v20188_v21 = vld [vmem:[#allocation3 + $0x114] sm:$0xff]  ;;  %22072 = vst [vmem:[#allocation40_spill] sm:$0xff] %v20195_v45 }
 0x2a1   : > { %16872 = vmatprep.mubr.msk.f32.mxu0 %vm326_vm1, %v18894_v57  ;;  %22071 = vst [vmem:[#allocation39_spill] sm:$0xff] %v20188_v21  ;;  %v18897_v57 = vld [vmem:[#allocation2 + $0x73] sm:$0xff] }
 0x2a2   : > { %16354 = vmatmul.mubr.msk.f32.gmra.mrb[30].mxu1 %vm326_vm1, %v20185_v46  ;;  %v18900_v46 = vld [vmem:[#allocation2 + $0x8b] sm:$0xff] }
 0x2a3   : > { %16356 = vmatprep.mubr.msk.f32.mxu1 %vm326_vm1, %v20188_v21  ;;  %v20205_v21 = vld [vmem:[#allocation3 + $0x12c] sm:$0xff] }
 0x2a4   : > { %16873 = vmatmul.mubr.msk.f32.gmra.mrb[4].mxu0 %vm326_vm1, %v18895_v8  ;;  %v20198_v8 = vld [vmem:[#allocation3 + $0x124] sm:$0xff]  ;;  %22074 = vst [vmem:[#allocation42_spill] sm:$0xff] %v20205_v21 }
 0x2a5   : > { %16875 = vmatprep.mubr.msk.f32.mxu0 %vm326_vm1, %v18896_v17  ;;  %22073 = vst [vmem:[#allocation41_spill] sm:$0xff] %v20198_v8  ;;  %v18899_v17 = vld [vmem:[#allocation2 + $0x83] sm:$0xff] }
 0x2a6   : > { %16357 = vmatmul.mubr.msk.f32.gmra.mrb[32].mxu1 %vm326_vm1, %v20195_v45  ;;  %v18902_v45 = vld [vmem:[#allocation2 + $0x9b] sm:$0xff] }
 0x2a7   : > { %16359 = vmatprep.mubr.msk.f32.mxu1 %vm326_vm1, %v20198_v8  ;;  %v20215_v8 = vld [vmem:[#allocation3 + $0x13c] sm:$0xff] }
 0x2a8   : > { %16876 = vmatmul.mubr.msk.f32.gmra.mrb[6].mxu0 %vm326_vm1, %v18897_v57  ;;  %v20208_v57 = vld [vmem:[#allocation3 + $0x134] sm:$0xff]  ;;  %22076 = vst [vmem:[#allocation44_spill] sm:$0xff] %v20215_v8 }
 0x2a9   : > { %16878 = vmatprep.mubr.msk.f32.mxu0 %vm326_vm1, %v18898_v37  ;;  %22075 = vst [vmem:[#allocation43_spill] sm:$0xff] %v20208_v57  ;;  %v18901_v37 = vld [vmem:[#allocation2 + $0x93] sm:$0xff] }
 0x2aa   : > { %16360 = vmatmul.mubr.msk.f32.gmra.mrb[34].mxu1 %vm326_vm1, %v20205_v21  ;;  %v18904_v21 = vld [vmem:[#allocation2 + $0xab] sm:$0xff] }
 0x2ab   : > { %16362 = vmatprep.mubr.msk.f32.mxu1 %vm326_vm1, %v20208_v57  ;;  %v20225_v57 = vld [vmem:[#allocation3 + $0x14c] sm:$0xff] }
 0x2ac   : > { %16879 = vmatmul.mubr.msk.f32.gmra.mrb[8].mxu0 %vm326_vm1, %v18899_v17  ;;  %v20218_v17 = vld [vmem:[#allocation3 + $0x144] sm:$0xff]  ;;  %22078 = vst [vmem:[#allocation46_spill] sm:$0xff] %v20225_v57 }
 0x2ad   : > { %16881 = vmatprep.mubr.msk.f32.mxu0 %vm326_vm1, %v18900_v46  ;;  %22077 = vst [vmem:[#allocation45_spill] sm:$0xff] %v20218_v17  ;;  %v18903_v46 = vld [vmem:[#allocation2 + $0xa3] sm:$0xff] }
 0x2ae   : > { %16363 = vmatmul.mubr.msk.f32.gmra.mrb[36].mxu1 %vm326_vm1, %v20215_v8  ;;  %v18906_v8 = vld [vmem:[#allocation2 + $0xbb] sm:$0xff] }
 0x2af   : > { %16365 = vmatprep.mubr.msk.f32.mxu1 %vm326_vm1, %v20218_v17  ;;  %v20235_v17 = vld [vmem:[#allocation2 + $0xbd] sm:$0xff] }
 0x2b0   : > { %16882 = vmatmul.mubr.msk.f32.gmra.mrb[10].mxu0 %vm326_vm1, %v18901_v37  ;;  %v20228_v37 = vld [vmem:[#allocation2 + $0xb5] sm:$0xff]  ;;  %22080 = vst [vmem:[#allocation48_spill] sm:$0xff] %v20235_v17 }
 0x2b1   : > { %16884 = vmatprep.mubr.msk.f32.mxu0 %vm326_vm1, %v18902_v45  ;;  %22079 = vst [vmem:[#allocation47_spill] sm:$0xff] %v20228_v37  ;;  %v18905_v45 = vld [vmem:[#allocation2 + $0xb3] sm:$0xff] }
 0x2b2   : > { %16366 = vmatmul.mubr.msk.f32.gmra.mrb[38].mxu1 %vm326_vm1, %v20225_v57  ;;  %v18908_v57 = vld [vmem:[#allocation2 + $0xcb] sm:$0xff] }
 0x2b3   : > { %16400 = vmatprep.mubr.msk.f32.mxu1 %vm326_vm1, %v20228_v37  ;;  %v20245_v37 = vld [vmem:[#allocation2 + $0xcd] sm:$0xff] }
 0x2b4   : > { %16885 = vmatmul.mubr.msk.f32.gmra.mrb[12].mxu0 %vm326_vm1, %v18903_v46  ;;  %v20238_v46 = vld [vmem:[#allocation2 + $0xc5] sm:$0xff]  ;;  %22082 = vst [vmem:[#allocation50_spill] sm:$0xff] %v20245_v37 }
 0x2b5   : > { %16887 = vmatprep.mubr.msk.f32.mxu0 %vm326_vm1, %v18904_v21  ;;  %22081 = vst [vmem:[#allocation49_spill] sm:$0xff] %v20238_v46  ;;  %v18907_v21 = vld [vmem:[#allocation2 + $0xc3] sm:$0xff] }
 0x2b6   : > { %16401 = vmatmul.mubr.msk.f32.vlgmr.msra.gmra.mrb[20].mxu1 %vm326_vm1, %v20235_v17  ;;  %v18910_v17 = vld [vmem:[#allocation2 + $0xdb] sm:$0xff] }
 0x2b7   : > { %16403 = vmatprep.mubr.msk.f32.mxu1 %vm326_vm1, %v20238_v46  ;;  %v20255_v46 = vld [vmem:[#allocation2 + $0xdd] sm:$0xff] }
 0x2b8   : > { %16888 = vmatmul.mubr.msk.f32.gmra.mrb[14].mxu0 %vm326_vm1, %v18905_v45  ;;  %v20248_v45 = vld [vmem:[#allocation2 + $0xd5] sm:$0xff]  ;;  %22084 = vst [vmem:[#allocation52_spill] sm:$0xff] %v20255_v46 }
 0x2b9   : > { %16890 = vmatprep.mubr.msk.f32.mxu0 %vm326_vm1, %v18906_v8  ;;  %22083 = vst [vmem:[#allocation51_spill] sm:$0xff] %v20248_v45  ;;  %v18909_v8 = vld [vmem:[#allocation2 + $0xd3] sm:$0xff] }
 0x2ba   : > { %16404 = vmatmul.mubr.msk.f32.gmra.mrb[22].mxu1 %vm326_vm1, %v20245_v37  ;;  %v18912_v37 = vld [vmem:[#allocation2 + $0xeb] sm:$0xff] }
 0x2bb   : > { %16406 = vmatprep.mubr.msk.f32.mxu1 %vm326_vm1, %v20248_v45  ;;  %v20265_v45 = vld [vmem:[#allocation2 + $0xed] sm:$0xff] }
 0x2bc   : > { %16891 = vmatmul.mubr.msk.f32.gmra.mrb[16].mxu0 %vm326_vm1, %v18907_v21  ;;  %v20258_v21 = vld [vmem:[#allocation2 + $0xe5] sm:$0xff]  ;;  %22086 = vst [vmem:[#allocation54_spill] sm:$0xff] %v20265_v45 }
 0x2bd   : > { %16893 = vmatprep.mubr.msk.f32.mxu0 %vm326_vm1, %v18908_v57  ;;  %22085 = vst [vmem:[#allocation53_spill] sm:$0xff] %v20258_v21  ;;  %v18911_v57 = vld [vmem:[#allocation2 + $0xe3] sm:$0xff] }
 0x2be   : > { %16407 = vmatmul.mubr.msk.f32.gmra.mrb[24].mxu1 %vm326_vm1, %v20255_v46  ;;  %v18914_v46 = vld [vmem:[#allocation2 + $0xfb] sm:$0xff] }
 0x2bf   : > { %16409 = vmatprep.mubr.msk.f32.mxu1 %vm326_vm1, %v20258_v21  ;;  %v20275_v21 = vld [vmem:[#allocation2 + $0xfd] sm:$0xff] }
 0x2c0   : > { %16894 = vmatmul.mubr.msk.f32.gmra.mrb[18].mxu0 %vm326_vm1, %v18909_v8  ;;  %v20268_v8 = vld [vmem:[#allocation2 + $0xf5] sm:$0xff]  ;;  %22088 = vst [vmem:[#allocation56_spill] sm:$0xff] %v20275_v21 }
 0x2c1   : > { %16896 = vmatprep.mubr.msk.f32.mxu0 %vm326_vm1, %v18910_v17  ;;  %22087 = vst [vmem:[#allocation55_spill] sm:$0xff] %v20268_v8  ;;  %v18913_v17 = vld [vmem:[#allocation2 + $0xf3] sm:$0xff] }
 0x2c2   : > { %16410 = vmatmul.mubr.msk.f32.gmra.mrb[26].mxu1 %vm326_vm1, %v20265_v45  ;;  %v18916_v45 = vld [vmem:[#allocation2 + $0x10b] sm:$0xff] }
 0x2c3   : > { %16412 = vmatprep.mubr.msk.f32.mxu1 %vm326_vm1, %v20268_v8  ;;  %v20285_v8 = vld [vmem:[#allocation2 + $0x10d] sm:$0xff] }
 0x2c4   : > { %16897 = vmatmul.mubr.msk.f32.gmra.mrb[20].mxu0 %vm326_vm1, %v18911_v57  ;;  %v20278_v57 = vld [vmem:[#allocation2 + $0x105] sm:$0xff]  ;;  %22090 = vst [vmem:[#allocation58_spill] sm:$0xff] %v20285_v8 }
 0x2c5   : > { %16899 = vmatprep.mubr.msk.f32.mxu0 %vm326_vm1, %v18912_v37  ;;  %22089 = vst [vmem:[#allocation57_spill] sm:$0xff] %v20278_v57  ;;  %v18915_v37 = vld [vmem:[#allocation2 + $0x103] sm:$0xff] }
 0x2c6   : > { %16413 = vmatmul.mubr.msk.f32.gmra.mrb[28].mxu1 %vm326_vm1, %v20275_v21  ;;  %v18918_v21 = vld [vmem:[#allocation2 + $0x11b] sm:$0xff] }
 0x2c7   : > { %16415 = vmatprep.mubr.msk.f32.mxu1 %vm326_vm1, %v20278_v57  ;;  %v20295_v57 = vld [vmem:[#allocation2 + $0x11d] sm:$0xff] }
 0x2c8   : > { %16900 = vmatmul.mubr.msk.f32.gmra.mrb[22].mxu0 %vm326_vm1, %v18913_v17  ;;  %v20288_v17 = vld [vmem:[#allocation2 + $0x115] sm:$0xff]  ;;  %22092 = vst [vmem:[#allocation60_spill] sm:$0xff] %v20295_v57 }
 0x2c9   : > { %16902 = vmatprep.mubr.msk.f32.mxu0 %vm326_vm1, %v18914_v46  ;;  %22091 = vst [vmem:[#allocation59_spill] sm:$0xff] %v20288_v17  ;;  %v18917_v46 = vld [vmem:[#allocation2 + $0x113] sm:$0xff] }
 0x2ca   : > { %16416 = vmatmul.mubr.msk.f32.gmra.mrb[30].mxu1 %vm326_vm1, %v20285_v8  ;;  %v18920_v8 = vld [vmem:[#allocation2 + $0x12b] sm:$0xff] }
 0x2cb   : > { %16418 = vmatprep.mubr.msk.f32.mxu1 %vm326_vm1, %v20288_v17  ;;  %v20305_v17 = vld [vmem:[#allocation2 + $0x12d] sm:$0xff] }
 0x2cc   : > { %16903 = vmatmul.mubr.msk.f32.gmra.mrb[24].mxu0 %vm326_vm1, %v18915_v37  ;;  %v20298_v37 = vld [vmem:[#allocation2 + $0x125] sm:$0xff]  ;;  %22094 = vst [vmem:[#allocation62_spill] sm:$0xff] %v20305_v17 }
 0x2cd   : > { %16905 = vmatprep.mubr.msk.f32.mxu0 %vm326_vm1, %v18916_v45  ;;  %22093 = vst [vmem:[#allocation61_spill] sm:$0xff] %v20298_v37  ;;  %v18919_v45 = vld [vmem:[#allocation2 + $0x123] sm:$0xff] }
 0x2ce   : > { %16419 = vmatmul.mubr.msk.f32.gmra.mrb[32].mxu1 %vm326_vm1, %v20295_v57  ;;  %v18922_v57 = vld [vmem:[#allocation2 + $0x13b] sm:$0xff] }
 0x2cf   : > { %16421 = vmatprep.mubr.msk.f32.mxu1 %vm326_vm1, %v20298_v37  ;;  %v20315_v37 = vld [vmem:[#allocation2 + $0x13d] sm:$0xff] }
 0x2d0   : > { %16906 = vmatmul.mubr.msk.f32.gmra.mrb[26].mxu0 %vm326_vm1, %v18917_v46  ;;  %v20308_v46 = vld [vmem:[#allocation2 + $0x135] sm:$0xff]  ;;  %22096 = vst [vmem:[#allocation64_spill] sm:$0xff] %v20315_v37 }
 0x2d1   : > { %16908 = vmatprep.mubr.msk.f32.mxu0 %vm326_vm1, %v18918_v21  ;;  %22095 = vst [vmem:[#allocation63_spill] sm:$0xff] %v20308_v46  ;;  %v18921_v21 = vld [vmem:[#allocation2 + $0x133] sm:$0xff] }
 0x2d2   : > { %16422 = vmatmul.mubr.msk.f32.gmra.mrb[34].mxu1 %vm326_vm1, %v20305_v17  ;;  %v18924_v17 = vld [vmem:[#allocation2 + $0x14b] sm:$0xff] }
 0x2d3   : > { %16424 = vmatprep.mubr.msk.f32.mxu1 %vm326_vm1, %v20308_v46  ;;  %v20325_v46 = vld [vmem:[#allocation2 + $0x14d] sm:$0xff] }
 0x2d4   : > { %16909 = vmatmul.mubr.msk.f32.gmra.mrb[28].mxu0 %vm326_vm1, %v18919_v45  ;;  %v20318_v45 = vld [vmem:[#allocation2 + $0x145] sm:$0xff]  ;;  %22098 = vst [vmem:[#allocation66_spill] sm:$0xff] %v20325_v46 }
 0x2d5   : > { %16911 = vmatprep.mubr.msk.f32.mxu0 %vm326_vm1, %v18920_v8  ;;  %22097 = vst [vmem:[#allocation65_spill] sm:$0xff] %v20318_v45  ;;  %v18923_v8 = vld [vmem:[#allocation2 + $0x143] sm:$0xff] }
 0x2d6   : > { %16425 = vmatmul.mubr.msk.f32.gmra.mrb[36].mxu1 %vm326_vm1, %v20315_v37  ;;  %v6270_v37 = vld [vmem:[#allocation2 + $0x16b] sm:$0xff] }
 0x2d7   : > { %16427 = vmatprep.mubr.msk.f32.mxu1 %vm326_vm1, %v20318_v45  ;;  %v18925_v45 = vld [vmem:[#allocation3 + $0x3b] sm:$0xff] }
 0x2d8   : > { %16912 = vmatmul.mubr.msk.f32.gmra.mrb[30].mxu0 %vm326_vm1, %v18921_v21  ;;  %v6267_v21 = vld [vmem:[#allocation2 + $0x153] sm:$0xff] }
 0x2d9   : > { %16914 = vmatprep.mubr.msk.f32.mxu0 %vm326_vm1, %v18922_v57  ;;  %v6269_v57 = vld [vmem:[#allocation2 + $0x163] sm:$0xff] }
 0x2da   : > { %16428 = vmatmul.mubr.msk.f32.gmra.mrb[38].mxu1 %vm326_vm1, %v20325_v46  ;;  %v18926_v46 = vld [vmem:[#allocation3 + $0x43] sm:$0xff] }
 0x2dc   : > { %16915 = vmatmul.mubr.msk.f32.gmra.mrb[32].mxu0 %vm326_vm1, %v18923_v8  ;;  %v6271_v8 = vld [vmem:[#allocation2 + $0x173] sm:$0xff] }
 0x2dd   : > { %16917 = vmatprep.mubr.msk.f32.mxu0 %vm326_vm1, %v18924_v17  ;;  %v14505_v17 = vld [vmem:[%s21945_s4 + $0xe] sm:$0x3] }
 0x2e0   : > { %16918 = vmatmul.mubr.msk.f32.gmra.mrb[34].mxu0 %vm326_vm1, %v6267_v21  ;;  %v18929_v21 = vld [vmem:[#allocation3 + $0x5b] sm:$0xff] }
 0x2e1   : > { %16920 = vmatprep.mubr.msk.f32.mxu0 %vm326_vm1, %v6268_v15  ;;  %v18927_v15 = vld [vmem:[#allocation3 + $0x4b] sm:$0xff] }
 0x2e4   : > { %16921 = vmatmul.mubr.msk.f32.gmra.mrb[36].mxu0 %vm326_vm1, %v6269_v57  ;;  %v18931_v57 = vld [vmem:[#allocation3 + $0x6b] sm:$0xff] }
 0x2e5   : > { %16923 = vmatprep.mubr.msk.f32.mxu0 %vm326_vm1, %v6270_v37  ;;  %v18928_v37 = vld [vmem:[#allocation3 + $0x53] sm:$0xff] }
 0x2e8   : > { %16924 = vmatmul.mubr.msk.f32.gmra.mrb[38].mxu0 %vm326_vm1, %v6271_v8  ;;  %v22115_v8 = vld [vmem:[#allocation21_spill] sm:$0xff] }
 0x2e9   : > { %16928 = vmatprep.mubr.msk.f32.mxu0 %vm326_vm1, %v18925_v45  ;;  %v18930_v45 = vld [vmem:[#allocation3 + $0x63] sm:$0xff] }
 0x2ec   : > { %16929 = vmatmul.mubr.msk.f32.vlgmr.msra.gmra.mrb[0].mxu0 %vm326_vm1, %v18926_v46  ;;  %v18932_v46 = vld [vmem:[#allocation3 + $0x73] sm:$0xff] }
 0x2ed   : > { %16989 = vmatpush3.msk.msra.mxu0 %vm754_vm0, %v20156_v53  ;;  %16931 = vmatprep.mubr.msk.f32.mxu0 %vm326_vm1, %v18927_v15 }
 0x2ee   : > { %17050 = vmatprep.subr.msk.mxu0 %vm754_vm0, %v14505_v17 }
 0x2f0   : > { %16932 = vmatmul.mubr.msk.f32.gmra.mrb[2].mxu0 %vm326_vm1, %v18928_v37 }
 0x2f1   : > { %16934 = vmatprep.mubr.msk.f32.mxu0 %vm326_vm1, %v18929_v21  ;;  %v22117_v21 = vld [vmem:[#allocation23_spill] sm:$0xff] }
 0x2f4   : > { %16935 = vmatmul.mubr.msk.f32.gmra.mrb[4].mxu0 %vm326_vm1, %v18930_v45  ;;  %v22118_v45 = vld [vmem:[#allocation24_spill] sm:$0xff] }
 0x2f5   : > { %16937 = vmatprep.mubr.msk.f32.mxu0 %vm326_vm1, %v18931_v57 }
 0x2f8   : > { %16938 = vmatmul.mubr.msk.f32.gmra.mrb[6].mxu0 %vm326_vm1, %v18932_v46 }
 0x2f9   : > { %16940 = vmatprep.mubr.msk.f32.mxu0 %vm326_vm1, %v19683_v18  ;;  %v6737_v18 = vld [vmem:[#allocation3 + $0x153] sm:$0xff] }
 0x2fc   : > { %16941 = vmatmul.mubr.msk.f32.gmra.mrb[8].mxu0 %vm326_vm1, %v19686_v20  ;;  %v6738_v20 = vld [vmem:[#allocation3 + $0x15b] sm:$0xff] }
 0x2fd   : > { %16943 = vmatprep.mubr.msk.f32.mxu0 %vm326_vm1, %v19693_v22  ;;  %v6739_v22 = vld [vmem:[#allocation3 + $0x163] sm:$0xff] }
 0x300   : > { %16944 = vmatmul.mubr.msk.f32.gmra.mrb[10].mxu0 %vm326_vm1, %v19696_v9  ;;  %v6740_v9 = vld [vmem:[#allocation3 + $0x16b] sm:$0xff] }
 0x301   : > { %16946 = vmatprep.mubr.msk.f32.mxu0 %vm326_vm1, %v19703_v26  ;;  %v6741_v26 = vld [vmem:[#allocation3 + $0x173] sm:$0xff] }
 0x304   : > { %16947 = vmatmul.mubr.msk.f32.gmra.mrb[12].mxu0 %vm326_vm1, %v19706_v29  ;;  %v20413_v29 = vld [vmem:[%s21944_s3 + $0x10] sm:$0x3] }
 0x305   : > { %16949 = vmatprep.mubr.msk.f32.mxu0 %vm326_vm1, %v19713_v31 }
 0x308   : > { %16950 = vmatmul.mubr.msk.f32.gmra.mrb[14].mxu0 %vm326_vm1, %v19716_v33 }
 0x309   : > { %16952 = vmatprep.mubr.msk.f32.mxu0 %vm326_vm1, %v19723_v35 }
 0x30c   : > { %16953 = vmatmul.mubr.msk.f32.gmra.mrb[16].mxu0 %vm326_vm1, %v19726_v36 }
 0x30d   : > { %16955 = vmatprep.mubr.msk.f32.mxu0 %vm326_vm1, %v19733_v38 }
 0x310   : > { %16956 = vmatmul.mubr.msk.f32.gmra.mrb[18].mxu0 %vm326_vm1, %v19736_v40 }
 0x311   : > { %16958 = vmatprep.mubr.msk.f32.mxu0 %vm326_vm1, %v19743_v42  ;;  %v22099_v42 = vld [vmem:[#allocation5_spill] sm:$0xff] }
 0x314   : > { %16959 = vmatmul.mubr.msk.f32.gmra.mrb[20].mxu0 %vm326_vm1, %v19746_v44 }
 0x315   : > { %16961 = vmatprep.mubr.msk.f32.mxu0 %vm326_vm1, %v19758_v47  ;;  %v22100_v47 = vld [vmem:[#allocation6_spill] sm:$0xff] }
 0x318   : > { %16962 = vmatmul.mubr.msk.f32.gmra.mrb[22].mxu0 %vm326_vm1, %v19763_v49 }
 0x319   : > { %16964 = vmatprep.mubr.msk.f32.mxu0 %vm326_vm1, %v19772_v51  ;;  %v22101_v51 = vld [vmem:[#allocation7_spill] sm:$0xff] }
 0x31c   : > { %16965 = vmatmul.mubr.msk.f32.gmra.mrb[24].mxu0 %vm326_vm1, %v19775_v52 }
 0x31d   : > { %16967 = vmatprep.mubr.msk.f32.mxu0 %vm326_vm1, %v19782_v54  ;;  %v22102_v54 = vld [vmem:[#allocation8_spill] sm:$0xff] }
 0x320   : > { %16968 = vmatmul.mubr.msk.f32.gmra.mrb[26].mxu0 %vm326_vm1, %v19785_v56 }
 0x321   : > { %16970 = vmatprep.mubr.msk.f32.mxu0 %vm326_vm1, %v19792_v58  ;;  %v22103_v58 = vld [vmem:[#allocation9_spill] sm:$0xff] }
 0x324   : > { %16971 = vmatmul.mubr.msk.f32.gmra.mrb[28].mxu0 %vm326_vm1, %v19795_v60 }
 0x325   : > { %16973 = vmatprep.mubr.msk.f32.mxu0 %vm326_vm1, %v19802_v62  ;;  %v22104_v62 = vld [vmem:[#allocation10_spill] sm:$0xff] }
 0x328   : > { %16974 = vmatmul.mubr.msk.f32.gmra.mrb[30].mxu0 %vm326_vm1, %v19805_v0 }
 0x329   : > { %16976 = vmatprep.mubr.msk.f32.mxu0 %vm326_vm1, %v19812_v2  ;;  %v22105_v2 = vld [vmem:[#allocation11_spill] sm:$0xff] }
 0x32c   : > { %16977 = vmatmul.mubr.msk.f32.gmra.mrb[32].mxu0 %vm326_vm1, %v19815_v4 }
 0x32d   : > { %16979 = vmatprep.mubr.msk.f32.mxu0 %vm326_vm1, %v19822_v6  ;;  %v22106_v6 = vld [vmem:[#allocation12_spill] sm:$0xff] }
 0x330   : > { %16980 = vmatmul.mubr.msk.f32.gmra.mrb[34].mxu0 %vm326_vm1, %v6737_v18  ;;  %v22119_v18 = vld [vmem:[#allocation25_spill] sm:$0xff] }
 0x331   : > { %16982 = vmatprep.mubr.msk.f32.mxu0 %vm326_vm1, %v6738_v20  ;;  %v22120_v20 = vld [vmem:[#allocation26_spill] sm:$0xff] }
 0x334   : > { %16983 = vmatmul.mubr.msk.f32.gmra.mrb[36].mxu0 %vm326_vm1, %v6739_v22 }
 0x335   : > { %16985 = vmatprep.mubr.msk.f32.mxu0 %vm326_vm1, %v6740_v9 }
 0x338   : > { %16986 = vmatmul.mubr.msk.f32.gmra.mrb[38].mxu0 %vm326_vm1, %v6741_v26  ;;  %v20458_v31 = vpop.f32.mrb[0].mxu1  ;;  %v22121_v26 = vld [vmem:[#allocation27_spill] sm:$0xff] }
 0x339   : > { %16990 = vmatprep.mubr.msk.f32.mxu0 %vm326_vm1, %v19842_v24  ;;  %v20462_v33 = vpop.f32.mrb[1].mxu1 }
 0x33c   : > { %16991 = vmatmul.mubr.msk.f32.vlgmr.msra.gmra.mrb[0].mxu0 %vm326_vm1, %v19845_v27  ;;  %v20466_v35 = vpop.f32.mrb[2].mxu1  ;;  %v22107_v27 = vld [vmem:[#allocation13_spill] sm:$0xff] }
 0x33d   : > { %17051 = vmatpush3.msk.msra.mxu0 %vm754_vm0, %v14505_v17  ;;  %16993 = vmatprep.mubr.msk.f32.mxu0 %vm326_vm1, %v19852_v32  ;;  %v20470_v36 = vpop.f32.mrb[3].mxu1  ;;  %v7207_v32 = vld [vmem:[#allocation2 + $0x154] sm:$0xff] }
 0x33e   : > { %17112 = vmatprep.subr.msk.mxu0 %vm754_vm0, %v20413_v29  ;;  %v22116_v17 = vld [vmem:[#allocation22_spill] sm:$0xff] }
 0x340   : > { %16994 = vmatmul.mubr.msk.f32.gmra.mrb[2].mxu0 %vm326_vm1, %v19855_v23  ;;  %v20474_v38 = vpop.f32.mrb[4].mxu1 }
 0x341   : > { %16996 = vmatprep.mubr.msk.f32.mxu0 %vm326_vm1, %v19862_v39  ;;  %v20478_v40 = vpop.f32.mrb[5].mxu1  ;;  %v7208_v39 = vld [vmem:[#allocation2 + $0x15c] sm:$0xff] }
 0x344   : > { %16997 = vmatmul.mubr.msk.f32.gmra.mrb[4].mxu0 %vm326_vm1, %v19865_v43  ;;  %v20482_v44 = vpop.f32.mrb[6].mxu1 }
 0x345   : > { %16999 = vmatprep.mubr.msk.f32.mxu0 %vm326_vm1, %v19872_v48  ;;  %v20486_v49 = vpop.f32.mrb[7].mxu1  ;;  %v7209_v48 = vld [vmem:[#allocation2 + $0x164] sm:$0xff] }
 0x348   : > { %17000 = vmatmul.mubr.msk.f32.gmra.mrb[6].mxu0 %vm326_vm1, %v19875_v28  ;;  %v20490_v52 = vpop.f32.mrb[8].mxu1 }
 0x349   : > { %17002 = vmatprep.mubr.msk.f32.mxu0 %vm326_vm1, %v19882_v55  ;;  %v20494_v56 = vpop.f32.mrb[9].mxu1  ;;  %v7210_v55 = vld [vmem:[#allocation2 + $0x16c] sm:$0xff] }
 0x34c   : > { %17003 = vmatmul.mubr.msk.f32.gmra.mrb[8].mxu0 %vm326_vm1, %v19885_v59  ;;  %v20498_v60 = vpop.f32.mrb[10].mxu1 }
 0x34d   : > { %17005 = vmatprep.mubr.msk.f32.mxu0 %vm326_vm1, %v19892_v63  ;;  %v20502_v0 = vpop.f32.mrb[11].mxu1  ;;  %v7211_v63 = vld [vmem:[#allocation2 + $0x174] sm:$0xff] }
 0x350   : > { %17006 = vmatmul.mubr.msk.f32.gmra.mrb[10].mxu0 %vm326_vm1, %v19895_v3  ;;  %v20506_v4 = vpop.f32.mrb[12].mxu1 }
 0x351   : > { %17008 = vmatprep.mubr.msk.f32.mxu0 %vm326_vm1, %v19902_v7  ;;  %v20510_v24 = vpop.f32.mrb[13].mxu1 }
 0x354   : > { %17009 = vmatmul.mubr.msk.f32.gmra.mrb[12].mxu0 %vm326_vm1, %v19905_v10  ;;  %v20514_v23 = vpop.f32.mrb[14].mxu1  ;;  %v20536_v10 = vld [vmem:[%s21945_s4 + $0x10] sm:$0x3] }
 0x355   : > { %17011 = vmatprep.mubr.msk.f32.mxu0 %vm326_vm1, %v19912_v12  ;;  %v20517_v43 = vpop.f32.mrb[15].mxu1  ;;  %v22108_v12 = vld [vmem:[#allocation14_spill] sm:$0xff] }
 0x358   : > { %17012 = vmatmul.mubr.msk.f32.gmra.mrb[14].mxu0 %vm326_vm1, %v19915_v14  ;;  %v20520_v28 = vpop.f32.mrb[16].mxu1 }
 0x359   : > { %17014 = vmatprep.mubr.msk.f32.mxu0 %vm326_vm1, %v19922_v16  ;;  %v20523_v59 = vpop.f32.mrb[17].mxu1 }
 0x35c   : > { %17015 = vmatmul.mubr.msk.f32.gmra.mrb[16].mxu0 %vm326_vm1, %v19925_v19  ;;  %v20526_v3 = vpop.f32.mrb[18].mxu1  ;;  %v22109_v19 = vld [vmem:[#allocation15_spill] sm:$0xff] }
 0x35d   : > { %17017 = vmatprep.mubr.msk.f32.mxu0 %vm326_vm1, %v19932_v25  ;;  %v20529_v7 = vpop.f32.mrb[19].mxu1  ;;  %v22110_v25 = vld [vmem:[#allocation16_spill] sm:$0xff] }
 0x360   : > { %17018 = vmatmul.mubr.msk.f32.gmra.mrb[18].mxu0 %vm326_vm1, %v19935_v34 }
 0x361   : > { %17020 = vmatprep.mubr.msk.f32.mxu0 %vm326_vm1, %v19942_v41 }
 0x364   : > { %17021 = vmatmul.mubr.msk.f32.gmra.mrb[20].mxu0 %vm326_vm1, %v19945_v50  ;;  %v22111_v50 = vld [vmem:[#allocation17_spill] sm:$0xff] }
 0x365   : > { %17023 = vmatprep.mubr.msk.f32.mxu0 %vm326_vm1, %v19957_v61  ;;  %v22112_v61 = vld [vmem:[#allocation18_spill] sm:$0xff] }
 0x368   : > { %17024 = vmatmul.mubr.msk.f32.gmra.mrb[22].mxu0 %vm326_vm1, %v19962_v5 }
 0x369   : > { %17026 = vmatprep.mubr.msk.f32.mxu0 %vm326_vm1, %v19971_v11 }
 0x36c   : > { %17027 = vmatmul.mubr.msk.f32.gmra.mrb[24].mxu0 %vm326_vm1, %v19974_v13  ;;  %v22113_v13 = vld [vmem:[#allocation19_spill] sm:$0xff] }
 0x36d   : > { %17029 = vmatprep.mubr.msk.f32.mxu0 %vm326_vm1, %v22099_v42 }
 0x370   : > { %17030 = vmatmul.mubr.msk.f32.gmra.mrb[26].mxu0 %vm326_vm1, %v22100_v47 }
 0x371   : > { %17032 = vmatprep.mubr.msk.f32.mxu0 %vm326_vm1, %v22101_v51  ;;  %v22123_v51 = vld [vmem:[#allocation29_spill] sm:$0xff] }
 0x374   : > { %17033 = vmatmul.mubr.msk.f32.gmra.mrb[28].mxu0 %vm326_vm1, %v22102_v54  ;;  %v22124_v54 = vld [vmem:[#allocation30_spill] sm:$0xff] }
 0x375   : > { %17035 = vmatprep.mubr.msk.f32.mxu0 %vm326_vm1, %v22103_v58 }
 0x378   : > { %17036 = vmatmul.mubr.msk.f32.gmra.mrb[30].mxu0 %vm326_vm1, %v22104_v62 }
 0x379   : > { %17038 = vmatprep.mubr.msk.f32.mxu0 %vm326_vm1, %v22105_v2  ;;  %v22127_v2 = vld [vmem:[#allocation31_spill] sm:$0xff] }
 0x37c   : > { %17039 = vmatmul.mubr.msk.f32.gmra.mrb[32].mxu0 %vm326_vm1, %v22106_v6  ;;  %v22128_v6 = vld [vmem:[#allocation32_spill] sm:$0xff] }
 0x37d   : > { %17041 = vmatprep.mubr.msk.f32.mxu0 %vm326_vm1, %v22107_v27 }
 0x380   : > { %17042 = vmatmul.mubr.msk.f32.gmra.mrb[34].mxu0 %vm326_vm1, %v7207_v32 }
 0x381   : > { %17044 = vmatprep.mubr.msk.f32.mxu0 %vm326_vm1, %v7208_v39  ;;  %v22131_v39 = vld [vmem:[#allocation33_spill] sm:$0xff] }
 0x384   : > { %17045 = vmatmul.mubr.msk.f32.gmra.mrb[36].mxu0 %vm326_vm1, %v7209_v48  ;;  %v9102_v48 = vld [vmem:[%s21943_s2] sm:$0xff] }
 0x385   : > { %17047 = vmatprep.mubr.msk.f32.mxu0 %vm326_vm1, %v7210_v55  ;;  %v22132_v55 = vld [vmem:[#allocation34_spill] sm:$0xff] }
 0x388   : > { %17048 = vmatmul.mubr.msk.f32.gmra.mrb[38].mxu0 %vm326_vm1, %v7211_v63  ;;  %v18945_v63 = vmov 0  }
 0x389   : > { %17052 = vmatprep.mubr.msk.f32.mxu0 %vm326_vm1, %v20046_v30  ;;  %v20544_v14 = vpop.f32.mrb[20].mxu1  ;;  %v22114_v30 = vld [vmem:[#allocation20_spill] sm:$0xff]  ;;  %18887 = vset.pattern.permute.xlu0 %v18945_v63 }
 0x38a   : > { %v20548_v16 = vpop.f32.mrb[21].mxu1  ;;  %9144 = vperm.xlu0 %18887, %v9102_v48   ;;  %18888 = vset.pattern.permute.xlu1 %v18945_v63  ;;  %v22143_v48 = vld [vmem:[#allocation45_spill] sm:$0xff]  ;;  %v9114_v63 = vld [vmem:[%s21943_s2 + $0x60] sm:$0xff] }
 0x38c   : > { %17053 = vmatmul.mubr.msk.f32.vlgmr.msra.gmra.mrb[0].mxu0 %vm326_vm1, %v20049_v1 }
 0x38d   : > { %17113 = vmatpush3.msk.msra.mxu0 %vm754_vm0, %v20413_v29  ;;  %17055 = vmatprep.mubr.msk.f32.mxu0 %vm326_vm1, %v22108_v12  ;;  %v20554_v34 = vpop.f32.mrb[22].mxu1  ;;  %v22122_v29 = vld [vmem:[#allocation28_spill] sm:$0xff]  ;;  %v22133_v12 = vld [vmem:[#allocation35_spill] sm:$0xff] }
 0x38e   : > { %17174 = vmatprep.subr.msk.mxu0 %vm754_vm0, %v20536_v10  ;;  %v20556_v41 = vpop.f32.mrb[23].mxu1 }
 0x390   : > { %17056 = vmatmul.mubr.msk.f32.gmra.mrb[2].mxu0 %vm326_vm1, %v22109_v19  ;;  %v9104_v19 = vld [vmem:[%s21943_s2 + $0x10] sm:$0xff] }
 0x391   : > { %17058 = vmatprep.mubr.msk.f32.mxu0 %vm326_vm1, %v22110_v25  ;;  %v20562_v5 = vpop.f32.mrb[24].mxu1  ;;  %v9103_v25 = vld [vmem:[%s21943_s2 + $0x8] sm:$0xff]  ;;  %9154 = vperm.xlu1 %18888, %v9104_v19  }
 0x392   : > { %v20564_v11 = vpop.f32.mrb[25].mxu1  ;;  %9149 = vperm.xlu0 %18887, %v9103_v25   ;;  %v7677_v19 = vld [vmem:[#allocation3 + $0x154] sm:$0xff]  ;;  %v7678_v25 = vld [vmem:[#allocation3 + $0x15c] sm:$0xff] }
 0x394   : > { %17059 = vmatmul.mubr.msk.f32.gmra.mrb[4].mxu0 %vm326_vm1, %v22111_v50  ;;  %v22134_v50 = vld [vmem:[#allocation36_spill] sm:$0xff] }
 0x395   : > { %17061 = vmatprep.mubr.msk.f32.mxu0 %vm326_vm1, %v22112_v61  ;;  %v20570_v1 = vpop.f32.mrb[26].mxu1  ;;  %v22135_v61 = vld [vmem:[#allocation37_spill] sm:$0xff] }
 0x396   : > { %v20572_v53 = vpop.f32.mrb[27].mxu1 }
 0x398   : > { %17062 = vmatmul.mubr.msk.f32.gmra.mrb[6].mxu0 %vm326_vm1, %v22113_v13  ;;  %v9105_v13 = vld [vmem:[%s21943_s2 + $0x18] sm:$0xff] }
 0x399   : > { %17064 = vmatprep.mubr.msk.f32.mxu0 %vm326_vm1, %v22114_v30  ;;  %v20578_v15 = vpop.f32.mrb[28].mxu1  ;;  %v9106_v30 = vld [vmem:[%s21943_s2 + $0x20] sm:$0xff]  ;;  %9159 = vperm.xlu1 %18888, %v9105_v13   ;;  %v7679_v13 = vld [vmem:[#allocation3 + $0x164] sm:$0xff] }
 0x39a   : > { %v20580_v37 = vpop.f32.mrb[29].mxu1  ;;  %9164 = vperm.xlu0 %18887, %v9106_v30   ;;  %v7680_v30 = vld [vmem:[#allocation3 + $0x16c] sm:$0xff] }
 0x39c   : > { %17065 = vmatmul.mubr.msk.f32.gmra.mrb[8].mxu0 %vm326_vm1, %v22115_v8  ;;  %v22136_v8 = vld [vmem:[#allocation38_spill] sm:$0xff] }
 0x39d   : > { %17067 = vmatprep.mubr.msk.f32.mxu0 %vm326_vm1, %v22116_v17  ;;  %v20586_v57 = vpop.f32.mrb[30].mxu1  ;;  %v22137_v17 = vld [vmem:[#allocation39_spill] sm:$0xff] }
 0x39e   : > { %v20588_v46 = vpop.f32.mrb[31].mxu1 }
 0x3a0   : > { %17068 = vmatmul.mubr.msk.f32.gmra.mrb[10].mxu0 %vm326_vm1, %v22117_v21  ;;  %v9107_v21 = vld [vmem:[%s21943_s2 + $0x28] sm:$0xff] }
 0x3a1   : > { %17070 = vmatprep.mubr.msk.f32.mxu0 %vm326_vm1, %v22118_v45  ;;  %v20594_v22 = vpop.f32.mrb[32].mxu1  ;;  %v9108_v45 = vld [vmem:[%s21943_s2 + $0x30] sm:$0xff]  ;;  %9169 = vperm.xlu1 %18888, %v9107_v21   ;;  %v7681_v21 = vld [vmem:[#allocation3 + $0x174] sm:$0xff] }
 0x3a2   : > { %v20596_v9 = vpop.f32.mrb[33].mxu1  ;;  %9174 = vperm.xlu0 %18887, %v9108_v45   ;;  %v8112_v45 = vld [vmem:[#allocation2 + $0x3d] sm:$0xff] }
 0x3a4   : > { %17071 = vmatmul.mubr.msk.f32.gmra.mrb[12].mxu0 %vm326_vm1, %v22119_v18  ;;  %v22138_v18 = vld [vmem:[#allocation40_spill] sm:$0xff] }
 0x3a5   : > { %17073 = vmatprep.mubr.msk.f32.mxu0 %vm326_vm1, %v22120_v20  ;;  %v20602_v42 = vpop.f32.mrb[34].mxu1  ;;  %v22139_v20 = vld [vmem:[#allocation41_spill] sm:$0xff] }
 0x3a6   : > { %v20604_v47 = vpop.f32.mrb[35].mxu1 }
 0x3a8   : > { %17074 = vmatmul.mubr.msk.f32.gmra.mrb[14].mxu0 %vm326_vm1, %v22121_v26  ;;  %v9109_v26 = vld [vmem:[%s21943_s2 + $0x38] sm:$0xff] }
 0x3a9   : > { %17076 = vmatprep.mubr.msk.f32.mxu0 %vm326_vm1, %v22122_v29  ;;  %v20610_v58 = vpop.f32.mrb[36].mxu1  ;;  %v9110_v29 = vld [vmem:[%s21943_s2 + $0x40] sm:$0xff]  ;;  %9179 = vperm.xlu1 %18888, %v9109_v26  }
 0x3aa   : > { %22125 = vst [vmem:[#allocation5_spill] sm:$0xff] %v20610_v58  ;;  %v20612_v62 = vpop.f32.mrb[37].mxu1  ;;  %9184 = vperm.xlu0 %18887, %v9110_v29   ;;  %v8113_v26 = vld [vmem:[#allocation2 + $0x45] sm:$0xff]  ;;  %v8114_v29 = vld [vmem:[#allocation2 + $0x4d] sm:$0xff] }
 0x3ab   : > { %22126 = vst [vmem:[#allocation6_spill] sm:$0xff] %v20612_v62 }
 0x3ac   : > { %17077 = vmatmul.mubr.msk.f32.gmra.mrb[16].mxu0 %vm326_vm1, %v22123_v51  ;;  %v22140_v51 = vld [vmem:[#allocation42_spill] sm:$0xff] }
 0x3ad   : > { %17079 = vmatprep.mubr.msk.f32.mxu0 %vm326_vm1, %v22124_v54  ;;  %v20618_v27 = vpop.f32.mrb[38].mxu1  ;;  %v22141_v54 = vld [vmem:[#allocation43_spill] sm:$0xff] }
 0x3ae   : > { %22129 = vst [vmem:[#allocation7_spill] sm:$0xff] %v20618_v27  ;;  %v20620_v32 = vpop.f32.mrb[39].mxu1 }
 0x3af   : > { %22130 = vst [vmem:[#allocation8_spill] sm:$0xff] %v20620_v32 }
 0x3b0   : > { %17080 = vmatmul.mubr.msk.f32.gmra.mrb[18].mxu0 %vm326_vm1, %v22127_v2  ;;  %v9111_v2 = vld [vmem:[%s21943_s2 + $0x48] sm:$0xff] }
 0x3b1   : > { %17082 = vmatprep.mubr.msk.f32.mxu0 %vm326_vm1, %v22128_v6  ;;  %v9112_v6 = vld [vmem:[%s21943_s2 + $0x50] sm:$0xff]  ;;  %9189 = vperm.xlu1 %18888, %v9111_v2  }
 0x3b2   : > { %9194 = vperm.xlu0 %18887, %v9112_v6   ;;  %v8115_v2 = vld [vmem:[#allocation2 + $0x55] sm:$0xff]  ;;  %v8116_v6 = vld [vmem:[#allocation2 + $0x5d] sm:$0xff] }
 0x3b4   : > { %17083 = vmatmul.mubr.msk.f32.gmra.mrb[20].mxu0 %vm326_vm1, %v22131_v39  ;;  %v22142_v39 = vld [vmem:[#allocation44_spill] sm:$0xff] }
 0x3b5   : > { %17085 = vmatprep.mubr.msk.f32.mxu0 %vm326_vm1, %v22132_v55  ;;  %v9113_v55 = vld [vmem:[%s21943_s2 + $0x58] sm:$0xff] }
 0x3b6   : > { %9199 = vperm.xlu1 %18888, %v9113_v55   ;;  %9204 = vperm.xlu0 %18887, %v9114_v63   ;;  %v8117_v55 = vld [vmem:[#allocation2 + $0x65] sm:$0xff]  ;;  %v9125_v63 = vld [vmem:[%s21943_s2 + $0xb8] sm:$0xff] }
 0x3b8   : > { %17086 = vmatmul.mubr.msk.f32.gmra.mrb[22].mxu0 %vm326_vm1, %v22133_v12  ;;  %v22144_v12 = vld [vmem:[#allocation46_spill] sm:$0xff] }
 0x3b9   : > { %17088 = vmatprep.mubr.msk.f32.mxu0 %vm326_vm1, %v22134_v50  ;;  %v9115_v50 = vld [vmem:[%s21943_s2 + $0x68] sm:$0xff] }
 0x3ba   : > { %9209 = vperm.xlu1 %18888, %v9115_v50   ;;  %v9127_v50 = vld [vmem:[%s21943_s2 + $0xc8] sm:$0xff] }
 0x3bc   : > { %17089 = vmatmul.mubr.msk.f32.gmra.mrb[24].mxu0 %vm326_vm1, %v22135_v61  ;;  %v9116_v61 = vld [vmem:[%s21943_s2 + $0x70] sm:$0xff] }
 0x3bd   : > { %17091 = vmatprep.mubr.msk.f32.mxu0 %vm326_vm1, %v22136_v8  ;;  %9214 = vperm.xlu0 %18887, %v9116_v61   ;;  %v9117_v8 = vld [vmem:[%s21943_s2 + $0x78] sm:$0xff]  ;;  %v9128_v61 = vld [vmem:[%s21943_s2 + $0xd0] sm:$0xff] }
 0x3be   : > { %9219 = vperm.xlu1 %18888, %v9117_v8   ;;  %v9129_v8 = vld [vmem:[%s21943_s2 + $0xd8] sm:$0xff] }
 0x3c0   : > { %17092 = vmatmul.mubr.msk.f32.gmra.mrb[26].mxu0 %vm326_vm1, %v22137_v17  ;;  %v9118_v17 = vld [vmem:[%s21943_s2 + $0x80] sm:$0xff] }
 0x3c1   : > { %17094 = vmatprep.mubr.msk.f32.mxu0 %vm326_vm1, %v22138_v18  ;;  %9224 = vperm.xlu0 %18887, %v9118_v17   ;;  %v9119_v18 = vld [vmem:[%s21943_s2 + $0x88] sm:$0xff]  ;;  %v9130_v17 = vld [vmem:[%s21943_s2 + $0xe0] sm:$0xff] }
 0x3c2   : > { %9229 = vperm.xlu1 %18888, %v9119_v18   ;;  %v9131_v18 = vld [vmem:[%s21943_s2 + $0xe8] sm:$0xff] }
 0x3c4   : > { %17095 = vmatmul.mubr.msk.f32.gmra.mrb[28].mxu0 %vm326_vm1, %v22139_v20  ;;  %v9120_v20 = vld [vmem:[%s21943_s2 + $0x90] sm:$0xff] }
 0x3c5   : > { %17097 = vmatprep.mubr.msk.f32.mxu0 %vm326_vm1, %v22140_v51  ;;  %9234 = vperm.xlu0 %18887, %v9120_v20   ;;  %v9121_v51 = vld [vmem:[%s21943_s2 + $0x98] sm:$0xff]  ;;  %v9132_v20 = vld [vmem:[%s21943_s2 + $0xf0] sm:$0xff] }
 0x3c6   : > { %9239 = vperm.xlu1 %18888, %v9121_v51   ;;  %v9133_v51 = vld [vmem:[%s21943_s2 + $0xf8] sm:$0xff] }
 0x3c8   : > { %17098 = vmatmul.mubr.msk.f32.gmra.mrb[30].mxu0 %vm326_vm1, %v22141_v54  ;;  %v9122_v54 = vld [vmem:[%s21943_s2 + $0xa0] sm:$0xff] }
 0x3c9   : > { %17100 = vmatprep.mubr.msk.f32.mxu0 %vm326_vm1, %v22142_v39  ;;  %9244 = vperm.xlu0 %18887, %v9122_v54   ;;  %v9123_v39 = vld [vmem:[%s21943_s2 + $0xa8] sm:$0xff]  ;;  %v9134_v54 = vld [vmem:[%s21943_s2 + $0x100] sm:$0xff] }
 0x3ca   : > { %9249 = vperm.xlu1 %18888, %v9123_v39   ;;  %v9136_v39 = vld [vmem:[%s21943_s2 + $0x110] sm:$0xff] }
 0x3cc   : > { %17101 = vmatmul.mubr.msk.f32.gmra.mrb[32].mxu0 %vm326_vm1, %v22143_v48  ;;  %v9124_v48 = vld [vmem:[%s21943_s2 + $0xb0] sm:$0xff] }
 0x3cd   : > { %17103 = vmatprep.mubr.msk.f32.mxu0 %vm326_vm1, %v22144_v12  ;;  %9254 = vperm.xlu0 %18887, %v9124_v48   ;;  %v9126_v12 = vld [vmem:[%s21943_s2 + $0xc0] sm:$0xff]  ;;  %v22146_v48 = vld [vmem:[#allocation48_spill] sm:$0xff] }
 0x3ce   : > { %9259 = vperm.xlu1 %18888, %v9125_v63   ;;  %v9138_v63 = vld [vmem:[%s21943_s2 + $0x120] sm:$0xff] }
 0x3d0   : > { %17104 = vmatmul.mubr.msk.f32.gmra.mrb[34].mxu0 %vm326_vm1, %v7677_v19  ;;  %v8119_v19 = vld [vmem:[#allocation2 + $0x75] sm:$0xff] }
 0x3d1   : > { %17106 = vmatprep.mubr.msk.f32.mxu0 %vm326_vm1, %v7678_v25  ;;  %v8120_v25 = vld [vmem:[#allocation2 + $0x7d] sm:$0xff]  ;;  %9264 = vperm.xlu0 %18887, %v9126_v12   ;;  %v22147_v12 = vld [vmem:[#allocation49_spill] sm:$0xff] }
 0x3d2   : > { %9269 = vperm.xlu1 %18888, %v9127_v50   ;;  %v9140_v50 = vld [vmem:[%s21943_s2 + $0x130] sm:$0xff] }
 0x3d4   : > { %17107 = vmatmul.mubr.msk.f32.gmra.mrb[36].mxu0 %vm326_vm1, %v7679_v13  ;;  %v8121_v13 = vld [vmem:[#allocation2 + $0x85] sm:$0xff] }
 0x3d5   : > { %17109 = vmatprep.mubr.msk.f32.mxu0 %vm326_vm1, %v7680_v30  ;;  %v8122_v30 = vld [vmem:[#allocation2 + $0x8d] sm:$0xff]  ;;  %9274 = vperm.xlu0 %18887, %v9128_v61   ;;  %v22149_v61 = vld [vmem:[#allocation51_spill] sm:$0xff] }
 0x3d6   : > { %9279 = vperm.xlu1 %18888, %v9129_v8   ;;  %v22151_v8 = vld [vmem:[#allocation53_spill] sm:$0xff] }
 0x3d8   : > { %17110 = vmatmul.mubr.msk.f32.gmra.mrb[38].mxu0 %vm326_vm1, %v7681_v21  ;;  %v8123_v21 = vld [vmem:[#allocation2 + $0x95] sm:$0xff] }
 0x3d9   : > { %17114 = vmatprep.mubr.msk.f32.mxu0 %vm326_vm1, %v8112_v45  ;;  %v8124_v45 = vld [vmem:[#allocation2 + $0x9d] sm:$0xff]  ;;  %9284 = vperm.xlu0 %18887, %v9130_v17  }
 0x3da   : > { %9289 = vperm.xlu1 %18888, %v9131_v18   ;;  %v22152_v17 = vld [vmem:[#allocation54_spill] sm:$0xff]  ;;  %v22155_v18 = vld [vmem:[#allocation57_spill] sm:$0xff] }
 0x3dc   : > { %17115 = vmatmul.mubr.msk.f32.vlgmr.msra.gmra.mrb[0].mxu0 %vm326_vm1, %v8113_v26  ;;  %v8125_v26 = vld [vmem:[#allocation2 + $0xa5] sm:$0xff] }
 0x3dd   : > { %17175 = vmatpush3.msk.msra.mxu0 %vm754_vm0, %v20536_v10  ;;  %17117 = vmatprep.mubr.msk.f32.mxu0 %vm326_vm1, %v8114_v29  ;;  %v8118_v10 = vld [vmem:[#allocation2 + $0x6d] sm:$0xff] }
 0x3de   : > { %v8126_v29 = vld [vmem:[#allocation2 + $0xad] sm:$0xff]  ;;  %9294 = vperm.xlu0 %18887, %v9132_v20   ;;  %9299 = vperm.xlu1 %18888, %v9133_v51   ;;  %v22156_v20 = vld [vmem:[#allocation58_spill] sm:$0xff] }
 0x3df   : > { %v22159_v51 = vld [vmem:[#allocation61_spill] sm:$0xff] }
 0x3e0   : > { %17118 = vmatmul.mubr.msk.f32.gmra.mrb[2].mxu0 %vm326_vm1, %v8115_v2  ;;  %v22145_v2 = vld [vmem:[#allocation47_spill] sm:$0xff] }
 0x3e1   : > { %17120 = vmatprep.mubr.msk.f32.mxu0 %vm326_vm1, %v8116_v6  ;;  %v9135_v6 = vld [vmem:[%s21943_s2 + $0x108] sm:$0xff] }
 0x3e2   : > { %9304 = vperm.xlu0 %18887, %v9134_v54   ;;  %9309 = vperm.xlu1 %18888, %v9135_v6   ;;  %v22160_v54 = vld [vmem:[#allocation62_spill] sm:$0xff]  ;;  %v22162_v6 = vld [vmem:[#allocation64_spill] sm:$0xff] }
 0x3e4   : > { %17121 = vmatmul.mubr.msk.f32.gmra.mrb[4].mxu0 %vm326_vm1, %v8117_v55  ;;  %v9470_v55 = vld [vmem:[%s21947_s6] sm:$0x3] }
 0x3e5   : > { %17123 = vmatprep.mubr.msk.f32.mxu0 %vm326_vm1, %v8118_v10  ;;  %v9137_v10 = vld [vmem:[%s21943_s2 + $0x118] sm:$0xff]  ;;  %17236 = vmatprep.subr.msk.mxu1 %vm754_vm0, %v9470_v55 }
 0x3e6   : > { %9314 = vperm.xlu0 %18887, %v9136_v39   ;;  %17237 = vmatpush3.msk.msra.mxu1 %vm754_vm0, %v9470_v55  ;;  %v22163_v39 = vld [vmem:[#allocation65_spill] sm:$0xff] }
 0x3e7   : > { %9319 = vperm.xlu1 %18888, %v9137_v10   ;;  %v8147_v55 = vld [vmem:[#allocation2 + $0x155] sm:$0xff]  ;;  %v8148_v10 = vld [vmem:[#allocation2 + $0x15d] sm:$0xff] }
 0x3e8   : > { %17124 = vmatmul.mubr.msk.f32.gmra.mrb[6].mxu0 %vm326_vm1, %v8119_v19  ;;  %v22148_v19 = vld [vmem:[#allocation50_spill] sm:$0xff] }
 0x3e9   : > { %17126 = vmatprep.mubr.msk.f32.mxu0 %vm326_vm1, %v8120_v25  ;;  %v9139_v25 = vld [vmem:[%s21943_s2 + $0x128] sm:$0xff] }
 0x3ea   : > { %9324 = vperm.xlu0 %18887, %v9138_v63   ;;  %v8149_v63 = vld [vmem:[#allocation2 + $0x165] sm:$0xff] }
 0x3eb   : > { %9329 = vperm.xlu1 %18888, %v9139_v25   ;;  %v8582_v25 = vld [vmem:[#allocation3 + $0x3d] sm:$0xff] }
 0x3ec   : > { %17127 = vmatmul.mubr.msk.f32.gmra.mrb[8].mxu0 %vm326_vm1, %v8121_v13  ;;  %v22150_v13 = vld [vmem:[#allocation52_spill] sm:$0xff] }
 0x3ed   : > { %17129 = vmatprep.mubr.msk.f32.mxu0 %vm326_vm1, %v8122_v30  ;;  %v9141_v30 = vld [vmem:[%s21943_s2 + $0x138] sm:$0xff] }
 0x3ee   : > { %9334 = vperm.xlu0 %18887, %v9140_v50   ;;  %v8583_v50 = vld [vmem:[#allocation3 + $0x45] sm:$0xff] }
 0x3ef   : > { %9339 = vperm.xlu1 %18888, %v9141_v30   ;;  %v8586_v30 = vld [vmem:[#allocation3 + $0x5d] sm:$0xff] }
 0x3f0   : > { %17130 = vmatmul.mubr.msk.f32.gmra.mrb[10].mxu0 %vm326_vm1, %v8123_v21  ;;  %v22153_v21 = vld [vmem:[#allocation55_spill] sm:$0xff] }
 0x3f1   : > { %17132 = vmatprep.mubr.msk.f32.mxu0 %vm326_vm1, %v8124_v45  ;;  %v22154_v45 = vld [vmem:[#allocation56_spill] sm:$0xff] }
 0x3f4   : > { %17133 = vmatmul.mubr.msk.f32.gmra.mrb[12].mxu0 %vm326_vm1, %v8125_v26  ;;  %v22157_v26 = vld [vmem:[#allocation59_spill] sm:$0xff] }
 0x3f5   : > { %17135 = vmatprep.mubr.msk.f32.mxu0 %vm326_vm1, %v8126_v29  ;;  %v22158_v29 = vld [vmem:[#allocation60_spill] sm:$0xff] }
 0x3f8   : > { %17136 = vmatmul.mubr.msk.f32.gmra.mrb[14].mxu0 %vm326_vm1, %v22145_v2  ;;  %v22161_v2 = vld [vmem:[#allocation63_spill] sm:$0xff] }
 0x3f9   : > { %17138 = vmatprep.mubr.msk.f32.mxu0 %vm326_vm1, %v22146_v48  ;;  %v22164_v48 = vld [vmem:[#allocation66_spill] sm:$0xff] }
 0x3fc   : > { %17139 = vmatmul.mubr.msk.f32.gmra.mrb[16].mxu0 %vm326_vm1, %v22147_v12  ;;  %v8150_v12 = vld [vmem:[#allocation2 + $0x16d] sm:$0xff] }
 0x3fd   : > { %17141 = vmatprep.mubr.msk.f32.mxu0 %vm326_vm1, %v22148_v19  ;;  %v8151_v19 = vld [vmem:[#allocation2 + $0x175] sm:$0xff] }
 0x400   : > { %17142 = vmatmul.mubr.msk.f32.gmra.mrb[18].mxu0 %vm326_vm1, %v22149_v61  ;;  %v8584_v61 = vld [vmem:[#allocation3 + $0x4d] sm:$0xff] }
 0x401   : > { %17144 = vmatprep.mubr.msk.f32.mxu0 %vm326_vm1, %v22150_v13  ;;  %v8585_v13 = vld [vmem:[#allocation3 + $0x55] sm:$0xff] }
 0x404   : > { %17145 = vmatmul.mubr.msk.f32.gmra.mrb[20].mxu0 %vm326_vm1, %v22151_v8  ;;  %v8587_v8 = vld [vmem:[#allocation3 + $0x65] sm:$0xff] }
 0x405   : > { %17147 = vmatprep.mubr.msk.f32.mxu0 %vm326_vm1, %v22152_v17  ;;  %v8588_v17 = vld [vmem:[#allocation3 + $0x6d] sm:$0xff] }
 0x408   : > { %17148 = vmatmul.mubr.msk.f32.gmra.mrb[22].mxu0 %vm326_vm1, %v22153_v21  ;;  %v8589_v21 = vld [vmem:[#allocation3 + $0x75] sm:$0xff] }
 0x409   : > { %17150 = vmatprep.mubr.msk.f32.mxu0 %vm326_vm1, %v22154_v45  ;;  %v8590_v45 = vld [vmem:[#allocation3 + $0x7d] sm:$0xff] }
 0x40c   : > { %17151 = vmatmul.mubr.msk.f32.gmra.mrb[24].mxu0 %vm326_vm1, %v22155_v18  ;;  %v8591_v18 = vld [vmem:[#allocation3 + $0x85] sm:$0xff] }
 0x40d   : > { %17153 = vmatprep.mubr.msk.f32.mxu0 %vm326_vm1, %v22156_v20  ;;  %v8592_v20 = vld [vmem:[#allocation3 + $0x8d] sm:$0xff] }
 0x410   : > { %17154 = vmatmul.mubr.msk.f32.gmra.mrb[26].mxu0 %vm326_vm1, %v22157_v26  ;;  %v8593_v26 = vld [vmem:[#allocation3 + $0x95] sm:$0xff] }
 0x411   : > { %17156 = vmatprep.mubr.msk.f32.mxu0 %vm326_vm1, %v22158_v29  ;;  %v8594_v29 = vld [vmem:[#allocation3 + $0x9d] sm:$0xff] }
 0x414   : > { %17157 = vmatmul.mubr.msk.f32.gmra.mrb[28].mxu0 %vm326_vm1, %v22159_v51  ;;  %v8595_v51 = vld [vmem:[#allocation3 + $0xa5] sm:$0xff] }
 0x415   : > { %17159 = vmatprep.mubr.msk.f32.mxu0 %vm326_vm1, %v22160_v54  ;;  %v8596_v54 = vld [vmem:[#allocation3 + $0xad] sm:$0xff] }
 0x418   : > { %17160 = vmatmul.mubr.msk.f32.gmra.mrb[30].mxu0 %vm326_vm1, %v22161_v2  ;;  %v8597_v2 = vld [vmem:[#allocation3 + $0xb5] sm:$0xff] }
 0x419   : > { %17162 = vmatprep.mubr.msk.f32.mxu0 %vm326_vm1, %v22162_v6  ;;  %v8598_v6 = vld [vmem:[#allocation3 + $0xbd] sm:$0xff] }
 0x41c   : > { %17163 = vmatmul.mubr.msk.f32.gmra.mrb[32].mxu0 %vm326_vm1, %v22163_v39  ;;  %v8599_v39 = vld [vmem:[#allocation3 + $0xc5] sm:$0xff] }
 0x41d   : > { %17165 = vmatprep.mubr.msk.f32.mxu0 %vm326_vm1, %v22164_v48  ;;  %v8600_v48 = vld [vmem:[#allocation3 + $0xcd] sm:$0xff] }
 0x420   : > { %17166 = vmatmul.mubr.msk.f32.gmra.mrb[34].mxu0 %vm326_vm1, %v8147_v55  ;;  %v8601_v55 = vld [vmem:[#allocation3 + $0xd5] sm:$0xff] }
 0x421   : > { %17168 = vmatprep.mubr.msk.f32.mxu0 %vm326_vm1, %v8148_v10  ;;  %v8602_v10 = vld [vmem:[#allocation3 + $0xdd] sm:$0xff] }
 0x424   : > { %17169 = vmatmul.mubr.msk.f32.gmra.mrb[36].mxu0 %vm326_vm1, %v8149_v63  ;;  %v8603_v63 = vld [vmem:[#allocation3 + $0xe5] sm:$0xff] }
 0x425   : > { %17171 = vmatprep.mubr.msk.f32.mxu0 %vm326_vm1, %v8150_v12  ;;  %v8604_v12 = vld [vmem:[#allocation3 + $0xed] sm:$0xff] }
 0x428   : > { %17172 = vmatmul.mubr.msk.f32.gmra.mrb[38].mxu0 %vm326_vm1, %v8151_v19  ;;  %v8605_v19 = vld [vmem:[#allocation3 + $0xf5] sm:$0xff] }
 0x429   : > { %17176 = vmatprep.mubr.msk.f32.mxu0 %vm326_vm1, %v8582_v25  ;;  %v8606_v25 = vld [vmem:[#allocation3 + $0xfd] sm:$0xff] }
 0x42c   : > { %17177 = vmatmul.mubr.msk.f32.vlgmr.msra.gmra.mrb[0].mxu0 %vm326_vm1, %v8583_v50  ;;  %v8607_v50 = vld [vmem:[#allocation3 + $0x105] sm:$0xff] }
 0x42d   : > { %17179 = vmatprep.mubr.msk.f32.mxu0 %vm326_vm1, %v8584_v61  ;;  %v8608_v61 = vld [vmem:[#allocation3 + $0x10d] sm:$0xff] }
 0x430   : > { %17180 = vmatmul.mubr.msk.f32.gmra.mrb[2].mxu0 %vm326_vm1, %v8585_v13  ;;  %v8609_v13 = vld [vmem:[#allocation3 + $0x115] sm:$0xff] }
 0x431   : > { %17182 = vmatprep.mubr.msk.f32.mxu0 %vm326_vm1, %v8586_v30  ;;  %v8610_v30 = vld [vmem:[#allocation3 + $0x11d] sm:$0xff] }
 0x434   : > { %17183 = vmatmul.mubr.msk.f32.gmra.mrb[4].mxu0 %vm326_vm1, %v8587_v8  ;;  %v8611_v8 = vld [vmem:[#allocation3 + $0x125] sm:$0xff] }
 0x435   : > { %17185 = vmatprep.mubr.msk.f32.mxu0 %vm326_vm1, %v8588_v17  ;;  %v8612_v17 = vld [vmem:[#allocation3 + $0x12d] sm:$0xff] }
 0x438   : > { %17186 = vmatmul.mubr.msk.f32.gmra.mrb[6].mxu0 %vm326_vm1, %v8589_v21  ;;  %v8613_v21 = vld [vmem:[#allocation3 + $0x135] sm:$0xff] }
 0x439   : > { %17188 = vmatprep.mubr.msk.f32.mxu0 %vm326_vm1, %v8590_v45  ;;  %v8614_v45 = vld [vmem:[#allocation3 + $0x13d] sm:$0xff] }
 0x43c   : > { %17189 = vmatmul.mubr.msk.f32.gmra.mrb[8].mxu0 %vm326_vm1, %v8591_v18  ;;  %v8615_v18 = vld [vmem:[#allocation3 + $0x145] sm:$0xff] }
 0x43d   : > { %17191 = vmatprep.mubr.msk.f32.mxu0 %vm326_vm1, %v8592_v20  ;;  %v8616_v20 = vld [vmem:[#allocation3 + $0x14d] sm:$0xff] }
 0x440   : > { %17192 = vmatmul.mubr.msk.f32.gmra.mrb[10].mxu0 %vm326_vm1, %v8593_v26  ;;  %v8617_v26 = vld [vmem:[#allocation3 + $0x155] sm:$0xff] }
 0x441   : > { %17194 = vmatprep.mubr.msk.f32.mxu0 %vm326_vm1, %v8594_v29  ;;  %v8618_v29 = vld [vmem:[#allocation3 + $0x15d] sm:$0xff] }
 0x444   : > { %17195 = vmatmul.mubr.msk.f32.gmra.mrb[12].mxu0 %vm326_vm1, %v8595_v51  ;;  %v8619_v51 = vld [vmem:[#allocation3 + $0x165] sm:$0xff] }
 0x445   : > { %17197 = vmatprep.mubr.msk.f32.mxu0 %vm326_vm1, %v8596_v54  ;;  %v8620_v54 = vld [vmem:[#allocation3 + $0x16d] sm:$0xff] }
 0x448   : > { %17198 = vmatmul.mubr.msk.f32.gmra.mrb[14].mxu0 %vm326_vm1, %v8597_v2  ;;  %v8621_v2 = vld [vmem:[#allocation3 + $0x175] sm:$0xff] }
 0x449   : > { %17200 = vmatprep.mubr.msk.f32.mxu0 %vm326_vm1, %v8598_v6  ;;  %v9430_v6 = vld [vmem:[#allocation4 + $0x13] sm:$0xff] }
 0x44a   : > { %17238 = vmatprep.mubr.msk.f32.mxu1 %vm326_vm1, %v9430_v6 }
 0x44c   : > { %17201 = vmatmul.mubr.msk.f32.gmra.mrb[16].mxu0 %vm326_vm1, %v8599_v39  ;;  %v9431_v39 = vld [vmem:[#allocation4 + $0x1b] sm:$0xff] }
 0x44d   : > { %17203 = vmatprep.mubr.msk.f32.mxu0 %vm326_vm1, %v8600_v48  ;;  %17239 = vmatmul.mubr.msk.f32.vlgmr.msra.gmra.mrb[40].mxu1 %vm326_vm1, %v9431_v39  ;;  %v14673_v48 = vld [vmem:[%s21947_s6 + $0x2] sm:$0x3] }
 0x44e   : > { %17298 = vmatprep.subr.msk.mxu1 %vm754_vm0, %v14673_v48 }
 0x44f   : > { %17299 = vmatpush3.msk.msra.mxu1 %vm754_vm0, %v14673_v48 }
 0x450   : > { %17204 = vmatmul.mubr.msk.f32.gmra.mrb[18].mxu0 %vm326_vm1, %v8601_v55  ;;  %v20892_v55 = vld [vmem:[%s21947_s6 + $0x4] sm:$0x3] }
 0x451   : > { %17206 = vmatprep.mubr.msk.f32.mxu0 %vm326_vm1, %v8602_v10  ;;  %22165 = vst [vmem:[#allocation9_spill] sm:$0xff] %v20892_v55  ;;  %17360 = vmatprep.subr.msk.mxu1 %vm754_vm0, %v20892_v55  ;;  %v9155_v10 = vpop.permute.xlu1 %9154 }
 0x454   : > { %17207 = vmatmul.mubr.msk.f32.gmra.mrb[20].mxu0 %vm326_vm1, %v8603_v63  ;;  %v9145_v63 = vpop.permute.xlu0 %9144 }
 0x455   : > { %17209 = vmatprep.mubr.msk.f32.mxu0 %vm326_vm1, %v8604_v12  ;;  %v9160_v12 = vpop.permute.xlu1 %9159 }
 0x458   : > { %17210 = vmatmul.mubr.msk.f32.gmra.mrb[22].mxu0 %vm326_vm1, %v8605_v19  ;;  %v9150_v19 = vpop.permute.xlu0 %9149 }
 0x459   : > { %17212 = vmatprep.mubr.msk.f32.mxu0 %vm326_vm1, %v8606_v25  ;;  %v9170_v25 = vpop.permute.xlu1 %9169 }
 0x45c   : > { %17213 = vmatmul.mubr.msk.f32.gmra.mrb[24].mxu0 %vm326_vm1, %v8607_v50  ;;  %v9165_v50 = vpop.permute.xlu0 %9164 }
 0x45d   : > { %17215 = vmatprep.mubr.msk.f32.mxu0 %vm326_vm1, %v8608_v61  ;;  %v20896_v61 = vpop.permute.xlu1 %9179 }
 0x460   : > { %17216 = vmatmul.mubr.msk.f32.gmra.mrb[26].mxu0 %vm326_vm1, %v8609_v13  ;;  %v20898_v13 = vpop.permute.xlu0 %9174 }
 0x461   : > { %17218 = vmatprep.mubr.msk.f32.mxu0 %vm326_vm1, %v8610_v30  ;;  %v20900_v30 = vpop.permute.xlu1 %9189 }
 0x464   : > { %17219 = vmatmul.mubr.msk.f32.gmra.mrb[28].mxu0 %vm326_vm1, %v8611_v8  ;;  %v20902_v8 = vpop.permute.xlu0 %9184 }
 0x465   : > { %17221 = vmatprep.mubr.msk.f32.mxu0 %vm326_vm1, %v8612_v17  ;;  %v20907_v17 = vld [vmem:[%s21946_s5] ss:$0 sm:$0xff] }
 0x466   : > { %v17800_v6 = vadd.f32 %v20466_v35, %v20907_v17  ;;  %v17802_v55 = vadd.f32 %v20907_v17, %v20470_v36  ;;  %v17806_v35 = vadd.f32 %v20907_v17, %v20478_v40  ;;  %v17810_v40 = vadd.f32 %v20907_v17, %v20486_v49 }
 0x468   : > { %17222 = vmatmul.mubr.msk.f32.gmra.mrb[30].mxu0 %vm326_vm1, %v8613_v21  ;;  %v20909_v21 = vpop.permute.xlu1 %9199 }
 0x469   : > { %17224 = vmatprep.mubr.msk.f32.mxu0 %vm326_vm1, %v8614_v45  ;;  %v20911_v45 = vpop.permute.xlu0 %9194 }
 0x46c   : > { %17225 = vmatmul.mubr.msk.f32.gmra.mrb[32].mxu0 %vm326_vm1, %v8615_v18  ;;  %v17796_v18 = vadd.f32 %v20458_v31, %v20907_v17 }
 0x46d   : > { %17227 = vmatprep.mubr.msk.f32.mxu0 %vm326_vm1, %v8616_v20  ;;  %v17798_v20 = vadd.f32 %v20907_v17, %v20462_v33  ;;  %v20921_v39 = vpop.permute.xlu0 %9204 }
 0x470   : > { %17228 = vmatmul.mubr.msk.f32.gmra.mrb[34].mxu0 %vm326_vm1, %v8617_v26 }
 0x471   : > { %17230 = vmatprep.mubr.msk.f32.mxu0 %vm326_vm1, %v8618_v29 }
 0x474   : > { %17231 = vmatmul.mubr.msk.f32.gmra.mrb[36].mxu0 %vm326_vm1, %v8619_v51 }
 0x475   : > { %17233 = vmatprep.mubr.msk.f32.mxu0 %vm326_vm1, %v8620_v54  ;;  %v20917_v54 = vpop.permute.xlu1 %9209 }
 0x478   : > { %17234 = vmatmul.mubr.msk.f32.gmra.mrb[38].mxu0 %vm326_vm1, %v8621_v2 }
 0x4ff   : > { %v17178_v26 = vpop.f32.mrb[0].mxu0 }
 0x500   : > { %v17797_v29 = vadd.f32 %v17796_v18, %v17178_v26  ;;  %v8813_v51 = vpop.f32.mrb[1].mxu0  ;;  %v17804_v26 = vadd.f32 %v20474_v38, %v20907_v17  ;;  %v17808_v38 = vadd.f32 %v20482_v44, %v20907_v17  ;;  %v17812_v44 = vadd.f32 %v20490_v52, %v20907_v17 }
 0x501   : > { %v17799_v2 = vadd.f32 %v17798_v20, %v8813_v51 }
 0x502   : > { %v9063_v48 = vmax.f32 %v17797_v29, 0.0  ;;  %v20930_v29 = vpop.permute.xlu1 %9219 }
 0x503   : > { %v9062_v32 = vmax.f32 %v17799_v2, 0.0  ;;  %v17181_v31 = vpop.f32.mrb[2].mxu0 }
 0x504   : > { %v9343_v27 = vmul.f32 %v9150_v19, %v9063_v48  ;;  %v17801_v62 = vadd.f32 %v17800_v6, %v17181_v31  ;;  %v8823_v33 = vpop.f32.mrb[3].mxu0  ;;  %v20933_v19 = vpop.permute.xlu0 %9214 }
 0x505   : > { %v9342_v58 = vmul.f32 %v9145_v63, %v9062_v32  ;;  %v17803_v18 = vadd.f32 %v17802_v55, %v8823_v33 }
 0x506   : > { %9383 = vst.msk [vmem:[#allocation4 + $0x30] sm:$0xff] %vm326_vm1, %v9343_v27  ;;  %v9065_v20 = vmax.f32 %v17801_v62, 0.0  ;;  %v20941_v33 = vpop.permute.xlu1 %9229 }
 0x507   : > { %9382 = vst.msk [vmem:[#allocation4 + $0x28] sm:$0xff] %vm326_vm1, %v9342_v58  ;;  %v9064_v36 = vmax.f32 %v17803_v18, 0.0  ;;  %v17184_v51 = vpop.f32.mrb[4].mxu0 }
 0x508   : > { %v9345_v2 = vmul.f32 %v9160_v12, %v9065_v20  ;;  %v17805_v32 = vadd.f32 %v17804_v26, %v17184_v51  ;;  %v8833_v55 = vpop.f32.mrb[5].mxu0  ;;  %v20945_v26 = vpop.permute.xlu0 %9224 }
 0x509   : > { %v9344_v63 = vmul.f32 %v9155_v10, %v9064_v36  ;;  %v17807_v6 = vadd.f32 %v17806_v35, %v8833_v55  ;;  %v17814_v36 = vadd.f32 %v20907_v17, %v20494_v56 }
 0x50a   : > { %9385 = vst.msk [vmem:[#allocation4 + $0x40] sm:$0xff] %vm326_vm1, %v9345_v2  ;;  %v9067_v62 = vmax.f32 %v17805_v32, 0.0 }
 0x50b   : > { %9384 = vst.msk [vmem:[#allocation4 + $0x38] sm:$0xff] %vm326_vm1, %v9344_v63  ;;  %v9066_v58 = vmax.f32 %v17807_v6, 0.0  ;;  %v17187_v27 = vpop.f32.mrb[6].mxu0  ;;  %v17816_v63 = vadd.f32 %v20498_v60, %v20907_v17 }
 0x50c   : > { %v9347_v48 = vmul.f32 %v9170_v25, %v9067_v62  ;;  %v17809_v31 = vadd.f32 %v17808_v38, %v17187_v27  ;;  %v8843_v12 = vpop.f32.mrb[7].mxu0  ;;  %v17818_v62 = vadd.f32 %v20907_v17, %v20502_v0  ;;  %v17820_v0 = vadd.f32 %v20506_v4, %v20907_v17 }
 0x50d   : > { %v9346_v10 = vmul.f32 %v9165_v50, %v9066_v58  ;;  %v17811_v18 = vadd.f32 %v17810_v40, %v8843_v12  ;;  %v20960_v40 = vpop.permute.xlu1 %9239 }
 0x50e   : > { %9387 = vst.msk [vmem:[#allocation4 + $0x50] sm:$0xff] %vm326_vm1, %v9347_v48  ;;  %v9069_v20 = vmax.f32 %v17809_v31, 0.0  ;;  %v9432_v49 = vld [vmem:[#allocation4 + $0x23] sm:$0xff]  ;;  %v9433_v35 = vld [vmem:[#allocation4 + $0x2b] sm:$0xff] }
 0x50f   : > { %9386 = vst.msk [vmem:[#allocation4 + $0x48] sm:$0xff] %vm326_vm1, %v9346_v10  ;;  %v9068_v25 = vmax.f32 %v17811_v18, 0.0  ;;  %v17190_v51 = vpop.f32.mrb[8].mxu0  ;;  %17241 = vmatprep.mubr.msk.f32.mxu1 %vm326_vm1, %v9432_v49 }
 0x510   : > { %v9349_v50 = vmul.f32 %v20896_v61, %v9069_v20  ;;  %v17813_v2 = vadd.f32 %v17812_v44, %v17190_v51  ;;  %v8853_v52 = vpop.f32.mrb[9].mxu0  ;;  %17242 = vmatmul.mubr.msk.f32.gmra.mrb[42].mxu1 %vm326_vm1, %v9433_v35  ;;  %v17822_v20 = vadd.f32 %v20907_v17, %v20510_v24  ;;  %v17824_v24 = vadd.f32 %v20514_v23, %v20907_v17 }
 0x511   : > { %v9348_v32 = vmul.f32 %v20898_v13, %v9068_v25  ;;  %v17815_v55 = vadd.f32 %v17814_v36, %v8853_v52  ;;  %v20964_v13 = vpop.permute.xlu0 %9234  ;;  %v20978_v4 = vpop.permute.xlu1 %9249 }
 0x512   : > { %9389 = vst.msk [vmem:[#allocation4 + $0x60] sm:$0xff] %vm326_vm1, %v9349_v50  ;;  %v9071_v56 = vmax.f32 %v17813_v2, 0.0  ;;  %v9434_v6 = vld [vmem:[#allocation4 + $0x33] sm:$0xff]  ;;  %v9435_v38 = vld [vmem:[#allocation4 + $0x3b] sm:$0xff] }
 0x513   : > { %9388 = vst.msk [vmem:[#allocation4 + $0x58] sm:$0xff] %vm326_vm1, %v9348_v32  ;;  %v9070_v61 = vmax.f32 %v17815_v55, 0.0  ;;  %v17193_v58 = vpop.f32.mrb[10].mxu0  ;;  %17244 = vmatprep.mubr.msk.f32.mxu1 %vm326_vm1, %v9434_v6 }
 0x514   : > { %v9351_v60 = vmul.f32 %v20900_v30, %v9071_v56  ;;  %v17817_v27 = vadd.f32 %v17816_v63, %v17193_v58  ;;  %v8863_v48 = vpop.f32.mrb[11].mxu0  ;;  %17245 = vmatmul.mubr.msk.f32.gmra.mrb[44].mxu1 %vm326_vm1, %v9435_v38 }
 0x515   : > { %v9350_v31 = vmul.f32 %v20902_v8, %v9070_v61  ;;  %v17819_v12 = vadd.f32 %v17818_v62, %v8863_v48  ;;  %v20983_v50 = vpop.permute.xlu0 %9244  ;;  %v17828_v62 = vadd.f32 %v20520_v28, %v20907_v17 }
 0x516   : > { %9391 = vst.msk [vmem:[#allocation4 + $0x70] sm:$0xff] %vm326_vm1, %v9351_v60  ;;  %v9073_v10 = vmax.f32 %v17817_v27, 0.0  ;;  %v9436_v18 = vld [vmem:[#allocation4 + $0x43] sm:$0xff]  ;;  %v9437_v44 = vld [vmem:[#allocation4 + $0x4b] sm:$0xff]  ;;  %v17830_v60 = vadd.f32 %v20907_v17, %v20523_v59  ;;  %v20998_v27 = vpop.permute.xlu1 %9259  ;;  %v17832_v59 = vadd.f32 %v20526_v3, %v20907_v17 }
 0x517   : > { %9390 = vst.msk [vmem:[#allocation4 + $0x68] sm:$0xff] %vm326_vm1, %v9350_v31  ;;  %v9072_v30 = vmax.f32 %v17819_v12, 0.0  ;;  %v17196_v49 = vpop.f32.mrb[12].mxu0  ;;  %17247 = vmatprep.mubr.msk.f32.mxu1 %vm326_vm1, %v9436_v18 }
 0x518   : > { %v9353_v8 = vmul.f32 %v20909_v21, %v9073_v10  ;;  %v17821_v35 = vadd.f32 %v17820_v0, %v17196_v49  ;;  %v8873_v36 = vpop.f32.mrb[13].mxu0  ;;  %17248 = vmatmul.mubr.msk.f32.gmra.mrb[46].mxu1 %vm326_vm1, %v9437_v44  ;;  %v17826_v21 = vadd.f32 %v20907_v17, %v20517_v43 }
 0x519   : > { %v9352_v25 = vmul.f32 %v20911_v45, %v9072_v30  ;;  %v17823_v51 = vadd.f32 %v17822_v20, %v8873_v36  ;;  %v17834_v30 = vadd.f32 %v20907_v17, %v20529_v7  ;;  %v17836_v7 = vadd.f32 %v20544_v14, %v20907_v17 }
 0x51a   : > { %9393 = vst.msk [vmem:[#allocation4 + $0x80] sm:$0xff] %vm326_vm1, %v9353_v8  ;;  %v9075_v2 = vmax.f32 %v17821_v35, 0.0  ;;  %v9438_v52 = vld [vmem:[#allocation4 + $0x53] sm:$0xff]  ;;  %v9439_v32 = vld [vmem:[#allocation4 + $0x5b] sm:$0xff]  ;;  %v21016_v3 = vpop.permute.xlu1 %9269 }
 0x51b   : > { %9392 = vst.msk [vmem:[#allocation4 + $0x78] sm:$0xff] %vm326_vm1, %v9352_v25  ;;  %v9074_v55 = vmax.f32 %v17823_v51, 0.0  ;;  %v17199_v63 = vpop.f32.mrb[14].mxu0  ;;  %17250 = vmatprep.mubr.msk.f32.mxu1 %vm326_vm1, %v9438_v52 }
 0x51c   : > { %v9355_v45 = vmul.f32 %v20917_v54, %v9075_v2  ;;  %v17825_v56 = vadd.f32 %v17824_v24, %v17199_v63  ;;  %v8883_v23 = vpop.f32.mrb[15].mxu0  ;;  %17251 = vmatmul.mubr.msk.f32.gmra.mrb[48].mxu1 %vm326_vm1, %v9439_v32 }
 0x51d   : > { %v9354_v6 = vmul.f32 %v20921_v39, %v9074_v55  ;;  %v17827_v38 = vadd.f32 %v17826_v21, %v8883_v23  ;;  %v21002_v39 = vpop.permute.xlu0 %9254 }
 0x51e   : > { %9395 = vst.msk [vmem:[#allocation4 + $0x90] sm:$0xff] %vm326_vm1, %v9355_v45  ;;  %v9077_v43 = vmax.f32 %v17825_v56, 0.0  ;;  %v9440_v61 = vld [vmem:[#allocation4 + $0x63] sm:$0xff]  ;;  %v9441_v58 = vld [vmem:[#allocation4 + $0x6b] sm:$0xff]  ;;  %v17840_v56 = vadd.f32 %v20554_v34, %v20907_v17 }
 0x51f   : > { %9394 = vst.msk [vmem:[#allocation4 + $0x88] sm:$0xff] %vm326_vm1, %v9354_v6  ;;  %v9076_v54 = vmax.f32 %v17827_v38, 0.0  ;;  %v17202_v48 = vpop.f32.mrb[16].mxu0  ;;  %17253 = vmatprep.mubr.msk.f32.mxu1 %vm326_vm1, %v9440_v61  ;;  %v17842_v38 = vadd.f32 %v20907_v17, %v20556_v41  ;;  %v17844_v41 = vadd.f32 %v20562_v5, %v20907_v17 }
 0x520   : > { %v9357_v28 = vmul.f32 %v20930_v29, %v9077_v43  ;;  %v17829_v31 = vadd.f32 %v17828_v62, %v17202_v48  ;;  %v8893_v12 = vpop.f32.mrb[17].mxu0  ;;  %17254 = vmatmul.mubr.msk.f32.gmra.mrb[50].mxu1 %vm326_vm1, %v9441_v58  ;;  %v9280_v62 = vpop.permute.xlu1 %9279 }
 0x521   : > { %v9356_v0 = vmul.f32 %v20933_v19, %v9076_v54  ;;  %v17831_v10 = vadd.f32 %v17830_v60, %v8893_v12  ;;  %v21021_v51 = vpop.permute.xlu0 %9264  ;;  %v17846_v12 = vadd.f32 %v20907_v17, %v20564_v11 }
 0x522   : > { %9397 = vst.msk [vmem:[#allocation4 + $0xa0] sm:$0xff] %vm326_vm1, %v9357_v28  ;;  %v9079_v18 = vmax.f32 %v17829_v31, 0.0  ;;  %v9442_v44 = vld [vmem:[#allocation4 + $0x73] sm:$0xff]  ;;  %v9443_v20 = vld [vmem:[#allocation4 + $0x7b] sm:$0xff] }
 0x523   : > { %9396 = vst.msk [vmem:[#allocation4 + $0x98] sm:$0xff] %vm326_vm1, %v9356_v0  ;;  %v9078_v29 = vmax.f32 %v17831_v10, 0.0  ;;  %v17205_v49 = vpop.f32.mrb[18].mxu0  ;;  %17256 = vmatprep.mubr.msk.f32.mxu1 %vm326_vm1, %v9442_v44 }
 0x524   : > { %v9359_v19 = vmul.f32 %v20941_v33, %v9079_v18  ;;  %v17833_v8 = vadd.f32 %v17832_v59, %v17205_v49  ;;  %v8903_v35 = vpop.f32.mrb[19].mxu0  ;;  %17257 = vmatmul.mubr.msk.f32.gmra.mrb[52].mxu1 %vm326_vm1, %v9443_v20  ;;  %v17838_v33 = vadd.f32 %v20907_v17, %v20548_v16  ;;  %v9290_v5 = vpop.permute.xlu1 %9289  ;;  %v17848_v20 = vadd.f32 %v20570_v1, %v20907_v17 }
 0x525   : > { %v9358_v36 = vmul.f32 %v20945_v26, %v9078_v29  ;;  %v17835_v25 = vadd.f32 %v17834_v30, %v8903_v35 }
 0x526   : > { %9399 = vst.msk [vmem:[#allocation4 + $0xb0] sm:$0xff] %vm326_vm1, %v9359_v19  ;;  %v9081_v24 = vmax.f32 %v17833_v8, 0.0  ;;  %v9444_v2 = vld [vmem:[#allocation4 + $0x83] sm:$0xff]  ;;  %v9445_v52 = vld [vmem:[#allocation4 + $0x8b] sm:$0xff] }
 0x527   : > { %9398 = vst.msk [vmem:[#allocation4 + $0xa8] sm:$0xff] %vm326_vm1, %v9358_v36  ;;  %v9080_v32 = vmax.f32 %v17835_v25, 0.0  ;;  %v17208_v21 = vpop.f32.mrb[20].mxu0  ;;  %17259 = vmatprep.mubr.msk.f32.mxu1 %vm326_vm1, %v9444_v2 }
 0x528   : > { %v9361_v26 = vmul.f32 %v20960_v40, %v9081_v24  ;;  %v17837_v55 = vadd.f32 %v17836_v7, %v17208_v21  ;;  %v8913_v14 = vpop.f32.mrb[21].mxu0  ;;  %17260 = vmatmul.mubr.msk.f32.gmra.mrb[54].mxu1 %vm326_vm1, %v9445_v52  ;;  %v17852_v7 = vadd.f32 %v20578_v15, %v20907_v17  ;;  %v17854_v52 = vadd.f32 %v20907_v17, %v20580_v37 }
 0x529   : > { %v9360_v63 = vmul.f32 %v20964_v13, %v9080_v32  ;;  %v17839_v45 = vadd.f32 %v17838_v33, %v8913_v14  ;;  %v9275_v13 = vpop.permute.xlu0 %9274  ;;  %v9300_v33 = vpop.permute.xlu1 %9299 }
 0x52a   : > { %9401 = vst.msk [vmem:[#allocation4 + $0xc0] sm:$0xff] %vm326_vm1, %v9361_v26  ;;  %v9083_v16 = vmax.f32 %v17837_v55, 0.0  ;;  %v9446_v23 = vld [vmem:[#allocation4 + $0x93] sm:$0xff]  ;;  %v9447_v6 = vld [vmem:[#allocation4 + $0x9b] sm:$0xff] }
 0x52b   : > { %9400 = vst.msk [vmem:[#allocation4 + $0xb8] sm:$0xff] %vm326_vm1, %v9360_v63  ;;  %v9082_v40 = vmax.f32 %v17839_v45, 0.0  ;;  %v17211_v43 = vpop.f32.mrb[22].mxu0  ;;  %17262 = vmatprep.mubr.msk.f32.mxu1 %vm326_vm1, %v9446_v23  ;;  %v17856_v63 = vadd.f32 %v20586_v57, %v20907_v17 }
 0x52c   : > { %v9363_v61 = vmul.f32 %v20978_v4, %v9083_v16  ;;  %v17841_v58 = vadd.f32 %v17840_v56, %v17211_v43  ;;  %v8923_v34 = vpop.f32.mrb[23].mxu0  ;;  %17263 = vmatmul.mubr.msk.f32.gmra.mrb[56].mxu1 %vm326_vm1, %v9447_v6  ;;  %v17858_v16 = vadd.f32 %v20907_v17, %v20588_v46 }
 0x52d   : > { %v9362_v60 = vmul.f32 %v20983_v50, %v9082_v40  ;;  %v17843_v54 = vadd.f32 %v17842_v38, %v8923_v34  ;;  %v9285_v11 = vpop.permute.xlu0 %9284  ;;  %v9310_v57 = vpop.permute.xlu1 %9309 }
 0x52e   : > { %9403 = vst.msk [vmem:[#allocation4 + $0xd0] sm:$0xff] %vm326_vm1, %v9363_v61  ;;  %v9085_v48 = vmax.f32 %v17841_v58, 0.0  ;;  %v9448_v28 = vld [vmem:[#allocation4 + $0xa3] sm:$0xff]  ;;  %v9449_v31 = vld [vmem:[#allocation4 + $0xab] sm:$0xff]  ;;  %v17860_v61 = vadd.f32 %v20594_v22, %v20907_v17 }
 0x52f   : > { %9402 = vst.msk [vmem:[#allocation4 + $0xc8] sm:$0xff] %vm326_vm1, %v9362_v60  ;;  %v9084_v4 = vmax.f32 %v17843_v54, 0.0  ;;  %v17214_v0 = vpop.f32.mrb[24].mxu0  ;;  %17265 = vmatprep.mubr.msk.f32.mxu1 %vm326_vm1, %v9448_v28  ;;  %v17862_v54 = vadd.f32 %v20907_v17, %v20596_v9 }
 0x530   : > { %v9365_v50 = vmul.f32 %v20998_v27, %v9085_v48  ;;  %v17845_v10 = vadd.f32 %v17844_v41, %v17214_v0  ;;  %v8933_v59 = vpop.f32.mrb[25].mxu0  ;;  %17266 = vmatmul.mubr.msk.f32.gmra.mrb[58].mxu1 %vm326_vm1, %v9449_v31  ;;  %v17850_v27 = vadd.f32 %v20907_v17, %v20572_v53  ;;  %v17864_v0 = vadd.f32 %v20602_v42, %v20907_v17 }
 0x531   : > { %v9364_v18 = vmul.f32 %v21002_v39, %v9084_v4  ;;  %v17847_v44 = vadd.f32 %v17846_v12, %v8933_v59  ;;  %v17866_v59 = vadd.f32 %v20907_v17, %v20604_v47 }
 0x532   : > { %9405 = vst.msk [vmem:[#allocation4 + $0xe0] sm:$0xff] %vm326_vm1, %v9365_v50  ;;  %v9087_v30 = vmax.f32 %v17845_v10, 0.0  ;;  %v9450_v29 = vld [vmem:[#allocation4 + $0xb3] sm:$0xff]  ;;  %v9451_v49 = vld [vmem:[#allocation4 + $0xbb] sm:$0xff] }
 0x533   : > { %9404 = vst.msk [vmem:[#allocation4 + $0xd8] sm:$0xff] %vm326_vm1, %v9364_v18  ;;  %v9086_v19 = vmax.f32 %v17847_v44, 0.0  ;;  %v17217_v8 = vpop.f32.mrb[26].mxu0  ;;  %17268 = vmatprep.mubr.msk.f32.mxu1 %vm326_vm1, %v9450_v29 }
 0x534   : > { %v9367_v39 = vmul.f32 %v21016_v3, %v9087_v30  ;;  %v17849_v35 = vadd.f32 %v17848_v20, %v17217_v8  ;;  %v8943_v36 = vpop.f32.mrb[27].mxu0  ;;  %17269 = vmatmul.mubr.msk.f32.gmra.mrb[60].mxu1 %vm326_vm1, %v9451_v49 }
 0x535   : > { %v9366_v1 = vmul.f32 %v21021_v51, %v9086_v19  ;;  %v17851_v25 = vadd.f32 %v17850_v27, %v8943_v36  ;;  %v9295_v51 = vpop.permute.xlu0 %9294  ;;  %v22166_v27 = vld [vmem:[#allocation5_spill] sm:$0xff] }
 0x536   : > { %9407 = vst.msk [vmem:[#allocation4 + $0xf0] sm:$0xff] %vm326_vm1, %v9367_v39  ;;  %v9089_v53 = vmax.f32 %v17849_v35, 0.0  ;;  %v9452_v24 = vld [vmem:[#allocation4 + $0xc3] sm:$0xff]  ;;  %v9453_v2 = vld [vmem:[#allocation4 + $0xcb] sm:$0xff]  ;;  %v17868_v19 = vadd.f32 %v22166_v27, %v20907_v17  ;;  %v22167_v35 = vld [vmem:[#allocation6_spill] sm:$0xff] }
 0x537   : > { %9406 = vst.msk [vmem:[#allocation4 + $0xe8] sm:$0xff] %vm326_vm1, %v9366_v1  ;;  %v9088_v3 = vmax.f32 %v17851_v25, 0.0  ;;  %v17220_v32 = vpop.f32.mrb[28].mxu0  ;;  %17271 = vmatprep.mubr.msk.f32.mxu1 %vm326_vm1, %v9452_v24  ;;  %v17870_v36 = vadd.f32 %v20907_v17, %v22167_v35  ;;  %v21217_v27 = vld [vmem:[#allocation4 + $0xb4] sm:$0xff] }
 0x538   : > { %v9369_v21 = vmul.f32 %v9280_v62, %v9089_v53  ;;  %v17853_v26 = vadd.f32 %v17852_v7, %v17220_v32  ;;  %v8953_v55 = vpop.f32.mrb[29].mxu0  ;;  %17272 = vmatmul.mubr.msk.f32.gmra.mrb[62].mxu1 %vm326_vm1, %v9453_v2 }
 0x539   : > { %v9368_v15 = vmul.f32 %v9275_v13, %v9088_v3  ;;  %v17855_v14 = vadd.f32 %v17854_v52, %v8953_v55  ;;  %v9305_v58 = vpop.permute.xlu0 %9304  ;;  %v22168_v3 = vld [vmem:[#allocation7_spill] sm:$0xff] }
 0x53a   : > { %9409 = vst.msk [vmem:[#allocation4 + $0x100] sm:$0xff] %vm326_vm1, %v9369_v21  ;;  %v9091_v37 = vmax.f32 %v17853_v26, 0.0  ;;  %v9454_v45 = vld [vmem:[#allocation4 + $0xd3] sm:$0xff]  ;;  %v9455_v56 = vld [vmem:[#allocation4 + $0xdb] sm:$0xff]  ;;  %v17872_v32 = vadd.f32 %v22168_v3, %v20907_v17 }
 0x53b   : > { %9408 = vst.msk [vmem:[#allocation4 + $0xf8] sm:$0xff] %vm326_vm1, %v9368_v15  ;;  %v9090_v23 = vmax.f32 %v17855_v14, 0.0  ;;  %v17223_v6 = vpop.f32.mrb[30].mxu0  ;;  %17274 = vmatprep.mubr.msk.f32.mxu1 %vm326_vm1, %v9454_v45  ;;  %v22169_v15 = vld [vmem:[#allocation8_spill] sm:$0xff]  ;;  %v21237_v35 = vld [vmem:[#allocation4 + $0xdc] sm:$0xff] }
 0x53c   : > { %v9371_v38 = vmul.f32 %v9290_v5, %v9091_v37  ;;  %v17857_v62 = vadd.f32 %v17856_v63, %v17223_v6  ;;  %v8963_v40 = vpop.f32.mrb[31].mxu0  ;;  %17275 = vmatmul.mubr.msk.f32.gmra.mrb[64].mxu1 %vm326_vm1, %v9455_v56  ;;  %v9320_v5 = vpop.permute.xlu1 %9319  ;;  %v17874_v14 = vadd.f32 %v20907_v17, %v22169_v15  ;;  %v10369_v15 = vld [vmem:[#allocation4 + $0x15] sm:$0xff] }
 0x53d   : > { %v9370_v43 = vmul.f32 %v9285_v11, %v9090_v23  ;;  %v17859_v13 = vadd.f32 %v17858_v16, %v8963_v40  ;;  %v9315_v20 = vpop.permute.xlu0 %9314 }
 0x53e   : > { %9411 = vst.msk [vmem:[#allocation4 + $0x110] sm:$0xff] %vm326_vm1, %v9371_v38  ;;  %v9093_v46 = vmax.f32 %v17857_v62, 0.0  ;;  %v9456_v34 = vld [vmem:[#allocation4 + $0xe3] sm:$0xff]  ;;  %v9457_v60 = vld [vmem:[#allocation4 + $0xeb] sm:$0xff] }
 0x53f   : > { %9410 = vst.msk [vmem:[#allocation4 + $0x108] sm:$0xff] %vm326_vm1, %v9370_v43  ;;  %v9092_v41 = vmax.f32 %v17859_v13, 0.0  ;;  %v17226_v48 = vpop.f32.mrb[32].mxu0  ;;  %17277 = vmatprep.mubr.msk.f32.mxu1 %vm326_vm1, %v9456_v34 }
 0x540   : > { %v9373_v28 = vmul.f32 %v9300_v33, %v9093_v46  ;;  %v17861_v31 = vadd.f32 %v17860_v61, %v17226_v48  ;;  %v8973_v12 = vpop.f32.mrb[33].mxu0  ;;  %17278 = vmatmul.mubr.msk.f32.gmra.mrb[66].mxu1 %vm326_vm1, %v9457_v60  ;;  %v9330_v2 = vpop.permute.xlu1 %9329  ;;  %v21147_v48 = vld [vmem:[%s21947_s6 + $0x6] sm:$0x3] }
 0x541   : > { %v9372_v22 = vmul.f32 %v9295_v51, %v9092_v41  ;;  %v17863_v4 = vadd.f32 %v17862_v54, %v8973_v12  ;;  %v9325_v51 = vpop.permute.xlu0 %9324  ;;  %v9899_v54 = vld [vmem:[#allocation4 + $0x14] sm:$0xff]  ;;  %v9900_v41 = vld [vmem:[#allocation4 + $0x1c] sm:$0xff]  ;;  %v9902_v12 = vld [vmem:[#allocation4 + $0x2c] sm:$0xff] }
 0x542   : > { %9413 = vst.msk [vmem:[#allocation4 + $0x120] sm:$0xff] %vm326_vm1, %v9373_v28  ;;  %v9095_v50 = vmax.f32 %v17861_v31, 0.0  ;;  %v9458_v9 = vld [vmem:[#allocation4 + $0xf3] sm:$0xff]  ;;  %v9459_v10 = vld [vmem:[#allocation4 + $0xfb] sm:$0xff]  ;;  %v9901_v28 = vld [vmem:[#allocation4 + $0x24] sm:$0xff] }
 0x543   : > { %9412 = vst.msk [vmem:[#allocation4 + $0x118] sm:$0xff] %vm326_vm1, %v9372_v22  ;;  %v9094_v18 = vmax.f32 %v17863_v4, 0.0  ;;  %v17229_v44 = vpop.f32.mrb[34].mxu0  ;;  %17280 = vmatprep.mubr.msk.f32.mxu1 %vm326_vm1, %v9458_v9  ;;  %v22170_v31 = vld [vmem:[#allocation9_spill] sm:$0xff]  ;;  %v21157_v4 = vld [vmem:[#allocation4 + $0x3c] sm:$0xff] }
 0x544   : > { %v9375_v11 = vmul.f32 %v9310_v57, %v9095_v50  ;;  %v17865_v30 = vadd.f32 %v17864_v0, %v17229_v44  ;;  %v8983_v29 = vpop.f32.mrb[35].mxu0  ;;  %17281 = vmatmul.mubr.msk.f32.gmra.mrb[68].mxu1 %vm326_vm1, %v9459_v10  ;;  %v9340_v40 = vpop.permute.xlu1 %9339  ;;  %v9903_v22 = vld [vmem:[#allocation4 + $0x34] sm:$0xff]  ;;  %v21161_v0 = vld [vmem:[#allocation4 + $0x44] sm:$0xff]  ;;  %v21165_v50 = vld [vmem:[#allocation4 + $0x4c] sm:$0xff] }
 0x545   : > { %v9374_v42 = vmul.f32 %v9305_v58, %v9094_v18  ;;  %v17867_v49 = vadd.f32 %v17866_v59, %v8983_v29  ;;  %v9335_v43 = vpop.permute.xlu0 %9334  ;;  %v21169_v9 = vld [vmem:[#allocation4 + $0x54] sm:$0xff]  ;;  %v21173_v10 = vld [vmem:[#allocation4 + $0x5c] sm:$0xff]  ;;  %v21177_v59 = vld [vmem:[#allocation4 + $0x64] sm:$0xff] }
 0x546   : > { %9415 = vst.msk [vmem:[#allocation4 + $0x130] sm:$0xff] %vm326_vm1, %v9375_v11  ;;  %v9097_v47 = vmax.f32 %v17865_v30, 0.0  ;;  %v9460_v8 = vld [vmem:[#allocation4 + $0x103] sm:$0xff]  ;;  %v9461_v39 = vld [vmem:[#allocation4 + $0x10b] sm:$0xff]  ;;  %v21185_v18 = vld [vmem:[#allocation4 + $0x74] sm:$0xff] }
 0x547   : > { %9414 = vst.msk [vmem:[#allocation4 + $0x128] sm:$0xff] %vm326_vm1, %v9374_v42  ;;  %v9096_v1 = vmax.f32 %v17867_v49, 0.0  ;;  %v17232_v25 = vpop.f32.mrb[36].mxu0  ;;  %17283 = vmatprep.mubr.msk.f32.mxu1 %vm326_vm1, %v9460_v8  ;;  %v21189_v44 = vld [vmem:[#allocation4 + $0x7c] sm:$0xff]  ;;  %v21197_v11 = vld [vmem:[#allocation4 + $0x8c] sm:$0xff]  ;;  %v21201_v30 = vld [vmem:[#allocation4 + $0x94] sm:$0xff] }
 0x548   : > { %v9377_v7 = vmul.f32 %v9320_v5, %v9097_v47  ;;  %v17869_v53 = vadd.f32 %v17868_v19, %v17232_v25  ;;  %v8993_v24 = vpop.f32.mrb[37].mxu0  ;;  %17284 = vmatmul.mubr.msk.f32.gmra.mrb[70].mxu1 %vm326_vm1, %v9461_v39  ;;  %v21181_v5 = vld [vmem:[#allocation4 + $0x6c] sm:$0xff]  ;;  %v21205_v29 = vld [vmem:[#allocation4 + $0x9c] sm:$0xff]  ;;  %v21209_v42 = vld [vmem:[#allocation4 + $0xa4] sm:$0xff] }
 0x549   : > { %v9376_v52 = vmul.f32 %v9315_v20, %v9096_v1  ;;  %v17871_v33 = vadd.f32 %v17870_v36, %v8993_v24  ;;  %v21193_v20 = vld [vmem:[#allocation4 + $0x84] sm:$0xff]  ;;  %v21213_v49 = vld [vmem:[#allocation4 + $0xac] sm:$0xff]  ;;  %v21221_v19 = vld [vmem:[#allocation4 + $0xbc] sm:$0xff] }
 0x54a   : > { %9417 = vst.msk [vmem:[#allocation4 + $0x140] sm:$0xff] %vm326_vm1, %v9377_v7  ;;  %v9099_v21 = vmax.f32 %v17869_v53, 0.0  ;;  %v21104_v26 = vld [vmem:[#allocation4 + $0x113] sm:$0xff]  ;;  %v21106_v55 = vld [vmem:[#allocation4 + $0x11b] sm:$0xff]  ;;  %v21225_v47 = vld [vmem:[#allocation4 + $0xc4] sm:$0xff] }
 0x54b   : > { %9416 = vst.msk [vmem:[#allocation4 + $0x138] sm:$0xff] %vm326_vm1, %v9376_v52  ;;  %v9098_v63 = vmax.f32 %v17871_v33, 0.0  ;;  %v17235_v37 = vpop.f32.mrb[38].mxu0  ;;  %17286 = vmatprep.mubr.msk.f32.mxu1 %vm326_vm1, %v21104_v26  ;;  %v21229_v8 = vld [vmem:[#allocation4 + $0xcc] sm:$0xff]  ;;  %v21233_v39 = vld [vmem:[#allocation4 + $0xd4] sm:$0xff]  ;;  %v21241_v36 = vld [vmem:[#allocation4 + $0xe4] sm:$0xff] }
 0x54c   : > { %v9379_v45 = vmul.f32 %v9330_v2, %v9099_v21  ;;  %v17873_v56 = vadd.f32 %v17872_v32, %v17235_v37  ;;  %v9003_v16 = vpop.f32.mrb[39].mxu0  ;;  %17287 = vmatmul.mubr.msk.f32.gmra.mrb[72].mxu1 %vm326_vm1, %v21106_v55  ;;  %v21245_v1 = vld [vmem:[#allocation4 + $0xec] sm:$0xff]  ;;  %v21249_v25 = vld [vmem:[#allocation4 + $0xf4] sm:$0xff]  ;;  %v21253_v7 = vld [vmem:[#allocation4 + $0xfc] sm:$0xff] }
 0x54d   : > { %v9378_v23 = vmul.f32 %v9325_v51, %v9098_v63  ;;  %v17875_v6 = vadd.f32 %v17874_v14, %v9003_v16  ;;  %v21257_v53 = vld [vmem:[#allocation4 + $0x104] sm:$0xff]  ;;  %v21261_v24 = vld [vmem:[#allocation4 + $0x10c] sm:$0xff]  ;;  %v21265_v2 = vld [vmem:[#allocation4 + $0x114] sm:$0xff] }
 0x54e   : > { %9419 = vst.msk [vmem:[#allocation4 + $0x150] sm:$0xff] %vm326_vm1, %v9379_v45  ;;  %v9101_v38 = vmax.f32 %v17873_v56, 0.0  ;;  %v21116_v62 = vld [vmem:[#allocation4 + $0x123] sm:$0xff]  ;;  %v21118_v17 = vld [vmem:[#allocation4 + $0x12b] sm:$0xff]  ;;  %v10373_v16 = vld [vmem:[#allocation4 + $0x35] sm:$0xff] }
 0x54f   : > { %9418 = vst.msk [vmem:[#allocation4 + $0x148] sm:$0xff] %vm326_vm1, %v9378_v23  ;;  %v9100_v57 = vmax.f32 %v17875_v6, 0.0  ;;  %17289 = vmatprep.mubr.msk.f32.mxu1 %vm326_vm1, %v21116_v62  ;;  %v21269_v52 = vld [vmem:[#allocation4 + $0x11c] sm:$0xff]  ;;  %v21273_v33 = vld [vmem:[#allocation4 + $0x124] sm:$0xff]  ;;  %v21277_v3 = vld [vmem:[#allocation4 + $0x12c] sm:$0xff] }
 0x550   : > { %v9381_v13 = vmul.f32 %v9340_v40, %v9101_v38  ;;  %17290 = vmatmul.mubr.msk.f32.gmra.mrb[74].mxu1 %vm326_vm1, %v21118_v17  ;;  %v10370_v63 = vld [vmem:[#allocation4 + $0x1d] sm:$0xff]  ;;  %v21301_v37 = vld [vmem:[%s21947_s6 + $0x8] sm:$0x3]  ;;  %v10372_v56 = vld [vmem:[#allocation4 + $0x2d] sm:$0xff] }
 0x551   : > { %v9380_v61 = vmul.f32 %v9335_v43, %v9100_v57  ;;  %v10371_v45 = vld [vmem:[#allocation4 + $0x25] sm:$0xff]  ;;  %v21311_v23 = vld [vmem:[#allocation4 + $0x3d] sm:$0xff]  ;;  %v21319_v38 = vld [vmem:[#allocation4 + $0x4d] sm:$0xff] }
 0x552   : > { %9421 = vst.msk [vmem:[#allocation4 + $0x160] sm:$0xff] %vm326_vm1, %v9381_v13  ;;  %v21126_v58 = vld [vmem:[#allocation4 + $0x133] sm:$0xff]  ;;  %v21128_v46 = vld [vmem:[#allocation4 + $0x13b] sm:$0xff]  ;;  %v21315_v6 = vld [vmem:[#allocation4 + $0x45] sm:$0xff] }
 0x553   : > { %9420 = vst.msk [vmem:[#allocation4 + $0x158] sm:$0xff] %vm326_vm1, %v9380_v61  ;;  %17292 = vmatprep.mubr.msk.f32.mxu1 %vm326_vm1, %v21126_v58  ;;  %v21281_v32 = vld [vmem:[#allocation4 + $0x134] sm:$0xff]  ;;  %v21285_v51 = vld [vmem:[#allocation4 + $0x13c] sm:$0xff]  ;;  %v21331_v43 = vld [vmem:[#allocation4 + $0x65] sm:$0xff] }
 0x554   : > { %17293 = vmatmul.mubr.msk.f32.gmra.mrb[76].mxu1 %vm326_vm1, %v21128_v46  ;;  %v21323_v40 = vld [vmem:[#allocation4 + $0x55] sm:$0xff]  ;;  %v21327_v57 = vld [vmem:[#allocation4 + $0x5d] sm:$0xff]  ;;  %v21335_v13 = vld [vmem:[#allocation4 + $0x6d] sm:$0xff] }
 0x555   : > { %v21339_v61 = vld [vmem:[#allocation4 + $0x75] sm:$0xff] }
 0x556   : > { %v21135_v34 = vld [vmem:[#allocation4 + $0x143] sm:$0xff]  ;;  %v21137_v60 = vld [vmem:[#allocation4 + $0x14b] sm:$0xff] }
 0x557   : > { %17295 = vmatprep.mubr.msk.f32.mxu1 %vm326_vm1, %v21135_v34  ;;  %v21289_v21 = vld [vmem:[#allocation4 + $0x144] sm:$0xff]  ;;  %v21293_v14 = vld [vmem:[#allocation4 + $0x14c] sm:$0xff] }
 0x558   : > { %17296 = vmatmul.mubr.msk.f32.gmra.mrb[78].mxu1 %vm326_vm1, %v21137_v60 }
 0x559   : > { %17300 = vmatprep.mubr.msk.f32.mxu1 %vm326_vm1, %v9899_v54  ;;  %v21343_v54 = vld [vmem:[#allocation4 + $0x7d] sm:$0xff] }
 0x55c   : > { %17301 = vmatmul.mubr.msk.f32.vlgmr.msra.gmra.mrb[40].mxu1 %vm326_vm1, %v9900_v41  ;;  %v21347_v41 = vld [vmem:[#allocation4 + $0x85] sm:$0xff] }
 0x55d   : > { %17361 = vmatpush3.msk.msra.mxu1 %vm754_vm0, %v22170_v31  ;;  %17303 = vmatprep.mubr.msk.f32.mxu1 %vm326_vm1, %v9901_v28  ;;  %v21355_v28 = vld [vmem:[#allocation4 + $0x95] sm:$0xff]  ;;  %v21359_v31 = vld [vmem:[#allocation4 + $0x9d] sm:$0xff] }
 0x55e   : > { %17422 = vmatprep.subr.msk.mxu1 %vm754_vm0, %v21147_v48  ;;  %22171 = vst [vmem:[#allocation10_spill] sm:$0xff] %v21359_v31 }
 0x560   : > { %17304 = vmatmul.mubr.msk.f32.gmra.mrb[42].mxu1 %vm326_vm1, %v9902_v12  ;;  %v21363_v12 = vld [vmem:[#allocation4 + $0xa5] sm:$0xff] }
 0x561   : > { %17306 = vmatprep.mubr.msk.f32.mxu1 %vm326_vm1, %v9903_v22  ;;  %22172 = vst [vmem:[#allocation11_spill] sm:$0xff] %v21363_v12  ;;  %v21367_v22 = vld [vmem:[#allocation4 + $0xad] sm:$0xff] }
 0x562   : > { %22173 = vst [vmem:[#allocation12_spill] sm:$0xff] %v21367_v22 }
 0x564   : > { %17307 = vmatmul.mubr.msk.f32.gmra.mrb[44].mxu1 %vm326_vm1, %v21157_v4 }
 0x565   : > { %17309 = vmatprep.mubr.msk.f32.mxu1 %vm326_vm1, %v21161_v0 }
 0x568   : > { %17310 = vmatmul.mubr.msk.f32.gmra.mrb[46].mxu1 %vm326_vm1, %v21165_v50 }
 0x569   : > { %17312 = vmatprep.mubr.msk.f32.mxu1 %vm326_vm1, %v21169_v9 }
 0x56c   : > { %17313 = vmatmul.mubr.msk.f32.gmra.mrb[48].mxu1 %vm326_vm1, %v21173_v10 }
 0x56d   : > { %17315 = vmatprep.mubr.msk.f32.mxu1 %vm326_vm1, %v21177_v59 }
 0x570   : > { %17316 = vmatmul.mubr.msk.f32.gmra.mrb[50].mxu1 %vm326_vm1, %v21181_v5 }
 0x571   : > { %17318 = vmatprep.mubr.msk.f32.mxu1 %vm326_vm1, %v21185_v18 }
 0x574   : > { %17319 = vmatmul.mubr.msk.f32.gmra.mrb[52].mxu1 %vm326_vm1, %v21189_v44 }
 0x575   : > { %17321 = vmatprep.mubr.msk.f32.mxu1 %vm326_vm1, %v21193_v20 }
 0x578   : > { %17322 = vmatmul.mubr.msk.f32.gmra.mrb[54].mxu1 %vm326_vm1, %v21197_v11 }
 0x579   : > { %17324 = vmatprep.mubr.msk.f32.mxu1 %vm326_vm1, %v21201_v30 }
 0x57c   : > { %17325 = vmatmul.mubr.msk.f32.gmra.mrb[56].mxu1 %vm326_vm1, %v21205_v29 }
 0x57d   : > { %17327 = vmatprep.mubr.msk.f32.mxu1 %vm326_vm1, %v21209_v42 }
 0x580   : > { %17328 = vmatmul.mubr.msk.f32.gmra.mrb[58].mxu1 %vm326_vm1, %v21213_v49 }
 0x581   : > { %17330 = vmatprep.mubr.msk.f32.mxu1 %vm326_vm1, %v21217_v27 }
 0x584   : > { %17331 = vmatmul.mubr.msk.f32.gmra.mrb[60].mxu1 %vm326_vm1, %v21221_v19 }
 0x585   : > { %17333 = vmatprep.mubr.msk.f32.mxu1 %vm326_vm1, %v21225_v47 }
 0x588   : > { %17334 = vmatmul.mubr.msk.f32.gmra.mrb[62].mxu1 %vm326_vm1, %v21229_v8 }
 0x589   : > { %17336 = vmatprep.mubr.msk.f32.mxu1 %vm326_vm1, %v21233_v39 }
 0x58c   : > { %17337 = vmatmul.mubr.msk.f32.gmra.mrb[64].mxu1 %vm326_vm1, %v21237_v35 }
 0x58d   : > { %17339 = vmatprep.mubr.msk.f32.mxu1 %vm326_vm1, %v21241_v36 }
 0x590   : > { %17340 = vmatmul.mubr.msk.f32.gmra.mrb[66].mxu1 %vm326_vm1, %v21245_v1 }
 0x591   : > { %17342 = vmatprep.mubr.msk.f32.mxu1 %vm326_vm1, %v21249_v25 }
 0x594   : > { %17343 = vmatmul.mubr.msk.f32.gmra.mrb[68].mxu1 %vm326_vm1, %v21253_v7 }
 0x595   : > { %17345 = vmatprep.mubr.msk.f32.mxu1 %vm326_vm1, %v21257_v53 }
 0x598   : > { %17346 = vmatmul.mubr.msk.f32.gmra.mrb[70].mxu1 %vm326_vm1, %v21261_v24 }
 0x599   : > { %17348 = vmatprep.mubr.msk.f32.mxu1 %vm326_vm1, %v21265_v2 }
 0x59c   : > { %17349 = vmatmul.mubr.msk.f32.gmra.mrb[72].mxu1 %vm326_vm1, %v21269_v52 }
 0x59d   : > { %17351 = vmatprep.mubr.msk.f32.mxu1 %vm326_vm1, %v21273_v33 }
 0x5a0   : > { %17352 = vmatmul.mubr.msk.f32.gmra.mrb[74].mxu1 %vm326_vm1, %v21277_v3 }
 0x5a1   : > { %17354 = vmatprep.mubr.msk.f32.mxu1 %vm326_vm1, %v21281_v32 }
 0x5a4   : > { %17355 = vmatmul.mubr.msk.f32.gmra.mrb[76].mxu1 %vm326_vm1, %v21285_v51 }
 0x5a5   : > { %17357 = vmatprep.mubr.msk.f32.mxu1 %vm326_vm1, %v21289_v21 }
 0x5a8   : > { %17358 = vmatmul.mubr.msk.f32.gmra.mrb[78].mxu1 %vm326_vm1, %v21293_v14 }
 0x5a9   : > { %17362 = vmatprep.mubr.msk.f32.mxu1 %vm326_vm1, %v10369_v15  ;;  %v21371_v15 = vld [vmem:[#allocation4 + $0xb5] sm:$0xff] }
 0x5aa   : > { %22174 = vst [vmem:[#allocation13_spill] sm:$0xff] %v21371_v15 }
 0x5ac   : > { %17363 = vmatmul.mubr.msk.f32.vlgmr.msra.gmra.mrb[40].mxu1 %vm326_vm1, %v10370_v63  ;;  %v21375_v63 = vld [vmem:[#allocation4 + $0xbd] sm:$0xff] }
 0x5ad   : > { %17423 = vmatpush3.msk.msra.mxu1 %vm754_vm0, %v21147_v48  ;;  %17365 = vmatprep.mubr.msk.f32.mxu1 %vm326_vm1, %v10371_v45  ;;  %v21351_v48 = vld [vmem:[#allocation4 + $0x8d] sm:$0xff]  ;;  %22175 = vst [vmem:[#allocation14_spill] sm:$0xff] %v21375_v63  ;;  %v21379_v45 = vld [vmem:[#allocation4 + $0xc5] sm:$0xff] }
 0x5ae   : > { %17484 = vmatprep.subr.msk.mxu1 %vm754_vm0, %v21301_v37  ;;  %22176 = vst [vmem:[#allocation15_spill] sm:$0xff] %v21379_v45 }
 0x5b0   : > { %17366 = vmatmul.mubr.msk.f32.gmra.mrb[42].mxu1 %vm326_vm1, %v10372_v56  ;;  %v21383_v56 = vld [vmem:[#allocation4 + $0xcd] sm:$0xff] }
 0x5b1   : > { %17368 = vmatprep.mubr.msk.f32.mxu1 %vm326_vm1, %v10373_v16  ;;  %22177 = vst [vmem:[#allocation16_spill] sm:$0xff] %v21383_v56  ;;  %v21387_v16 = vld [vmem:[#allocation4 + $0xd5] sm:$0xff] }
 0x5b2   : > { %22178 = vst [vmem:[#allocation17_spill] sm:$0xff] %v21387_v16 }
 0x5b4   : > { %17369 = vmatmul.mubr.msk.f32.gmra.mrb[44].mxu1 %vm326_vm1, %v21311_v23 }
 0x5b5   : > { %17371 = vmatprep.mubr.msk.f32.mxu1 %vm326_vm1, %v21315_v6 }
 0x5b8   : > { %17372 = vmatmul.mubr.msk.f32.gmra.mrb[46].mxu1 %vm326_vm1, %v21319_v38 }
 0x5b9   : > { %17374 = vmatprep.mubr.msk.f32.mxu1 %vm326_vm1, %v21323_v40 }
 0x5bc   : > { %17375 = vmatmul.mubr.msk.f32.gmra.mrb[48].mxu1 %vm326_vm1, %v21327_v57 }
 0x5bd   : > { %17377 = vmatprep.mubr.msk.f32.mxu1 %vm326_vm1, %v21331_v43 }
 0x5c0   : > { %17378 = vmatmul.mubr.msk.f32.gmra.mrb[50].mxu1 %vm326_vm1, %v21335_v13 }
 0x5c1   : > { %17380 = vmatprep.mubr.msk.f32.mxu1 %vm326_vm1, %v21339_v61 }
 0x5c4   : > { %17381 = vmatmul.mubr.msk.f32.gmra.mrb[52].mxu1 %vm326_vm1, %v21343_v54 }
 0x5c5   : > { %17383 = vmatprep.mubr.msk.f32.mxu1 %vm326_vm1, %v21347_v41 }
 0x5c8   : > { %17384 = vmatmul.mubr.msk.f32.gmra.mrb[54].mxu1 %vm326_vm1, %v21351_v48 }
 0x5c9   : > { %17386 = vmatprep.mubr.msk.f32.mxu1 %vm326_vm1, %v21355_v28 }
 0x5cc   : > { %17387 = vmatmul.mubr.msk.f32.gmra.mrb[56].mxu1 %vm326_vm1, %v21359_v31  ;;  %v10849_v31 = vld [vmem:[#allocation4 + $0x77] sm:$0xff] }
 0x5cd   : > { %17389 = vmatprep.mubr.msk.f32.mxu1 %vm326_vm1, %v21363_v12  ;;  %v10845_v12 = vld [vmem:[#allocation4 + $0x57] sm:$0xff] }
 0x5d0   : > { %17390 = vmatmul.mubr.msk.f32.gmra.mrb[58].mxu1 %vm326_vm1, %v21367_v22  ;;  %v10840_v22 = vld [vmem:[#allocation4 + $0x2f] sm:$0xff] }
 0x5d1   : > { %17392 = vmatprep.mubr.msk.f32.mxu1 %vm326_vm1, %v21371_v15  ;;  %v21391_v15 = vld [vmem:[#allocation4 + $0xdd] sm:$0xff] }
 0x5d2   : > { %22179 = vst [vmem:[#allocation18_spill] sm:$0xff] %v21391_v15 }
 0x5d4   : > { %17393 = vmatmul.mubr.msk.f32.gmra.mrb[60].mxu1 %vm326_vm1, %v21375_v63  ;;  %v21395_v63 = vld [vmem:[#allocation4 + $0xe5] sm:$0xff] }
 0x5d5   : > { %17395 = vmatprep.mubr.msk.f32.mxu1 %vm326_vm1, %v21379_v45  ;;  %22180 = vst [vmem:[#allocation19_spill] sm:$0xff] %v21395_v63  ;;  %v21399_v45 = vld [vmem:[#allocation4 + $0xed] sm:$0xff] }
 0x5d6   : > { %22181 = vst [vmem:[#allocation20_spill] sm:$0xff] %v21399_v45 }
 0x5d8   : > { %17396 = vmatmul.mubr.msk.f32.gmra.mrb[62].mxu1 %vm326_vm1, %v21383_v56  ;;  %v21403_v56 = vld [vmem:[#allocation4 + $0xf5] sm:$0xff] }
 0x5d9   : > { %17398 = vmatprep.mubr.msk.f32.mxu1 %vm326_vm1, %v21387_v16  ;;  %22182 = vst [vmem:[#allocation21_spill] sm:$0xff] %v21403_v56  ;;  %v21407_v16 = vld [vmem:[#allocation4 + $0xfd] sm:$0xff] }
 0x5da   : > { %22183 = vst [vmem:[#allocation22_spill] sm:$0xff] %v21407_v16 }
 0x5dc   : > { %17399 = vmatmul.mubr.msk.f32.gmra.mrb[64].mxu1 %vm326_vm1, %v21391_v15  ;;  %v21411_v15 = vld [vmem:[#allocation4 + $0x105] sm:$0xff] }
 0x5dd   : > { %17401 = vmatprep.mubr.msk.f32.mxu1 %vm326_vm1, %v21395_v63  ;;  %22184 = vst [vmem:[#allocation23_spill] sm:$0xff] %v21411_v15  ;;  %v21415_v63 = vld [vmem:[#allocation4 + $0x10d] sm:$0xff] }
 0x5de   : > { %22185 = vst [vmem:[#allocation24_spill] sm:$0xff] %v21415_v63 }
 0x5e0   : > { %17402 = vmatmul.mubr.msk.f32.gmra.mrb[66].mxu1 %vm326_vm1, %v21399_v45  ;;  %v21419_v45 = vld [vmem:[#allocation4 + $0x115] sm:$0xff] }
 0x5e1   : > { %17404 = vmatprep.mubr.msk.f32.mxu1 %vm326_vm1, %v21403_v56  ;;  %22186 = vst [vmem:[#allocation25_spill] sm:$0xff] %v21419_v45  ;;  %v21423_v56 = vld [vmem:[#allocation4 + $0x11d] sm:$0xff] }
 0x5e2   : > { %22187 = vst [vmem:[#allocation26_spill] sm:$0xff] %v21423_v56 }
 0x5e4   : > { %17405 = vmatmul.mubr.msk.f32.gmra.mrb[68].mxu1 %vm326_vm1, %v21407_v16  ;;  %v21427_v16 = vld [vmem:[#allocation4 + $0x125] sm:$0xff] }
 0x5e5   : > { %17407 = vmatprep.mubr.msk.f32.mxu1 %vm326_vm1, %v21411_v15  ;;  %22188 = vst [vmem:[#allocation27_spill] sm:$0xff] %v21427_v16  ;;  %v21431_v15 = vld [vmem:[#allocation4 + $0x12d] sm:$0xff] }
 0x5e6   : > { %22189 = vst [vmem:[#allocation28_spill] sm:$0xff] %v21431_v15 }
 0x5e8   : > { %17408 = vmatmul.mubr.msk.f32.gmra.mrb[70].mxu1 %vm326_vm1, %v21415_v63  ;;  %v21435_v63 = vld [vmem:[#allocation4 + $0x135] sm:$0xff] }
 0x5e9   : > { %17410 = vmatprep.mubr.msk.f32.mxu1 %vm326_vm1, %v21419_v45  ;;  %22190 = vst [vmem:[#allocation29_spill] sm:$0xff] %v21435_v63  ;;  %v21439_v45 = vld [vmem:[#allocation4 + $0x13d] sm:$0xff] }
 0x5ea   : > { %22191 = vst [vmem:[#allocation30_spill] sm:$0xff] %v21439_v45 }
 0x5ec   : > { %17411 = vmatmul.mubr.msk.f32.gmra.mrb[72].mxu1 %vm326_vm1, %v21423_v56  ;;  %v21443_v56 = vld [vmem:[#allocation4 + $0x145] sm:$0xff] }
 0x5ed   : > { %17413 = vmatprep.mubr.msk.f32.mxu1 %vm326_vm1, %v21427_v16  ;;  %22192 = vst [vmem:[#allocation31_spill] sm:$0xff] %v21443_v56  ;;  %v21447_v16 = vld [vmem:[#allocation4 + $0x14d] sm:$0xff] }
 0x5ee   : > { %22193 = vst [vmem:[#allocation32_spill] sm:$0xff] %v21447_v16 }
 0x5f0   : > { %17414 = vmatmul.mubr.msk.f32.gmra.mrb[74].mxu1 %vm326_vm1, %v21431_v15  ;;  %v10839_v15 = vld [vmem:[#allocation4 + $0x27] sm:$0xff] }
 0x5f1   : > { %17416 = vmatprep.mubr.msk.f32.mxu1 %vm326_vm1, %v21435_v63  ;;  %v21455_v63 = vld [vmem:[%s21947_s6 + $0xa] sm:$0x3] }
 0x5f4   : > { %17417 = vmatmul.mubr.msk.f32.gmra.mrb[76].mxu1 %vm326_vm1, %v21439_v45  ;;  %v10841_v45 = vld [vmem:[#allocation4 + $0x37] sm:$0xff] }
 0x5f5   : > { %17419 = vmatprep.mubr.msk.f32.mxu1 %vm326_vm1, %v21443_v56  ;;  %v10844_v56 = vld [vmem:[#allocation4 + $0x4f] sm:$0xff] }
 0x5f8   : > { %17420 = vmatmul.mubr.msk.f32.gmra.mrb[78].mxu1 %vm326_vm1, %v21447_v16  ;;  %v10842_v16 = vld [vmem:[#allocation4 + $0x3f] sm:$0xff] }
 0x5f9   : > { %17424 = vmatprep.mubr.msk.f32.mxu1 %vm326_vm1, %v10839_v15  ;;  %v10843_v15 = vld [vmem:[#allocation4 + $0x47] sm:$0xff] }
 0x5fc   : > { %17425 = vmatmul.mubr.msk.f32.vlgmr.msra.gmra.mrb[40].mxu1 %vm326_vm1, %v10840_v22  ;;  %v10846_v22 = vld [vmem:[#allocation4 + $0x5f] sm:$0xff] }
 0x5fd   : > { %17485 = vmatpush3.msk.msra.mxu1 %vm754_vm0, %v21301_v37  ;;  %17427 = vmatprep.mubr.msk.f32.mxu1 %vm326_vm1, %v10841_v45  ;;  %v10847_v37 = vld [vmem:[#allocation4 + $0x67] sm:$0xff]  ;;  %v10848_v45 = vld [vmem:[#allocation4 + $0x6f] sm:$0xff] }
 0x5fe   : > { %17546 = vmatprep.subr.msk.mxu1 %vm754_vm0, %v21455_v63 }
 0x600   : > { %17428 = vmatmul.mubr.msk.f32.gmra.mrb[42].mxu1 %vm326_vm1, %v10842_v16  ;;  %v10850_v16 = vld [vmem:[#allocation4 + $0x7f] sm:$0xff] }
 0x601   : > { %17430 = vmatprep.mubr.msk.f32.mxu1 %vm326_vm1, %v10843_v15  ;;  %v10851_v15 = vld [vmem:[#allocation4 + $0x87] sm:$0xff] }
 0x604   : > { %17431 = vmatmul.mubr.msk.f32.gmra.mrb[44].mxu1 %vm326_vm1, %v10844_v56  ;;  %v10852_v56 = vld [vmem:[#allocation4 + $0x8f] sm:$0xff] }
 0x605   : > { %17433 = vmatprep.mubr.msk.f32.mxu1 %vm326_vm1, %v10845_v12  ;;  %v10853_v12 = vld [vmem:[#allocation4 + $0x97] sm:$0xff] }
 0x608   : > { %17434 = vmatmul.mubr.msk.f32.gmra.mrb[46].mxu1 %vm326_vm1, %v10846_v22  ;;  %v10854_v22 = vld [vmem:[#allocation4 + $0x9f] sm:$0xff] }
 0x609   : > { %17436 = vmatprep.mubr.msk.f32.mxu1 %vm326_vm1, %v10847_v37  ;;  %v10855_v37 = vld [vmem:[#allocation4 + $0xa7] sm:$0xff] }
 0x60c   : > { %17437 = vmatmul.mubr.msk.f32.gmra.mrb[48].mxu1 %vm326_vm1, %v10848_v45  ;;  %v10856_v45 = vld [vmem:[#allocation4 + $0xaf] sm:$0xff] }
 0x60d   : > { %17439 = vmatprep.mubr.msk.f32.mxu1 %vm326_vm1, %v10849_v31  ;;  %v10857_v31 = vld [vmem:[#allocation4 + $0xb7] sm:$0xff] }
 0x610   : > { %17440 = vmatmul.mubr.msk.f32.gmra.mrb[50].mxu1 %vm326_vm1, %v10850_v16  ;;  %v10858_v16 = vld [vmem:[#allocation4 + $0xbf] sm:$0xff] }
 0x611   : > { %17442 = vmatprep.mubr.msk.f32.mxu1 %vm326_vm1, %v10851_v15  ;;  %v10859_v15 = vld [vmem:[#allocation4 + $0xc7] sm:$0xff] }
 0x614   : > { %17443 = vmatmul.mubr.msk.f32.gmra.mrb[52].mxu1 %vm326_vm1, %v10852_v56  ;;  %v10860_v56 = vld [vmem:[#allocation4 + $0xcf] sm:$0xff] }
 0x615   : > { %17445 = vmatprep.mubr.msk.f32.mxu1 %vm326_vm1, %v10853_v12  ;;  %v10861_v12 = vld [vmem:[#allocation4 + $0xd7] sm:$0xff] }
 0x618   : > { %17446 = vmatmul.mubr.msk.f32.gmra.mrb[54].mxu1 %vm326_vm1, %v10854_v22  ;;  %v10862_v22 = vld [vmem:[#allocation4 + $0xdf] sm:$0xff] }
 0x619   : > { %17448 = vmatprep.mubr.msk.f32.mxu1 %vm326_vm1, %v10855_v37  ;;  %v10863_v37 = vld [vmem:[#allocation4 + $0xe7] sm:$0xff] }
 0x61c   : > { %17449 = vmatmul.mubr.msk.f32.gmra.mrb[56].mxu1 %vm326_vm1, %v10856_v45  ;;  %v10864_v45 = vld [vmem:[#allocation4 + $0xef] sm:$0xff] }
 0x61d   : > { %17451 = vmatprep.mubr.msk.f32.mxu1 %vm326_vm1, %v10857_v31  ;;  %v10865_v31 = vld [vmem:[#allocation4 + $0xf7] sm:$0xff] }
 0x620   : > { %17452 = vmatmul.mubr.msk.f32.gmra.mrb[58].mxu1 %vm326_vm1, %v10858_v16  ;;  %v10866_v16 = vld [vmem:[#allocation4 + $0xff] sm:$0xff] }
 0x621   : > { %17454 = vmatprep.mubr.msk.f32.mxu1 %vm326_vm1, %v10859_v15  ;;  %v10867_v15 = vld [vmem:[#allocation4 + $0x107] sm:$0xff] }
 0x624   : > { %17455 = vmatmul.mubr.msk.f32.gmra.mrb[60].mxu1 %vm326_vm1, %v10860_v56  ;;  %v10868_v56 = vld [vmem:[#allocation4 + $0x10f] sm:$0xff] }
 0x625   : > { %17457 = vmatprep.mubr.msk.f32.mxu1 %vm326_vm1, %v10861_v12  ;;  %v10869_v12 = vld [vmem:[#allocation4 + $0x117] sm:$0xff] }
 0x628   : > { %17458 = vmatmul.mubr.msk.f32.gmra.mrb[62].mxu1 %vm326_vm1, %v10862_v22  ;;  %v10870_v22 = vld [vmem:[#allocation4 + $0x11f] sm:$0xff] }
 0x629   : > { %17460 = vmatprep.mubr.msk.f32.mxu1 %vm326_vm1, %v10863_v37  ;;  %v10871_v37 = vld [vmem:[#allocation4 + $0x127] sm:$0xff] }
 0x62c   : > { %17461 = vmatmul.mubr.msk.f32.gmra.mrb[64].mxu1 %vm326_vm1, %v10864_v45  ;;  %v10872_v45 = vld [vmem:[#allocation4 + $0x12f] sm:$0xff] }
 0x62d   : > { %17463 = vmatprep.mubr.msk.f32.mxu1 %vm326_vm1, %v10865_v31  ;;  %v10873_v31 = vld [vmem:[#allocation4 + $0x137] sm:$0xff] }
 0x630   : > { %17464 = vmatmul.mubr.msk.f32.gmra.mrb[66].mxu1 %vm326_vm1, %v10866_v16  ;;  %v10874_v16 = vld [vmem:[#allocation4 + $0x13f] sm:$0xff] }
 0x631   : > { %17466 = vmatprep.mubr.msk.f32.mxu1 %vm326_vm1, %v10867_v15  ;;  %v10875_v15 = vld [vmem:[#allocation4 + $0x147] sm:$0xff] }
 0x634   : > { %17467 = vmatmul.mubr.msk.f32.gmra.mrb[68].mxu1 %vm326_vm1, %v10868_v56  ;;  %v10876_v56 = vld [vmem:[#allocation4 + $0x14f] sm:$0xff] }
 0x635   : > { %17469 = vmatprep.mubr.msk.f32.mxu1 %vm326_vm1, %v10869_v12  ;;  %v10877_v12 = vld [vmem:[#allocation4 + $0x157] sm:$0xff] }
 0x638   : > { %17470 = vmatmul.mubr.msk.f32.gmra.mrb[70].mxu1 %vm326_vm1, %v10870_v22  ;;  %v10878_v22 = vld [vmem:[#allocation4 + $0x15f] sm:$0xff] }
 0x639   : > { %17472 = vmatprep.mubr.msk.f32.mxu1 %vm326_vm1, %v10871_v37  ;;  %v11309_v37 = vld [vmem:[#allocation4 + $0x28] sm:$0xff] }
 0x63c   : > { %17473 = vmatmul.mubr.msk.f32.gmra.mrb[72].mxu1 %vm326_vm1, %v10872_v45  ;;  %v11310_v45 = vld [vmem:[#allocation4 + $0x30] sm:$0xff] }
 0x63d   : > { %17475 = vmatprep.mubr.msk.f32.mxu1 %vm326_vm1, %v10873_v31  ;;  %v21504_v31 = vld [vmem:[%s21947_s6 + $0xc] sm:$0x3] }
 0x640   : > { %17476 = vmatmul.mubr.msk.f32.gmra.mrb[74].mxu1 %vm326_vm1, %v10874_v16  ;;  %v11311_v16 = vld [vmem:[#allocation4 + $0x38] sm:$0xff] }
 0x641   : > { %17478 = vmatprep.mubr.msk.f32.mxu1 %vm326_vm1, %v10875_v15  ;;  %v11312_v15 = vld [vmem:[#allocation4 + $0x40] sm:$0xff] }
 0x644   : > { %17479 = vmatmul.mubr.msk.f32.gmra.mrb[76].mxu1 %vm326_vm1, %v10876_v56  ;;  %v11313_v56 = vld [vmem:[#allocation4 + $0x48] sm:$0xff] }
 0x645   : > { %17481 = vmatprep.mubr.msk.f32.mxu1 %vm326_vm1, %v10877_v12  ;;  %v11314_v12 = vld [vmem:[#allocation4 + $0x50] sm:$0xff] }
 0x648   : > { %17482 = vmatmul.mubr.msk.f32.gmra.mrb[78].mxu1 %vm326_vm1, %v10878_v22  ;;  %v11315_v22 = vld [vmem:[#allocation4 + $0x58] sm:$0xff] }
 0x649   : > { %17486 = vmatprep.mubr.msk.f32.mxu1 %vm326_vm1, %v11309_v37  ;;  %v11316_v37 = vld [vmem:[#allocation4 + $0x60] sm:$0xff] }
 0x64c   : > { %17487 = vmatmul.mubr.msk.f32.vlgmr.msra.gmra.mrb[40].mxu1 %vm326_vm1, %v11310_v45  ;;  %v11318_v45 = vld [vmem:[#allocation4 + $0x70] sm:$0xff] }
 0x64d   : > { %17547 = vmatpush3.msk.msra.mxu1 %vm754_vm0, %v21455_v63  ;;  %17489 = vmatprep.mubr.msk.f32.mxu1 %vm326_vm1, %v11311_v16  ;;  %v11317_v63 = vld [vmem:[#allocation4 + $0x68] sm:$0xff]  ;;  %v11319_v16 = vld [vmem:[#allocation4 + $0x78] sm:$0xff] }
 0x64e   : > { %17608 = vmatprep.subr.msk.mxu1 %vm754_vm0, %v21504_v31 }
 0x650   : > { %17490 = vmatmul.mubr.msk.f32.gmra.mrb[42].mxu1 %vm326_vm1, %v11312_v15  ;;  %v11320_v15 = vld [vmem:[#allocation4 + $0x80] sm:$0xff] }
 0x651   : > { %17492 = vmatprep.mubr.msk.f32.mxu1 %vm326_vm1, %v11313_v56  ;;  %v11321_v56 = vld [vmem:[#allocation4 + $0x88] sm:$0xff] }
 0x654   : > { %17493 = vmatmul.mubr.msk.f32.gmra.mrb[44].mxu1 %vm326_vm1, %v11314_v12  ;;  %v11322_v12 = vld [vmem:[#allocation4 + $0x90] sm:$0xff] }
 0x655   : > { %17495 = vmatprep.mubr.msk.f32.mxu1 %vm326_vm1, %v11315_v22  ;;  %v11323_v22 = vld [vmem:[#allocation4 + $0x98] sm:$0xff] }
 0x658   : > { %17496 = vmatmul.mubr.msk.f32.gmra.mrb[46].mxu1 %vm326_vm1, %v11316_v37  ;;  %v11324_v37 = vld [vmem:[#allocation4 + $0xa0] sm:$0xff] }
 0x659   : > { %17498 = vmatprep.mubr.msk.f32.mxu1 %vm326_vm1, %v11317_v63  ;;  %v11325_v63 = vld [vmem:[#allocation4 + $0xa8] sm:$0xff] }
 0x65c   : > { %17499 = vmatmul.mubr.msk.f32.gmra.mrb[48].mxu1 %vm326_vm1, %v11318_v45  ;;  %v11326_v45 = vld [vmem:[#allocation4 + $0xb0] sm:$0xff] }
 0x65d   : > { %17501 = vmatprep.mubr.msk.f32.mxu1 %vm326_vm1, %v11319_v16  ;;  %v11327_v16 = vld [vmem:[#allocation4 + $0xb8] sm:$0xff] }
 0x660   : > { %17502 = vmatmul.mubr.msk.f32.gmra.mrb[50].mxu1 %vm326_vm1, %v11320_v15  ;;  %v11328_v15 = vld [vmem:[#allocation4 + $0xc0] sm:$0xff] }
 0x661   : > { %17504 = vmatprep.mubr.msk.f32.mxu1 %vm326_vm1, %v11321_v56  ;;  %v11329_v56 = vld [vmem:[#allocation4 + $0xc8] sm:$0xff] }
 0x664   : > { %17505 = vmatmul.mubr.msk.f32.gmra.mrb[52].mxu1 %vm326_vm1, %v11322_v12  ;;  %v11330_v12 = vld [vmem:[#allocation4 + $0xd0] sm:$0xff] }
 0x665   : > { %17507 = vmatprep.mubr.msk.f32.mxu1 %vm326_vm1, %v11323_v22  ;;  %v11331_v22 = vld [vmem:[#allocation4 + $0xd8] sm:$0xff] }
 0x668   : > { %17508 = vmatmul.mubr.msk.f32.gmra.mrb[54].mxu1 %vm326_vm1, %v11324_v37  ;;  %v11332_v37 = vld [vmem:[#allocation4 + $0xe0] sm:$0xff] }
 0x669   : > { %17510 = vmatprep.mubr.msk.f32.mxu1 %vm326_vm1, %v11325_v63  ;;  %v11333_v63 = vld [vmem:[#allocation4 + $0xe8] sm:$0xff] }
 0x66c   : > { %17511 = vmatmul.mubr.msk.f32.gmra.mrb[56].mxu1 %vm326_vm1, %v11326_v45  ;;  %v11334_v45 = vld [vmem:[#allocation4 + $0xf0] sm:$0xff] }
 0x66d   : > { %17513 = vmatprep.mubr.msk.f32.mxu1 %vm326_vm1, %v11327_v16  ;;  %v11335_v16 = vld [vmem:[#allocation4 + $0xf8] sm:$0xff] }
 0x670   : > { %17514 = vmatmul.mubr.msk.f32.gmra.mrb[58].mxu1 %vm326_vm1, %v11328_v15  ;;  %v11336_v15 = vld [vmem:[#allocation4 + $0x100] sm:$0xff] }
 0x671   : > { %17516 = vmatprep.mubr.msk.f32.mxu1 %vm326_vm1, %v11329_v56  ;;  %v11337_v56 = vld [vmem:[#allocation4 + $0x108] sm:$0xff] }
 0x674   : > { %17517 = vmatmul.mubr.msk.f32.gmra.mrb[60].mxu1 %vm326_vm1, %v11330_v12  ;;  %v11338_v12 = vld [vmem:[#allocation4 + $0x110] sm:$0xff] }
 0x675   : > { %17519 = vmatprep.mubr.msk.f32.mxu1 %vm326_vm1, %v11331_v22  ;;  %v11339_v22 = vld [vmem:[#allocation4 + $0x118] sm:$0xff] }
 0x678   : > { %17520 = vmatmul.mubr.msk.f32.gmra.mrb[62].mxu1 %vm326_vm1, %v11332_v37  ;;  %v11340_v37 = vld [vmem:[#allocation4 + $0x120] sm:$0xff] }
 0x679   : > { %17522 = vmatprep.mubr.msk.f32.mxu1 %vm326_vm1, %v11333_v63  ;;  %v11341_v63 = vld [vmem:[#allocation4 + $0x128] sm:$0xff] }
 0x67c   : > { %17523 = vmatmul.mubr.msk.f32.gmra.mrb[64].mxu1 %vm326_vm1, %v11334_v45  ;;  %v11342_v45 = vld [vmem:[#allocation4 + $0x130] sm:$0xff] }
 0x67d   : > { %17525 = vmatprep.mubr.msk.f32.mxu1 %vm326_vm1, %v11335_v16  ;;  %v11343_v16 = vld [vmem:[#allocation4 + $0x138] sm:$0xff] }
 0x680   : > { %17526 = vmatmul.mubr.msk.f32.gmra.mrb[66].mxu1 %vm326_vm1, %v11336_v15  ;;  %v11344_v15 = vld [vmem:[#allocation4 + $0x140] sm:$0xff] }
 0x681   : > { %17528 = vmatprep.mubr.msk.f32.mxu1 %vm326_vm1, %v11337_v56  ;;  %v11345_v56 = vld [vmem:[#allocation4 + $0x148] sm:$0xff] }
 0x684   : > { %17529 = vmatmul.mubr.msk.f32.gmra.mrb[68].mxu1 %vm326_vm1, %v11338_v12  ;;  %v11346_v12 = vld [vmem:[#allocation4 + $0x150] sm:$0xff] }
 0x685   : > { %17531 = vmatprep.mubr.msk.f32.mxu1 %vm326_vm1, %v11339_v22  ;;  %v11347_v22 = vld [vmem:[#allocation4 + $0x158] sm:$0xff] }
 0x688   : > { %17532 = vmatmul.mubr.msk.f32.gmra.mrb[70].mxu1 %vm326_vm1, %v11340_v37  ;;  %v11348_v37 = vld [vmem:[#allocation4 + $0x160] sm:$0xff] }
 0x689   : > { %17534 = vmatprep.mubr.msk.f32.mxu1 %vm326_vm1, %v11341_v63  ;;  %v11779_v63 = vld [vmem:[#allocation4 + $0x29] sm:$0xff] }
 0x68c   : > { %17535 = vmatmul.mubr.msk.f32.gmra.mrb[72].mxu1 %vm326_vm1, %v11342_v45  ;;  %v11780_v45 = vld [vmem:[#allocation4 + $0x31] sm:$0xff] }
 0x68d   : > { %17537 = vmatprep.mubr.msk.f32.mxu1 %vm326_vm1, %v11343_v16  ;;  %v21553_v16 = vld [vmem:[%s21947_s6 + $0xe] sm:$0x3] }
 0x690   : > { %17538 = vmatmul.mubr.msk.f32.gmra.mrb[74].mxu1 %vm326_vm1, %v11344_v15  ;;  %v11781_v15 = vld [vmem:[#allocation4 + $0x39] sm:$0xff] }
 0x691   : > { %17540 = vmatprep.mubr.msk.f32.mxu1 %vm326_vm1, %v11345_v56  ;;  %v11782_v56 = vld [vmem:[#allocation4 + $0x41] sm:$0xff] }
 0x694   : > { %17541 = vmatmul.mubr.msk.f32.gmra.mrb[76].mxu1 %vm326_vm1, %v11346_v12  ;;  %v11783_v12 = vld [vmem:[#allocation4 + $0x49] sm:$0xff] }
 0x695   : > { %17543 = vmatprep.mubr.msk.f32.mxu1 %vm326_vm1, %v11347_v22  ;;  %v11784_v22 = vld [vmem:[#allocation4 + $0x51] sm:$0xff] }
 0x698   : > { %17544 = vmatmul.mubr.msk.f32.gmra.mrb[78].mxu1 %vm326_vm1, %v11348_v37  ;;  %v11785_v37 = vld [vmem:[#allocation4 + $0x59] sm:$0xff] }
 0x699   : > { %17548 = vmatprep.mubr.msk.f32.mxu1 %vm326_vm1, %v11779_v63  ;;  %v11786_v63 = vld [vmem:[#allocation4 + $0x61] sm:$0xff] }
 0x69c   : > { %17549 = vmatmul.mubr.msk.f32.vlgmr.msra.gmra.mrb[40].mxu1 %vm326_vm1, %v11780_v45  ;;  %v11788_v45 = vld [vmem:[#allocation4 + $0x71] sm:$0xff] }
 0x69d   : > { %17609 = vmatpush3.msk.msra.mxu1 %vm754_vm0, %v21504_v31  ;;  %17551 = vmatprep.mubr.msk.f32.mxu1 %vm326_vm1, %v11781_v15  ;;  %v11787_v31 = vld [vmem:[#allocation4 + $0x69] sm:$0xff]  ;;  %v11789_v15 = vld [vmem:[#allocation4 + $0x79] sm:$0xff] }
 0x69e   : > { %17670 = vmatprep.subr.msk.mxu1 %vm754_vm0, %v21553_v16 }
 0x6a0   : > { %17552 = vmatmul.mubr.msk.f32.gmra.mrb[42].mxu1 %vm326_vm1, %v11782_v56  ;;  %v11790_v56 = vld [vmem:[#allocation4 + $0x81] sm:$0xff] }
 0x6a1   : > { %17554 = vmatprep.mubr.msk.f32.mxu1 %vm326_vm1, %v11783_v12  ;;  %v11791_v12 = vld [vmem:[#allocation4 + $0x89] sm:$0xff] }
 0x6a4   : > { %17555 = vmatmul.mubr.msk.f32.gmra.mrb[44].mxu1 %vm326_vm1, %v11784_v22  ;;  %v11792_v22 = vld [vmem:[#allocation4 + $0x91] sm:$0xff] }
 0x6a5   : > { %17557 = vmatprep.mubr.msk.f32.mxu1 %vm326_vm1, %v11785_v37  ;;  %v11793_v37 = vld [vmem:[#allocation4 + $0x99] sm:$0xff] }
 0x6a8   : > { %17558 = vmatmul.mubr.msk.f32.gmra.mrb[46].mxu1 %vm326_vm1, %v11786_v63  ;;  %v11794_v63 = vld [vmem:[#allocation4 + $0xa1] sm:$0xff] }
 0x6a9   : > { %17560 = vmatprep.mubr.msk.f32.mxu1 %vm326_vm1, %v11787_v31  ;;  %v11795_v31 = vld [vmem:[#allocation4 + $0xa9] sm:$0xff] }
 0x6ac   : > { %17561 = vmatmul.mubr.msk.f32.gmra.mrb[48].mxu1 %vm326_vm1, %v11788_v45  ;;  %v11796_v45 = vld [vmem:[#allocation4 + $0xb1] sm:$0xff] }
 0x6ad   : > { %17563 = vmatprep.mubr.msk.f32.mxu1 %vm326_vm1, %v11789_v15  ;;  %v11797_v15 = vld [vmem:[#allocation4 + $0xb9] sm:$0xff] }
 0x6b0   : > { %17564 = vmatmul.mubr.msk.f32.gmra.mrb[50].mxu1 %vm326_vm1, %v11790_v56  ;;  %v11798_v56 = vld [vmem:[#allocation4 + $0xc1] sm:$0xff] }
 0x6b1   : > { %17566 = vmatprep.mubr.msk.f32.mxu1 %vm326_vm1, %v11791_v12  ;;  %v11799_v12 = vld [vmem:[#allocation4 + $0xc9] sm:$0xff] }
 0x6b4   : > { %17567 = vmatmul.mubr.msk.f32.gmra.mrb[52].mxu1 %vm326_vm1, %v11792_v22  ;;  %v11800_v22 = vld [vmem:[#allocation4 + $0xd1] sm:$0xff] }
 0x6b5   : > { %17569 = vmatprep.mubr.msk.f32.mxu1 %vm326_vm1, %v11793_v37  ;;  %v11801_v37 = vld [vmem:[#allocation4 + $0xd9] sm:$0xff] }
 0x6b8   : > { %17570 = vmatmul.mubr.msk.f32.gmra.mrb[54].mxu1 %vm326_vm1, %v11794_v63  ;;  %v11802_v63 = vld [vmem:[#allocation4 + $0xe1] sm:$0xff] }
 0x6b9   : > { %17572 = vmatprep.mubr.msk.f32.mxu1 %vm326_vm1, %v11795_v31  ;;  %v11803_v31 = vld [vmem:[#allocation4 + $0xe9] sm:$0xff] }
 0x6bc   : > { %17573 = vmatmul.mubr.msk.f32.gmra.mrb[56].mxu1 %vm326_vm1, %v11796_v45  ;;  %v11804_v45 = vld [vmem:[#allocation4 + $0xf1] sm:$0xff] }
 0x6bd   : > { %17575 = vmatprep.mubr.msk.f32.mxu1 %vm326_vm1, %v11797_v15  ;;  %v11805_v15 = vld [vmem:[#allocation4 + $0xf9] sm:$0xff] }
 0x6c0   : > { %17576 = vmatmul.mubr.msk.f32.gmra.mrb[58].mxu1 %vm326_vm1, %v11798_v56  ;;  %v11806_v56 = vld [vmem:[#allocation4 + $0x101] sm:$0xff] }
 0x6c1   : > { %17578 = vmatprep.mubr.msk.f32.mxu1 %vm326_vm1, %v11799_v12  ;;  %v11807_v12 = vld [vmem:[#allocation4 + $0x109] sm:$0xff] }
 0x6c4   : > { %17579 = vmatmul.mubr.msk.f32.gmra.mrb[60].mxu1 %vm326_vm1, %v11800_v22  ;;  %v11808_v22 = vld [vmem:[#allocation4 + $0x111] sm:$0xff] }
 0x6c5   : > { %17581 = vmatprep.mubr.msk.f32.mxu1 %vm326_vm1, %v11801_v37  ;;  %v11809_v37 = vld [vmem:[#allocation4 + $0x119] sm:$0xff] }
 0x6c8   : > { %17582 = vmatmul.mubr.msk.f32.gmra.mrb[62].mxu1 %vm326_vm1, %v11802_v63  ;;  %v11810_v63 = vld [vmem:[#allocation4 + $0x121] sm:$0xff] }
 0x6c9   : > { %17584 = vmatprep.mubr.msk.f32.mxu1 %vm326_vm1, %v11803_v31  ;;  %v11811_v31 = vld [vmem:[#allocation4 + $0x129] sm:$0xff] }
 0x6cc   : > { %17585 = vmatmul.mubr.msk.f32.gmra.mrb[64].mxu1 %vm326_vm1, %v11804_v45  ;;  %v11812_v45 = vld [vmem:[#allocation4 + $0x131] sm:$0xff] }
 0x6cd   : > { %17587 = vmatprep.mubr.msk.f32.mxu1 %vm326_vm1, %v11805_v15  ;;  %v11813_v15 = vld [vmem:[#allocation4 + $0x139] sm:$0xff] }
 0x6d0   : > { %17588 = vmatmul.mubr.msk.f32.gmra.mrb[66].mxu1 %vm326_vm1, %v11806_v56  ;;  %v11814_v56 = vld [vmem:[#allocation4 + $0x141] sm:$0xff] }
 0x6d1   : > { %17590 = vmatprep.mubr.msk.f32.mxu1 %vm326_vm1, %v11807_v12  ;;  %v11815_v12 = vld [vmem:[#allocation4 + $0x149] sm:$0xff] }
 0x6d4   : > { %17591 = vmatmul.mubr.msk.f32.gmra.mrb[68].mxu1 %vm326_vm1, %v11808_v22  ;;  %v11816_v22 = vld [vmem:[#allocation4 + $0x151] sm:$0xff] }
 0x6d5   : > { %17593 = vmatprep.mubr.msk.f32.mxu1 %vm326_vm1, %v11809_v37  ;;  %v11817_v37 = vld [vmem:[#allocation4 + $0x159] sm:$0xff] }
 0x6d8   : > { %17594 = vmatmul.mubr.msk.f32.gmra.mrb[70].mxu1 %vm326_vm1, %v11810_v63  ;;  %v11818_v63 = vld [vmem:[#allocation4 + $0x161] sm:$0xff] }
 0x6d9   : > { %17596 = vmatprep.mubr.msk.f32.mxu1 %vm326_vm1, %v11811_v31  ;;  %v12249_v31 = vld [vmem:[#allocation4 + $0x3b] sm:$0xff] }
 0x6dc   : > { %17597 = vmatmul.mubr.msk.f32.gmra.mrb[72].mxu1 %vm326_vm1, %v11812_v45  ;;  %v12250_v45 = vld [vmem:[#allocation4 + $0x43] sm:$0xff] }
 0x6dd   : > { %17599 = vmatprep.mubr.msk.f32.mxu1 %vm326_vm1, %v11813_v15  ;;  %v21602_v15 = vld [vmem:[%s21947_s6 + $0x10] sm:$0x3] }
 0x6e0   : > { %17600 = vmatmul.mubr.msk.f32.gmra.mrb[74].mxu1 %vm326_vm1, %v11814_v56  ;;  %v12251_v56 = vld [vmem:[#allocation4 + $0x4b] sm:$0xff] }
 0x6e1   : > { %17602 = vmatprep.mubr.msk.f32.mxu1 %vm326_vm1, %v11815_v12  ;;  %v12252_v12 = vld [vmem:[#allocation4 + $0x53] sm:$0xff] }
 0x6e4   : > { %17603 = vmatmul.mubr.msk.f32.gmra.mrb[76].mxu1 %vm326_vm1, %v11816_v22  ;;  %v12253_v22 = vld [vmem:[#allocation4 + $0x5b] sm:$0xff] }
 0x6e5   : > { %17605 = vmatprep.mubr.msk.f32.mxu1 %vm326_vm1, %v11817_v37  ;;  %v12254_v37 = vld [vmem:[#allocation4 + $0x63] sm:$0xff] }
 0x6e8   : > { %17606 = vmatmul.mubr.msk.f32.gmra.mrb[78].mxu1 %vm326_vm1, %v11818_v63  ;;  %v12255_v63 = vld [vmem:[#allocation4 + $0x6b] sm:$0xff] }
 0x6e9   : > { %17610 = vmatprep.mubr.msk.f32.mxu1 %vm326_vm1, %v12249_v31  ;;  %v12256_v31 = vld [vmem:[#allocation4 + $0x73] sm:$0xff] }
 0x6ec   : > { %17611 = vmatmul.mubr.msk.f32.vlgmr.msra.gmra.mrb[40].mxu1 %vm326_vm1, %v12250_v45  ;;  %v12258_v45 = vld [vmem:[#allocation4 + $0x83] sm:$0xff] }
 0x6ed   : > { %17671 = vmatpush3.msk.msra.mxu1 %vm754_vm0, %v21553_v16  ;;  %17613 = vmatprep.mubr.msk.f32.mxu1 %vm326_vm1, %v12251_v56  ;;  %v12257_v16 = vld [vmem:[#allocation4 + $0x7b] sm:$0xff]  ;;  %v12259_v56 = vld [vmem:[#allocation4 + $0x8b] sm:$0xff] }
 0x6ee   : > { %17732 = vmatprep.subr.msk.mxu1 %vm754_vm0, %v21602_v15 }
 0x6f0   : > { %17614 = vmatmul.mubr.msk.f32.gmra.mrb[42].mxu1 %vm326_vm1, %v12252_v12  ;;  %v12260_v12 = vld [vmem:[#allocation4 + $0x93] sm:$0xff] }
 0x6f1   : > { %17616 = vmatprep.mubr.msk.f32.mxu1 %vm326_vm1, %v12253_v22  ;;  %v12261_v22 = vld [vmem:[#allocation4 + $0x9b] sm:$0xff] }
 0x6f4   : > { %17617 = vmatmul.mubr.msk.f32.gmra.mrb[44].mxu1 %vm326_vm1, %v12254_v37  ;;  %v12262_v37 = vld [vmem:[#allocation4 + $0xa3] sm:$0xff] }
 0x6f5   : > { %17619 = vmatprep.mubr.msk.f32.mxu1 %vm326_vm1, %v12255_v63  ;;  %v12263_v63 = vld [vmem:[#allocation4 + $0xab] sm:$0xff] }
 0x6f8   : > { %17620 = vmatmul.mubr.msk.f32.gmra.mrb[46].mxu1 %vm326_vm1, %v12256_v31  ;;  %v12264_v31 = vld [vmem:[#allocation4 + $0xb3] sm:$0xff] }
 0x6f9   : > { %17622 = vmatprep.mubr.msk.f32.mxu1 %vm326_vm1, %v12257_v16  ;;  %v12265_v16 = vld [vmem:[#allocation4 + $0xbb] sm:$0xff] }
 0x6fc   : > { %17623 = vmatmul.mubr.msk.f32.gmra.mrb[48].mxu1 %vm326_vm1, %v12258_v45  ;;  %v12266_v45 = vld [vmem:[#allocation4 + $0xc3] sm:$0xff] }
 0x6fd   : > { %17625 = vmatprep.mubr.msk.f32.mxu1 %vm326_vm1, %v12259_v56  ;;  %v12267_v56 = vld [vmem:[#allocation4 + $0xcb] sm:$0xff] }
 0x700   : > { %17626 = vmatmul.mubr.msk.f32.gmra.mrb[50].mxu1 %vm326_vm1, %v12260_v12  ;;  %v12268_v12 = vld [vmem:[#allocation4 + $0xd3] sm:$0xff] }
 0x701   : > { %17628 = vmatprep.mubr.msk.f32.mxu1 %vm326_vm1, %v12261_v22  ;;  %v12269_v22 = vld [vmem:[#allocation4 + $0xdb] sm:$0xff] }
 0x704   : > { %17629 = vmatmul.mubr.msk.f32.gmra.mrb[52].mxu1 %vm326_vm1, %v12262_v37  ;;  %v12270_v37 = vld [vmem:[#allocation4 + $0xe3] sm:$0xff] }
 0x705   : > { %17631 = vmatprep.mubr.msk.f32.mxu1 %vm326_vm1, %v12263_v63  ;;  %v12271_v63 = vld [vmem:[#allocation4 + $0xeb] sm:$0xff] }
 0x708   : > { %17632 = vmatmul.mubr.msk.f32.gmra.mrb[54].mxu1 %vm326_vm1, %v12264_v31  ;;  %v12272_v31 = vld [vmem:[#allocation4 + $0xf3] sm:$0xff] }
 0x709   : > { %17634 = vmatprep.mubr.msk.f32.mxu1 %vm326_vm1, %v12265_v16  ;;  %v18933_v16 = vld [vmem:[#allocation4 + $0xfb] sm:$0xff] }
 0x70c   : > { %17635 = vmatmul.mubr.msk.f32.gmra.mrb[56].mxu1 %vm326_vm1, %v12266_v45  ;;  %v18934_v45 = vld [vmem:[#allocation4 + $0x103] sm:$0xff] }
 0x70d   : > { %17637 = vmatprep.mubr.msk.f32.mxu1 %vm326_vm1, %v12267_v56  ;;  %v18935_v56 = vld [vmem:[#allocation4 + $0x10b] sm:$0xff] }
 0x710   : > { %17638 = vmatmul.mubr.msk.f32.gmra.mrb[58].mxu1 %vm326_vm1, %v12268_v12 }
 0x711   : > { %17640 = vmatprep.mubr.msk.f32.mxu1 %vm326_vm1, %v12269_v22 }
 0x714   : > { %17641 = vmatmul.mubr.msk.f32.gmra.mrb[60].mxu1 %vm326_vm1, %v12270_v37 }
 0x715   : > { %17643 = vmatprep.mubr.msk.f32.mxu1 %vm326_vm1, %v12271_v63 }
 0x718   : > { %17644 = vmatmul.mubr.msk.f32.gmra.mrb[62].mxu1 %vm326_vm1, %v12272_v31 }
 0x719   : > { %17646 = vmatprep.mubr.msk.f32.mxu1 %vm326_vm1, %v18933_v16 }
 0x71c   : > { %17647 = vmatmul.mubr.msk.f32.gmra.mrb[64].mxu1 %vm326_vm1, %v18934_v45 }
 0x71d   : > { %17649 = vmatprep.mubr.msk.f32.mxu1 %vm326_vm1, %v18935_v56 }
 0x720   : > { %17650 = vmatmul.mubr.msk.f32.gmra.mrb[66].mxu1 %vm326_vm1, %v21104_v26  ;;  %v12284_v26 = vld [vmem:[#allocation4 + $0x153] sm:$0xff] }
 0x721   : > { %17652 = vmatprep.mubr.msk.f32.mxu1 %vm326_vm1, %v21106_v55  ;;  %v12285_v55 = vld [vmem:[#allocation4 + $0x15b] sm:$0xff] }
 0x724   : > { %17653 = vmatmul.mubr.msk.f32.gmra.mrb[68].mxu1 %vm326_vm1, %v21116_v62  ;;  %v12287_v62 = vld [vmem:[#allocation4 + $0x16b] sm:$0xff] }
 0x725   : > { %17655 = vmatprep.mubr.msk.f32.mxu1 %vm326_vm1, %v21118_v17  ;;  %v12286_v17 = vld [vmem:[#allocation4 + $0x163] sm:$0xff] }
 0x728   : > { %17656 = vmatmul.mubr.msk.f32.gmra.mrb[70].mxu1 %vm326_vm1, %v21126_v58  ;;  %v12288_v58 = vld [vmem:[#allocation4 + $0x173] sm:$0xff] }
 0x729   : > { %17658 = vmatprep.mubr.msk.f32.mxu1 %vm326_vm1, %v21128_v46  ;;  %v12754_v46 = vld [vmem:[#allocation4 + $0x154] sm:$0xff] }
 0x72c   : > { %17659 = vmatmul.mubr.msk.f32.gmra.mrb[72].mxu1 %vm326_vm1, %v21135_v34  ;;  %v12755_v34 = vld [vmem:[#allocation4 + $0x15c] sm:$0xff] }
 0x72d   : > { %17661 = vmatprep.mubr.msk.f32.mxu1 %vm326_vm1, %v21137_v60  ;;  %v12757_v60 = vld [vmem:[#allocation4 + $0x16c] sm:$0xff] }
 0x730   : > { %17662 = vmatmul.mubr.msk.f32.gmra.mrb[74].mxu1 %vm326_vm1, %v12284_v26 }
 0x731   : > { %17664 = vmatprep.mubr.msk.f32.mxu1 %vm326_vm1, %v12285_v55 }
 0x734   : > { %17665 = vmatmul.mubr.msk.f32.gmra.mrb[76].mxu1 %vm326_vm1, %v12286_v17 }
 0x735   : > { %17667 = vmatprep.mubr.msk.f32.mxu1 %vm326_vm1, %v12287_v62 }
 0x738   : > { %17668 = vmatmul.mubr.msk.f32.gmra.mrb[78].mxu1 %vm326_vm1, %v12288_v58 }
 0x739   : > { %17672 = vmatprep.mubr.msk.f32.mxu1 %vm326_vm1, %v21157_v4  ;;  %v12756_v4 = vld [vmem:[#allocation4 + $0x164] sm:$0xff] }
 0x73c   : > { %17673 = vmatmul.mubr.msk.f32.vlgmr.msra.gmra.mrb[40].mxu1 %vm326_vm1, %v21161_v0  ;;  %v12758_v0 = vld [vmem:[#allocation4 + $0x174] sm:$0xff] }
 0x73d   : > { %17733 = vmatpush3.msk.msra.mxu1 %vm754_vm0, %v21602_v15  ;;  %17675 = vmatprep.mubr.msk.f32.mxu1 %vm326_vm1, %v21165_v50  ;;  %v22194_v50 = vld [vmem:[#allocation10_spill] sm:$0xff] }
 0x740   : > { %17676 = vmatmul.mubr.msk.f32.gmra.mrb[42].mxu1 %vm326_vm1, %v21169_v9  ;;  %v22195_v9 = vld [vmem:[#allocation11_spill] sm:$0xff] }
 0x741   : > { %17678 = vmatprep.mubr.msk.f32.mxu1 %vm326_vm1, %v21173_v10  ;;  %v22196_v10 = vld [vmem:[#allocation12_spill] sm:$0xff] }
 0x744   : > { %17679 = vmatmul.mubr.msk.f32.gmra.mrb[44].mxu1 %vm326_vm1, %v21177_v59  ;;  %v22197_v59 = vld [vmem:[#allocation13_spill] sm:$0xff] }
 0x745   : > { %17681 = vmatprep.mubr.msk.f32.mxu1 %vm326_vm1, %v21181_v5  ;;  %v22198_v5 = vld [vmem:[#allocation14_spill] sm:$0xff] }
 0x748   : > { %17682 = vmatmul.mubr.msk.f32.gmra.mrb[46].mxu1 %vm326_vm1, %v21185_v18  ;;  %v22199_v18 = vld [vmem:[#allocation15_spill] sm:$0xff] }
 0x749   : > { %17684 = vmatprep.mubr.msk.f32.mxu1 %vm326_vm1, %v21189_v44  ;;  %v22200_v44 = vld [vmem:[#allocation16_spill] sm:$0xff] }
 0x74c   : > { %17685 = vmatmul.mubr.msk.f32.gmra.mrb[48].mxu1 %vm326_vm1, %v21193_v20  ;;  %v22201_v20 = vld [vmem:[#allocation17_spill] sm:$0xff] }
 0x74d   : > { %17687 = vmatprep.mubr.msk.f32.mxu1 %vm326_vm1, %v21197_v11  ;;  %v22202_v11 = vld [vmem:[#allocation18_spill] sm:$0xff] }
 0x750   : > { %17688 = vmatmul.mubr.msk.f32.gmra.mrb[50].mxu1 %vm326_vm1, %v21201_v30  ;;  %v22203_v30 = vld [vmem:[#allocation19_spill] sm:$0xff] }
 0x751   : > { %17690 = vmatprep.mubr.msk.f32.mxu1 %vm326_vm1, %v21205_v29  ;;  %v22204_v29 = vld [vmem:[#allocation20_spill] sm:$0xff] }
 0x754   : > { %17691 = vmatmul.mubr.msk.f32.gmra.mrb[52].mxu1 %vm326_vm1, %v21209_v42  ;;  %v22205_v42 = vld [vmem:[#allocation21_spill] sm:$0xff] }
 0x755   : > { %17693 = vmatprep.mubr.msk.f32.mxu1 %vm326_vm1, %v21213_v49  ;;  %v22206_v49 = vld [vmem:[#allocation22_spill] sm:$0xff] }
 0x758   : > { %17694 = vmatmul.mubr.msk.f32.gmra.mrb[54].mxu1 %vm326_vm1, %v21217_v27  ;;  %v22207_v27 = vld [vmem:[#allocation23_spill] sm:$0xff] }
 0x759   : > { %17696 = vmatprep.mubr.msk.f32.mxu1 %vm326_vm1, %v21221_v19  ;;  %v22208_v19 = vld [vmem:[#allocation24_spill] sm:$0xff] }
 0x75c   : > { %17697 = vmatmul.mubr.msk.f32.gmra.mrb[56].mxu1 %vm326_vm1, %v21225_v47  ;;  %v22209_v47 = vld [vmem:[#allocation25_spill] sm:$0xff] }
 0x75d   : > { %17699 = vmatprep.mubr.msk.f32.mxu1 %vm326_vm1, %v21229_v8  ;;  %v22210_v8 = vld [vmem:[#allocation26_spill] sm:$0xff] }
 0x760   : > { %17700 = vmatmul.mubr.msk.f32.gmra.mrb[58].mxu1 %vm326_vm1, %v21233_v39  ;;  %v22211_v39 = vld [vmem:[#allocation27_spill] sm:$0xff] }
 0x761   : > { %17702 = vmatprep.mubr.msk.f32.mxu1 %vm326_vm1, %v21237_v35  ;;  %v22212_v35 = vld [vmem:[#allocation28_spill] sm:$0xff] }
 0x764   : > { %17703 = vmatmul.mubr.msk.f32.gmra.mrb[60].mxu1 %vm326_vm1, %v21241_v36  ;;  %v22213_v36 = vld [vmem:[#allocation29_spill] sm:$0xff] }
 0x765   : > { %17705 = vmatprep.mubr.msk.f32.mxu1 %vm326_vm1, %v21245_v1  ;;  %v22214_v1 = vld [vmem:[#allocation30_spill] sm:$0xff] }
 0x768   : > { %17706 = vmatmul.mubr.msk.f32.gmra.mrb[62].mxu1 %vm326_vm1, %v21249_v25  ;;  %v22215_v25 = vld [vmem:[#allocation31_spill] sm:$0xff] }
 0x769   : > { %17708 = vmatprep.mubr.msk.f32.mxu1 %vm326_vm1, %v21253_v7  ;;  %v22216_v7 = vld [vmem:[#allocation32_spill] sm:$0xff] }
 0x76c   : > { %17709 = vmatmul.mubr.msk.f32.gmra.mrb[64].mxu1 %vm326_vm1, %v21257_v53  ;;  %v13224_v53 = vld [vmem:[#allocation4 + $0x155] sm:$0xff] }
 0x76d   : > { %17711 = vmatprep.mubr.msk.f32.mxu1 %vm326_vm1, %v21261_v24  ;;  %v13225_v24 = vld [vmem:[#allocation4 + $0x15d] sm:$0xff] }
 0x770   : > { %17712 = vmatmul.mubr.msk.f32.gmra.mrb[66].mxu1 %vm326_vm1, %v21265_v2  ;;  %v13227_v2 = vld [vmem:[#allocation4 + $0x16d] sm:$0xff] }
 0x771   : > { %17714 = vmatprep.mubr.msk.f32.mxu1 %vm326_vm1, %v21269_v52  ;;  %v13226_v52 = vld [vmem:[#allocation4 + $0x165] sm:$0xff] }
 0x774   : > { %17715 = vmatmul.mubr.msk.f32.gmra.mrb[68].mxu1 %vm326_vm1, %v21273_v33  ;;  %v13228_v33 = vld [vmem:[#allocation4 + $0x175] sm:$0xff] }
 0x775   : > { %17717 = vmatprep.mubr.msk.f32.mxu1 %vm326_vm1, %v21277_v3  ;;  %v21811_v3 = vld [vmem:[%s21948_s7] ss:$0 sm:$0xff] }
 0x778   : > { %17718 = vmatmul.mubr.msk.f32.gmra.mrb[70].mxu1 %vm326_vm1, %v21281_v32 }
 0x779   : > { %17720 = vmatprep.mubr.msk.f32.mxu1 %vm326_vm1, %v21285_v51 }
 0x77c   : > { %17721 = vmatmul.mubr.msk.f32.gmra.mrb[72].mxu1 %vm326_vm1, %v21289_v21 }
 0x77d   : > { %17723 = vmatprep.mubr.msk.f32.mxu1 %vm326_vm1, %v21293_v14 }
 0x780   : > { %17724 = vmatmul.mubr.msk.f32.gmra.mrb[74].mxu1 %vm326_vm1, %v12754_v46 }
 0x781   : > { %17726 = vmatprep.mubr.msk.f32.mxu1 %vm326_vm1, %v12755_v34 }
 0x784   : > { %17727 = vmatmul.mubr.msk.f32.gmra.mrb[76].mxu1 %vm326_vm1, %v12756_v4 }
 0x785   : > { %17729 = vmatprep.mubr.msk.f32.mxu1 %vm326_vm1, %v12757_v60 }
 0x788   : > { %17730 = vmatmul.mubr.msk.f32.gmra.mrb[78].mxu1 %vm326_vm1, %v12758_v0 }
 0x789   : > { %17734 = vmatprep.mubr.msk.f32.mxu1 %vm326_vm1, %v21311_v23 }
 0x78c   : > { %17735 = vmatmul.mubr.msk.f32.vlgmr.msra.gmra.mrb[40].mxu1 %vm326_vm1, %v21315_v6 }
 0x78d   : > { %17737 = vmatprep.mubr.msk.f32.mxu1 %vm326_vm1, %v21319_v38 }
 0x790   : > { %17738 = vmatmul.mubr.msk.f32.gmra.mrb[42].mxu1 %vm326_vm1, %v21323_v40 }
 0x791   : > { %17740 = vmatprep.mubr.msk.f32.mxu1 %vm326_vm1, %v21327_v57 }
 0x794   : > { %17741 = vmatmul.mubr.msk.f32.gmra.mrb[44].mxu1 %vm326_vm1, %v21331_v43 }
 0x795   : > { %17743 = vmatprep.mubr.msk.f32.mxu1 %vm326_vm1, %v21335_v13 }
 0x798   : > { %17744 = vmatmul.mubr.msk.f32.gmra.mrb[46].mxu1 %vm326_vm1, %v21339_v61 }
 0x799   : > { %17746 = vmatprep.mubr.msk.f32.mxu1 %vm326_vm1, %v21343_v54 }
 0x79c   : > { %17747 = vmatmul.mubr.msk.f32.gmra.mrb[48].mxu1 %vm326_vm1, %v21347_v41 }
 0x79d   : > { %17749 = vmatprep.mubr.msk.f32.mxu1 %vm326_vm1, %v21351_v48 }
 0x7a0   : > { %17750 = vmatmul.mubr.msk.f32.gmra.mrb[50].mxu1 %vm326_vm1, %v21355_v28 }
 0x7a1   : > { %17752 = vmatprep.mubr.msk.f32.mxu1 %vm326_vm1, %v22194_v50 }
 0x7a4   : > { %17753 = vmatmul.mubr.msk.f32.gmra.mrb[52].mxu1 %vm326_vm1, %v22195_v9 }
 0x7a5   : > { %17755 = vmatprep.mubr.msk.f32.mxu1 %vm326_vm1, %v22196_v10 }
 0x7a8   : > { %17756 = vmatmul.mubr.msk.f32.gmra.mrb[54].mxu1 %vm326_vm1, %v22197_v59 }
 0x7a9   : > { %17758 = vmatprep.mubr.msk.f32.mxu1 %vm326_vm1, %v22198_v5 }
 0x7ac   : > { %17759 = vmatmul.mubr.msk.f32.gmra.mrb[56].mxu1 %vm326_vm1, %v22199_v18 }
 0x7ad   : > { %17761 = vmatprep.mubr.msk.f32.mxu1 %vm326_vm1, %v22200_v44 }
 0x7b0   : > { %17762 = vmatmul.mubr.msk.f32.gmra.mrb[58].mxu1 %vm326_vm1, %v22201_v20 }
 0x7b1   : > { %17764 = vmatprep.mubr.msk.f32.mxu1 %vm326_vm1, %v22202_v11 }
 0x7b4   : > { %17765 = vmatmul.mubr.msk.f32.gmra.mrb[60].mxu1 %vm326_vm1, %v22203_v30 }
 0x7b5   : > { %17767 = vmatprep.mubr.msk.f32.mxu1 %vm326_vm1, %v22204_v29 }
 0x7b8   : > { %17768 = vmatmul.mubr.msk.f32.gmra.mrb[62].mxu1 %vm326_vm1, %v22205_v42 }
 0x7b9   : > { %17770 = vmatprep.mubr.msk.f32.mxu1 %vm326_vm1, %v22206_v49 }
 0x7bc   : > { %17771 = vmatmul.mubr.msk.f32.gmra.mrb[64].mxu1 %vm326_vm1, %v22207_v27 }
 0x7bd   : > { %17773 = vmatprep.mubr.msk.f32.mxu1 %vm326_vm1, %v22208_v19 }
 0x7c0   : > { %17774 = vmatmul.mubr.msk.f32.gmra.mrb[66].mxu1 %vm326_vm1, %v22209_v47 }
 0x7c1   : > { %17776 = vmatprep.mubr.msk.f32.mxu1 %vm326_vm1, %v22210_v8 }
 0x7c4   : > { %17777 = vmatmul.mubr.msk.f32.gmra.mrb[68].mxu1 %vm326_vm1, %v22211_v39 }
 0x7c5   : > { %17779 = vmatprep.mubr.msk.f32.mxu1 %vm326_vm1, %v22212_v35 }
 0x7c8   : > { %17780 = vmatmul.mubr.msk.f32.gmra.mrb[70].mxu1 %vm326_vm1, %v22213_v36 }
 0x7c9   : > { %17782 = vmatprep.mubr.msk.f32.mxu1 %vm326_vm1, %v22214_v1 }
 0x7cc   : > { %17783 = vmatmul.mubr.msk.f32.gmra.mrb[72].mxu1 %vm326_vm1, %v22215_v25 }
 0x7cd   : > { %17785 = vmatprep.mubr.msk.f32.mxu1 %vm326_vm1, %v22216_v7 }
 0x7d0   : > { %17786 = vmatmul.mubr.msk.f32.gmra.mrb[74].mxu1 %vm326_vm1, %v13224_v53 }
 0x7d1   : > { %17788 = vmatprep.mubr.msk.f32.mxu1 %vm326_vm1, %v13225_v24 }
 0x7d4   : > { %17789 = vmatmul.mubr.msk.f32.gmra.mrb[76].mxu1 %vm326_vm1, %v13226_v52 }
 0x7d5   : > { %17791 = vmatprep.mubr.msk.f32.mxu1 %vm326_vm1, %v13227_v2 }
 0x7d8   : > { %17792 = vmatmul.mubr.msk.f32.gmra.mrb[78].mxu1 %vm326_vm1, %v13228_v33 }
 0x85f   : > { %v17736_v32 = vpop.f32.mrb[40].mxu1 }
 0x860   : > { %v17876_v51 = vadd.f32 %v17736_v32, %v21811_v3  ;;  %v13420_v21 = vpop.f32.mrb[41].mxu1 }
 0x861   : > { %v17877_v14 = vadd.f32 %v21811_v3, %v13420_v21 }
 0x862   : > { %v13660_v23 = vmax.f32 %v17876_v51, 0.0 }
 0x863   : > { %v13659_v6 = vmax.f32 %v17877_v14, 0.0  ;;  %v17739_v38 = vpop.f32.mrb[42].mxu1 }
 0x864   : > { %13700 = vst.msk [vmem:[%s21817_s18 + $0x8] sm:$0xff] %vm326_vm1, %v13660_v23  ;;  %v17878_v40 = vadd.f32 %v17739_v38, %v21811_v3  ;;  %v13430_v57 = vpop.f32.mrb[43].mxu1 }
 0x865   : > { %13699 = vst.msk [vmem:[%s21817_s18] sm:$0xff] %vm326_vm1, %v13659_v6  ;;  %v17879_v43 = vadd.f32 %v21811_v3, %v13430_v57 }
 0x866   : > { %v13662_v13 = vmax.f32 %v17878_v40, 0.0 }
 0x867   : > { %v13661_v61 = vmax.f32 %v17879_v43, 0.0  ;;  %v17742_v54 = vpop.f32.mrb[44].mxu1 }
 0x868   : > { %13702 = vst.msk [vmem:[%s21817_s18 + $0x18] sm:$0xff] %vm326_vm1, %v13662_v13  ;;  %v17880_v41 = vadd.f32 %v17742_v54, %v21811_v3  ;;  %v13440_v48 = vpop.f32.mrb[45].mxu1 }
 0x869   : > { %13701 = vst.msk [vmem:[%s21817_s18 + $0x10] sm:$0xff] %vm326_vm1, %v13661_v61  ;;  %v17881_v28 = vadd.f32 %v21811_v3, %v13440_v48 }
 0x86a   : > { %v13664_v15 = vmax.f32 %v17880_v41, 0.0 }
 0x86b   : > { %v13663_v12 = vmax.f32 %v17881_v28, 0.0  ;;  %v17745_v22 = vpop.f32.mrb[46].mxu1 }
 0x86c   : > { %13704 = vst.msk [vmem:[%s21817_s18 + $0x28] sm:$0xff] %vm326_vm1, %v13664_v15  ;;  %v17882_v37 = vadd.f32 %v17745_v22, %v21811_v3  ;;  %v13450_v63 = vpop.f32.mrb[47].mxu1 }
 0x86d   : > { %13703 = vst.msk [vmem:[%s21817_s18 + $0x20] sm:$0xff] %vm326_vm1, %v13663_v12  ;;  %v17883_v31 = vadd.f32 %v21811_v3, %v13450_v63 }
 0x86e   : > { %v13666_v16 = vmax.f32 %v17882_v37, 0.0 }
 0x86f   : > { %v13665_v45 = vmax.f32 %v17883_v31, 0.0  ;;  %v17748_v56 = vpop.f32.mrb[48].mxu1 }
 0x870   : > { %13706 = vst.msk [vmem:[%s21817_s18 + $0x38] sm:$0xff] %vm326_vm1, %v13666_v16  ;;  %v17884_v26 = vadd.f32 %v17748_v56, %v21811_v3  ;;  %v13460_v55 = vpop.f32.mrb[49].mxu1 }
 0x871   : > { %13705 = vst.msk [vmem:[%s21817_s18 + $0x30] sm:$0xff] %vm326_vm1, %v13665_v45  ;;  %v17885_v62 = vadd.f32 %v21811_v3, %v13460_v55 }
 0x872   : > { %v13668_v17 = vmax.f32 %v17884_v26, 0.0 }
 0x873   : > { %v13667_v58 = vmax.f32 %v17885_v62, 0.0  ;;  %v17751_v46 = vpop.f32.mrb[50].mxu1 }
 0x874   : > { %13708 = vst.msk [vmem:[%s21817_s18 + $0x48] sm:$0xff] %vm326_vm1, %v13668_v17  ;;  %v17886_v34 = vadd.f32 %v17751_v46, %v21811_v3  ;;  %v13470_v60 = vpop.f32.mrb[51].mxu1 }
 0x875   : > { %13707 = vst.msk [vmem:[%s21817_s18 + $0x40] sm:$0xff] %vm326_vm1, %v13667_v58  ;;  %v17887_v4 = vadd.f32 %v21811_v3, %v13470_v60 }
 0x876   : > { %v13670_v0 = vmax.f32 %v17886_v34, 0.0 }
 0x877   : > { %v13669_v50 = vmax.f32 %v17887_v4, 0.0  ;;  %v17754_v9 = vpop.f32.mrb[52].mxu1 }
 0x878   : > { %13710 = vst.msk [vmem:[%s21817_s18 + $0x58] sm:$0xff] %vm326_vm1, %v13670_v0  ;;  %v17888_v10 = vadd.f32 %v17754_v9, %v21811_v3  ;;  %v13480_v59 = vpop.f32.mrb[53].mxu1 }
 0x879   : > { %13709 = vst.msk [vmem:[%s21817_s18 + $0x50] sm:$0xff] %vm326_vm1, %v13669_v50  ;;  %v17889_v5 = vadd.f32 %v21811_v3, %v13480_v59 }
 0x87a   : > { %v13672_v18 = vmax.f32 %v17888_v10, 0.0 }
 0x87b   : > { %v13671_v44 = vmax.f32 %v17889_v5, 0.0  ;;  %v17757_v20 = vpop.f32.mrb[54].mxu1 }
 0x87c   : > { %13712 = vst.msk [vmem:[%s21817_s18 + $0x68] sm:$0xff] %vm326_vm1, %v13672_v18  ;;  %v17890_v11 = vadd.f32 %v17757_v20, %v21811_v3  ;;  %v13490_v30 = vpop.f32.mrb[55].mxu1 }
 0x87d   : > { %13711 = vst.msk [vmem:[%s21817_s18 + $0x60] sm:$0xff] %vm326_vm1, %v13671_v44  ;;  %v17891_v29 = vadd.f32 %v21811_v3, %v13490_v30 }
 0x87e   : > { %v13674_v42 = vmax.f32 %v17890_v11, 0.0 }
 0x87f   : > { %v13673_v49 = vmax.f32 %v17891_v29, 0.0  ;;  %v17760_v27 = vpop.f32.mrb[56].mxu1 }
 0x880   : > { %13714 = vst.msk [vmem:[%s21817_s18 + $0x78] sm:$0xff] %vm326_vm1, %v13674_v42  ;;  %v17892_v19 = vadd.f32 %v17760_v27, %v21811_v3  ;;  %v13500_v47 = vpop.f32.mrb[57].mxu1 }
 0x881   : > { %13713 = vst.msk [vmem:[%s21817_s18 + $0x70] sm:$0xff] %vm326_vm1, %v13673_v49  ;;  %v17893_v8 = vadd.f32 %v21811_v3, %v13500_v47 }
 0x882   : > { %v13676_v39 = vmax.f32 %v17892_v19, 0.0 }
 0x883   : > { %v13675_v35 = vmax.f32 %v17893_v8, 0.0  ;;  %v17763_v36 = vpop.f32.mrb[58].mxu1 }
 0x884   : > { %13716 = vst.msk [vmem:[%s21817_s18 + $0x88] sm:$0xff] %vm326_vm1, %v13676_v39  ;;  %v17894_v1 = vadd.f32 %v17763_v36, %v21811_v3  ;;  %v13510_v25 = vpop.f32.mrb[59].mxu1 }
 0x885   : > { %13715 = vst.msk [vmem:[%s21817_s18 + $0x80] sm:$0xff] %vm326_vm1, %v13675_v35  ;;  %v17895_v7 = vadd.f32 %v21811_v3, %v13510_v25 }
 0x886   : > { %v13678_v53 = vmax.f32 %v17894_v1, 0.0 }
 0x887   : > { %v13677_v24 = vmax.f32 %v17895_v7, 0.0  ;;  %v17766_v2 = vpop.f32.mrb[60].mxu1 }
 0x888   : > { %13718 = vst.msk [vmem:[%s21817_s18 + $0x98] sm:$0xff] %vm326_vm1, %v13678_v53  ;;  %v17896_v52 = vadd.f32 %v17766_v2, %v21811_v3  ;;  %v13520_v33 = vpop.f32.mrb[61].mxu1 }
 0x889   : > { %13717 = vst.msk [vmem:[%s21817_s18 + $0x90] sm:$0xff] %vm326_vm1, %v13677_v24  ;;  %v17897_v32 = vadd.f32 %v21811_v3, %v13520_v33 }
 0x88a   : > { %v13680_v51 = vmax.f32 %v17896_v52, 0.0 }
 0x88b   : > { %v13679_v21 = vmax.f32 %v17897_v32, 0.0  ;;  %v17769_v14 = vpop.f32.mrb[62].mxu1 }
 0x88c   : > { %13720 = vst.msk [vmem:[%s21817_s18 + $0xa8] sm:$0xff] %vm326_vm1, %v13680_v51  ;;  %v17898_v23 = vadd.f32 %v17769_v14, %v21811_v3  ;;  %v13530_v6 = vpop.f32.mrb[63].mxu1 }
 0x88d   : > { %13719 = vst.msk [vmem:[%s21817_s18 + $0xa0] sm:$0xff] %vm326_vm1, %v13679_v21  ;;  %v17899_v38 = vadd.f32 %v21811_v3, %v13530_v6 }
 0x88e   : > { %v13682_v40 = vmax.f32 %v17898_v23, 0.0 }
 0x88f   : > { %v13681_v57 = vmax.f32 %v17899_v38, 0.0  ;;  %v17772_v43 = vpop.f32.mrb[64].mxu1 }
 0x890   : > { %13722 = vst.msk [vmem:[%s21817_s18 + $0xb8] sm:$0xff] %vm326_vm1, %v13682_v40  ;;  %v17900_v13 = vadd.f32 %v17772_v43, %v21811_v3  ;;  %v13540_v61 = vpop.f32.mrb[65].mxu1 }
 0x891   : > { %13721 = vst.msk [vmem:[%s21817_s18 + $0xb0] sm:$0xff] %vm326_vm1, %v13681_v57  ;;  %v17901_v54 = vadd.f32 %v21811_v3, %v13540_v61 }
 0x892   : > { %v13684_v41 = vmax.f32 %v17900_v13, 0.0 }
 0x893   : > { %v13683_v48 = vmax.f32 %v17901_v54, 0.0  ;;  %v17775_v28 = vpop.f32.mrb[66].mxu1 }
 0x894   : > { %13724 = vst.msk [vmem:[%s21817_s18 + $0xc8] sm:$0xff] %vm326_vm1, %v13684_v41  ;;  %v17902_v15 = vadd.f32 %v17775_v28, %v21811_v3  ;;  %v13550_v12 = vpop.f32.mrb[67].mxu1 }
 0x895   : > { %13723 = vst.msk [vmem:[%s21817_s18 + $0xc0] sm:$0xff] %vm326_vm1, %v13683_v48  ;;  %v17903_v22 = vadd.f32 %v21811_v3, %v13550_v12 }
 0x896   : > { %v13686_v37 = vmax.f32 %v17902_v15, 0.0 }
 0x897   : > { %v13685_v63 = vmax.f32 %v17903_v22, 0.0  ;;  %v17778_v31 = vpop.f32.mrb[68].mxu1 }
 0x898   : > { %13726 = vst.msk [vmem:[%s21817_s18 + $0xd8] sm:$0xff] %vm326_vm1, %v13686_v37  ;;  %v17904_v16 = vadd.f32 %v17778_v31, %v21811_v3  ;;  %v13560_v45 = vpop.f32.mrb[69].mxu1 }
 0x899   : > { %13725 = vst.msk [vmem:[%s21817_s18 + $0xd0] sm:$0xff] %vm326_vm1, %v13685_v63  ;;  %v17905_v56 = vadd.f32 %v21811_v3, %v13560_v45 }
 0x89a   : > { %v13688_v26 = vmax.f32 %v17904_v16, 0.0 }
 0x89b   : > { %v13687_v55 = vmax.f32 %v17905_v56, 0.0  ;;  %v17781_v62 = vpop.f32.mrb[70].mxu1 }
 0x89c   : > { %13728 = vst.msk [vmem:[%s21817_s18 + $0xe8] sm:$0xff] %vm326_vm1, %v13688_v26  ;;  %v17906_v17 = vadd.f32 %v17781_v62, %v21811_v3  ;;  %v13570_v58 = vpop.f32.mrb[71].mxu1 }
 0x89d   : > { %13727 = vst.msk [vmem:[%s21817_s18 + $0xe0] sm:$0xff] %vm326_vm1, %v13687_v55  ;;  %v17907_v46 = vadd.f32 %v21811_v3, %v13570_v58 }
 0x89e   : > { %v13690_v34 = vmax.f32 %v17906_v17, 0.0 }
 0x89f   : > { %v13689_v60 = vmax.f32 %v17907_v46, 0.0  ;;  %v17784_v4 = vpop.f32.mrb[72].mxu1 }
 0x8a0   : > { %13730 = vst.msk [vmem:[%s21817_s18 + $0xf8] sm:$0xff] %vm326_vm1, %v13690_v34  ;;  %v17908_v0 = vadd.f32 %v17784_v4, %v21811_v3  ;;  %v13580_v50 = vpop.f32.mrb[73].mxu1 }
 0x8a1   : > { %13729 = vst.msk [vmem:[%s21817_s18 + $0xf0] sm:$0xff] %vm326_vm1, %v13689_v60  ;;  %v17909_v9 = vadd.f32 %v21811_v3, %v13580_v50 }
 0x8a2   : > { %v13692_v10 = vmax.f32 %v17908_v0, 0.0 }
 0x8a3   : > { %v13691_v59 = vmax.f32 %v17909_v9, 0.0  ;;  %v17787_v5 = vpop.f32.mrb[74].mxu1 }
 0x8a4   : > { %13732 = vst.msk [vmem:[%s21817_s18 + $0x108] sm:$0xff] %vm326_vm1, %v13692_v10  ;;  %v17910_v18 = vadd.f32 %v17787_v5, %v21811_v3  ;;  %v13590_v44 = vpop.f32.mrb[75].mxu1 }
 0x8a5   : > { %13731 = vst.msk [vmem:[%s21817_s18 + $0x100] sm:$0xff] %vm326_vm1, %v13691_v59  ;;  %v17911_v20 = vadd.f32 %v21811_v3, %v13590_v44 }
 0x8a6   : > { %v13694_v11 = vmax.f32 %v17910_v18, 0.0 }
 0x8a7   : > { %v13693_v30 = vmax.f32 %v17911_v20, 0.0  ;;  %v17790_v29 = vpop.f32.mrb[76].mxu1 }
 0x8a8   : > { %13734 = vst.msk [vmem:[%s21817_s18 + $0x118] sm:$0xff] %vm326_vm1, %v13694_v11  ;;  %v17912_v42 = vadd.f32 %v17790_v29, %v21811_v3  ;;  %v13600_v49 = vpop.f32.mrb[77].mxu1 }
 0x8a9   : > { %13733 = vst.msk [vmem:[%s21817_s18 + $0x110] sm:$0xff] %vm326_vm1, %v13693_v30  ;;  %v17913_v27 = vadd.f32 %v21811_v3, %v13600_v49 }
 0x8aa   : > { %v13696_v19 = vmax.f32 %v17912_v42, 0.0 }
 0x8ab   : > { %v13695_v47 = vmax.f32 %v17913_v27, 0.0  ;;  %v17793_v8 = vpop.f32.mrb[78].mxu1 }
 0x8ac   : > { %13736 = vst.msk [vmem:[%s21817_s18 + $0x128] sm:$0xff] %vm326_vm1, %v13696_v19  ;;  %v17914_v39 = vadd.f32 %v17793_v8, %v21811_v3  ;;  %v13610_v35 = vpop.f32.mrb[79].mxu1 }
 0x8ad   : > { %13735 = vst.msk [vmem:[%s21817_s18 + $0x120] sm:$0xff] %vm326_vm1, %v13695_v47  ;;  %v17915_v36 = vadd.f32 %v21811_v3, %v13610_v35 }
 0x8ae   : > { %v13698_v1 = vmax.f32 %v17914_v39, 0.0 }
 0x8af   : > { %v13697_v25 = vmax.f32 %v17915_v36, 0.0 }
 0x8b0   : > { %13738 = vst.msk [vmem:[%s21817_s18 + $0x138] sm:$0xff] %vm326_vm1, %v13698_v1 }
 0x8b1   : > { %13737 = vst.msk [vmem:[%s21817_s18 + $0x130] sm:$0xff] %vm326_vm1, %v13697_v25 }
 0x8b2 PF: > { %s18_s27 = sadd.s32 1, %s18942_s27  }
 0x8b3   : > { %p15_p4 = scmp.ge.s32.totalorder %s18_s27, 4  }
 0x8b5   :  { %17 = sbr.rel (!%p15_p4) target bundleno = 1 (0x1), region = 139 }

</bundles_post_ra>
